<compile_context>
chip_gen: v7x
topology: tpu7x:2x2x1
jax: 0.10.0
libtpu: 0.0.40
codegen_flags: <defaults>
</compile_context>

<pallas_src>
import jax
import jax.numpy as jnp
from jax.experimental import pallas as pl
from jax.experimental.pallas import tpu as pltpu


# Left halo width in the W (sublane) dim of the padding scratch. Using 8 keeps
# the interior store sublane-aligned; only 1 column/row of zero halo is
# actually consumed by the 3x3 taps.
_HALO = 8


# ---------------------------------------------------------------------------
# In-kernel helper: 3x3 'SAME' conv from the pre-written padded scratch
# ---------------------------------------------------------------------------
def _conv3x3_from_pad(pad_ref, cin, H, W, w_ref):
    """One im2col matmul over the first `cin` channels of the padded scratch.

    pad_ref: (H+2, W+2*_HALO, Cmax) f32 VMEM scratch; halo is zero, the
             interior [1:H+1, _HALO:_HALO+W, :cin] holds the current image.
    w_ref:   (9*cin, cout) bf16 ref (BN scale pre-folded in the wrapper).
    returns: (H*W, cout) f32.
    """
    xp = pad_ref[...]
    # im2col: 9 shifted windows concatenated along K -> (H*W, 9*cin), then one
    # MXU contraction (bf16 operands, f32 accumulate). K ordering is
    # (dy, dx, channel), matching w_hwio.reshape(9*cin, cout).
    patches = jnp.concatenate(
        [xp[dy:dy + H, _HALO - 1 + dx:_HALO - 1 + dx + W, :cin]
         .reshape(H * W, cin)
         for dy in range(3) for dx in range(3)],
        axis=-1).astype(jnp.bfloat16)
    return jnp.dot(patches, w_ref[...], preferred_element_type=jnp.float32)


# ---------------------------------------------------------------------------
# Fused kernel: (conv_low ++ conv_high) + att_layer + attention merge
# ---------------------------------------------------------------------------
def _att_merge_fused_kernel(xl_ref, xh_ref, wlh_ref, wa1_ref, wa2_ref, b_ref,
                            o_ref, pad_ref):
    H, W, cout = o_ref.shape[1], o_ref.shape[2], o_ref.shape[3]
    cl, ch = xl_ref.shape[3], xh_ref.shape[3]
    chalf = wa1_ref.shape[1]
    c2 = 2 * cout

    # Zero the padding scratch once per grid step; every conv only rewrites
    # the interior, so the halo stays zero for all three fused convs.
    pad_ref[...] = jnp.zeros_like(pad_ref)

    # ---- conv_low + conv_high fused into one matmul --------------------- #
    # Write both inputs side by side (the channel concat is free); a single
    # im2col + one matmul against the block-diagonal weight produces
    # lowhigh = [conv_low(x_low) | conv_high(x_high)]  in one MXU pass.
    pad_ref[1:H + 1, _HALO:_HALO + W, :cl] = xl_ref[0]
    pad_ref[1:H + 1, _HALO:_HALO + W, cl:cl + ch] = xh_ref[0]
    lowhigh = _conv3x3_from_pad(pad_ref, cl + ch, H, W, wlh_ref)
    lowhigh = jnp.maximum(lowhigh + b_ref[0:1, :c2], 0.0)       # (H*W, 2*cout)

    # ---- att_layer conv1 (2*cout -> cout//2) + BN + ReLU ----------------- #
    # Dropout(p=0.2) is identity at inference time.
    pad_ref[1:H + 1, _HALO:_HALO + W, :c2] = lowhigh.reshape(H, W, c2)
    a = _conv3x3_from_pad(pad_ref, c2, H, W, wa1_ref) + b_ref[1:2, :chalf]
    a = jnp.maximum(a, 0.0)                                      # (H*W, cout//2)

    # ---- att_layer conv2 (-> 1 channel, with bias) + sigmoid ------------- #
    pad_ref[1:H + 1, _HALO:_HALO + W, :chalf] = a.reshape(H, W, chalf)
    ca = jax.nn.sigmoid(
        _conv3x3_from_pad(pad_ref, chalf, H, W, wa2_ref) + b_ref[2:3, 0:1])

    # ---- x_out = low * ca + high * (1 - ca) ------------------------------ #
    low = lowhigh[:, :cout]
    high = lowhigh[:, cout:]
    out = low * ca + high * (1.0 - ca)                           # (H*W, cout)
    o_ref[...] = out.reshape(1, H, W, cout).astype(o_ref.dtype)


# ---------------------------------------------------------------------------
# Wrapper: parameter folding + pallas_call
# ---------------------------------------------------------------------------
@jax.jit
def att_merge_deconv_forward(params, x_low_nhwc, x_high_nhwc):
    N, H, W, cin_low = x_low_nhwc.shape
    cin_high = x_high_nhwc.shape[-1]
    cout = params["w_low"].shape[-1]
    chalf = params["w_att1"].shape[-1]
    c2 = 2 * cout

    s_lo, b_lo = params["bn_low"]
    s_hi, b_hi = params["bn_high"]
    s_a1, b_a1 = params["bn_att1"]

    # Block-diagonal fused weight for [conv_low | conv_high], BN scale folded.
    w_lo = params["w_low"] * s_lo.reshape(1, 1, 1, -1)            # (3,3,cl,cout)
    w_hi = params["w_high"] * s_hi.reshape(1, 1, 1, -1)           # (3,3,ch,cout)
    w_lh = jnp.zeros((3, 3, cin_low + cin_high, c2), jnp.float32)
    w_lh = w_lh.at[:, :, :cin_low, :cout].set(w_lo)
    w_lh = w_lh.at[:, :, cin_low:, cout:].set(w_hi)
    w_lh = w_lh.reshape(9 * (cin_low + cin_high), c2).astype(jnp.bfloat16)

    w_a1 = (params["w_att1"] * s_a1.reshape(1, 1, 1, -1))
    w_a1 = w_a1.reshape(9 * c2, chalf).astype(jnp.bfloat16)
    w_a2 = params["w_att2"].reshape(9 * chalf, 1).astype(jnp.bfloat16)

    # Pack the tiny per-channel biases into one (3, nb) f32 operand.
    nb = max(c2, chalf, 1)
    biases = jnp.zeros((3, nb), jnp.float32)
    biases = biases.at[0, :cout].set(b_lo)
    biases = biases.at[0, cout:c2].set(b_hi)
    biases = biases.at[1, :chalf].set(b_a1)
    biases = biases.at[2, 0].set(params["b_att2"][0])

    cmax = max(cin_low + cin_high, c2, chalf)
    return pl.pallas_call(
        _att_merge_fused_kernel,
        out_shape=jax.ShapeDtypeStruct((N, H, W, cout), jnp.float32),
        grid=(N,),
        in_specs=[
            pl.BlockSpec((1, H, W, cin_low), lambda n: (n, 0, 0, 0)),
            pl.BlockSpec((1, H, W, cin_high), lambda n: (n, 0, 0, 0)),
            pl.BlockSpec((9 * (cin_low + cin_high), c2), lambda n: (0, 0)),
            pl.BlockSpec((9 * c2, chalf), lambda n: (0, 0)),
            pl.BlockSpec((9 * chalf, 1), lambda n: (0, 0)),
            pl.BlockSpec((3, nb), lambda n: (0, 0)),
        ],
        out_specs=pl.BlockSpec((1, H, W, cout), lambda n: (n, 0, 0, 0)),
        scratch_shapes=[
            pltpu.VMEM((H + 2, W + 2 * _HALO, cmax), jnp.float32)],
        compiler_params=pltpu.CompilerParams(
            dimension_semantics=("parallel",)),
    )(x_low_nhwc, x_high_nhwc, w_lh, w_a1, w_a2, biases)


# ---------------------------------------------------------------------------
# Parameter construction (deterministic, synthetic)
# ---------------------------------------------------------------------------
def fold_bn(gamma, beta, mean, var, eps=1e-5):
    scale = gamma / jnp.sqrt(var + eps)
    bias = beta - mean * scale
    return scale, bias


def make_params(key, cin_low, cin_high, cout):
    ks = jax.random.split(key, 12)
    p = {}
    # conv_low: conv3x3 (no bias) + BN + ReLU
    p["w_low"] = 0.1 * jax.random.normal(ks[0], (3, 3, cin_low, cout), jnp.float32)
    p["bn_low"] = fold_bn(
        0.5 + jax.random.uniform(ks[1], (cout,)),
        0.1 * jax.random.normal(ks[2], (cout,)),
        0.1 * jax.random.normal(ks[3], (cout,)),
        0.5 + jax.random.uniform(ks[4], (cout,)))
    # conv_high (scale_factor == 1 branch): conv3x3 (no bias) + BN + ReLU
    p["w_high"] = 0.1 * jax.random.normal(ks[5], (3, 3, cin_high, cout), jnp.float32)
    p["bn_high"] = fold_bn(
        0.5 + jax.random.uniform(ks[6], (cout,)),
        0.1 * jax.random.normal(ks[7], (cout,)),
        0.1 * jax.random.normal(ks[8], (cout,)),
        0.5 + jax.random.uniform(ks[9], (cout,)))
    # att_layer: conv3x3_bn_relu(2*cout -> cout//2) ; conv3x3(cout//2 -> 1, bias) ; sigmoid
    p["w_att1"] = 0.1 * jax.random.normal(ks[10], (3, 3, 2 * cout, cout // 2), jnp.float32)
    p["bn_att1"] = fold_bn(
        jnp.ones((cout // 2,)), jnp.zeros((cout // 2,)),
        jnp.zeros((cout // 2,)), jnp.ones((cout // 2,)))
    p["w_att2"] = 0.1 * jax.random.normal(ks[11], (3, 3, cout // 2, 1), jnp.float32)
    p["b_att2"] = jnp.array([0.05], jnp.float32)
    return p


# ---------------------------------------------------------------------------
# Pure-JAX reference (f32, lax.conv)
# ---------------------------------------------------------------------------
def _ref_conv(x, w, scale, bias, relu=False, sigmoid=False):
    y = jax.lax.conv_general_dilated(
        x, w, window_strides=(1, 1), padding="SAME",
        dimension_numbers=("NHWC", "HWIO", "NHWC"),
        precision=jax.lax.Precision.HIGHEST)
    y = y * scale.reshape(1, 1, 1, -1) + bias.reshape(1, 1, 1, -1)
    if relu:
        y = jnp.maximum(y, 0.0)
    if sigmoid:
        y = jax.nn.sigmoid(y)
    return y


def reference_forward(params, x_low_nhwc, x_high_nhwc):
    lo = _ref_conv(x_low_nhwc, params["w_low"], *params["bn_low"], relu=True)
    hi = _ref_conv(x_high_nhwc, params["w_high"], *params["bn_high"], relu=True)
    m = jnp.concatenate([lo, hi], axis=-1)
    a = _ref_conv(m, params["w_att1"], *params["bn_att1"], relu=True)
    ca = _ref_conv(a, params["w_att2"], jnp.ones((1,), jnp.float32),
                   params["b_att2"], sigmoid=True)
    return lo * ca + hi * (1.0 - ca)


# ---------------------------------------------------------------------------
if __name__ == "__main__":
    N, H, W = 2, 16, 16
    cin_low, cin_high, cout, scale_factor = 4, 6, 8, 1

    key = jax.random.PRNGKey(0)
    k_xl, k_xh, k_p = jax.random.split(key, 3)

    # PyTorch-style NCHW inputs
    x_low_nchw = jax.random.normal(k_xl, (N, cin_low, H, W), jnp.float32)
    x_high_nchw = jax.random.normal(k_xh, (N, cin_high, H, W), jnp.float32)

    # glue: NCHW -> NHWC for the kernel
    x_low = jnp.transpose(x_low_nchw, (0, 2, 3, 1))
    x_high = jnp.transpose(x_high_nchw, (0, 2, 3, 1))

    params = make_params(k_p, cin_low, cin_high, cout)

    out = jax.block_until_ready(att_merge_deconv_forward(params, x_low, x_high))
    ref = jax.block_until_ready(reference_forward(params, x_low, x_high))

    assert out.shape == (N, H, W, cout)
    # Tolerance is widened vs the f32 lax.conv reference because the kernel's
    # matmul operands are bf16 (accumulation stays f32).
    assert jnp.allclose(out, ref, rtol=5e-2, atol=5e-2), (
        float(jnp.max(jnp.abs(out - ref))))

    print("KERNEL_OK")
</pallas_src>

<mosaic_0001>
module attributes {stable_mosaic.version = 11 : i64} {
  func.func @_att_merge_fused_kernel(%arg0: i32, %arg1: memref<1x16x16x4xf32, #tpu.memory_space<vmem>>, %arg2: memref<1x16x16x6xf32, #tpu.memory_space<vmem>>, %arg3: memref<90x16xbf16, #tpu.memory_space<vmem>>, %arg4: memref<144x4xbf16, #tpu.memory_space<vmem>>, %arg5: memref<36x1xbf16, #tpu.memory_space<vmem>>, %arg6: memref<3x16xf32, #tpu.memory_space<vmem>>, %arg7: memref<1x16x16x8xf32, #tpu.memory_space<vmem>>, %arg8: memref<18x32x16xf32, #tpu.memory_space<vmem>>) attributes {dimension_semantics = [#tpu.dimension_semantics<parallel>], iteration_bounds = array<i64: 2>, scalar_prefetch = 0 : i64, scratch_operands = 1 : i64, tpu.core_type = #tpu.core_type<tc>, window_params = [{transform_indices = @transform_0, window_bounds = array<i64: 1, 16, 16, 4>}, {transform_indices = @transform_1, window_bounds = array<i64: 1, 16, 16, 6>}, {pipeline_mode = #tpu.pipeline_mode<synchronous>, transform_indices = @transform_2, window_bounds = array<i64: 90, 16>}, {pipeline_mode = #tpu.pipeline_mode<synchronous>, transform_indices = @transform_3, window_bounds = array<i64: 144, 4>}, {pipeline_mode = #tpu.pipeline_mode<synchronous>, transform_indices = @transform_4, window_bounds = array<i64: 36, 1>}, {pipeline_mode = #tpu.pipeline_mode<synchronous>, transform_indices = @transform_5, window_bounds = array<i64: 3, 16>}, {transform_indices = @transform_6, window_bounds = array<i64: 1, 16, 16, 8>}]} {
    %cst = arith.constant 0.000000e+00 : f32
    %0 = vector.broadcast %cst : f32 to vector<18x32x16xf32>
    %c0 = arith.constant 0 : index
    %c0_0 = arith.constant 0 : index
    %c0_1 = arith.constant 0 : index
    %1 = vector.load %arg8[%c0, %c0_0, %c0_1] : memref<18x32x16xf32, #tpu.memory_space<vmem>>, vector<18x32x16xf32>
    tpu.vector_store %arg8[%c0, %c0_0, %c0_1], %0 {strides = array<i32>} : memref<18x32x16xf32, #tpu.memory_space<vmem>>, vector<18x32x16xf32>,
    %c0_2 = arith.constant 0 : index
    %c0_3 = arith.constant 0 : index
    %c0_4 = arith.constant 0 : index
    %c0_5 = arith.constant 0 : index
    %2 = vector.load %arg1[%c0_2, %c0_3, %c0_4, %c0_5] : memref<1x16x16x4xf32, #tpu.memory_space<vmem>>, vector<1x16x16x4xf32>
    %3 = vector.shape_cast %2 : vector<1x16x16x4xf32> to vector<16x16x4xf32>
    %c1 = arith.constant 1 : index
    %c8 = arith.constant 8 : index
    %c0_6 = arith.constant 0 : index
    %4 = vector.load %arg8[%c1, %c8, %c0_6] : memref<18x32x16xf32, #tpu.memory_space<vmem>>, vector<16x16x4xf32>
    tpu.vector_store %arg8[%c1, %c8, %c0_6], %3 {strides = array<i32>} : memref<18x32x16xf32, #tpu.memory_space<vmem>>, vector<16x16x4xf32>,
    %c0_7 = arith.constant 0 : index
    %c0_8 = arith.constant 0 : index
    %c0_9 = arith.constant 0 : index
    %c0_10 = arith.constant 0 : index
    %5 = vector.load %arg2[%c0_7, %c0_8, %c0_9, %c0_10] : memref<1x16x16x6xf32, #tpu.memory_space<vmem>>, vector<1x16x16x6xf32>
    %6 = vector.shape_cast %5 : vector<1x16x16x6xf32> to vector<16x16x6xf32>
    %c1_11 = arith.constant 1 : index
    %c8_12 = arith.constant 8 : index
    %c4 = arith.constant 4 : index
    %7 = vector.load %arg8[%c1_11, %c8_12, %c4] : memref<18x32x16xf32, #tpu.memory_space<vmem>>, vector<16x16x6xf32>
    tpu.vector_store %arg8[%c1_11, %c8_12, %c4], %6 {strides = array<i32>} : memref<18x32x16xf32, #tpu.memory_space<vmem>>, vector<16x16x6xf32>,
    %c0_13 = arith.constant 0 : index
    %c0_14 = arith.constant 0 : index
    %c0_15 = arith.constant 0 : index
    %8 = vector.load %arg8[%c0_13, %c0_14, %c0_15] : memref<18x32x16xf32, #tpu.memory_space<vmem>>, vector<18x32x16xf32>
    %9 = vector.extract_strided_slice %8 {offsets = [0, 7, 0], sizes = [16, 16, 10], strides = [1, 1, 1]} : vector<18x32x16xf32> to vector<16x16x10xf32>
    %10 = vector.shape_cast %9 : vector<16x16x10xf32> to vector<256x10xf32>
    %11 = vector.extract_strided_slice %8 {offsets = [0, 8, 0], sizes = [16, 16, 10], strides = [1, 1, 1]} : vector<18x32x16xf32> to vector<16x16x10xf32>
    %12 = vector.shape_cast %11 : vector<16x16x10xf32> to vector<256x10xf32>
    %13 = vector.extract_strided_slice %8 {offsets = [0, 9, 0], sizes = [16, 16, 10], strides = [1, 1, 1]} : vector<18x32x16xf32> to vector<16x16x10xf32>
    %14 = vector.shape_cast %13 : vector<16x16x10xf32> to vector<256x10xf32>
    %15 = vector.extract_strided_slice %8 {offsets = [1, 7, 0], sizes = [16, 16, 10], strides = [1, 1, 1]} : vector<18x32x16xf32> to vector<16x16x10xf32>
    %16 = vector.shape_cast %15 : vector<16x16x10xf32> to vector<256x10xf32>
    %17 = vector.extract_strided_slice %8 {offsets = [1, 8, 0], sizes = [16, 16, 10], strides = [1, 1, 1]} : vector<18x32x16xf32> to vector<16x16x10xf32>
    %18 = vector.shape_cast %17 : vector<16x16x10xf32> to vector<256x10xf32>
    %19 = vector.extract_strided_slice %8 {offsets = [1, 9, 0], sizes = [16, 16, 10], strides = [1, 1, 1]} : vector<18x32x16xf32> to vector<16x16x10xf32>
    %20 = vector.shape_cast %19 : vector<16x16x10xf32> to vector<256x10xf32>
    %21 = vector.extract_strided_slice %8 {offsets = [2, 7, 0], sizes = [16, 16, 10], strides = [1, 1, 1]} : vector<18x32x16xf32> to vector<16x16x10xf32>
    %22 = vector.shape_cast %21 : vector<16x16x10xf32> to vector<256x10xf32>
    %23 = vector.extract_strided_slice %8 {offsets = [2, 8, 0], sizes = [16, 16, 10], strides = [1, 1, 1]} : vector<18x32x16xf32> to vector<16x16x10xf32>
    %24 = vector.shape_cast %23 : vector<16x16x10xf32> to vector<256x10xf32>
    %25 = vector.extract_strided_slice %8 {offsets = [2, 9, 0], sizes = [16, 16, 10], strides = [1, 1, 1]} : vector<18x32x16xf32> to vector<16x16x10xf32>
    %26 = vector.shape_cast %25 : vector<16x16x10xf32> to vector<256x10xf32>
    %27 = tpu.concatenate %10, %12, %14, %16, %18, %20, %22, %24, %26 in 1 : vector<256x10xf32>, vector<256x10xf32>, vector<256x10xf32>, vector<256x10xf32>, vector<256x10xf32>, vector<256x10xf32>, vector<256x10xf32>, vector<256x10xf32>, vector<256x10xf32> -> vector<256x90xf32>
    %28 = arith.truncf %27 : vector<256x90xf32> to vector<256x90xbf16>
    %c0_16 = arith.constant 0 : index
    %c0_17 = arith.constant 0 : index
    %29 = vector.load %arg3[%c0_16, %c0_17] : memref<90x16xbf16, #tpu.memory_space<vmem>>, vector<90x16xbf16>
    %cst_18 = arith.constant dense<0.000000e+00> : vector<256x16xf32>
    %30 = tpu.matmul %28, %29, %cst_18 {dimension_numbers = #tpu.dot_dimension_numbers<[1], [0], [0], [1], [0, 0, 1, 1], [], []>} : vector<256x90xbf16>, vector<90x16xbf16>, vector<256x16xf32> -> vector<256x16xf32>
    %c0_19 = arith.constant 0 : index
    %c0_20 = arith.constant 0 : index
    %31 = vector.load %arg6[%c0_19, %c0_20] : memref<3x16xf32, #tpu.memory_space<vmem>>, vector<1x16xf32>
    %32 = vector.broadcast %31 : vector<1x16xf32> to vector<256x16xf32>
    %33 = arith.addf %30, %32 : vector<256x16xf32>
    %cst_21 = arith.constant 0.000000e+00 : f32
    %34 = vector.broadcast %cst_21 : f32 to vector<256x16xf32>
    %35 = arith.maximumf %33, %34 : vector<256x16xf32>
    %36 = vector.shape_cast %35 : vector<256x16xf32> to vector<16x16x16xf32>
    %c1_22 = arith.constant 1 : index
    %c8_23 = arith.constant 8 : index
    %c0_24 = arith.constant 0 : index
    %37 = vector.load %arg8[%c1_22, %c8_23, %c0_24] : memref<18x32x16xf32, #tpu.memory_space<vmem>>, vector<16x16x16xf32>
    tpu.vector_store %arg8[%c1_22, %c8_23, %c0_24], %36 {strides = array<i32>} : memref<18x32x16xf32, #tpu.memory_space<vmem>>, vector<16x16x16xf32>,
    %c0_25 = arith.constant 0 : index
    %c0_26 = arith.constant 0 : index
    %c0_27 = arith.constant 0 : index
    %38 = vector.load %arg8[%c0_25, %c0_26, %c0_27] : memref<18x32x16xf32, #tpu.memory_space<vmem>>, vector<18x32x16xf32>
    %39 = vector.extract_strided_slice %38 {offsets = [0, 7, 0], sizes = [16, 16, 16], strides = [1, 1, 1]} : vector<18x32x16xf32> to vector<16x16x16xf32>
    %40 = vector.shape_cast %39 : vector<16x16x16xf32> to vector<256x16xf32>
    %41 = vector.extract_strided_slice %38 {offsets = [0, 8, 0], sizes = [16, 16, 16], strides = [1, 1, 1]} : vector<18x32x16xf32> to vector<16x16x16xf32>
    %42 = vector.shape_cast %41 : vector<16x16x16xf32> to vector<256x16xf32>
    %43 = vector.extract_strided_slice %38 {offsets = [0, 9, 0], sizes = [16, 16, 16], strides = [1, 1, 1]} : vector<18x32x16xf32> to vector<16x16x16xf32>
    %44 = vector.shape_cast %43 : vector<16x16x16xf32> to vector<256x16xf32>
    %45 = vector.extract_strided_slice %38 {offsets = [1, 7, 0], sizes = [16, 16, 16], strides = [1, 1, 1]} : vector<18x32x16xf32> to vector<16x16x16xf32>
    %46 = vector.shape_cast %45 : vector<16x16x16xf32> to vector<256x16xf32>
    %47 = vector.extract_strided_slice %38 {offsets = [1, 8, 0], sizes = [16, 16, 16], strides = [1, 1, 1]} : vector<18x32x16xf32> to vector<16x16x16xf32>
    %48 = vector.shape_cast %47 : vector<16x16x16xf32> to vector<256x16xf32>
    %49 = vector.extract_strided_slice %38 {offsets = [1, 9, 0], sizes = [16, 16, 16], strides = [1, 1, 1]} : vector<18x32x16xf32> to vector<16x16x16xf32>
    %50 = vector.shape_cast %49 : vector<16x16x16xf32> to vector<256x16xf32>
    %51 = vector.extract_strided_slice %38 {offsets = [2, 7, 0], sizes = [16, 16, 16], strides = [1, 1, 1]} : vector<18x32x16xf32> to vector<16x16x16xf32>
    %52 = vector.shape_cast %51 : vector<16x16x16xf32> to vector<256x16xf32>
    %53 = vector.extract_strided_slice %38 {offsets = [2, 8, 0], sizes = [16, 16, 16], strides = [1, 1, 1]} : vector<18x32x16xf32> to vector<16x16x16xf32>
    %54 = vector.shape_cast %53 : vector<16x16x16xf32> to vector<256x16xf32>
    %55 = vector.extract_strided_slice %38 {offsets = [2, 9, 0], sizes = [16, 16, 16], strides = [1, 1, 1]} : vector<18x32x16xf32> to vector<16x16x16xf32>
    %56 = vector.shape_cast %55 : vector<16x16x16xf32> to vector<256x16xf32>
    %57 = tpu.concatenate %40, %42, %44, %46, %48, %50, %52, %54, %56 in 1 : vector<256x16xf32>, vector<256x16xf32>, vector<256x16xf32>, vector<256x16xf32>, vector<256x16xf32>, vector<256x16xf32>, vector<256x16xf32>, vector<256x16xf32>, vector<256x16xf32> -> vector<256x144xf32>
    %58 = arith.truncf %57 : vector<256x144xf32> to vector<256x144xbf16>
    %c0_28 = arith.constant 0 : index
    %c0_29 = arith.constant 0 : index
    %59 = vector.load %arg4[%c0_28, %c0_29] : memref<144x4xbf16, #tpu.memory_space<vmem>>, vector<144x4xbf16>
    %cst_30 = arith.constant dense<0.000000e+00> : vector<256x4xf32>
    %60 = tpu.matmul %58, %59, %cst_30 {dimension_numbers = #tpu.dot_dimension_numbers<[1], [0], [0], [1], [0, 0, 1, 1], [], []>} : vector<256x144xbf16>, vector<144x4xbf16>, vector<256x4xf32> -> vector<256x4xf32>
    %c1_31 = arith.constant 1 : index
    %c0_32 = arith.constant 0 : index
    %61 = vector.load %arg6[%c1_31, %c0_32] : memref<3x16xf32, #tpu.memory_space<vmem>>, vector<1x4xf32>
    %62 = vector.broadcast %61 : vector<1x4xf32> to vector<256x4xf32>
    %63 = arith.addf %60, %62 : vector<256x4xf32>
    %cst_33 = arith.constant 0.000000e+00 : f32
    %64 = vector.broadcast %cst_33 : f32 to vector<256x4xf32>
    %65 = arith.maximumf %63, %64 : vector<256x4xf32>
    %66 = vector.shape_cast %65 : vector<256x4xf32> to vector<16x16x4xf32>
    %c1_34 = arith.constant 1 : index
    %c8_35 = arith.constant 8 : index
    %c0_36 = arith.constant 0 : index
    %67 = vector.load %arg8[%c1_34, %c8_35, %c0_36] : memref<18x32x16xf32, #tpu.memory_space<vmem>>, vector<16x16x4xf32>
    tpu.vector_store %arg8[%c1_34, %c8_35, %c0_36], %66 {strides = array<i32>} : memref<18x32x16xf32, #tpu.memory_space<vmem>>, vector<16x16x4xf32>,
    %c0_37 = arith.constant 0 : index
    %c0_38 = arith.constant 0 : index
    %c0_39 = arith.constant 0 : index
    %68 = vector.load %arg8[%c0_37, %c0_38, %c0_39] : memref<18x32x16xf32, #tpu.memory_space<vmem>>, vector<18x32x16xf32>
    %69 = vector.extract_strided_slice %68 {offsets = [0, 7, 0], sizes = [16, 16, 4], strides = [1, 1, 1]} : vector<18x32x16xf32> to vector<16x16x4xf32>
    %70 = vector.shape_cast %69 : vector<16x16x4xf32> to vector<256x4xf32>
    %71 = vector.extract_strided_slice %68 {offsets = [0, 8, 0], sizes = [16, 16, 4], strides = [1, 1, 1]} : vector<18x32x16xf32> to vector<16x16x4xf32>
    %72 = vector.shape_cast %71 : vector<16x16x4xf32> to vector<256x4xf32>
    %73 = vector.extract_strided_slice %68 {offsets = [0, 9, 0], sizes = [16, 16, 4], strides = [1, 1, 1]} : vector<18x32x16xf32> to vector<16x16x4xf32>
    %74 = vector.shape_cast %73 : vector<16x16x4xf32> to vector<256x4xf32>
    %75 = vector.extract_strided_slice %68 {offsets = [1, 7, 0], sizes = [16, 16, 4], strides = [1, 1, 1]} : vector<18x32x16xf32> to vector<16x16x4xf32>
    %76 = vector.shape_cast %75 : vector<16x16x4xf32> to vector<256x4xf32>
    %77 = vector.extract_strided_slice %68 {offsets = [1, 8, 0], sizes = [16, 16, 4], strides = [1, 1, 1]} : vector<18x32x16xf32> to vector<16x16x4xf32>
    %78 = vector.shape_cast %77 : vector<16x16x4xf32> to vector<256x4xf32>
    %79 = vector.extract_strided_slice %68 {offsets = [1, 9, 0], sizes = [16, 16, 4], strides = [1, 1, 1]} : vector<18x32x16xf32> to vector<16x16x4xf32>
    %80 = vector.shape_cast %79 : vector<16x16x4xf32> to vector<256x4xf32>
    %81 = vector.extract_strided_slice %68 {offsets = [2, 7, 0], sizes = [16, 16, 4], strides = [1, 1, 1]} : vector<18x32x16xf32> to vector<16x16x4xf32>
    %82 = vector.shape_cast %81 : vector<16x16x4xf32> to vector<256x4xf32>
    %83 = vector.extract_strided_slice %68 {offsets = [2, 8, 0], sizes = [16, 16, 4], strides = [1, 1, 1]} : vector<18x32x16xf32> to vector<16x16x4xf32>
    %84 = vector.shape_cast %83 : vector<16x16x4xf32> to vector<256x4xf32>
    %85 = vector.extract_strided_slice %68 {offsets = [2, 9, 0], sizes = [16, 16, 4], strides = [1, 1, 1]} : vector<18x32x16xf32> to vector<16x16x4xf32>
    %86 = vector.shape_cast %85 : vector<16x16x4xf32> to vector<256x4xf32>
    %87 = tpu.concatenate %70, %72, %74, %76, %78, %80, %82, %84, %86 in 1 : vector<256x4xf32>, vector<256x4xf32>, vector<256x4xf32>, vector<256x4xf32>, vector<256x4xf32>, vector<256x4xf32>, vector<256x4xf32>, vector<256x4xf32>, vector<256x4xf32> -> vector<256x36xf32>
    %88 = arith.truncf %87 : vector<256x36xf32> to vector<256x36xbf16>
    %c0_40 = arith.constant 0 : index
    %c0_41 = arith.constant 0 : index
    %89 = vector.load %arg5[%c0_40, %c0_41] : memref<36x1xbf16, #tpu.memory_space<vmem>>, vector<36x1xbf16>
    %cst_42 = arith.constant dense<0.000000e+00> : vector<256x1xf32>
    %90 = tpu.matmul %88, %89, %cst_42 {dimension_numbers = #tpu.dot_dimension_numbers<[1], [0], [0], [1], [0, 0, 1, 1], [], []>} : vector<256x36xbf16>, vector<36x1xbf16>, vector<256x1xf32> -> vector<256x1xf32>
    %c2 = arith.constant 2 : index
    %c0_43 = arith.constant 0 : index
    %91 = vector.load %arg6[%c2, %c0_43] : memref<3x16xf32, #tpu.memory_space<vmem>>, vector<1x1xf32>
    %92 = vector.broadcast %91 : vector<1x1xf32> to vector<256x1xf32>
    %93 = arith.addf %90, %92 : vector<256x1xf32>
    %94 = arith.negf %93 : vector<256x1xf32>
    %95 = math.exp %94 : vector<256x1xf32>
    %cst_44 = arith.constant 1.000000e+00 : f32
    %96 = vector.broadcast %cst_44 : f32 to vector<256x1xf32>
    %97 = arith.addf %96, %95 : vector<256x1xf32>
    %98 = arith.divf %96, %97 : vector<256x1xf32>
    %99 = vector.extract_strided_slice %35 {offsets = [0, 0], sizes = [256, 8], strides = [1, 1]} : vector<256x16xf32> to vector<256x8xf32>
    %100 = vector.extract_strided_slice %35 {offsets = [0, 8], sizes = [256, 8], strides = [1, 1]} : vector<256x16xf32> to vector<256x8xf32>
    %101 = vector.broadcast %98 : vector<256x1xf32> to vector<256x8xf32>
    %102 = arith.mulf %99, %101 : vector<256x8xf32>
    %cst_45 = arith.constant 1.000000e+00 : f32
    %103 = vector.broadcast %cst_45 : f32 to vector<256x1xf32>
    %104 = arith.subf %103, %98 : vector<256x1xf32>
    %105 = vector.broadcast %104 : vector<256x1xf32> to vector<256x8xf32>
    %106 = arith.mulf %100, %105 : vector<256x8xf32>
    %107 = arith.addf %102, %106 : vector<256x8xf32>
    %108 = vector.shape_cast %107 : vector<256x8xf32> to vector<1x16x16x8xf32>
    %c0_46 = arith.constant 0 : index
    %c0_47 = arith.constant 0 : index
    %c0_48 = arith.constant 0 : index
    %c0_49 = arith.constant 0 : index
    %109 = vector.load %arg7[%c0_46, %c0_47, %c0_48, %c0_49] : memref<1x16x16x8xf32, #tpu.memory_space<vmem>>, vector<1x16x16x8xf32>
    tpu.vector_store %arg7[%c0_46, %c0_47, %c0_48, %c0_49], %108 {strides = array<i32>} : memref<1x16x16x8xf32, #tpu.memory_space<vmem>>, vector<1x16x16x8xf32>,
    return
  }
  func.func @transform_0(%arg0: i32) -> (i32, i32, i32, i32) {
    %c0_i32 = arith.constant 0 : i32
    %c0_i32_0 = arith.constant 0 : i32
    %c0_i32_1 = arith.constant 0 : i32
    %c0_i32_2 = arith.constant 0 : i32
    return %arg0, %c0_i32, %c0_i32_0, %c0_i32_1 : i32, i32, i32, i32
  }
  func.func @transform_1(%arg0: i32) -> (i32, i32, i32, i32) {
    %c0_i32 = arith.constant 0 : i32
    %c0_i32_0 = arith.constant 0 : i32
    %c0_i32_1 = arith.constant 0 : i32
    %c0_i32_2 = arith.constant 0 : i32
    return %arg0, %c0_i32, %c0_i32_0, %c0_i32_1 : i32, i32, i32, i32
  }
  func.func @transform_2(%arg0: i32) -> (i32, i32) {
    %c0_i32 = arith.constant 0 : i32
    %c0_i32_0 = arith.constant 0 : i32
    %c0_i32_1 = arith.constant 0 : i32
    return %c0_i32, %c0_i32_0 : i32, i32
  }
  func.func @transform_3(%arg0: i32) -> (i32, i32) {
    %c0_i32 = arith.constant 0 : i32
    %c0_i32_0 = arith.constant 0 : i32
    %c0_i32_1 = arith.constant 0 : i32
    return %c0_i32, %c0_i32_0 : i32, i32
  }
  func.func @transform_4(%arg0: i32) -> (i32, i32) {
    %c0_i32 = arith.constant 0 : i32
    %c0_i32_0 = arith.constant 0 : i32
    %c0_i32_1 = arith.constant 0 : i32
    return %c0_i32, %c0_i32_0 : i32, i32
  }
  func.func @transform_5(%arg0: i32) -> (i32, i32) {
    %c0_i32 = arith.constant 0 : i32
    %c0_i32_0 = arith.constant 0 : i32
    %c0_i32_1 = arith.constant 0 : i32
    return %c0_i32, %c0_i32_0 : i32, i32
  }
  func.func @transform_6(%arg0: i32) -> (i32, i32, i32, i32) {
    %c0_i32 = arith.constant 0 : i32
    %c0_i32_0 = arith.constant 0 : i32
    %c0_i32_1 = arith.constant 0 : i32
    %c0_i32_2 = arith.constant 0 : i32
    return %arg0, %c0_i32, %c0_i32_0, %c0_i32_1 : i32, i32, i32, i32
  }
}

</mosaic_0001>

<bundles_post_ra>
// kernel: att_merge_deconv_forward.1
= control target key start
LH: loop header
LB: loop body
LE: loop exit
PB: predicated region body
PF: predicated region fallthrough
CT: control target
= control target key end

     0   :  { %s8852_s21 = smov 0   ;;  %s13739_s0 = inlined_call_operand.vmem [shape: f32[2,16,16,4], index: 0, kind: input, shape index: {}]   ;;  %s13740_s1 = inlined_call_operand.vmem [shape: f32[2,16,16,6], index: 1, kind: input, shape index: {}]   ;;  %s13741_s2 = inlined_call_operand.vmem [shape: bf16[90,16], index: 2, kind: input, shape index: {}]   ;;  %s13742_s3 = inlined_call_operand.vmem [shape: bf16[144,4], index: 3, kind: input, shape index: {}]   ;;  %s13743_s4 = inlined_call_operand.vmem [shape: bf16[36,1], index: 4, kind: input, shape index: {}]   ;;  %s13744_s5 = inlined_call_operand.vmem [shape: f32[3,16], index: 5, kind: input, shape index: {}]   ;;  %s13745_s6 = inlined_call_operand.vmem [shape: f32[2,16,16,8], index: 6, kind: output, shape index: {}]  }
   0x1 LB: > { %s6518_s22 = sadd.s32 4294967295, %s8793_s21   ;;  %p6522_p0 = scmp.ge.s32.totalorder %s8793_s21, 1  ;;  %s8793_s21 = sphi %s8852_s21, %s16_s21  }
   0x2   : > { %p222_p1 = scmp.lt.s32.totalorder %s8793_s21, 3 }
   0x4   : > { %p223_p2 = pnand %p6522_p0, %p222_p1 }
   0x6   : > { %226 = sbr.rel (%p223_p2) target bundleno = 2001 (0x7d1), region = 44 }
   0xd   : > { %p8862_p3 = scmp.lt.s32.totalorder %s6518_s22, 1  ;;  %vm273_vm0 = vcmask 130048   ;;  %v8795_v0 = vmov 0.0   ;;  %s8796_s28 = smov 4   ;;  %vm379_vm1 = vcmask 31744   ;;  %vm854_vm2 = vcmask 1046528  }
   0xe   : > { %283 = vst.msk [vmem:[#allocation2 + $0x48] sm:$0xff] %vm273_vm0, %v8795_v0  ;;  %274 = vst.msk [vmem:[#allocation2] sm:$0xff] %vm273_vm0, %v8795_v0  ;;  %s8797_s8 = smov 10   ;;  %s8798_s9 = smov 20   ;;  %vm725_vm3 = vcmask 1040384   ;;  %vm572_vm4 = vcmask 80928  }
   0xf   : > { %275 = vst.msk [vmem:[#allocation2 + $0x8] sm:$0xff] %vm273_vm0, %v8795_v0  ;;  %276 = vst.msk [vmem:[#allocation2 + $0x10] sm:$0xff] %vm273_vm0, %v8795_v0  ;;  %s14355_s22 = smov (!%p8862_p3, %s6518_s22), 1  ;;  %s8799_s10 = smov 30   ;;  %vm1731_vm5 = vcmask 80896   ;;  %vm1764_vm6 = vcmask 162816  }
  0x10   : > { %277 = vst.msk [vmem:[#allocation2 + $0x18] sm:$0xff] %vm273_vm0, %v8795_v0  ;;  %278 = vst.msk [vmem:[#allocation2 + $0x20] sm:$0xff] %vm273_vm0, %v8795_v0  ;;  %s9014_s24 = sshll.u32 %s14355_s22, 8  ;;  %s8800_s11 = smov 40   ;;  %vm1797_vm7 = vcmask 244736   ;;  %vm2112_vm8 = vcmask 1044480  }
  0x11   : > { %279 = vst.msk [vmem:[#allocation2 + $0x28] sm:$0xff] %vm273_vm0, %v8795_v0  ;;  %280 = vst.msk [vmem:[#allocation2 + $0x30] sm:$0xff] %vm273_vm0, %v8795_v0  ;;  %s9020_s27 = scalar_lea.vmem %s13740_s1, %s9014_s24  ;;  %s9036_s7 = scalar_lea.vmem %s13739_s0, %s9014_s24  ;;  %vm1830_vm9 = vcmask 326656   ;;  %vm1863_vm10 = vcmask 408576   ;;  %vm1896_vm11 = vcmask 490496   ;;  %vm1929_vm12 = vcmask 572416  }
  0x12   : > { %281 = vst.msk [vmem:[#allocation2 + $0x38] sm:$0xff] %vm273_vm0, %v8795_v0  ;;  %282 = vst.msk [vmem:[#allocation2 + $0x40] sm:$0xff] %vm273_vm0, %v8795_v0  ;;  %v414_v1 = vld [vmem:[%s9020_s27 + $0x10] sm:$0xff]  ;;  %v412_v2 = vld [vmem:[%s9020_s27] sm:$0xff]  ;;  %s8801_s12 = smov 50   ;;  %s8802_s13 = smov 60  }
  0x13   : > { %284 = vst.msk [vmem:[#allocation2 + $0x50] sm:$0xff] %vm273_vm0, %v8795_v0  ;;  %285 = vst.msk [vmem:[#allocation2 + $0x58] sm:$0xff] %vm273_vm0, %v8795_v0  ;;  %480 = vrot.lane.b32.xlu1 %v414_v1, %s8796_s28  ;;  %476 = vrot.lane.b32.xlu0 %v412_v2, %s8796_s28  ;;  %v415_v3 = vld [vmem:[%s9020_s27 + $0x18] sm:$0xff]  ;;  %v413_v4 = vld [vmem:[%s9020_s27 + $0x8] sm:$0xff]  ;;  %s8803_s14 = smov 70   ;;  %s8804_s30 = smov 80  }
  0x14   : > { %286 = vst.msk [vmem:[#allocation2 + $0x60] sm:$0xff] %vm273_vm0, %v8795_v0  ;;  %287 = vst.msk [vmem:[#allocation2 + $0x68] sm:$0xff] %vm273_vm0, %v8795_v0  ;;  %v417_v5 = vld [vmem:[%s9020_s27 + $0x28] sm:$0xff]  ;;  %v416_v6 = vld [vmem:[%s9020_s27 + $0x20] sm:$0xff]  ;;  %vm1962_vm13 = vcmask 654336   ;;  %vm2063_vm14 = vcmask 736256   ;;  %s13605_s15 = scalar_lea.vmem %s13745_s6, %s9014_s24 }
  0x15   : > { %288 = vst.msk [vmem:[#allocation2 + $0x70] sm:$0xff] %vm273_vm0, %v8795_v0  ;;  %289 = vst.msk [vmem:[#allocation2 + $0x78] sm:$0xff] %vm273_vm0, %v8795_v0  ;;  %v419_v7 = vld [vmem:[%s9020_s27 + $0x38] sm:$0xff]  ;;  %v418_v8 = vld [vmem:[%s9020_s27 + $0x30] sm:$0xff]  ;;  %s8809_s22 = smov 64   ;;  %s8810_s26 = smov 112  }
  0x16   : > { %290 = vst.msk [vmem:[#allocation2 + $0x80] sm:$0xff] %vm273_vm0, %v8795_v0  ;;  %291 = vst.msk [vmem:[#allocation2 + $0x88] sm:$0xff] %vm273_vm0, %v8795_v0  ;;  %v348_v9 = vld [vmem:[%s9036_s7 + $0x10] sm:$0xff]  ;;  %v346_v10 = vld [vmem:[%s9036_s7] sm:$0xff]  ;;  %vm3433_vm15 = vcmask 261120   ;;  %s8814_s18 = smov 8  }
  0x17   : > { %292 = vst.msk [vmem:[#allocation2 + $0x90] sm:$0xff] %vm273_vm0, %v8795_v0  ;;  %293 = vst.msk [vmem:[#allocation2 + $0x98] sm:$0xff] %vm273_vm0, %v8795_v0  ;;  %482 = vrot.lane.b32.xlu1 %v415_v3, %s8796_s28  ;;  %478 = vrot.lane.b32.xlu0 %v413_v4, %s8796_s28  ;;  %v421_v11 = vld [vmem:[%s9020_s27 + $0x48] sm:$0xff]  ;;  %v420_v12 = vld [vmem:[%s9020_s27 + $0x40] sm:$0xff] }
  0x18   : > { %294 = vst.msk [vmem:[#allocation2 + $0xa0] sm:$0xff] %vm273_vm0, %v8795_v0  ;;  %295 = vst.msk [vmem:[#allocation2 + $0xa8] sm:$0xff] %vm273_vm0, %v8795_v0  ;;  %v349_v13 = vld [vmem:[%s9036_s7 + $0x18] sm:$0xff]  ;;  %v347_v14 = vld [vmem:[%s9036_s7 + $0x8] sm:$0xff] }
  0x19   : > { %296 = vst.msk [vmem:[#allocation2 + $0xb0] sm:$0xff] %vm273_vm0, %v8795_v0  ;;  %297 = vst.msk [vmem:[#allocation2 + $0xb8] sm:$0xff] %vm273_vm0, %v8795_v0  ;;  %v351_v15 = vld [vmem:[%s9036_s7 + $0x28] sm:$0xff]  ;;  %v350_v16 = vld [vmem:[%s9036_s7 + $0x20] sm:$0xff] }
  0x1a   : > { %298 = vst.msk [vmem:[#allocation2 + $0xc0] sm:$0xff] %vm273_vm0, %v8795_v0  ;;  %299 = vst.msk [vmem:[#allocation2 + $0xc8] sm:$0xff] %vm273_vm0, %v8795_v0  ;;  %v353_v17 = vld [vmem:[%s9036_s7 + $0x38] sm:$0xff]  ;;  %v352_v18 = vld [vmem:[%s9036_s7 + $0x30] sm:$0xff] }
  0x1b   : > { %300 = vst.msk [vmem:[#allocation2 + $0xd0] sm:$0xff] %vm273_vm0, %v8795_v0  ;;  %301 = vst.msk [vmem:[#allocation2 + $0xd8] sm:$0xff] %vm273_vm0, %v8795_v0  ;;  %486 = vrot.lane.b32.xlu1 %v417_v5, %s8796_s28  ;;  %484 = vrot.lane.b32.xlu0 %v416_v6, %s8796_s28  ;;  %v355_v19 = vld [vmem:[%s9036_s7 + $0x48] sm:$0xff]  ;;  %v354_v20 = vld [vmem:[%s9036_s7 + $0x40] sm:$0xff] }
  0x1c   : > { %302 = vst.msk [vmem:[#allocation2 + $0xe0] sm:$0xff] %vm273_vm0, %v8795_v0  ;;  %303 = vst.msk [vmem:[#allocation2 + $0xe8] sm:$0xff] %vm273_vm0, %v8795_v0  ;;  %v357_v21 = vld [vmem:[%s9036_s7 + $0x58] sm:$0xff]  ;;  %v356_v22 = vld [vmem:[%s9036_s7 + $0x50] sm:$0xff] }
  0x1d   : > { %304 = vst.msk [vmem:[#allocation2 + $0xf0] sm:$0xff] %vm273_vm0, %v8795_v0  ;;  %305 = vst.msk [vmem:[#allocation2 + $0xf8] sm:$0xff] %vm273_vm0, %v8795_v0  ;;  %v359_v23 = vld [vmem:[%s9036_s7 + $0x68] sm:$0xff]  ;;  %v358_v24 = vld [vmem:[%s9036_s7 + $0x60] sm:$0xff] }
  0x1e   : > { %306 = vst.msk [vmem:[#allocation2 + $0x100] sm:$0xff] %vm273_vm0, %v8795_v0  ;;  %307 = vst.msk [vmem:[#allocation2 + $0x108] sm:$0xff] %vm273_vm0, %v8795_v0  ;;  %v361_v25 = vld [vmem:[%s9036_s7 + $0x78] sm:$0xff]  ;;  %v360_v27 = vld [vmem:[%s9036_s7 + $0x70] sm:$0xff] }
  0x1f   : > { %308 = vst.msk [vmem:[#allocation2 + $0x110] sm:$0xff] %vm273_vm0, %v8795_v0  ;;  %309 = vst.msk [vmem:[#allocation2 + $0x118] sm:$0xff] %vm273_vm0, %v8795_v0  ;;  %490 = vrot.lane.b32.xlu1 %v419_v7, %s8796_s28  ;;  %488 = vrot.lane.b32.xlu0 %v418_v8, %s8796_s28  ;;  %v423_v26 = vld [vmem:[%s9020_s27 + $0x58] sm:$0xff]  ;;  %v422_v28 = vld [vmem:[%s9020_s27 + $0x50] sm:$0xff] }
  0x20   : > { %310 = vst.msk [vmem:[#allocation2 + $0x120] sm:$0xff] %vm273_vm0, %v8795_v0  ;;  %311 = vst.msk [vmem:[#allocation2 + $0x128] sm:$0xff] %vm273_vm0, %v8795_v0  ;;  %v363_v29 = vld [vmem:[%s9036_s7 + $0x88] sm:$0xff]  ;;  %v362_v30 = vld [vmem:[%s9036_s7 + $0x80] sm:$0xff] }
  0x21   : > { %312 = vst.msk [vmem:[#allocation2 + $0x130] sm:$0xff] %vm273_vm0, %v8795_v0  ;;  %313 = vst.msk [vmem:[#allocation2 + $0x138] sm:$0xff] %vm273_vm0, %v8795_v0  ;;  %v425_v31 = vld [vmem:[%s9020_s27 + $0x68] sm:$0xff]  ;;  %v424_v32 = vld [vmem:[%s9020_s27 + $0x60] sm:$0xff] }
  0x22   : > { %314 = vst.msk [vmem:[#allocation2 + $0x140] sm:$0xff] %vm273_vm0, %v8795_v0  ;;  %315 = vst.msk [vmem:[#allocation2 + $0x148] sm:$0xff] %vm273_vm0, %v8795_v0  ;;  %v365_v33 = vld [vmem:[%s9036_s7 + $0x98] sm:$0xff]  ;;  %v364_v34 = vld [vmem:[%s9036_s7 + $0x90] sm:$0xff] }
  0x23   : > { %316 = vst.msk [vmem:[#allocation2 + $0x150] sm:$0xff] %vm273_vm0, %v8795_v0  ;;  %317 = vst.msk [vmem:[#allocation2 + $0x158] sm:$0xff] %vm273_vm0, %v8795_v0  ;;  %494 = vrot.lane.b32.xlu1 %v421_v11, %s8796_s28  ;;  %492 = vrot.lane.b32.xlu0 %v420_v12, %s8796_s28  ;;  %v427_v35 = vld [vmem:[%s9020_s27 + $0x78] sm:$0xff]  ;;  %v426_v36 = vld [vmem:[%s9020_s27 + $0x70] sm:$0xff] }
  0x24   : > { %318 = vst.msk [vmem:[#allocation2 + $0x160] sm:$0xff] %vm273_vm0, %v8795_v0  ;;  %319 = vst.msk [vmem:[#allocation2 + $0x168] sm:$0xff] %vm273_vm0, %v8795_v0  ;;  %v367_v37 = vld [vmem:[%s9036_s7 + $0xa8] sm:$0xff]  ;;  %v366_v38 = vld [vmem:[%s9036_s7 + $0xa0] sm:$0xff] }
  0x25   : > { %320 = vst.msk [vmem:[#allocation2 + $0x170] sm:$0xff] %vm273_vm0, %v8795_v0  ;;  %321 = vst.msk [vmem:[#allocation2 + $0x178] sm:$0xff] %vm273_vm0, %v8795_v0  ;;  %v429_v39 = vld [vmem:[%s9020_s27 + $0x88] sm:$0xff]  ;;  %v428_v40 = vld [vmem:[%s9020_s27 + $0x80] sm:$0xff] }
  0x26   : > { %322 = vst.msk [vmem:[#allocation2 + $0x180] sm:$0xff] %vm273_vm0, %v8795_v0  ;;  %323 = vst.msk [vmem:[#allocation2 + $0x188] sm:$0xff] %vm273_vm0, %v8795_v0  ;;  %v369_v41 = vld [vmem:[%s9036_s7 + $0xb8] sm:$0xff]  ;;  %v368_v42 = vld [vmem:[%s9036_s7 + $0xb0] sm:$0xff] }
  0x27   : > { %324 = vst.msk [vmem:[#allocation2 + $0x190] sm:$0xff] %vm273_vm0, %v8795_v0  ;;  %325 = vst.msk [vmem:[#allocation2 + $0x198] sm:$0xff] %vm273_vm0, %v8795_v0  ;;  %498 = vrot.lane.b32.xlu1 %v423_v26, %s8796_s28  ;;  %496 = vrot.lane.b32.xlu0 %v422_v28, %s8796_s28  ;;  %v431_v43 = vld [vmem:[%s9020_s27 + $0x98] sm:$0xff]  ;;  %v430_v44 = vld [vmem:[%s9020_s27 + $0x90] sm:$0xff] }
  0x28   : > { %326 = vst.msk [vmem:[#allocation2 + $0x1a0] sm:$0xff] %vm273_vm0, %v8795_v0  ;;  %327 = vst.msk [vmem:[#allocation2 + $0x1a8] sm:$0xff] %vm273_vm0, %v8795_v0  ;;  %v371_v45 = vld [vmem:[%s9036_s7 + $0xc8] sm:$0xff]  ;;  %v370_v46 = vld [vmem:[%s9036_s7 + $0xc0] sm:$0xff] }
  0x29   : > { %328 = vst.msk [vmem:[#allocation2 + $0x1b0] sm:$0xff] %vm273_vm0, %v8795_v0  ;;  %329 = vst.msk [vmem:[#allocation2 + $0x1b8] sm:$0xff] %vm273_vm0, %v8795_v0  ;;  %v433_v47 = vld [vmem:[%s9020_s27 + $0xa8] sm:$0xff]  ;;  %v432_v48 = vld [vmem:[%s9020_s27 + $0xa0] sm:$0xff] }
  0x2a   : > { %330 = vst.msk [vmem:[#allocation2 + $0x1c0] sm:$0xff] %vm273_vm0, %v8795_v0  ;;  %331 = vst.msk [vmem:[#allocation2 + $0x1c8] sm:$0xff] %vm273_vm0, %v8795_v0  ;;  %v373_v49 = vld [vmem:[%s9036_s7 + $0xd8] sm:$0xff]  ;;  %v372_v50 = vld [vmem:[%s9036_s7 + $0xd0] sm:$0xff] }
  0x2b   : > { %332 = vst.msk [vmem:[#allocation2 + $0x1d0] sm:$0xff] %vm273_vm0, %v8795_v0  ;;  %333 = vst.msk [vmem:[#allocation2 + $0x1d8] sm:$0xff] %vm273_vm0, %v8795_v0  ;;  %502 = vrot.lane.b32.xlu1 %v425_v31, %s8796_s28  ;;  %500 = vrot.lane.b32.xlu0 %v424_v32, %s8796_s28  ;;  %v435_v51 = vld [vmem:[%s9020_s27 + $0xb8] sm:$0xff]  ;;  %v434_v52 = vld [vmem:[%s9020_s27 + $0xb0] sm:$0xff] }
  0x2c   : > { %334 = vst.msk [vmem:[#allocation2 + $0x1e0] sm:$0xff] %vm273_vm0, %v8795_v0  ;;  %335 = vst.msk [vmem:[#allocation2 + $0x1e8] sm:$0xff] %vm273_vm0, %v8795_v0  ;;  %v375_v53 = vld [vmem:[%s9036_s7 + $0xe8] sm:$0xff]  ;;  %v374_v54 = vld [vmem:[%s9036_s7 + $0xe0] sm:$0xff] }
  0x2d   : > { %336 = vst.msk [vmem:[#allocation2 + $0x1f0] sm:$0xff] %vm273_vm0, %v8795_v0  ;;  %337 = vst.msk [vmem:[#allocation2 + $0x1f8] sm:$0xff] %vm273_vm0, %v8795_v0  ;;  %v437_v55 = vld [vmem:[%s9020_s27 + $0xc8] sm:$0xff]  ;;  %v436_v56 = vld [vmem:[%s9020_s27 + $0xc0] sm:$0xff] }
  0x2e   : > { %338 = vst.msk [vmem:[#allocation2 + $0x200] sm:$0xff] %vm273_vm0, %v8795_v0  ;;  %339 = vst.msk [vmem:[#allocation2 + $0x208] sm:$0xff] %vm273_vm0, %v8795_v0  ;;  %v439_v57 = vld [vmem:[%s9020_s27 + $0xd8] sm:$0xff]  ;;  %v438_v58 = vld [vmem:[%s9020_s27 + $0xd0] sm:$0xff] }
  0x2f   : > { %340 = vst.msk [vmem:[#allocation2 + $0x210] sm:$0xff] %vm273_vm0, %v8795_v0  ;;  %341 = vst.msk [vmem:[#allocation2 + $0x218] sm:$0xff] %vm273_vm0, %v8795_v0  ;;  %506 = vrot.lane.b32.xlu1 %v427_v35, %s8796_s28  ;;  %504 = vrot.lane.b32.xlu0 %v426_v36, %s8796_s28  ;;  %v441_v59 = vld [vmem:[%s9020_s27 + $0xe8] sm:$0xff]  ;;  %v440_v60 = vld [vmem:[%s9020_s27 + $0xe0] sm:$0xff] }
  0x30   : > { %342 = vst.msk [vmem:[#allocation2 + $0x220] sm:$0xff] %vm273_vm0, %v8795_v0  ;;  %343 = vst.msk [vmem:[#allocation2 + $0x228] sm:$0xff] %vm273_vm0, %v8795_v0  ;;  %v9146_v61 = vld [vmem:[#allocation2 + $0x8] sm:$0xff]  ;;  %v607_v62 = vld [vmem:[#allocation2 + $0x10] sm:$0xff] }
  0x31   : > { %344 = vst.msk [vmem:[#allocation2 + $0x230] sm:$0xff] %vm273_vm0, %v8795_v0  ;;  %345 = vst.msk [vmem:[#allocation2 + $0x238] sm:$0xff] %vm273_vm0, %v8795_v0  ;;  %v608_v63 = vld [vmem:[#allocation2 + $0x18] sm:$0xff]  ;;  %v442_v1 = vld [vmem:[%s9020_s27 + $0xf0] sm:$0xff]  ;;  %v856_v2 = vrot.slane %v607_v62, 1  ;;  %v855_v3 = vrot.slane %v9146_v61, 1  ;;  %v6790_v5 = vpack.i.bf16 %v607_v62, %v9146_v61 }
  0x32   : > { %382 = vst.msk [vmem:[#allocation2 + $0x48] sm:$0xff] %vm379_vm1, %v348_v9  ;;  %380 = vst.msk [vmem:[#allocation2 + $0x28] sm:$0xff] %vm379_vm1, %v346_v10  ;;  %v443_v0 = vld [vmem:[%s9020_s27 + $0xf8] sm:$0xff]  ;;  %v858_v4 = vrot.slane %v608_v63, 1  ;;  %v729_v9 = vrot.slane %v607_v62, 7  ;;  %v13746_v10 = vrot.slane %v9146_v61, 7 }
  0x33   : > { %383 = vst.msk [vmem:[#allocation2 + $0x50] sm:$0xff] %vm379_vm1, %v349_v13  ;;  %381 = vst.msk [vmem:[#allocation2 + $0x30] sm:$0xff] %vm379_vm1, %v347_v14  ;;  %510 = vrot.lane.b32.xlu1 %v429_v39, %s8796_s28  ;;  %508 = vrot.lane.b32.xlu0 %v428_v40, %s8796_s28  ;;  %v857_v6 = vsel %vm854_vm2, %v855_v3, %v856_v2  ;;  %v377_v11 = vld [vmem:[%s9036_s7 + $0xf8] sm:$0xff]  ;;  %v376_v12 = vld [vmem:[%s9036_s7 + $0xf0] sm:$0xff]  ;;  %s8805_s7 = smov 16  }
  0x34   : > { %385 = vst.msk [vmem:[#allocation2 + $0x70] sm:$0xff] %vm379_vm1, %v351_v15  ;;  %384 = vst.msk [vmem:[#allocation2 + $0x68] sm:$0xff] %vm379_vm1, %v350_v16  ;;  %v859_v7 = vsel %vm854_vm2, %v856_v2, %v858_v4  ;;  %v9168_v13 = vsel %vm725_vm3, %v13746_v10, %v729_v9  ;;  %v624_v36 = vld [vmem:[#allocation2 + $0x98] sm:$0xff] }
  0x35   : > { %387 = vst.msk [vmem:[#allocation2 + $0x90] sm:$0xff] %vm379_vm1, %v353_v17  ;;  %386 = vst.msk [vmem:[#allocation2 + $0x88] sm:$0xff] %vm379_vm1, %v352_v18  ;;  %v6795_v8 = vpack.i.bf16 %v859_v7, %v857_v6 }
  0x36   : > { %389 = vst.msk [vmem:[#allocation2 + $0xb0] sm:$0xff] %vm379_vm1, %v355_v19  ;;  %388 = vst.msk [vmem:[#allocation2 + $0xa8] sm:$0xff] %vm379_vm1, %v354_v20  ;;  %v612_v20 = vld [vmem:[#allocation2 + $0x38] sm:$0xff] }
  0x37   : > { %391 = vst.msk [vmem:[#allocation2 + $0xd0] sm:$0xff] %vm379_vm1, %v357_v21  ;;  %390 = vst.msk [vmem:[#allocation2 + $0xc8] sm:$0xff] %vm379_vm1, %v356_v22  ;;  %514 = vrot.lane.b32.xlu1 %v431_v43, %s8796_s28  ;;  %512 = vrot.lane.b32.xlu0 %v430_v44, %s8796_s28  ;;  %v616_v22 = vld [vmem:[#allocation2 + $0x58] sm:$0xff] }
  0x38   : > { %393 = vst.msk [vmem:[#allocation2 + $0xf0] sm:$0xff] %vm379_vm1, %v359_v23  ;;  %392 = vst.msk [vmem:[#allocation2 + $0xe8] sm:$0xff] %vm379_vm1, %v358_v24  ;;  %v620_v23 = vld [vmem:[#allocation2 + $0x78] sm:$0xff]  ;;  %v868_v35 = vrot.slane %v616_v22, 1 }
  0x39   : > { %395 = vst.msk [vmem:[#allocation2 + $0x110] sm:$0xff] %vm379_vm1, %v361_v25  ;;  %394 = vst.msk [vmem:[#allocation2 + $0x108] sm:$0xff] %vm379_vm1, %v360_v27 }
  0x3a   : > { %397 = vst.msk [vmem:[#allocation2 + $0x130] sm:$0xff] %vm379_vm1, %v363_v29  ;;  %396 = vst.msk [vmem:[#allocation2 + $0x128] sm:$0xff] %vm379_vm1, %v362_v30  ;;  %v863_v29 = vrot.slane %v612_v20, 1 }
  0x3b   : > { %399 = vst.msk [vmem:[#allocation2 + $0x150] sm:$0xff] %vm379_vm1, %v365_v33  ;;  %398 = vst.msk [vmem:[#allocation2 + $0x148] sm:$0xff] %vm379_vm1, %v364_v34  ;;  %518 = vrot.lane.b32.xlu1 %v433_v47, %s8796_s28  ;;  %516 = vrot.lane.b32.xlu0 %v432_v48, %s8796_s28 }
  0x3c   : > { %401 = vst.msk [vmem:[#allocation2 + $0x170] sm:$0xff] %vm379_vm1, %v367_v37  ;;  %400 = vst.msk [vmem:[#allocation2 + $0x168] sm:$0xff] %vm379_vm1, %v366_v38  ;;  %v873_v37 = vrot.slane %v620_v23, 1  ;;  %v636_v23 = vld [vmem:[#allocation2 + $0xf8] sm:$0xff] }
  0x3d   : > { %403 = vst.msk [vmem:[#allocation2 + $0x190] sm:$0xff] %vm379_vm1, %v369_v41  ;;  %402 = vst.msk [vmem:[#allocation2 + $0x188] sm:$0xff] %vm379_vm1, %v368_v42 }
  0x3e   : > { %405 = vst.msk [vmem:[#allocation2 + $0x1b0] sm:$0xff] %vm379_vm1, %v371_v45  ;;  %404 = vst.msk [vmem:[#allocation2 + $0x1a8] sm:$0xff] %vm379_vm1, %v370_v46 }
  0x3f   : > { %407 = vst.msk [vmem:[#allocation2 + $0x1d0] sm:$0xff] %vm379_vm1, %v373_v49  ;;  %406 = vst.msk [vmem:[#allocation2 + $0x1c8] sm:$0xff] %vm379_vm1, %v372_v50  ;;  %522 = vrot.lane.b32.xlu1 %v435_v51, %s8796_s28  ;;  %520 = vrot.lane.b32.xlu0 %v434_v52, %s8796_s28  ;;  %v878_v49 = vrot.slane %v624_v36, 1 }
  0x40   : > { %409 = vst.msk [vmem:[#allocation2 + $0x1f0] sm:$0xff] %vm379_vm1, %v375_v53  ;;  %408 = vst.msk [vmem:[#allocation2 + $0x1e8] sm:$0xff] %vm379_vm1, %v374_v54 }
  0x41   : > { %13959 = vst [vmem:[#allocation3_spill] sm:$0xff] %v9146_v61  ;;  %411 = vst.msk [vmem:[#allocation2 + $0x210] sm:$0xff] %vm379_vm1, %v377_v11 }
  0x42   : > { %410 = vst.msk [vmem:[#allocation2 + $0x208] sm:$0xff] %vm379_vm1, %v376_v12  ;;  %13960 = vst [vmem:[#allocation4_spill] sm:$0xff] %v9168_v13 }
  0x43   : > { %526 = vrot.lane.b32.xlu1 %v437_v55, %s8796_s28  ;;  %524 = vrot.lane.b32.xlu0 %v436_v56, %s8796_s28 }
  0x47   : > { %530 = vrot.lane.b32.xlu1 %v439_v57, %s8796_s28  ;;  %528 = vrot.lane.b32.xlu0 %v438_v58, %s8796_s28  ;;  %v628_v58 = vld [vmem:[#allocation2 + $0xb8] sm:$0xff] }
  0x48   : > { %v883_v3 = vrot.slane %v628_v58, 1  ;;  %v644_v58 = vld [vmem:[#allocation2 + $0x138] sm:$0xff] }
  0x4b   : > { %534 = vrot.lane.b32.xlu1 %v441_v59, %s8796_s28  ;;  %532 = vrot.lane.b32.xlu0 %v440_v60, %s8796_s28 }
  0x4f   : > { %538 = vrot.lane.b32.xlu1 %v443_v0, %s8796_s28  ;;  %536 = vrot.lane.b32.xlu0 %v442_v1, %s8796_s28 }
  0x53   : > { %6791 = vrot.lane.b32.xlu0 %v6790_v5, %s8797_s8 }
  0x57   : > { %6796 = vrot.lane.b32.xlu0 %v6795_v8, %s8798_s9  ;;  %v632_v8 = vld [vmem:[#allocation2 + $0xd8] sm:$0xff] }
  0x85   : > { %v481_v14 = vpop.permute.xlu1 %480  ;;  %v477_v15 = vpop.permute.xlu0 %476 }
  0x86   : > { %575 = vst.msk [vmem:[#allocation2 + $0x48] sm:$0xff] %vm572_vm4, %v481_v14  ;;  %573 = vst.msk [vmem:[#allocation2 + $0x28] sm:$0xff] %vm572_vm4, %v477_v15  ;;  %v888_v15 = vrot.slane %v632_v8, 1 }
  0x89   : > { %v483_v16 = vpop.permute.xlu1 %482  ;;  %v479_v17 = vpop.permute.xlu0 %478 }
  0x8a   : > { %576 = vst.msk [vmem:[#allocation2 + $0x50] sm:$0xff] %vm572_vm4, %v483_v16  ;;  %574 = vst.msk [vmem:[#allocation2 + $0x30] sm:$0xff] %vm572_vm4, %v479_v17 }
  0x8d   : > { %v487_v18 = vpop.permute.xlu1 %486  ;;  %v485_v19 = vpop.permute.xlu0 %484  ;;  %v9176_v21 = vld [vmem:[#allocation2 + $0x28] sm:$0xff] }
  0x8e   : > { %578 = vst.msk [vmem:[#allocation2 + $0x70] sm:$0xff] %vm572_vm4, %v487_v18  ;;  %577 = vst.msk [vmem:[#allocation2 + $0x68] sm:$0xff] %vm572_vm4, %v485_v19  ;;  %v9178_v26 = vld [vmem:[#allocation2 + $0x48] sm:$0xff]  ;;  %v860_v34 = vrot.slane %v9176_v21, 1 }
  0x8f   : > { %v865_v42 = vrot.slane %v9178_v26, 1 }
  0x91   : > { %v491_v24 = vpop.permute.xlu1 %490  ;;  %v489_v25 = vpop.permute.xlu0 %488  ;;  %v9180_v27 = vld [vmem:[#allocation2 + $0x50] sm:$0xff] }
  0x92   : > { %v9182_v28 = vld [vmem:[#allocation2 + $0x30] sm:$0xff]  ;;  %580 = vst.msk [vmem:[#allocation2 + $0x90] sm:$0xff] %vm572_vm4, %v491_v24  ;;  %579 = vst.msk [vmem:[#allocation2 + $0x88] sm:$0xff] %vm572_vm4, %v489_v25  ;;  %v9188_v30 = vpack.i.bf16 %v9180_v27, %v9178_v26  ;;  %v866_v33 = vrot.slane %v9180_v27, 1 }
  0x93   : > { %v9192_v31 = vpack.i.bf16 %v9182_v28, %v9176_v21  ;;  %v861_v32 = vrot.slane %v9182_v28, 1 }
  0x94   : > { %6806 = vrot.lane.b32.xlu0 %v9188_v30, %s8797_s8  ;;  %v867_v48 = vsel %vm854_vm2, %v865_v42, %v866_v33  ;;  %v869_v50 = vsel %vm854_vm2, %v866_v33, %v868_v35  ;;  %v893_v35 = vrot.slane %v636_v23, 1  ;;  %v640_v42 = vld [vmem:[#allocation2 + $0x118] sm:$0xff] }
  0x95   : > { %6801 = vrot.lane.b32.xlu1 %v9192_v31, %s8797_s8  ;;  %v495_v38 = vpop.permute.xlu1 %494  ;;  %v493_v39 = vpop.permute.xlu0 %492  ;;  %v9201_v40 = vld [vmem:[#allocation2 + $0x68] sm:$0xff]  ;;  %v9203_v41 = vld [vmem:[#allocation2 + $0x70] sm:$0xff]  ;;  %v862_v43 = vsel %vm854_vm2, %v860_v34, %v861_v32  ;;  %v864_v44 = vsel %vm854_vm2, %v861_v32, %v863_v29  ;;  %v9238_v0 = vpack.i.bf16 %v869_v50, %v867_v48  ;;  %v898_v48 = vrot.slane %v640_v42, 1  ;;  %v652_v42 = vld [vmem:[#allocation2 + $0x178] sm:$0xff] }
  0x96   : > { %582 = vst.msk [vmem:[#allocation2 + $0xb0] sm:$0xff] %vm572_vm4, %v495_v38  ;;  %581 = vst.msk [vmem:[#allocation2 + $0xa8] sm:$0xff] %vm572_vm4, %v493_v39  ;;  %v9212_v45 = vpack.i.bf16 %v9203_v41, %v9201_v40  ;;  %v870_v46 = vrot.slane %v9201_v40, 1  ;;  %v871_v47 = vrot.slane %v9203_v41, 1  ;;  %v9222_v53 = vpack.i.bf16 %v864_v44, %v862_v43 }
  0x97   : > { %13961 = vst [vmem:[#allocation5_spill] sm:$0xff] %v9238_v0 }
  0x98   : > { %v872_v51 = vsel %vm854_vm2, %v870_v46, %v871_v47  ;;  %v874_v52 = vsel %vm854_vm2, %v871_v47, %v873_v37 }
  0x99   : > { %6811 = vrot.lane.b32.xlu1 %v9212_v45, %s8797_s8  ;;  %v499_v54 = vpop.permute.xlu1 %498  ;;  %v497_v55 = vpop.permute.xlu0 %496  ;;  %v9224_v56 = vld [vmem:[#allocation2 + $0x88] sm:$0xff]  ;;  %v9226_v57 = vld [vmem:[#allocation2 + $0x90] sm:$0xff]  ;;  %v9228_v59 = vpack.i.bf16 %v874_v52, %v872_v51 }
  0x9a   : > { %584 = vst.msk [vmem:[#allocation2 + $0xd0] sm:$0xff] %vm572_vm4, %v499_v54  ;;  %583 = vst.msk [vmem:[#allocation2 + $0xc8] sm:$0xff] %vm572_vm4, %v497_v55  ;;  %v9234_v60 = vpack.i.bf16 %v9226_v57, %v9224_v56  ;;  %v875_v62 = vrot.slane %v9224_v56, 1  ;;  %v876_v63 = vrot.slane %v9226_v57, 1 }
  0x9c   : > { %6816 = vrot.lane.b32.xlu0 %v9234_v60, %s8797_s8  ;;  %v877_v1 = vsel %vm854_vm2, %v875_v62, %v876_v63  ;;  %v879_v2 = vsel %vm854_vm2, %v876_v63, %v878_v49 }
  0x9d   : > { %v503_v4 = vpop.permute.xlu1 %502  ;;  %v501_v5 = vpop.permute.xlu0 %500  ;;  %v9244_v6 = vld [vmem:[#allocation2 + $0xa8] sm:$0xff]  ;;  %v9246_v7 = vld [vmem:[#allocation2 + $0xb0] sm:$0xff]  ;;  %v9248_v9 = vpack.i.bf16 %v879_v2, %v877_v1 }
  0x9e   : > { %586 = vst.msk [vmem:[#allocation2 + $0xf0] sm:$0xff] %vm572_vm4, %v503_v4  ;;  %585 = vst.msk [vmem:[#allocation2 + $0xe8] sm:$0xff] %vm572_vm4, %v501_v5  ;;  %v9254_v11 = vpack.i.bf16 %v9246_v7, %v9244_v6  ;;  %v880_v12 = vrot.slane %v9244_v6, 1  ;;  %v881_v14 = vrot.slane %v9246_v7, 1  ;;  %v903_v5 = vrot.slane %v644_v58, 1 }
  0xa0   : > { %6821 = vrot.lane.b32.xlu1 %v9254_v11, %s8797_s8  ;;  %v882_v16 = vsel %vm854_vm2, %v880_v12, %v881_v14  ;;  %v884_v17 = vsel %vm854_vm2, %v881_v14, %v883_v3 }
  0xa1   : > { %v507_v18 = vpop.permute.xlu1 %506  ;;  %v505_v19 = vpop.permute.xlu0 %504  ;;  %v9262_v20 = vld [vmem:[#allocation2 + $0xc8] sm:$0xff]  ;;  %v9264_v22 = vld [vmem:[#allocation2 + $0xd0] sm:$0xff]  ;;  %v9266_v24 = vpack.i.bf16 %v884_v17, %v882_v16  ;;  %v648_v16 = vld [vmem:[#allocation2 + $0x158] sm:$0xff] }
  0xa2   : > { %588 = vst.msk [vmem:[#allocation2 + $0x110] sm:$0xff] %vm572_vm4, %v507_v18  ;;  %587 = vst.msk [vmem:[#allocation2 + $0x108] sm:$0xff] %vm572_vm4, %v505_v19  ;;  %v9272_v25 = vpack.i.bf16 %v9264_v22, %v9262_v20  ;;  %v885_v29 = vrot.slane %v9262_v20, 1  ;;  %v886_v32 = vrot.slane %v9264_v22, 1 }
  0xa4   : > { %13962 = vst [vmem:[#allocation6_spill] sm:$0xff] %v9272_v25  ;;  %6826 = vrot.lane.b32.xlu0 %v9272_v25, %s8797_s8  ;;  %v887_v33 = vsel %vm854_vm2, %v885_v29, %v886_v32  ;;  %v889_v34 = vsel %vm854_vm2, %v886_v32, %v888_v15  ;;  %v908_v29 = vrot.slane %v648_v16, 1 }
  0xa5   : > { %v511_v36 = vpop.permute.xlu1 %510  ;;  %v509_v37 = vpop.permute.xlu0 %508  ;;  %v9280_v38 = vld [vmem:[#allocation2 + $0xe8] sm:$0xff]  ;;  %v9282_v39 = vld [vmem:[#allocation2 + $0xf0] sm:$0xff]  ;;  %v9284_v43 = vpack.i.bf16 %v889_v34, %v887_v33 }
  0xa6   : > { %590 = vst.msk [vmem:[#allocation2 + $0x130] sm:$0xff] %vm572_vm4, %v511_v36  ;;  %589 = vst.msk [vmem:[#allocation2 + $0x128] sm:$0xff] %vm572_vm4, %v509_v37  ;;  %v9290_v44 = vpack.i.bf16 %v9282_v39, %v9280_v38  ;;  %v890_v46 = vrot.slane %v9280_v38, 1  ;;  %v891_v47 = vrot.slane %v9282_v39, 1 }
  0xa8   : > { %6831 = vrot.lane.b32.xlu1 %v9290_v44, %s8797_s8  ;;  %v892_v49 = vsel %vm854_vm2, %v890_v46, %v891_v47  ;;  %v894_v50 = vsel %vm854_vm2, %v891_v47, %v893_v35 }
  0xa9   : > { %v515_v51 = vpop.permute.xlu1 %514  ;;  %v513_v52 = vpop.permute.xlu0 %512  ;;  %v9298_v54 = vld [vmem:[#allocation2 + $0x108] sm:$0xff]  ;;  %v9300_v55 = vld [vmem:[#allocation2 + $0x110] sm:$0xff]  ;;  %v9302_v62 = vpack.i.bf16 %v894_v50, %v892_v49 }
  0xaa   : > { %592 = vst.msk [vmem:[#allocation2 + $0x150] sm:$0xff] %vm572_vm4, %v515_v51  ;;  %591 = vst.msk [vmem:[#allocation2 + $0x148] sm:$0xff] %vm572_vm4, %v513_v52  ;;  %v9308_v63 = vpack.i.bf16 %v9300_v55, %v9298_v54  ;;  %v895_v1 = vrot.slane %v9298_v54, 1  ;;  %v896_v2 = vrot.slane %v9300_v55, 1  ;;  %v913_v52 = vrot.slane %v652_v42, 1  ;;  %v660_v42 = vld [vmem:[#allocation2 + $0x1b8] sm:$0xff] }
  0xac   : > { %13963 = vst [vmem:[#allocation7_spill] sm:$0xff] %v9308_v63  ;;  %6836 = vrot.lane.b32.xlu0 %v9308_v63, %s8797_s8  ;;  %v897_v3 = vsel %vm854_vm2, %v895_v1, %v896_v2  ;;  %v899_v4 = vsel %vm854_vm2, %v896_v2, %v898_v48 }
  0xad   : > { %v519_v8 = vpop.permute.xlu1 %518  ;;  %v517_v12 = vpop.permute.xlu0 %516  ;;  %v9316_v14 = vld [vmem:[#allocation2 + $0x128] sm:$0xff]  ;;  %v9318_v15 = vld [vmem:[#allocation2 + $0x130] sm:$0xff]  ;;  %v9320_v17 = vpack.i.bf16 %v899_v4, %v897_v3  ;;  %v656_v4 = vld [vmem:[#allocation2 + $0x198] sm:$0xff] }
  0xae   : > { %594 = vst.msk [vmem:[#allocation2 + $0x170] sm:$0xff] %vm572_vm4, %v519_v8  ;;  %593 = vst.msk [vmem:[#allocation2 + $0x168] sm:$0xff] %vm572_vm4, %v517_v12  ;;  %v9326_v18 = vpack.i.bf16 %v9318_v15, %v9316_v14  ;;  %v900_v19 = vrot.slane %v9316_v14, 1  ;;  %v901_v23 = vrot.slane %v9318_v15, 1 }
  0xb0   : > { %13964 = vst [vmem:[#allocation8_spill] sm:$0xff] %v9326_v18  ;;  %6841 = vrot.lane.b32.xlu1 %v9326_v18, %s8797_s8  ;;  %v902_v32 = vsel %vm854_vm2, %v900_v19, %v901_v23  ;;  %v904_v33 = vsel %vm854_vm2, %v901_v23, %v903_v5  ;;  %v918_v19 = vrot.slane %v656_v4, 1 }
  0xb1   : > { %v523_v34 = vpop.permute.xlu1 %522  ;;  %v521_v35 = vpop.permute.xlu0 %520  ;;  %v9334_v36 = vld [vmem:[#allocation2 + $0x148] sm:$0xff]  ;;  %v9336_v37 = vld [vmem:[#allocation2 + $0x150] sm:$0xff]  ;;  %v9338_v46 = vpack.i.bf16 %v904_v33, %v902_v32 }
  0xb2   : > { %596 = vst.msk [vmem:[#allocation2 + $0x190] sm:$0xff] %vm572_vm4, %v523_v34  ;;  %595 = vst.msk [vmem:[#allocation2 + $0x188] sm:$0xff] %vm572_vm4, %v521_v35  ;;  %v9344_v47 = vpack.i.bf16 %v9336_v37, %v9334_v36  ;;  %v905_v48 = vrot.slane %v9334_v36, 1  ;;  %v906_v49 = vrot.slane %v9336_v37, 1 }
  0xb4   : > { %13965 = vst [vmem:[#allocation9_spill] sm:$0xff] %v9344_v47  ;;  %6846 = vrot.lane.b32.xlu0 %v9344_v47, %s8797_s8  ;;  %v907_v50 = vsel %vm854_vm2, %v905_v48, %v906_v49  ;;  %v909_v51 = vsel %vm854_vm2, %v906_v49, %v908_v29  ;;  %v669_v47 = vld [vmem:[#allocation2 + $0x200] sm:$0xff] }
  0xb5   : > { %v527_v58 = vpop.permute.xlu1 %526  ;;  %v525_v1 = vpop.permute.xlu0 %524  ;;  %v9352_v2 = vld [vmem:[#allocation2 + $0x168] sm:$0xff]  ;;  %v9354_v3 = vld [vmem:[#allocation2 + $0x170] sm:$0xff]  ;;  %v9356_v5 = vpack.i.bf16 %v909_v51, %v907_v50 }
  0xb6   : > { %598 = vst.msk [vmem:[#allocation2 + $0x1b0] sm:$0xff] %vm572_vm4, %v527_v58  ;;  %597 = vst.msk [vmem:[#allocation2 + $0x1a8] sm:$0xff] %vm572_vm4, %v525_v1  ;;  %v9362_v8 = vpack.i.bf16 %v9354_v3, %v9352_v2  ;;  %v910_v12 = vrot.slane %v9352_v2, 1  ;;  %v911_v16 = vrot.slane %v9354_v3, 1  ;;  %v923_v1 = vrot.slane %v660_v42, 1 }
  0xb8   : > { %13966 = vst [vmem:[#allocation10_spill] sm:$0xff] %v9362_v8  ;;  %6851 = vrot.lane.b32.xlu1 %v9362_v8, %s8797_s8  ;;  %v912_v23 = vsel %vm854_vm2, %v910_v12, %v911_v16  ;;  %v914_v29 = vsel %vm854_vm2, %v911_v16, %v913_v52 }
  0xb9   : > { %v531_v32 = vpop.permute.xlu1 %530  ;;  %v529_v33 = vpop.permute.xlu0 %528  ;;  %v9370_v34 = vld [vmem:[#allocation2 + $0x188] sm:$0xff]  ;;  %v9372_v35 = vld [vmem:[#allocation2 + $0x190] sm:$0xff]  ;;  %v9374_v48 = vpack.i.bf16 %v914_v29, %v912_v23  ;;  %v664_v29 = vld [vmem:[#allocation2 + $0x1d8] sm:$0xff] }
  0xba   : > { %600 = vst.msk [vmem:[#allocation2 + $0x1d0] sm:$0xff] %vm572_vm4, %v531_v32  ;;  %599 = vst.msk [vmem:[#allocation2 + $0x1c8] sm:$0xff] %vm572_vm4, %v529_v33  ;;  %v9380_v49 = vpack.i.bf16 %v9372_v35, %v9370_v34  ;;  %v915_v50 = vrot.slane %v9370_v34, 1  ;;  %v916_v51 = vrot.slane %v9372_v35, 1 }
  0xbc   : > { %13967 = vst [vmem:[#allocation11_spill] sm:$0xff] %v9380_v49  ;;  %6856 = vrot.lane.b32.xlu0 %v9380_v49, %s8797_s8  ;;  %v917_v52 = vsel %vm854_vm2, %v915_v50, %v916_v51  ;;  %v919_v58 = vsel %vm854_vm2, %v916_v51, %v918_v19  ;;  %v928_v50 = vrot.slane %v664_v29, 1 }
  0xbd   : > { %v535_v4 = vpop.permute.xlu1 %534  ;;  %v533_v12 = vpop.permute.xlu0 %532  ;;  %v9388_v16 = vld [vmem:[#allocation2 + $0x1a8] sm:$0xff]  ;;  %v9390_v23 = vld [vmem:[#allocation2 + $0x1b0] sm:$0xff]  ;;  %v9392_v32 = vpack.i.bf16 %v919_v58, %v917_v52 }
  0xbe   : > { %602 = vst.msk [vmem:[#allocation2 + $0x1f0] sm:$0xff] %vm572_vm4, %v535_v4  ;;  %601 = vst.msk [vmem:[#allocation2 + $0x1e8] sm:$0xff] %vm572_vm4, %v533_v12  ;;  %v9398_v33 = vpack.i.bf16 %v9390_v23, %v9388_v16  ;;  %v920_v19 = vrot.slane %v9388_v16, 1  ;;  %v921_v42 = vrot.slane %v9390_v23, 1  ;;  %v668_v12 = vld [vmem:[#allocation2 + $0x1f8] sm:$0xff] }
  0xbf   : > { %13968 = vst [vmem:[#allocation12_spill] sm:$0xff] %v9392_v32 }
  0xc0   : > { %13969 = vst [vmem:[#allocation13_spill] sm:$0xff] %v9398_v33  ;;  %6861 = vrot.lane.b32.xlu1 %v9398_v33, %s8797_s8  ;;  %v922_v51 = vsel %vm854_vm2, %v920_v19, %v921_v42  ;;  %v924_v52 = vsel %vm854_vm2, %v921_v42, %v923_v1  ;;  %v933_v42 = vrot.slane %v668_v12, 1  ;;  %v938_v12 = vrot.slane %v669_v47, 7 }
  0xc1   : > { %v9406_v58 = vld [vmem:[#allocation2 + $0x1c8] sm:$0xff]  ;;  %v9408_v4 = vld [vmem:[#allocation2 + $0x1d0] sm:$0xff]  ;;  %v539_v10 = vpop.permute.xlu1 %538  ;;  %v537_v13 = vpop.permute.xlu0 %536  ;;  %v9410_v61 = vpack.i.bf16 %v924_v52, %v922_v51 }
  0xc2   : > { %v9414_v49 = vpack.i.bf16 %v9408_v4, %v9406_v58  ;;  %v925_v33 = vrot.slane %v9406_v58, 1  ;;  %v926_v29 = vrot.slane %v9408_v4, 1  ;;  %604 = vst.msk [vmem:[#allocation2 + $0x210] sm:$0xff] %vm572_vm4, %v539_v10  ;;  %603 = vst.msk [vmem:[#allocation2 + $0x208] sm:$0xff] %vm572_vm4, %v537_v13  ;;  %vm3466_vm4 = vcmask 392192  }
  0xc4   : > { %13970 = vst [vmem:[#allocation14_spill] sm:$0xff] %v9414_v49  ;;  %6866 = vrot.lane.b32.xlu0 %v9414_v49, %s8797_s8  ;;  %v927_v1 = vsel %vm854_vm2, %v925_v33, %v926_v29  ;;  %v929_v19 = vsel %vm854_vm2, %v926_v29, %v928_v50  ;;  %v672_v29 = vld [vmem:[#allocation2 + $0x218] sm:$0xff] }
  0xc5   : > { %v9424_v51 = vld [vmem:[#allocation2 + $0x1e8] sm:$0xff]  ;;  %v9426_v52 = vld [vmem:[#allocation2 + $0x1f0] sm:$0xff]  ;;  %v9428_v8 = vpack.i.bf16 %v929_v19, %v927_v1 }
  0xc6   : > { %v9432_v10 = vpack.i.bf16 %v9426_v52, %v9424_v51  ;;  %v930_v13 = vrot.slane %v9424_v51, 1  ;;  %v931_v49 = vrot.slane %v9426_v52, 1 }
  0xc7   : > { %13971 = vst [vmem:[#allocation15_spill] sm:$0xff] %v9428_v8 }
  0xc8   : > { %13972 = vst [vmem:[#allocation16_spill] sm:$0xff] %v9432_v10  ;;  %6881 = vrot.lane.b32.xlu0 %v9238_v0, %s8798_s9  ;;  %6871 = vrot.lane.b32.xlu1 %v9432_v10, %s8797_s8  ;;  %v932_v33 = vsel %vm854_vm2, %v930_v13, %v931_v49  ;;  %v934_v50 = vsel %vm854_vm2, %v931_v49, %v933_v42  ;;  %v947_v0 = vrot.slane %v672_v29, 1  ;;  %s8806_s8 = smov 96  }
  0xc9   : > { %v9442_v1 = vld [vmem:[#allocation2 + $0x208] sm:$0xff]  ;;  %v9444_v19 = vld [vmem:[#allocation2 + $0x210] sm:$0xff]  ;;  %v9448_v25 = vpack.i.bf16 %v934_v50, %v932_v33 }
  0xca   : > { %v939_v63 = vrot.slane %v9442_v1, 7  ;;  %v941_v18 = vrot.slane %v9444_v19, 7  ;;  %v944_v49 = vrot.slane %v9442_v1, 1  ;;  %v945_v13 = vrot.slane %v9444_v19, 1 }
  0xcc   : > { %6891 = vrot.lane.b32.xlu0 %v9248_v9, %s8798_s9  ;;  %6876 = vrot.lane.b32.xlu1 %v9222_v53, %s8798_s9  ;;  %v940_v47 = vsel %vm725_vm3, %v938_v12, %v939_v63  ;;  %v942_v42 = vsel %vm725_vm3, %v939_v63, %v941_v18  ;;  %v946_v33 = vsel %vm854_vm2, %v944_v49, %v945_v13  ;;  %v734_v63 = vrot.slane %v9182_v28, 7  ;;  %v617_v18 = vld [vmem:[#allocation2 + $0x60] sm:$0xff] }
  0xcd   : > { %v9458_v10 = vpack.i.bf16 %v942_v42, %v940_v47  ;;  %v948_v50 = vsel %vm854_vm2, %v945_v13, %v947_v0  ;;  %v609_v0 = vld [vmem:[#allocation2 + $0x20] sm:$0xff]  ;;  %v732_v47 = vrot.slane %v9176_v21, 7  ;;  %v741_v42 = vrot.slane %v617_v18, 7 }
  0xce   : > { %v9466_v29 = vpack.i.bf16 %v948_v50, %v946_v33  ;;  %v731_v12 = vrot.slane %v609_v0, 7  ;;  %v742_v13 = vrot.slane %v9201_v40, 7  ;;  %v744_v33 = vrot.slane %v9203_v41, 7  ;;  %v625_v50 = vld [vmem:[#allocation2 + $0xa0] sm:$0xff] }
  0xcf   : > { %v9483_v49 = vsel %vm725_vm3, %v732_v47, %v734_v63  ;;  %v613_v0 = vld [vmem:[#allocation2 + $0x40] sm:$0xff]  ;;  %v739_v21 = vrot.slane %v9180_v27, 7  ;;  %v737_v40 = vrot.slane %v9178_v26, 7  ;;  %v751_v18 = vrot.slane %v625_v50, 7 }
  0xd0   : > { %6901 = vrot.lane.b32.xlu0 %v9284_v43, %s8798_s9  ;;  %6886 = vrot.lane.b32.xlu1 %v9228_v59, %s8798_s9  ;;  %13973 = vst [vmem:[#allocation17_spill] sm:$0xff] %v9466_v29  ;;  %13974 = vst [vmem:[#allocation18_spill] sm:$0xff] %v9483_v49  ;;  %v9492_v28 = vsel %vm725_vm3, %v731_v12, %v732_v47  ;;  %v621_v41 = vld [vmem:[#allocation2 + $0x80] sm:$0xff]  ;;  %v752_v12 = vrot.slane %v9244_v6, 7  ;;  %v754_v47 = vrot.slane %v9246_v7, 7  ;;  %v736_v26 = vrot.slane %v613_v0, 7 }
  0xd1   : > { %13975 = vst [vmem:[#allocation19_spill] sm:$0xff] %v9492_v28  ;;  %v6950_v63 = vpack.i.bf16 %v9483_v49, %v9492_v28  ;;  %v633_v29 = vld [vmem:[#allocation2 + $0xe0] sm:$0xff]  ;;  %v9510_v27 = vsel %vm725_vm3, %v737_v40, %v739_v21  ;;  %v746_v50 = vrot.slane %v621_v41, 7  ;;  %v747_v6 = vrot.slane %v9224_v56, 7 }
  0xd2   : > { %13978 = vst [vmem:[#allocation22_spill] sm:$0xff] %v9510_v27  ;;  %v749_v7 = vrot.slane %v9226_v57, 7  ;;  %v641_v49 = vld [vmem:[#allocation2 + $0x120] sm:$0xff]  ;;  %v9519_v28 = vsel %vm725_vm3, %v751_v18, %v752_v12  ;;  %v9522_v0 = vsel %vm725_vm3, %v752_v12, %v754_v47  ;;  %v762_v21 = vrot.slane %v9280_v38, 7 }
  0xd3   : > { %13979 = vst [vmem:[#allocation23_spill] sm:$0xff] %v9519_v28  ;;  %13980 = vst [vmem:[#allocation24_spill] sm:$0xff] %v9522_v0  ;;  %v9531_v56 = vsel %vm725_vm3, %v736_v26, %v737_v40  ;;  %v757_v18 = vrot.slane %v9262_v20, 7  ;;  %v771_v41 = vrot.slane %v641_v49, 7  ;;  %v9540_v38 = vpack.i.bf16 %v9522_v0, %v9519_v28  ;;  %v637_v47 = vld [vmem:[#allocation2 + $0x100] sm:$0xff] }
  0xd4   : > { %6911 = vrot.lane.b32.xlu0 %v9320_v17, %s8798_s9  ;;  %6896 = vrot.lane.b32.xlu1 %v9266_v24, %s8798_s9  ;;  %v9535_v57 = vpack.i.bf16 %v9510_v27, %v9531_v56  ;;  %v9546_v12 = vsel %vm725_vm3, %v747_v6, %v749_v7  ;;  %v759_v40 = vrot.slane %v9264_v22, 7  ;;  %v649_v26 = vld [vmem:[#allocation2 + $0x160] sm:$0xff]  ;;  %v772_v49 = vrot.slane %v9316_v14, 7 }
  0xd5   : > { %13982 = vst [vmem:[#allocation26_spill] sm:$0xff] %v9546_v12  ;;  %v767_v7 = vrot.slane %v9298_v54, 7  ;;  %v657_v28 = vld [vmem:[#allocation2 + $0x1a0] sm:$0xff] }
  0xd6   : > { %v9578_v0 = vsel %vm725_vm3, %v771_v41, %v772_v49  ;;  %v791_v41 = vrot.slane %v657_v28, 7  ;;  %v792_v28 = vrot.slane %v9388_v16, 7 }
  0xd7   : > { %13987 = vst [vmem:[#allocation31_spill] sm:$0xff] %v9578_v0 }
  0xd8   : > { %6921 = vrot.lane.b32.xlu0 %v9356_v5, %s8798_s9  ;;  %6906 = vrot.lane.b32.xlu1 %v9302_v62, %s8798_s9 }
  0xdc   : > { %6931 = vrot.lane.b32.xlu0 %v9392_v32, %s8798_s9  ;;  %6916 = vrot.lane.b32.xlu1 %v9338_v46, %s8798_s9  ;;  %v9499_v32 = vsel %vm725_vm3, %v741_v42, %v742_v13  ;;  %v761_v42 = vrot.slane %v633_v29, 7  ;;  %v764_v29 = vrot.slane %v9282_v39, 7  ;;  %v9543_v39 = vsel %vm725_vm3, %v746_v50, %v747_v6 }
  0xdd   : > { %13976 = vst [vmem:[#allocation20_spill] sm:$0xff] %v9499_v32  ;;  %13981 = vst [vmem:[#allocation25_spill] sm:$0xff] %v9543_v39  ;;  %v9563_v22 = vpack.i.bf16 %v9546_v12, %v9543_v39  ;;  %v781_v6 = vrot.slane %v649_v26, 7  ;;  %v784_v26 = vrot.slane %v9354_v3, 7 }
  0xde   : > { %v9553_v20 = vsel %vm725_vm3, %v762_v21, %v764_v29  ;;  %v645_v29 = vld [vmem:[#allocation2 + $0x140] sm:$0xff] }
  0xdf   : > { %13984 = vst [vmem:[#allocation28_spill] sm:$0xff] %v9553_v20 }
  0xe0   : > { %6941 = vrot.lane.b32.xlu0 %v9428_v8, %s8798_s9  ;;  %6926 = vrot.lane.b32.xlu1 %v9374_v48, %s8798_s9  ;;  %v9502_v8 = vsel %vm725_vm3, %v742_v13, %v744_v33  ;;  %v629_v33 = vld [vmem:[#allocation2 + $0xc0] sm:$0xff] }
  0xe1   : > { %13977 = vst [vmem:[#allocation21_spill] sm:$0xff] %v9502_v8  ;;  %v9514_v13 = vpack.i.bf16 %v9502_v8, %v9499_v32  ;;  %v9550_v32 = vsel %vm725_vm3, %v761_v42, %v762_v21  ;;  %v766_v42 = vrot.slane %v637_v47, 7  ;;  %v769_v21 = vrot.slane %v9300_v55, 7 }
  0xe2   : > { %13983 = vst [vmem:[#allocation27_spill] sm:$0xff] %v9550_v32  ;;  %v9570_v14 = vpack.i.bf16 %v9553_v20, %v9550_v32  ;;  %v782_v47 = vrot.slane %v9352_v2, 7  ;;  %v776_v55 = vrot.slane %v645_v29, 7  ;;  %v665_v32 = vld [vmem:[#allocation2 + $0x1e0] sm:$0xff]  ;;  %v794_v29 = vrot.slane %v9390_v23, 7 }
  0xe3   : > { %v9599_v2 = vsel %vm725_vm3, %v766_v42, %v767_v7  ;;  %v9602_v3 = vsel %vm725_vm3, %v767_v7, %v769_v21  ;;  %v801_v7 = vrot.slane %v665_v32, 7  ;;  %v787_v21 = vrot.slane %v9370_v34, 7 }
  0xe4   : > { %6936 = vrot.lane.b32.xlu1 %v9410_v61, %s8798_s9  ;;  %6951 = vrot.lane.b32.xlu0 %v6950_v63, %s8799_s10  ;;  %v756_v63 = vrot.slane %v629_v33, 7  ;;  %v774_v33 = vrot.slane %v9318_v15, 7  ;;  %v9573_v15 = vsel %vm725_vm3, %v757_v18, %v759_v40  ;;  %13989 = vst [vmem:[#allocation33_spill] sm:$0xff] %v9599_v2  ;;  %13990 = vst [vmem:[#allocation34_spill] sm:$0xff] %v9602_v3  ;;  %v802_v32 = vrot.slane %v9424_v51, 7 }
  0xe5   : > { %13986 = vst [vmem:[#allocation30_spill] sm:$0xff] %v9573_v15  ;;  %v9606_v20 = vsel %vm725_vm3, %v781_v6, %v782_v47 }
  0xe6   : > { %v9566_v50 = vsel %vm725_vm3, %v756_v63, %v757_v18  ;;  %v9581_v63 = vsel %vm725_vm3, %v772_v49, %v774_v33  ;;  %v777_v18 = vrot.slane %v9334_v36, 7  ;;  %v779_v49 = vrot.slane %v9336_v37, 7  ;;  %v653_v33 = vld [vmem:[#allocation2 + $0x180] sm:$0xff]  ;;  %13991 = vst [vmem:[#allocation35_spill] sm:$0xff] %v9606_v20 }
  0xe7   : > { %13985 = vst [vmem:[#allocation29_spill] sm:$0xff] %v9566_v50  ;;  %13988 = vst [vmem:[#allocation32_spill] sm:$0xff] %v9581_v63  ;;  %v9591_v54 = vpack.i.bf16 %v9573_v15, %v9566_v50  ;;  %v9596_v40 = vpack.i.bf16 %v9581_v63, %v9578_v0  ;;  %v9609_v36 = vsel %vm725_vm3, %v782_v47, %v784_v26  ;;  %v786_v6 = vrot.slane %v653_v33, 7  ;;  %v661_v26 = vld [vmem:[#allocation2 + $0x1c0] sm:$0xff]  ;;  %v676_v63 = vld [vmem:[#allocation2 + $0x238] sm:$0xff] }
  0xe8   : > { %6946 = vrot.lane.b32.xlu1 %v9448_v25, %s8798_s9  ;;  %6961 = vrot.lane.b32.xlu0 %v9514_v13, %s8799_s10  ;;  %13992 = vst [vmem:[#allocation36_spill] sm:$0xff] %v9609_v36  ;;  %v9619_v37 = vpack.i.bf16 %v9602_v3, %v9599_v2  ;;  %v9622_v42 = vsel %vm725_vm3, %v776_v55, %v777_v18  ;;  %v789_v47 = vrot.slane %v9372_v35, 7  ;;  %v804_v33 = vrot.slane %v9426_v52, 7  ;;  %v14011_v15 = vld [vmem:[#allocation5_spill] sm:$0xff] }
  0xe9   : > { %13993 = vst [vmem:[#allocation37_spill] sm:$0xff] %v9622_v42  ;;  %v9626_v16 = vpack.i.bf16 %v9609_v36, %v9606_v20  ;;  %v9629_v23 = vsel %vm725_vm3, %v777_v18, %v779_v49  ;;  %v9634_v0 = vsel %vm725_vm3, %v791_v41, %v792_v28  ;;  %v9637_v55 = vsel %vm725_vm3, %v792_v28, %v794_v29 }
  0xea   : > { %13994 = vst [vmem:[#allocation38_spill] sm:$0xff] %v9629_v23  ;;  %13995 = vst [vmem:[#allocation39_spill] sm:$0xff] %v9634_v0  ;;  %v796_v34 = vrot.slane %v661_v26, 7  ;;  %v9647_v35 = vpack.i.bf16 %v9629_v23, %v9622_v42  ;;  %v9651_v18 = vpack.i.bf16 %v9637_v55, %v9634_v0  ;;  %v9654_v41 = vsel %vm725_vm3, %v786_v6, %v787_v21  ;;  %v14001_v26 = vld [vmem:[#allocation6_spill] sm:$0xff]  ;;  %v9737_v42 = vld [vmem:[#allocation2 + $0x228] sm:$0xff] }
  0xeb   : > { %13996 = vst [vmem:[#allocation40_spill] sm:$0xff] %v9637_v55  ;;  %13997 = vst [vmem:[#allocation41_spill] sm:$0xff] %v9654_v41  ;;  %v9657_v51 = vsel %vm725_vm3, %v787_v21, %v789_v47  ;;  %v9660_v52 = vsel %vm725_vm3, %v801_v7, %v802_v32  ;;  %v9663_v49 = vsel %vm725_vm3, %v802_v32, %v804_v33  ;;  %v797_v28 = vrot.slane %v9406_v58, 7  ;;  %v9703_v47 = vpop.permute.xlu0 %6791  ;;  %v14002_v32 = vld [vmem:[#allocation8_spill] sm:$0xff]  ;;  %v14003_v33 = vld [vmem:[#allocation7_spill] sm:$0xff] }
  0xec   : > { %6956 = vrot.lane.b32.xlu1 %v9535_v57, %s8799_s10  ;;  %6971 = vrot.lane.b32.xlu0 %v9540_v38, %s8799_s10  ;;  %13998 = vst [vmem:[#allocation42_spill] sm:$0xff] %v9657_v51  ;;  %v799_v29 = vrot.slane %v9408_v4, 7  ;;  %v9673_v6 = vpack.i.bf16 %v9657_v51, %v9654_v41  ;;  %v9677_v7 = vpack.i.bf16 %v9663_v49, %v9660_v52  ;;  %v14009_v41 = vld [vmem:[#allocation14_spill] sm:$0xff]  ;;  %v9739_v23 = vld [vmem:[#allocation2 + $0x230] sm:$0xff] }
  0xed   : > { %v9680_v21 = vsel %vm725_vm3, %v796_v34, %v797_v28  ;;  %v14004_v34 = vld [vmem:[#allocation10_spill] sm:$0xff]  ;;  %v9732_v36 = vpack.i.bf16 %v9444_v19, %v9442_v1  ;;  %v959_v2 = vrot.slane %v9739_v23, 1  ;;  %v961_v1 = vrot.slane %v676_v63, 1 }
  0xee   : > { %13999 = vst [vmem:[#allocation43_spill] sm:$0xff] %v9680_v21  ;;  %v9683_v58 = vsel %vm725_vm3, %v797_v28, %v799_v29  ;;  %v14006_v28 = vld [vmem:[#allocation13_spill] sm:$0xff] }
  0xef   : > { %14000 = vst [vmem:[#allocation44_spill] sm:$0xff] %v9683_v58  ;;  %v9691_v4 = vpack.i.bf16 %v9683_v58, %v9680_v21  ;;  %v14007_v21 = vld [vmem:[#allocation11_spill] sm:$0xff]  ;;  %v14008_v58 = vld [vmem:[#allocation16_spill] sm:$0xff]  ;;  %v9755_v39 = vsel %vm854_vm2, %v959_v2, %v961_v1 }
  0xf0   : > { %6966 = vrot.lane.b32.xlu1 %v9563_v22, %s8799_s10  ;;  %6981 = vrot.lane.b32.xlu0 %v9570_v14, %s8799_s10 }
  0xf4   : > { %6976 = vrot.lane.b32.xlu1 %v9591_v54, %s8799_s10  ;;  %6991 = vrot.lane.b32.xlu0 %v9596_v40, %s8799_s10 }
  0xf8   : > { %6986 = vrot.lane.b32.xlu1 %v9619_v37, %s8799_s10  ;;  %7001 = vrot.lane.b32.xlu0 %v9626_v16, %s8799_s10 }
  0xfc   : > { %6996 = vrot.lane.b32.xlu1 %v9647_v35, %s8799_s10  ;;  %7011 = vrot.lane.b32.xlu0 %v9651_v18, %s8799_s10 }
 0x100   : > { %7006 = vrot.lane.b32.xlu1 %v9673_v6, %s8799_s10  ;;  %7021 = vrot.lane.b32.xlu0 %v9677_v7, %s8799_s10 }
 0x104   : > { %7016 = vrot.lane.b32.xlu1 %v9691_v4, %s8799_s10  ;;  %7031 = vrot.lane.b32.xlu0 %v9192_v31, %s8800_s11  ;;  %v9707_v31 = vpop.permute.xlu0 %6796 }
 0x108   : > { %7026 = vrot.lane.b32.xlu1 %v9458_v10, %s8799_s10  ;;  %7041 = vrot.lane.b32.xlu0 %v9212_v45, %s8800_s11  ;;  %v9711_v45 = vpop.permute.xlu1 %6801  ;;  %v9715_v29 = vpop.permute.xlu0 %6806  ;;  %s8807_s10 = smov 32  }
 0x10c   : > { %7036 = vrot.lane.b32.xlu1 %v9188_v30, %s8800_s11  ;;  %7051 = vrot.lane.b32.xlu0 %v9254_v11, %s8800_s11  ;;  %v14005_v30 = vld [vmem:[#allocation9_spill] sm:$0xff]  ;;  %v9719_v0 = vpop.permute.xlu1 %6811 }
 0x10e   : > { %v9721_v55 = vpop.permute.xlu0 %6816 }
 0x110   : > { %7046 = vrot.lane.b32.xlu1 %v9234_v60, %s8800_s11  ;;  %7061 = vrot.lane.b32.xlu0 %v9290_v44, %s8800_s11 }
 0x112   : > { %v9726_v51 = vpop.permute.xlu1 %6821 }
 0x114   : > { %7056 = vrot.lane.b32.xlu1 %v14001_v26, %s8800_s11  ;;  %7071 = vrot.lane.b32.xlu0 %v14002_v32, %s8800_s11 }
 0x116   : > { %v9728_v20 = vpop.permute.xlu0 %6826 }
 0x118   : > { %7066 = vrot.lane.b32.xlu1 %v14003_v33, %s8800_s11  ;;  %7081 = vrot.lane.b32.xlu0 %v14004_v34, %s8800_s11 }
 0x11a   : > { %v9743_v3 = vpop.permute.xlu1 %6831 }
 0x11c   : > { %7076 = vrot.lane.b32.xlu1 %v14005_v30, %s8800_s11  ;;  %7091 = vrot.lane.b32.xlu0 %v14006_v28, %s8800_s11 }
 0x11e   : > { %v9745_v50 = vpop.permute.xlu0 %6836 }
 0x11f   : > { %14010 = vst [vmem:[#allocation6_spill] sm:$0xff] %v9745_v50  ;;  %v14026_v50 = vld [vmem:[#allocation17_spill] sm:$0xff] }
 0x120   : > { %7086 = vrot.lane.b32.xlu1 %v14007_v21, %s8800_s11  ;;  %7101 = vrot.lane.b32.xlu0 %v14008_v58, %s8800_s11 }
 0x122   : > { %v9759_v8 = vpop.permute.xlu1 %6841 }
 0x123   : > { %14012 = vst [vmem:[#allocation8_spill] sm:$0xff] %v9759_v8  ;;  %v14024_v8 = vld [vmem:[#allocation15_spill] sm:$0xff] }
 0x124   : > { %7096 = vrot.lane.b32.xlu1 %v14009_v41, %s8800_s11  ;;  %7111 = vrot.lane.b32.xlu0 %v9222_v53, %s8801_s12  ;;  %v958_v53 = vrot.slane %v9737_v42, 1 }
 0x126   : > { %v9748_v19 = vsel %vm854_vm2, %v958_v53, %v959_v2  ;;  %v9761_v27 = vpop.permute.xlu0 %6846 }
 0x127   : > { %14013 = vst [vmem:[#allocation7_spill] sm:$0xff] %v9761_v27 }
 0x128   : > { %7106 = vrot.lane.b32.xlu1 %v9732_v36, %s8800_s11  ;;  %7121 = vrot.lane.b32.xlu0 %v9228_v59, %s8801_s12  ;;  %s8811_s11 = smov 48  }
 0x12a   : > { %v9767_v63 = vpop.permute.xlu1 %6851 }
 0x12b   : > { %14014 = vst [vmem:[#allocation10_spill] sm:$0xff] %v9767_v63 }
 0x12c   : > { %7116 = vrot.lane.b32.xlu1 %v14011_v15, %s8801_s12  ;;  %7131 = vrot.lane.b32.xlu0 %v9266_v24, %s8801_s12 }
 0x12e   : > { %v9769_v53 = vpop.permute.xlu0 %6856 }
 0x12f   : > { %14015 = vst [vmem:[#allocation9_spill] sm:$0xff] %v9769_v53 }
 0x130   : > { %7126 = vrot.lane.b32.xlu1 %v9248_v9, %s8801_s12  ;;  %7141 = vrot.lane.b32.xlu0 %v9302_v62, %s8801_s12 }
 0x132   : > { %v9775_v2 = vpop.permute.xlu1 %6861 }
 0x133   : > { %14016 = vst [vmem:[#allocation13_spill] sm:$0xff] %v9775_v2 }
 0x134   : > { %7136 = vrot.lane.b32.xlu1 %v9284_v43, %s8801_s12  ;;  %7151 = vrot.lane.b32.xlu0 %v9338_v46, %s8801_s12 }
 0x136   : > { %v9777_v1 = vpop.permute.xlu0 %6866 }
 0x137   : > { %14017 = vst [vmem:[#allocation11_spill] sm:$0xff] %v9777_v1  ;;  %v14021_v1 = vld [vmem:[#allocation12_spill] sm:$0xff] }
 0x138   : > { %7146 = vrot.lane.b32.xlu1 %v9320_v17, %s8801_s12  ;;  %7161 = vrot.lane.b32.xlu0 %v9374_v48, %s8801_s12 }
 0x13a   : > { %v9783_v12 = vpop.permute.xlu0 %6881  ;;  %v9785_v63 = vpop.permute.xlu1 %6871 }
 0x13b   : > { %14018 = vst [vmem:[#allocation16_spill] sm:$0xff] %v9783_v12 }
 0x13c   : > { %7156 = vrot.lane.b32.xlu1 %v9356_v5, %s8801_s12  ;;  %7171 = vrot.lane.b32.xlu0 %v9410_v61, %s8801_s12 }
 0x13e   : > { %v9791_v53 = vpop.permute.xlu0 %6891  ;;  %v9793_v2 = vpop.permute.xlu1 %6876 }
 0x13f   : > { %14019 = vst [vmem:[#allocation14_spill] sm:$0xff] %v9791_v53  ;;  %14020 = vst [vmem:[#allocation5_spill] sm:$0xff] %v9793_v2 }
 0x140   : > { %7166 = vrot.lane.b32.xlu1 %v14021_v1, %s8801_s12  ;;  %7181 = vrot.lane.b32.xlu0 %v9448_v25, %s8801_s12 }
 0x142   : > { %v9799_v27 = vpop.permute.xlu0 %6901  ;;  %v9801_v12 = vpop.permute.xlu1 %6886 }
 0x143   : > { %14022 = vst [vmem:[#allocation12_spill] sm:$0xff] %v9799_v27  ;;  %14023 = vst [vmem:[#allocation45_spill] sm:$0xff] %v9801_v12 }
 0x144   : > { %7176 = vrot.lane.b32.xlu1 %v14024_v8, %s8801_s12  ;;  %7191 = vrot.lane.b32.xlu0 %v9535_v57, %s8802_s13 }
 0x146   : > { %v9807_v53 = vpop.permute.xlu0 %6911  ;;  %v9809_v2 = vpop.permute.xlu1 %6896 }
 0x147   : > { %14025 = vst [vmem:[#allocation15_spill] sm:$0xff] %v9807_v53 }
 0x148   : > { %7186 = vrot.lane.b32.xlu1 %v14026_v50, %s8801_s12  ;;  %7201 = vrot.lane.b32.xlu0 %v9563_v22, %s8802_s13 }
 0x14a   : > { %v9815_v27 = vpop.permute.xlu0 %6921  ;;  %v9817_v12 = vpop.permute.xlu1 %6906 }
 0x14b   : > { %14027 = vst [vmem:[#allocation17_spill] sm:$0xff] %v9815_v27 }
 0x14c   : > { %7196 = vrot.lane.b32.xlu1 %v9514_v13, %s8802_s13  ;;  %7211 = vrot.lane.b32.xlu0 %v9591_v54, %s8802_s13 }
 0x14e   : > { %v9823_v57 = vpop.permute.xlu0 %6931  ;;  %v9825_v53 = vpop.permute.xlu1 %6916 }
 0x14f   : > { %14028 = vst [vmem:[#allocation46_spill] sm:$0xff] %v9825_v53 }
 0x150   : > { %7206 = vrot.lane.b32.xlu1 %v9540_v38, %s8802_s13  ;;  %7221 = vrot.lane.b32.xlu0 %v9619_v37, %s8802_s13 }
 0x152   : > { %v9831_v22 = vpop.permute.xlu0 %6941  ;;  %v9833_v27 = vpop.permute.xlu1 %6926 }
 0x153   : > { %14029 = vst [vmem:[#allocation47_spill] sm:$0xff] %v9831_v22  ;;  %14030 = vst [vmem:[#allocation48_spill] sm:$0xff] %v9833_v27  ;;  %v673_v27 = vld [vmem:[#allocation2 + $0x220] sm:$0xff]  ;;  %v8779_v22 = vld [vmem:[#allocation2 + $0x50] sm:$0xff] }
 0x154   : > { %7216 = vrot.lane.b32.xlu1 %v9570_v14, %s8802_s13  ;;  %7231 = vrot.lane.b32.xlu0 %v9647_v35, %s8802_s13  ;;  %v952_v14 = vrot.slane %v673_v27, 7  ;;  %v953_v35 = vrot.slane %v9737_v42, 7 }
 0x156   : > { %v9839_v13 = vpop.permute.xlu1 %6936  ;;  %v9841_v54 = vpop.permute.xlu0 %6951 }
 0x157   : > { %14031 = vst [vmem:[#allocation49_spill] sm:$0xff] %v9839_v13  ;;  %14032 = vst [vmem:[#allocation50_spill] sm:$0xff] %v9841_v54  ;;  %v955_v54 = vrot.slane %v9739_v23, 7 }
 0x158   : > { %7226 = vrot.lane.b32.xlu1 %v9596_v40, %s8802_s13  ;;  %7241 = vrot.lane.b32.xlu0 %v9673_v6, %s8802_s13 }
 0x159   : > { %v956_v6 = vsel %vm725_vm3, %v953_v35, %v955_v54 }
 0x15a   : > { %v9847_v38 = vpop.permute.xlu1 %6946  ;;  %v9849_v37 = vpop.permute.xlu0 %6961 }
 0x15b   : > { %14033 = vst [vmem:[#allocation51_spill] sm:$0xff] %v9849_v37  ;;  %v8778_v37 = vld [vmem:[#allocation2 + $0x48] sm:$0xff] }
 0x15c   : > { %7236 = vrot.lane.b32.xlu1 %v9626_v16, %s8802_s13  ;;  %7251 = vrot.lane.b32.xlu0 %v9691_v4, %s8802_s13  ;;  %v954_v16 = vsel %vm725_vm3, %v952_v14, %v953_v35  ;;  %v7270_v53 = vpack.i.bf16 %v8779_v22, %v8778_v37  ;;  %v8780_v22 = vld [vmem:[#allocation2 + $0x68] sm:$0xff]  ;;  %v8781_v37 = vld [vmem:[#allocation2 + $0x70] sm:$0xff] }
 0x15e   : > { %v9857_v40 = vpop.permute.xlu1 %6956  ;;  %v9859_v13 = vpop.permute.xlu0 %6971 }
 0x15f   : > { %14034 = vst [vmem:[#allocation52_spill] sm:$0xff] %v9859_v13 }
 0x160   : > { %7246 = vrot.lane.b32.xlu1 %v9651_v18, %s8802_s13  ;;  %7261 = vrot.lane.b32.xlu0 %v9458_v10, %s8802_s13  ;;  %v7265_v18 = vpack.i.bf16 %v956_v6, %v954_v16 }
 0x162   : > { %v9867_v4 = vpop.permute.xlu1 %6966  ;;  %v9869_v27 = vpop.permute.xlu0 %6981 }
 0x164   : > { %7256 = vrot.lane.b32.xlu1 %v9677_v7, %s8802_s13  ;;  %7271 = vrot.lane.b32.xlu0 %v7270_v53, %s8803_s14  ;;  %v7275_v7 = vpack.i.bf16 %v8781_v37, %v8780_v22  ;;  %v8632_v53 = vld [vmem:[%s13741_s2] sm:$0xff]   ;;  %v6874_v22 = vunpack.i.h.bf16 %v9785_v63  ;;  %v6873_v37 = vunpack.i.l.bf16 %v9785_v63 }
 0x165   : > { %6676 = vmatprep.subr.bf16.mxu0 %v8632_v53 }
 0x166   : > { %v9874_v13 = vpop.permute.xlu1 %6976  ;;  %v9876_v10 = vpop.permute.xlu0 %6991  ;;  %6677 = vmatpush3.bf16.msra.mxu0 %v8632_v53 }
 0x168   : > { %7266 = vrot.lane.b32.xlu1 %v7265_v18, %s8802_s13  ;;  %7281 = vrot.lane.b32.xlu0 %v9234_v60, %s8803_s14  ;;  %v8633_v60 = vld [vmem:[%s13741_s2 + $0x8] sm:$0xff]  }
 0x169   : > { %6678 = vmatprep.subr.bf16.mxu0 %v8633_v60 }
 0x16a   : > { %v9881_v54 = vpop.permute.xlu1 %6986  ;;  %v9883_v14 = vpop.permute.xlu0 %7001  ;;  %6679 = vmatpush3.bf16.msra.mxu0 %v8633_v60  ;;  %v1763_v60 = vsel %vm1731_vm5, %v9663_v49, %v6874_v22 }
 0x16c   : > { %7276 = vrot.lane.b32.xlu1 %v7275_v7, %s8803_s14  ;;  %7291 = vrot.lane.b32.xlu0 %v14001_v26, %s8803_s14  ;;  %v6949_v7 = vunpack.i.h.bf16 %v9847_v38 }
 0x16e   : > { %v9891_v35 = vpop.permute.xlu1 %6996  ;;  %v9893_v16 = vpop.permute.xlu0 %7011 }
 0x170   : > { %7286 = vrot.lane.b32.xlu1 %v9254_v11, %s8803_s14  ;;  %7301 = vrot.lane.b32.xlu0 %v14003_v33, %s8803_s14  ;;  %v8634_v11 = vld [vmem:[%s13741_s2 + $0x10] sm:$0xff]  }
 0x171   : > { %6680 = vmatprep.subr.bf16.mxu0 %v8634_v11 }
 0x172   : > { %v9902_v26 = vpop.permute.xlu1 %7006  ;;  %v9904_v6 = vpop.permute.xlu0 %7021  ;;  %6681 = vmatpush3.bf16.msra.mxu0 %v8634_v11 }
 0x174   : > { %7296 = vrot.lane.b32.xlu1 %v9290_v44, %s8803_s14  ;;  %7311 = vrot.lane.b32.xlu0 %v14005_v30, %s8803_s14  ;;  %v6948_v44 = vunpack.i.l.bf16 %v9847_v38  ;;  %v8635_v30 = vld [vmem:[%s13741_s2 + $0x18] sm:$0xff]   ;;  %v1762_v38 = vsel %vm1731_vm5, %v9660_v52, %v6873_v37  ;;  %v8636_v52 = vld [vmem:[%s13741_s2 + $0x20] sm:$0xff]  }
 0x175   : > { %6682 = vmatprep.subr.bf16.mxu0 %v8635_v30 }
 0x176   : > { %v9913_v33 = vpop.permute.xlu1 %7016  ;;  %v9915_v18 = vpop.permute.xlu0 %7031  ;;  %v1795_v11 = vsel %vm1764_vm6, %v1762_v38, %v6948_v44  ;;  %6683 = vmatpush3.bf16.msra.mxu0 %v8635_v30 }
 0x177   : > { %14035 = vst [vmem:[#allocation53_spill] sm:$0xff] %v9915_v18  ;;  %6684 = vmatprep.subr.bf16.mxu0 %v8636_v52 }
 0x178   : > { %7306 = vrot.lane.b32.xlu1 %v14002_v32, %s8803_s14  ;;  %7321 = vrot.lane.b32.xlu0 %v14007_v21, %s8803_s14  ;;  %v1796_v21 = vsel %vm1764_vm6, %v1763_v60, %v6949_v7 }
 0x17a   : > { %v7027_v53 = vpop.permute.xlu1 %7026  ;;  %v9928_v63 = vpop.permute.xlu0 %7041  ;;  %6685 = vmatpush3.bf16.msra.mxu0 %v8636_v52  ;;  %v14061_v52 = vld [vmem:[#allocation3_spill] sm:$0xff] }
 0x17b   : > { %14036 = vst [vmem:[#allocation54_spill] sm:$0xff] %v9928_v63  ;;  %v7029_v32 = vunpack.i.h.bf16 %v7027_v53  ;;  %v7028_v18 = vunpack.i.l.bf16 %v7027_v53 }
 0x17c   : > { %7316 = vrot.lane.b32.xlu1 %v14004_v34, %s8803_s14  ;;  %7331 = vrot.lane.b32.xlu0 %v14009_v41, %s8803_s14  ;;  %v8637_v41 = vld [vmem:[%s13741_s2 + $0x28] sm:$0x1f]  }
 0x17d   : > { %v1828_v63 = vsel %vm1797_vm7, %v1795_v11, %v7028_v18  ;;  %v1829_v49 = vsel %vm1797_vm7, %v1796_v21, %v7029_v32  ;;  %6758 = vmatprep.subr.msk.bf16.mxu0 %vm2112_vm8, %v8637_v41  ;;  %v605_v32 = vld [vmem:[#allocation2] sm:$0xff]  ;;  %v14058_v21 = vpack.i.bf16 %v9755_v39, %v9748_v19  ;;  %v6798_v39 = vunpack.i.l.bf16 %v9707_v31 }
 0x17e   : > { %v9945_v22 = vpop.permute.xlu1 %7036  ;;  %v9947_v37 = vpop.permute.xlu0 %7051 }
 0x17f   : > { %14037 = vst [vmem:[#allocation55_spill] sm:$0xff] %v9945_v22  ;;  %14038 = vst [vmem:[#allocation56_spill] sm:$0xff] %v9947_v37  ;;  %v14114_v22 = vld [vmem:[#allocation12_spill] sm:$0xff] }
 0x180   : > { %7326 = vrot.lane.b32.xlu1 %v14006_v28, %s8803_s14  ;;  %7341 = vrot.lane.b32.xlu0 %v9732_v36, %s8803_s14  ;;  %v7345_v36 = vpack.i.bf16 %v9739_v23, %v9737_v42  ;;  %v2114_v28 = vsel %vm2112_vm8, %v8637_v41, 0  ;;  %v14062_v41 = vrot.slane %v14061_v52, 7  ;;  %v6808_v52 = vunpack.i.l.bf16 %v9715_v29 }
 0x181   : > { %6687 = vmatpush3.bf16.msra.mxu0 %v2114_v28  ;;  %vm3597_vm8 = vcmask 916480  }
 0x182   : > { %v9956_v34 = vpop.permute.xlu1 %7046  ;;  %v9958_v18 = vpop.permute.xlu0 %7061 }
 0x183   : > { %14039 = vst [vmem:[#allocation57_spill] sm:$0xff] %v9956_v34  ;;  %14040 = vst [vmem:[#allocation58_spill] sm:$0xff] %v9958_v18  ;;  %v14105_v18 = vld [vmem:[#allocation41_spill] sm:$0xff] }
 0x184   : > { %7336 = vrot.lane.b32.xlu1 %v14008_v58, %s8803_s14  ;;  %7351 = vrot.lane.b32.xlu0 %v14011_v15, %s8804_s30 }
 0x186   : > { %v9966_v7 = vpop.permute.xlu1 %7056  ;;  %v9968_v44 = vpop.permute.xlu0 %7071 }
 0x187   : > { %14041 = vst [vmem:[#allocation59_spill] sm:$0xff] %v9966_v7  ;;  %14042 = vst [vmem:[#allocation60_spill] sm:$0xff] %v9968_v44  ;;  %v14101_v44 = vld [vmem:[#allocation36_spill] sm:$0xff] }
 0x188   : > { %7346 = vrot.lane.b32.xlu1 %v7345_v36, %s8803_s14  ;;  %7361 = vrot.lane.b32.xlu0 %v9248_v9, %s8804_s30  ;;  %v6794_v36 = vunpack.i.h.bf16 %v9703_v47 }
 0x18a   : > { %v9973_v30 = vpop.permute.xlu1 %7066  ;;  %v9975_v58 = vpop.permute.xlu0 %7081 }
 0x18b   : > { %14043 = vst [vmem:[#allocation61_spill] sm:$0xff] %v9973_v30  ;;  %14044 = vst [vmem:[#allocation62_spill] sm:$0xff] %v9975_v58  ;;  %v14097_v30 = vld [vmem:[#allocation32_spill] sm:$0xff] }
 0x18c   : > { %7356 = vrot.lane.b32.xlu1 %v9228_v59, %s8804_s30  ;;  %7371 = vrot.lane.b32.xlu0 %v9284_v43, %s8804_s30 }
 0x18e   : > { %v9981_v15 = vpop.permute.xlu1 %7076  ;;  %v9983_v42 = vpop.permute.xlu0 %7091 }
 0x18f   : > { %14045 = vst [vmem:[#allocation63_spill] sm:$0xff] %v9981_v15  ;;  %14046 = vst [vmem:[#allocation64_spill] sm:$0xff] %v9983_v42 }
 0x190   : > { %7366 = vrot.lane.b32.xlu1 %v9266_v24, %s8804_s30  ;;  %7381 = vrot.lane.b32.xlu0 %v9320_v17, %s8804_s30 }
 0x192   : > { %v9989_v9 = vpop.permute.xlu1 %7086  ;;  %v9991_v23 = vpop.permute.xlu0 %7101 }
 0x193   : > { %14047 = vst [vmem:[#allocation65_spill] sm:$0xff] %v9989_v9  ;;  %14048 = vst [vmem:[#allocation66_spill] sm:$0xff] %v9991_v23  ;;  %v14090_v23 = vld [vmem:[#allocation13_spill] sm:$0xff] }
 0x194   : > { %7376 = vrot.lane.b32.xlu1 %v9302_v62, %s8804_s30  ;;  %7391 = vrot.lane.b32.xlu0 %v9356_v5, %s8804_s30  ;;  %v6864_v9 = vunpack.i.h.bf16 %v14090_v23 }
 0x196   : > { %v9997_v59 = vpop.permute.xlu1 %7096  ;;  %v9999_v43 = vpop.permute.xlu0 %7111 }
 0x197   : > { %14049 = vst [vmem:[#allocation67_spill] sm:$0xff] %v9997_v59  ;;  %14050 = vst [vmem:[#allocation68_spill] sm:$0xff] %v9999_v43  ;;  %v14089_v43 = vld [vmem:[#allocation9_spill] sm:$0xff] }
 0x198   : > { %7386 = vrot.lane.b32.xlu1 %v9338_v46, %s8804_s30  ;;  %7401 = vrot.lane.b32.xlu0 %v14021_v1, %s8804_s30  ;;  %v6859_v59 = vunpack.i.h.bf16 %v14089_v43 }
 0x19a   : > { %v7107_v24 = vpop.permute.xlu1 %7106  ;;  %v10005_v17 = vpop.permute.xlu0 %7121 }
 0x19b   : > { %14051 = vst [vmem:[#allocation69_spill] sm:$0xff] %v10005_v17  ;;  %v7109_v53 = vunpack.i.h.bf16 %v7107_v24  ;;  %v7108_v60 = vunpack.i.l.bf16 %v7107_v24 }
 0x19c   : > { %7396 = vrot.lane.b32.xlu1 %v9374_v48, %s8804_s30  ;;  %7411 = vrot.lane.b32.xlu0 %v14024_v8, %s8804_s30 }
 0x19d   : > { %v10012_v62 = vsel %vm1830_vm9, %v1828_v63, %v7108_v60  ;;  %v10015_v46 = vsel %vm1830_vm9, %v1829_v49, %v7109_v53  ;;  %v6793_v49 = vunpack.i.l.bf16 %v9703_v47  ;;  %v6799_v53 = vunpack.i.h.bf16 %v9707_v31  ;;  %v14065_v60 = vld [vmem:[#allocation4_spill] sm:$0xff] }
 0x19e   : > { %v10017_v5 = vpop.permute.xlu1 %7116  ;;  %v10019_v1 = vpop.permute.xlu0 %7131  ;;  %v6819_v31 = vunpack.i.h.bf16 %v9721_v55 }
 0x19f   : > { %14052 = vst [vmem:[#allocation70_spill] sm:$0xff] %v10017_v5  ;;  %14053 = vst [vmem:[#allocation71_spill] sm:$0xff] %v10019_v1  ;;  %v14087_v5 = vld [vmem:[#allocation34_spill] sm:$0xff] }
 0x1a0   : > { %7406 = vrot.lane.b32.xlu1 %v9410_v61, %s8804_s30  ;;  %7421 = vrot.lane.b32.xlu0 %v14026_v50, %s8804_s30  ;;  %v726_v61 = vrot.slane %v605_v32, 7  ;;  %v1733_v32 = vsel %vm1731_vm5, %v14065_v60, %v6794_v36  ;;  %v6818_v36 = vunpack.i.l.bf16 %v9721_v55  ;;  %v6823_v60 = vunpack.i.l.bf16 %v9726_v51 }
 0x1a2   : > { %v10025_v48 = vpop.permute.xlu1 %7126  ;;  %v10027_v38 = vpop.permute.xlu0 %7141 }
 0x1a3   : > { %14054 = vst [vmem:[#allocation72_spill] sm:$0xff] %v10025_v48  ;;  %14055 = vst [vmem:[#allocation73_spill] sm:$0xff] %v10027_v38  ;;  %v14080_v38 = vld [vmem:[#allocation30_spill] sm:$0xff] }
 0x1a4   : > { %7416 = vrot.lane.b32.xlu1 %v9448_v25, %s8804_s30  ;;  %v728_v25 = vsel %vm725_vm3, %v726_v61, %v14062_v41  ;;  %v6803_v61 = vunpack.i.l.bf16 %v9711_v45 }
 0x1a5   : > { %v1732_v19 = vsel %vm1731_vm5, %v728_v25, %v6793_v49  ;;  %v6813_v49 = vunpack.i.l.bf16 %v9719_v0 }
 0x1a6   : > { %v10031_v8 = vpop.permute.xlu1 %7136  ;;  %v10033_v63 = vpop.permute.xlu0 %7151  ;;  %v10069_v25 = vsel %vm1764_vm6, %v1732_v19, %v6798_v39  ;;  %v14068_v39 = vld [vmem:[#allocation22_spill] sm:$0xff]  ;;  %v14069_v19 = vld [vmem:[#allocation19_spill] sm:$0xff] }
 0x1a7   : > { %14056 = vst [vmem:[#allocation74_spill] sm:$0xff] %v10031_v8  ;;  %14057 = vst [vmem:[#allocation75_spill] sm:$0xff] %v10033_v63  ;;  %v14077_v8 = vld [vmem:[#allocation24_spill] sm:$0xff] }
 0x1a8   : > { %7426 = vrot.lane.b32.xlu1 %v14058_v21, %s8804_s30  ;;  %v6809_v21 = vunpack.i.h.bf16 %v9715_v29  ;;  %v6824_v29 = vunpack.i.h.bf16 %v9726_v51  ;;  %v10090_v51 = vsel %vm1731_vm5, %v14069_v19, %v6803_v61  ;;  %v14075_v61 = vld [vmem:[#allocation26_spill] sm:$0xff] }
 0x1a9   : > { %v1741_v19 = vsel %vm1731_vm5, %v14075_v61, %v6819_v31 }
 0x1aa   : > { %v10039_v11 = vpop.permute.xlu1 %7146  ;;  %v10041_v50 = vpop.permute.xlu0 %7161  ;;  %v10086_v55 = vsel %vm1731_vm5, %v14068_v39, %v6809_v21  ;;  %v14074_v21 = vld [vmem:[#allocation20_spill] sm:$0xff] }
 0x1ab   : > { %14059 = vst [vmem:[#allocation76_spill] sm:$0xff] %v10039_v11  ;;  %14060 = vst [vmem:[#allocation77_spill] sm:$0xff] %v10041_v50  ;;  %v10082_v50 = vsel %vm1731_vm5, %v9531_v56, %v6808_v52  ;;  %v14073_v56 = vld [vmem:[#allocation21_spill] sm:$0xff]  ;;  %v10107_v39 = vsel %vm1731_vm5, %v14074_v21, %v6813_v49 }
 0x1ac   : > { %v14081_v21 = vld [vmem:[#allocation29_spill] sm:$0xff] }
 0x1ae   : > { %v10048_v28 = vpop.permute.xlu1 %7156  ;;  %v10050_v24 = vpop.permute.xlu0 %7171 }
 0x1af   : > { %14063 = vst [vmem:[#allocation3_spill] sm:$0xff] %v10048_v28  ;;  %14064 = vst [vmem:[#allocation78_spill] sm:$0xff] %v10050_v24  ;;  %v6804_v24 = vunpack.i.h.bf16 %v9711_v45  ;;  %v6814_v28 = vunpack.i.h.bf16 %v9719_v0  ;;  %v6829_v45 = vunpack.i.h.bf16 %v9728_v20  ;;  %v6834_v0 = vunpack.i.h.bf16 %v9743_v3 }
 0x1b1   : > { %v10103_v52 = vsel %vm1731_vm5, %v14073_v56, %v6814_v28  ;;  %v14079_v28 = vld [vmem:[#allocation6_spill] sm:$0xff]  ;;  %v10126_v49 = vsel %vm1731_vm5, %v14080_v38, %v6829_v45 }
 0x1b2   : > { %v10060_v47 = vpop.permute.xlu1 %7166  ;;  %v10062_v41 = vpop.permute.xlu0 %7181  ;;  %v6839_v56 = vunpack.i.h.bf16 %v14079_v28 }
 0x1b3   : > { %14066 = vst [vmem:[#allocation4_spill] sm:$0xff] %v10060_v47  ;;  %14067 = vst [vmem:[#allocation79_spill] sm:$0xff] %v10062_v41  ;;  %v10075_v47 = vsel %vm1764_vm6, %v1733_v32, %v6799_v53  ;;  %v6828_v41 = vunpack.i.l.bf16 %v9728_v20  ;;  %v6833_v53 = vunpack.i.l.bf16 %v9743_v3  ;;  %v14072_v20 = vld [vmem:[#allocation18_spill] sm:$0xff]  ;;  %v14076_v3 = vld [vmem:[#allocation25_spill] sm:$0xff] }
 0x1b4   : > { %v10099_v63 = vsel %vm1731_vm5, %v14072_v20, %v6804_v24  ;;  %v14078_v24 = vld [vmem:[#allocation23_spill] sm:$0xff]  ;;  %v1749_v17 = vsel %vm1731_vm5, %v14087_v5, %v6839_v56  ;;  %v6863_v56 = vunpack.i.l.bf16 %v14090_v23  ;;  %v14100_v23 = vld [vmem:[#allocation37_spill] sm:$0xff] }
 0x1b5   : > { %v10121_v20 = vsel %vm1731_vm5, %v14078_v24, %v6823_v60  ;;  %v10130_v31 = vsel %vm1731_vm5, %v14081_v21, %v6828_v41  ;;  %v6838_v60 = vunpack.i.l.bf16 %v14079_v28  ;;  %v14086_v41 = vld [vmem:[#allocation7_spill] sm:$0xff] }
 0x1b6   : > { %v10093_v32 = vpop.permute.xlu1 %7176  ;;  %v10095_v11 = vpop.permute.xlu0 %7191  ;;  %v6849_v21 = vunpack.i.h.bf16 %v14086_v41  ;;  %v6848_v1 = vunpack.i.l.bf16 %v14086_v41  ;;  %v14093_v41 = vld [vmem:[#allocation33_spill] sm:$0xff] }
 0x1b7   : > { %14070 = vst [vmem:[#allocation22_spill] sm:$0xff] %v10093_v32  ;;  %14071 = vst [vmem:[#allocation19_spill] sm:$0xff] %v10095_v11  ;;  %v10113_v32 = vsel %vm1731_vm5, %v14076_v3, %v6818_v36  ;;  %v10117_v11 = vsel %vm1731_vm5, %v14077_v8, %v6824_v29  ;;  %v14082_v36 = vld [vmem:[#allocation28_spill] sm:$0xff]  ;;  %v14083_v8 = vld [vmem:[#allocation27_spill] sm:$0xff]  ;;  %v1748_v5 = vsel %vm1731_vm5, %v14093_v41, %v6838_v60 }
 0x1b8   : > { %v10134_v61 = vsel %vm1731_vm5, %v14082_v36, %v6834_v0  ;;  %v10138_v29 = vsel %vm1731_vm5, %v14083_v8, %v6833_v53  ;;  %v14084_v3 = vld [vmem:[#allocation8_spill] sm:$0xff]  ;;  %v14088_v53 = vld [vmem:[#allocation10_spill] sm:$0xff]  ;;  %v1752_v41 = vsel %vm1731_vm5, %v14100_v23, %v6848_v1  ;;  %v14108_v23 = vld [vmem:[#allocation39_spill] sm:$0xff] }
 0x1b9   : > { %v6844_v24 = vunpack.i.h.bf16 %v14084_v3  ;;  %v6843_v38 = vunpack.i.l.bf16 %v14084_v3  ;;  %v6854_v8 = vunpack.i.h.bf16 %v14088_v53  ;;  %v6853_v28 = vunpack.i.l.bf16 %v14088_v53  ;;  %v14094_v53 = vld [vmem:[#allocation11_spill] sm:$0xff] }
 0x1ba   : > { %v7187_v45 = vpop.permute.xlu1 %7186  ;;  %v10143_v48 = vpop.permute.xlu0 %7201  ;;  %v6858_v3 = vunpack.i.l.bf16 %v14089_v43  ;;  %v6869_v42 = vunpack.i.h.bf16 %v14094_v53  ;;  %v6868_v15 = vunpack.i.l.bf16 %v14094_v53 }
 0x1bb   : > { %14085 = vst [vmem:[#allocation18_spill] sm:$0xff] %v10143_v48  ;;  %v7189_v0 = vunpack.i.h.bf16 %v7187_v45  ;;  %v7188_v36 = vunpack.i.l.bf16 %v7187_v45  ;;  %v10185_v53 = vsel %vm1731_vm5, %v14101_v44, %v6854_v8  ;;  %v14107_v44 = vld [vmem:[#allocation14_spill] sm:$0xff] }
 0x1bc   : > { %v6894_v8 = vunpack.i.h.bf16 %v14107_v44 }
 0x1bd   : > { %v10156_v48 = vsel %vm1863_vm10, %v10012_v62, %v7188_v36  ;;  %v10160_v45 = vsel %vm1863_vm10, %v10015_v46, %v7189_v0  ;;  %v10173_v62 = vsel %vm1731_vm5, %v14097_v30, %v6844_v24  ;;  %v14098_v36 = vld [vmem:[#allocation31_spill] sm:$0xff]  ;;  %v14099_v0 = vld [vmem:[#allocation38_spill] sm:$0xff]  ;;  %v14103_v30 = vld [vmem:[#allocation16_spill] sm:$0xff] }
 0x1be   : > { %14091 = vst [vmem:[#allocation21_spill] sm:$0xff] %v10156_v48  ;;  %14092 = vst [vmem:[#allocation20_spill] sm:$0xff] %v10160_v45  ;;  %v10167_v43 = vpop.permute.xlu1 %7196  ;;  %v10169_v58 = vpop.permute.xlu0 %7211  ;;  %v10177_v46 = vsel %vm1731_vm5, %v14098_v36, %v6843_v38  ;;  %v1753_v60 = vsel %vm1731_vm5, %v14099_v0, %v6849_v21  ;;  %v6884_v24 = vunpack.i.h.bf16 %v14103_v30  ;;  %v6883_v7 = vunpack.i.l.bf16 %v14103_v30  ;;  %v14104_v38 = vld [vmem:[#allocation42_spill] sm:$0xff]  ;;  %v14106_v0 = vld [vmem:[#allocation40_spill] sm:$0xff] }
 0x1bf   : > { %14095 = vst [vmem:[#allocation26_spill] sm:$0xff] %v10167_v43  ;;  %14096 = vst [vmem:[#allocation25_spill] sm:$0xff] %v10169_v58  ;;  %v14102_v43 = vld [vmem:[#allocation35_spill] sm:$0xff]  ;;  %v1757_v36 = vsel %vm1731_vm5, %v14104_v38, %v6859_v59  ;;  %v1756_v21 = vsel %vm1731_vm5, %v14105_v18, %v6858_v3  ;;  %v10199_v1 = vsel %vm1731_vm5, %v14106_v0, %v6864_v9  ;;  %v6893_v59 = vunpack.i.l.bf16 %v14107_v44  ;;  %v14113_v9 = vld [vmem:[#allocation5_spill] sm:$0xff] }
 0x1c0   : > { %v10189_v58 = vsel %vm1731_vm5, %v14102_v43, %v6853_v28  ;;  %v10204_v28 = vsel %vm1731_vm5, %v14108_v23, %v6863_v56  ;;  %v14109_v43 = vld [vmem:[#allocation44_spill] sm:$0xff]  ;;  %v14110_v30 = vld [vmem:[#allocation43_spill] sm:$0xff]  ;;  %v6879_v3 = vunpack.i.h.bf16 %v14113_v9  ;;  %v6878_v0 = vunpack.i.l.bf16 %v14113_v9  ;;  %v14115_v44 = vld [vmem:[#allocation45_spill] sm:$0xff] }
 0x1c1   : > { %v1761_v34 = vsel %vm1731_vm5, %v14109_v43, %v6869_v42  ;;  %v1760_v37 = vsel %vm1731_vm5, %v14110_v30, %v6868_v15  ;;  %v6904_v45 = vunpack.i.h.bf16 %v14114_v22  ;;  %v6903_v56 = vunpack.i.l.bf16 %v14114_v22  ;;  %v14116_v9 = vld [vmem:[#allocation15_spill] sm:$0xff] }
 0x1c2   : > { %v10211_v38 = vpop.permute.xlu1 %7206  ;;  %v10213_v18 = vpop.permute.xlu0 %7221  ;;  %v10221_v42 = vsel %vm1764_vm6, %v10082_v50, %v6883_v7  ;;  %v10225_v15 = vsel %vm1764_vm6, %v10086_v55, %v6884_v24  ;;  %v6889_v23 = vunpack.i.h.bf16 %v14115_v44  ;;  %v6888_v43 = vunpack.i.l.bf16 %v14115_v44  ;;  %v14117_v55 = vld [vmem:[#allocation17_spill] sm:$0xff] }
 0x1c3   : > { %14111 = vst [vmem:[#allocation24_spill] sm:$0xff] %v10211_v38  ;;  %14112 = vst [vmem:[#allocation23_spill] sm:$0xff] %v10213_v18  ;;  %v10230_v30 = vsel %vm1764_vm6, %v1741_v19, %v6894_v8  ;;  %v6914_v18 = vunpack.i.h.bf16 %v14116_v9  ;;  %v6913_v38 = vunpack.i.l.bf16 %v14116_v9  ;;  %v6899_v22 = vunpack.i.h.bf16 %v9809_v2 }
 0x1c4   : > { %v10237_v7 = vsel %vm1764_vm6, %v10113_v32, %v6893_v59  ;;  %v6898_v50 = vunpack.i.l.bf16 %v9809_v2  ;;  %v6924_v24 = vunpack.i.h.bf16 %v14117_v55  ;;  %v6923_v48 = vunpack.i.l.bf16 %v14117_v55 }
 0x1c5   : > { %v1767_v8 = vsel %vm1764_vm6, %v10090_v51, %v6878_v0  ;;  %v1768_v9 = vsel %vm1764_vm6, %v10099_v63, %v6879_v3  ;;  %v10252_v32 = vsel %vm1764_vm6, %v10126_v49, %v6904_v45  ;;  %v10256_v2 = vsel %vm1764_vm6, %v10130_v31, %v6903_v56  ;;  %v14122_v56 = vld [vmem:[#allocation47_spill] sm:$0xff] }
 0x1c6   : > { %v10242_v44 = vpop.permute.xlu1 %7216  ;;  %v10244_v19 = vpop.permute.xlu0 %7231  ;;  %v10260_v59 = vsel %vm1764_vm6, %v10103_v52, %v6889_v23  ;;  %v10264_v55 = vsel %vm1764_vm6, %v10107_v39, %v6888_v43  ;;  %v6909_v51 = vunpack.i.h.bf16 %v9817_v12  ;;  %v6908_v63 = vunpack.i.l.bf16 %v9817_v12 }
 0x1c7   : > { %14118 = vst [vmem:[#allocation6_spill] sm:$0xff] %v10244_v19  ;;  %v10269_v3 = vsel %vm1764_vm6, %v1749_v17, %v6914_v18  ;;  %v10272_v49 = vsel %vm1764_vm6, %v1748_v5, %v6913_v38  ;;  %v10276_v31 = vsel %vm1764_vm6, %v10117_v11, %v6899_v22  ;;  %v6934_v52 = vunpack.i.h.bf16 %v9823_v57  ;;  %v14121_v11 = vld [vmem:[#allocation46_spill] sm:$0xff] }
 0x1c8   : > { %v10281_v39 = vsel %vm1764_vm6, %v10121_v20, %v6898_v50  ;;  %v10284_v45 = vsel %vm1764_vm6, %v1753_v60, %v6924_v24  ;;  %v10287_v12 = vsel %vm1764_vm6, %v1752_v41, %v6923_v48  ;;  %v6933_v17 = vunpack.i.l.bf16 %v9823_v57  ;;  %v14123_v57 = vld [vmem:[#allocation48_spill] sm:$0xff]  ;;  %v14124_v50 = vld [vmem:[#allocation49_spill] sm:$0xff] }
 0x1c9   : > { %v6919_v18 = vunpack.i.h.bf16 %v14121_v11  ;;  %v6918_v0 = vunpack.i.l.bf16 %v14121_v11  ;;  %v6944_v23 = vunpack.i.h.bf16 %v14122_v56  ;;  %v6943_v20 = vunpack.i.l.bf16 %v14122_v56 }
 0x1ca   : > { %v10290_v5 = vpop.permute.xlu1 %7226  ;;  %v10292_v38 = vpop.permute.xlu0 %7241  ;;  %v10300_v60 = vsel %vm1764_vm6, %v10134_v61, %v6909_v51  ;;  %v1779_v48 = vsel %vm1764_vm6, %v10138_v29, %v6908_v63  ;;  %v6929_v41 = vunpack.i.h.bf16 %v14123_v57  ;;  %v6928_v43 = vunpack.i.l.bf16 %v14123_v57  ;;  %v14126_v51 = vld [vmem:[#allocation51_spill] sm:$0xff] }
 0x1cb   : > { %14119 = vst [vmem:[#allocation30_spill] sm:$0xff] %v10290_v5  ;;  %14120 = vst [vmem:[#allocation29_spill] sm:$0xff] %v10292_v38  ;;  %v10307_v22 = vsel %vm1764_vm6, %v1757_v36, %v6934_v52  ;;  %v6939_v24 = vunpack.i.h.bf16 %v14124_v50  ;;  %v6938_v11 = vunpack.i.l.bf16 %v14124_v50  ;;  %v14125_v38 = vld [vmem:[#allocation50_spill] sm:$0xff]  ;;  %v10313_v5 = vsel %vm1764_vm6, %v1756_v21, %v6933_v17 }
 0x1cc   : > { %v6954_v56 = vunpack.i.h.bf16 %v14125_v38  ;;  %v6953_v61 = vunpack.i.l.bf16 %v14125_v38  ;;  %v6964_v29 = vunpack.i.h.bf16 %v14126_v51  ;;  %v6963_v63 = vunpack.i.l.bf16 %v14126_v51 }
 0x1cd   : > { %v1784_v36 = vsel %vm1764_vm6, %v10173_v62, %v6919_v18  ;;  %v1783_v52 = vsel %vm1764_vm6, %v10177_v46, %v6918_v0  ;;  %v10327_v50 = vsel %vm1764_vm6, %v1761_v34, %v6944_v23  ;;  %v10330_v21 = vsel %vm1764_vm6, %v1760_v37, %v6943_v20 }
 0x1ce   : > { %v10318_v19 = vpop.permute.xlu1 %7236  ;;  %v10320_v57 = vpop.permute.xlu0 %7251  ;;  %v10334_v17 = vsel %vm1764_vm6, %v10185_v53, %v6929_v41  ;;  %v10338_v38 = vsel %vm1764_vm6, %v10189_v58, %v6928_v43  ;;  %v6959_v51 = vunpack.i.h.bf16 %v9857_v40  ;;  %v6958_v62 = vunpack.i.l.bf16 %v9857_v40  ;;  %v14127_v53 = vld [vmem:[#allocation52_spill] sm:$0xff] }
 0x1cf   : > { %v10344_v46 = vsel %vm1764_vm6, %v10199_v1, %v6939_v24  ;;  %v10348_v37 = vsel %vm1764_vm6, %v10204_v28, %v6938_v11  ;;  %v10352_v34 = vsel %vm1797_vm7, %v10075_v47, %v6954_v56  ;;  %v6974_v18 = vunpack.i.h.bf16 %v14127_v53 }
 0x1d0   : > { %v10357_v58 = vsel %vm1797_vm7, %v10069_v25, %v6953_v61  ;;  %v10361_v40 = vsel %vm1797_vm7, %v10225_v15, %v6964_v29  ;;  %v10365_v1 = vsel %vm1797_vm7, %v10221_v42, %v6963_v63  ;;  %v6973_v28 = vunpack.i.l.bf16 %v14127_v53 }
 0x1d1   : > { %v6969_v23 = vunpack.i.h.bf16 %v9867_v4  ;;  %v6968_v20 = vunpack.i.l.bf16 %v9867_v4  ;;  %v6984_v25 = vunpack.i.h.bf16 %v9869_v27  ;;  %v6983_v41 = vunpack.i.l.bf16 %v9869_v27 }
 0x1d2   : > { %v10368_v0 = vpop.permute.xlu1 %7246  ;;  %v10370_v47 = vpop.permute.xlu0 %7261  ;;  %v10377_v15 = vsel %vm1797_vm7, %v1767_v8, %v6958_v62  ;;  %v10380_v42 = vsel %vm1797_vm7, %v1768_v9, %v6959_v51  ;;  %v6979_v43 = vunpack.i.h.bf16 %v9874_v13  ;;  %v6978_v24 = vunpack.i.l.bf16 %v9874_v13 }
 0x1d3   : > { %14128 = vst [vmem:[#allocation28_spill] sm:$0xff] %v10370_v47  ;;  %v10386_v11 = vsel %vm1797_vm7, %v10230_v30, %v6974_v18  ;;  %v6994_v4 = vunpack.i.h.bf16 %v9876_v10  ;;  %v6993_v56 = vunpack.i.l.bf16 %v9876_v10  ;;  %v6988_v27 = vunpack.i.l.bf16 %v9881_v54  ;;  %v14156_v47 = vld [vmem:[#allocation71_spill] sm:$0xff] }
 0x1d4   : > { %v10393_v8 = vsel %vm1797_vm7, %v10237_v7, %v6973_v28  ;;  %v6989_v9 = vunpack.i.h.bf16 %v9881_v54  ;;  %v7004_v61 = vunpack.i.h.bf16 %v9883_v14  ;;  %v7003_v13 = vunpack.i.l.bf16 %v9883_v14 }
 0x1d5   : > { %v10404_v63 = vsel %vm1797_vm7, %v10264_v55, %v6968_v20  ;;  %v10408_v10 = vsel %vm1797_vm7, %v10260_v59, %v6969_v23  ;;  %v10412_v7 = vsel %vm1797_vm7, %v10252_v32, %v6984_v25  ;;  %v10416_v54 = vsel %vm1797_vm7, %v10256_v2, %v6983_v41 }
 0x1d6   : > { %v10398_v29 = vpop.permute.xlu1 %7256  ;;  %v10400_v30 = vpop.permute.xlu0 %7271  ;;  %v10420_v14 = vsel %vm1797_vm7, %v10281_v39, %v6978_v24  ;;  %v10424_v55 = vsel %vm1797_vm7, %v10276_v31, %v6979_v43  ;;  %v6999_v51 = vunpack.i.h.bf16 %v9891_v35  ;;  %v6998_v59 = vunpack.i.l.bf16 %v9891_v35  ;;  %v14130_v43 = vld [vmem:[#allocation21_spill] sm:$0xff]  ;;  %v14131_v24 = vld [vmem:[#allocation20_spill] sm:$0xff] }
 0x1d7   : > { %14129 = vst [vmem:[#allocation27_spill] sm:$0xff] %v10398_v29  ;;  %v10430_v32 = vsel %vm1797_vm7, %v10269_v3, %v6994_v4  ;;  %v10434_v2 = vsel %vm1797_vm7, %v10272_v49, %v6993_v56  ;;  %v10437_v62 = vsel %vm1797_vm7, %v1779_v48, %v6988_v27  ;;  %v7014_v39 = vunpack.i.h.bf16 %v9893_v16  ;;  %v14132_v4 = vld [vmem:[#allocation53_spill] sm:$0xff] }
 0x1d8   : > { %v10442_v31 = vsel %vm1797_vm7, %v10300_v60, %v6989_v9  ;;  %v10446_v35 = vsel %vm1797_vm7, %v10284_v45, %v7004_v61  ;;  %v10450_v3 = vsel %vm1797_vm7, %v10287_v12, %v7003_v13  ;;  %v7013_v49 = vunpack.i.l.bf16 %v9893_v16 }
 0x1d9   : > { %v7009_v48 = vunpack.i.h.bf16 %v9902_v26  ;;  %v7008_v28 = vunpack.i.l.bf16 %v9902_v26  ;;  %v10458_v20 = vsel %vm1797_vm7, %v1783_v52, %v6998_v59  ;;  %v10461_v45 = vsel %vm1797_vm7, %v1784_v36, %v6999_v51 }
 0x1da   : > { %v7267_v53 = vpop.permute.xlu1 %7266  ;;  %v10453_v18 = vpop.permute.xlu0 %7281  ;;  %v7024_v12 = vunpack.i.h.bf16 %v9904_v6  ;;  %v7023_v25 = vunpack.i.l.bf16 %v9904_v6  ;;  %v10467_v16 = vsel %vm1797_vm7, %v10307_v22, %v7014_v39  ;;  %v7018_v41 = vunpack.i.l.bf16 %v9913_v33 }
 0x1db   : > { %v7269_v23 = vunpack.i.h.bf16 %v7267_v53  ;;  %v7268_v60 = vunpack.i.l.bf16 %v7267_v53  ;;  %v10480_v36 = vsel %vm1797_vm7, %v10313_v5, %v7013_v49  ;;  %v7019_v6 = vunpack.i.h.bf16 %v9913_v33  ;;  %v14133_v5 = vld [vmem:[#allocation54_spill] sm:$0xff]  ;;  %v14134_v49 = vld [vmem:[#allocation55_spill] sm:$0xff] }
 0x1dc   : > { %v7034_v56 = vunpack.i.h.bf16 %v14132_v4  ;;  %v7033_v22 = vunpack.i.l.bf16 %v14132_v4  ;;  %v10491_v61 = vsel %vm1797_vm7, %v10338_v38, %v7008_v28  ;;  %v10495_v13 = vsel %vm1797_vm7, %v10334_v17, %v7009_v48  ;;  %v14135_v48 = vld [vmem:[#allocation56_spill] sm:$0xff] }
 0x1dd   : > { %v10472_v26 = vsel %vm1896_vm11, %v14130_v43, %v7268_v60  ;;  %v10476_v52 = vsel %vm1896_vm11, %v14131_v24, %v7269_v23  ;;  %v7044_v51 = vunpack.i.h.bf16 %v14133_v5  ;;  %v7043_v33 = vunpack.i.l.bf16 %v14133_v5  ;;  %v14136_v60 = vld [vmem:[#allocation57_spill] sm:$0xff] }
 0x1de   : > { %v10485_v27 = vpop.permute.xlu1 %7276  ;;  %v10487_v9 = vpop.permute.xlu0 %7291  ;;  %v10501_v59 = vsel %vm1797_vm7, %v10327_v50, %v7024_v12  ;;  %v10505_v39 = vsel %vm1797_vm7, %v10330_v21, %v7023_v25  ;;  %v7039_v53 = vunpack.i.h.bf16 %v14134_v49  ;;  %v7038_v38 = vunpack.i.l.bf16 %v14134_v49 }
 0x1df   : > { %v10511_v17 = vsel %vm1797_vm7, %v10348_v37, %v7018_v41  ;;  %v7054_v28 = vunpack.i.h.bf16 %v14135_v48  ;;  %v7053_v23 = vunpack.i.l.bf16 %v14135_v48  ;;  %v7048_v43 = vunpack.i.l.bf16 %v14136_v60 }
 0x1e0   : > { %v10518_v50 = vsel %vm1797_vm7, %v10344_v46, %v7019_v6  ;;  %v10522_v21 = vsel %vm1830_vm9, %v10357_v58, %v7033_v22  ;;  %v10526_v12 = vsel %vm1830_vm9, %v10352_v34, %v7034_v56  ;;  %v7049_v37 = vunpack.i.h.bf16 %v14136_v60  ;;  %v14137_v58 = vld [vmem:[#allocation58_spill] sm:$0xff]  ;;  %v14138_v22 = vld [vmem:[#allocation59_spill] sm:$0xff] }
 0x1e1   : > { %v10535_v24 = vsel %vm1830_vm9, %v10365_v1, %v7043_v33  ;;  %v10539_v46 = vsel %vm1830_vm9, %v10361_v40, %v7044_v51  ;;  %v7064_v6 = vunpack.i.h.bf16 %v14137_v58  ;;  %v7063_v4 = vunpack.i.l.bf16 %v14137_v58  ;;  %v14139_v33 = vld [vmem:[#allocation60_spill] sm:$0xff] }
 0x1e2   : > { %v10529_v25 = vpop.permute.xlu1 %7286  ;;  %v10531_v41 = vpop.permute.xlu0 %7301  ;;  %v10545_v34 = vsel %vm1830_vm9, %v10377_v15, %v7038_v38  ;;  %v10549_v56 = vsel %vm1830_vm9, %v10380_v42, %v7039_v53  ;;  %v7059_v5 = vunpack.i.h.bf16 %v14138_v22  ;;  %v7058_v1 = vunpack.i.l.bf16 %v14138_v22  ;;  %v14140_v38 = vld [vmem:[#allocation61_spill] sm:$0xff]  ;;  %v14142_v22 = vld [vmem:[#allocation63_spill] sm:$0xff] }
 0x1e3   : > { %v10555_v40 = vsel %vm1830_vm9, %v10393_v8, %v7053_v23  ;;  %v10559_v51 = vsel %vm1830_vm9, %v10386_v11, %v7054_v28  ;;  %v10563_v15 = vsel %vm1830_vm9, %v10404_v63, %v7048_v43  ;;  %v7073_v49 = vunpack.i.l.bf16 %v14139_v33 }
 0x1e4   : > { %v10568_v42 = vsel %vm1830_vm9, %v10408_v10, %v7049_v37  ;;  %v7074_v53 = vunpack.i.h.bf16 %v14139_v33  ;;  %v7069_v48 = vunpack.i.h.bf16 %v14140_v38  ;;  %v7068_v8 = vunpack.i.l.bf16 %v14140_v38  ;;  %v14141_v10 = vld [vmem:[#allocation62_spill] sm:$0xff] }
 0x1e5   : > { %v10579_v63 = vsel %vm1830_vm9, %v10416_v54, %v7063_v4  ;;  %v10583_v28 = vsel %vm1830_vm9, %v10412_v7, %v7064_v6  ;;  %v7084_v60 = vunpack.i.h.bf16 %v14141_v10  ;;  %v7083_v43 = vunpack.i.l.bf16 %v14141_v10  ;;  %v14143_v6 = vld [vmem:[#allocation64_spill] sm:$0xff]  ;;  %v14144_v10 = vld [vmem:[#allocation65_spill] sm:$0xff] }
 0x1e6   : > { %v10573_v23 = vpop.permute.xlu1 %7296  ;;  %v10575_v11 = vpop.permute.xlu0 %7311  ;;  %v10589_v37 = vsel %vm1830_vm9, %v10420_v14, %v7058_v1  ;;  %v10593_v58 = vsel %vm1830_vm9, %v10424_v55, %v7059_v5  ;;  %v7079_v33 = vunpack.i.h.bf16 %v14142_v22  ;;  %v7078_v54 = vunpack.i.l.bf16 %v14142_v22 }
 0x1e7   : > { %v10599_v7 = vsel %vm1830_vm9, %v10434_v2, %v7073_v49  ;;  %v7094_v4 = vunpack.i.h.bf16 %v14143_v6  ;;  %v7093_v38 = vunpack.i.l.bf16 %v14143_v6  ;;  %v7088_v29 = vunpack.i.l.bf16 %v14144_v10  ;;  %v14146_v6 = vld [vmem:[#allocation67_spill] sm:$0xff] }
 0x1e8   : > { %v10606_v14 = vsel %vm1830_vm9, %v10430_v32, %v7074_v53  ;;  %v10610_v55 = vsel %vm1830_vm9, %v10437_v62, %v7068_v8  ;;  %v10614_v5 = vsel %vm1830_vm9, %v10442_v31, %v7069_v48  ;;  %v7089_v2 = vunpack.i.h.bf16 %v14144_v10  ;;  %v14145_v62 = vld [vmem:[#allocation66_spill] sm:$0xff] }
 0x1e9   : > { %v10623_v22 = vsel %vm1830_vm9, %v10450_v3, %v7083_v43  ;;  %v10627_v32 = vsel %vm1830_vm9, %v10446_v35, %v7084_v60  ;;  %v7104_v53 = vunpack.i.h.bf16 %v14145_v62  ;;  %v7103_v8 = vunpack.i.l.bf16 %v14145_v62  ;;  %v14148_v43 = vld [vmem:[#allocation68_spill] sm:$0xff]  ;;  %v14150_v62 = vld [vmem:[#allocation69_spill] sm:$0xff] }
 0x1ea   : > { %v10617_v1 = vpop.permute.xlu1 %7306  ;;  %v10619_v49 = vpop.permute.xlu0 %7321  ;;  %v10633_v31 = vsel %vm1830_vm9, %v10458_v20, %v7078_v54  ;;  %v10637_v48 = vsel %vm1830_vm9, %v10461_v45, %v7079_v33  ;;  %v7099_v10 = vunpack.i.h.bf16 %v14146_v6  ;;  %v7098_v3 = vunpack.i.l.bf16 %v14146_v6 }
 0x1eb   : > { %v10643_v35 = vsel %vm1830_vm9, %v10480_v36, %v7093_v38  ;;  %v10647_v60 = vsel %vm1830_vm9, %v10467_v16, %v7094_v4  ;;  %v10651_v20 = vsel %vm1830_vm9, %v10491_v61, %v7088_v29  ;;  %v7113_v54 = vunpack.i.l.bf16 %v14148_v43 }
 0x1ec   : > { %14147 = vst [vmem:[#allocation8_spill] sm:$0xff] %v10651_v20  ;;  %v10656_v45 = vsel %vm1830_vm9, %v10495_v13, %v7089_v2  ;;  %v7114_v33 = vunpack.i.h.bf16 %v14148_v43  ;;  %v7124_v36 = vunpack.i.h.bf16 %v14150_v62  ;;  %v7123_v38 = vunpack.i.l.bf16 %v14150_v62  ;;  %v14153_v13 = vld [vmem:[#allocation70_spill] sm:$0xff] }
 0x1ed   : > { %14149 = vst [vmem:[#allocation7_spill] sm:$0xff] %v10656_v45  ;;  %v10667_v29 = vsel %vm1830_vm9, %v10505_v39, %v7103_v8  ;;  %v10671_v61 = vsel %vm1830_vm9, %v10501_v59, %v7104_v53  ;;  %v7119_v4 = vunpack.i.h.bf16 %v14153_v13  ;;  %v7118_v2 = vunpack.i.l.bf16 %v14153_v13  ;;  %v14157_v53 = vld [vmem:[#allocation72_spill] sm:$0xff]  ;;  %v14158_v13 = vld [vmem:[#allocation73_spill] sm:$0xff] }
 0x1ee   : > { %v10661_v6 = vpop.permute.xlu1 %7316  ;;  %v10663_v16 = vpop.permute.xlu0 %7331  ;;  %14151 = vst [vmem:[#allocation34_spill] sm:$0xff] %v10667_v29  ;;  %14152 = vst [vmem:[#allocation10_spill] sm:$0xff] %v10671_v61  ;;  %v10677_v43 = vsel %vm1830_vm9, %v10511_v17, %v7098_v3  ;;  %v10681_v62 = vsel %vm1830_vm9, %v10518_v50, %v7099_v10  ;;  %v7134_v45 = vunpack.i.h.bf16 %v14156_v47  ;;  %v7133_v39 = vunpack.i.l.bf16 %v14156_v47 }
 0x1ef   : > { %14154 = vst [vmem:[#allocation9_spill] sm:$0xff] %v10677_v43  ;;  %14155 = vst [vmem:[#allocation13_spill] sm:$0xff] %v10681_v62  ;;  %v1864_v59 = vsel %vm1863_vm10, %v10522_v21, %v7113_v54  ;;  %v7129_v8 = vunpack.i.h.bf16 %v14157_v53  ;;  %v7128_v61 = vunpack.i.l.bf16 %v14157_v53  ;;  %v7143_v29 = vunpack.i.l.bf16 %v14158_v13  ;;  %v14160_v62 = vld [vmem:[#allocation19_spill] sm:$0xff] }
 0x1f0   : > { %v1865_v17 = vsel %vm1863_vm10, %v10526_v12, %v7114_v33  ;;  %v1868_v50 = vsel %vm1863_vm10, %v10535_v24, %v7123_v38  ;;  %v1869_v10 = vsel %vm1863_vm10, %v10539_v46, %v7124_v36  ;;  %v7144_v47 = vunpack.i.h.bf16 %v14158_v13  ;;  %v14164_v13 = vld [vmem:[#allocation18_spill] sm:$0xff] }
 0x1f1   : > { %v1866_v54 = vsel %vm1863_vm10, %v10545_v34, %v7118_v2  ;;  %v1867_v53 = vsel %vm1863_vm10, %v10549_v56, %v7119_v4  ;;  %v7194_v12 = vunpack.i.h.bf16 %v14160_v62  ;;  %v7193_v33 = vunpack.i.l.bf16 %v14160_v62  ;;  %v14161_v4 = vld [vmem:[#allocation74_spill] sm:$0xff] }
 0x1f2   : > { %v10697_v3 = vpop.permute.xlu1 %7326  ;;  %v10699_v21 = vpop.permute.xlu0 %7341  ;;  %v10709_v24 = vsel %vm1863_vm10, %v10555_v40, %v7133_v39  ;;  %v10713_v46 = vsel %vm1863_vm10, %v10559_v51, %v7134_v45  ;;  %v7274_v36 = vunpack.i.h.bf16 %v10400_v30  ;;  %v7273_v38 = vunpack.i.l.bf16 %v10400_v30  ;;  %v14162_v45 = vld [vmem:[#allocation75_spill] sm:$0xff] }
 0x1f3   : > { %14159 = vst [vmem:[#allocation33_spill] sm:$0xff] %v10699_v21  ;;  %v10719_v34 = vsel %vm1863_vm10, %v10563_v15, %v7128_v61  ;;  %v10723_v56 = vsel %vm1863_vm10, %v10568_v42, %v7129_v8  ;;  %v10727_v40 = vsel %vm1863_vm10, %v10579_v63, %v7143_v29  ;;  %v7138_v2 = vunpack.i.l.bf16 %v14161_v4  ;;  %v14165_v15 = vld [vmem:[#allocation26_spill] sm:$0xff] }
 0x1f4   : > { %v10732_v51 = vsel %vm1863_vm10, %v10583_v28, %v7144_v47  ;;  %v1897_v63 = vsel %vm1896_vm11, %v1864_v59, %v7193_v33  ;;  %v1898_v29 = vsel %vm1896_vm11, %v1865_v17, %v7194_v12  ;;  %v7204_v43 = vunpack.i.h.bf16 %v14164_v13 }
 0x1f5   : > { %v7203_v28 = vunpack.i.l.bf16 %v14164_v13  ;;  %v1930_v47 = vsel %vm1929_vm12, %v1897_v63, %v7273_v38  ;;  %v1931_v30 = vsel %vm1929_vm12, %v1898_v29, %v7274_v36  ;;  %v10747_v62 = vsel %vm1863_vm10, %v10589_v37, %v7138_v2 }
 0x1f6   : > { %v10737_v61 = vpop.permute.xlu1 %7336  ;;  %v7352_v42 = vpop.permute.xlu0 %7351  ;;  %v7198_v17 = vunpack.i.l.bf16 %v14165_v15  ;;  %v7284_v12 = vunpack.i.h.bf16 %v10453_v18  ;;  %v7283_v33 = vunpack.i.l.bf16 %v10453_v18  ;;  %v1902_v20 = vsel %vm1896_vm11, %v1869_v10, %v7204_v43 }
 0x1f7   : > { %14163 = vst [vmem:[#allocation11_spill] sm:$0xff] %v10737_v61  ;;  %v7354_v39 = vunpack.i.h.bf16 %v7352_v42  ;;  %v7353_v8 = vunpack.i.l.bf16 %v7352_v42  ;;  %v7199_v61 = vunpack.i.h.bf16 %v14165_v15  ;;  %v1901_v2 = vsel %vm1896_vm11, %v1868_v50, %v7203_v28  ;;  %v14166_v15 = vld [vmem:[#allocation25_spill] sm:$0xff] }
 0x1f8   : > { %v7213_v18 = vunpack.i.l.bf16 %v14166_v15  ;;  %v1899_v43 = vsel %vm1896_vm11, %v1866_v54, %v7198_v17  ;;  %v1935_v10 = vsel %vm1929_vm12, %v1902_v20, %v7284_v12  ;;  %v7293_v20 = vunpack.i.l.bf16 %v10487_v9 }
 0x1f9   : > { %v1963_v42 = vsel %vm1962_vm13, %v1930_v47, %v7353_v8  ;;  %v1964_v59 = vsel %vm1962_vm13, %v1931_v30, %v7354_v39  ;;  %v7279_v8 = vunpack.i.h.bf16 %v10485_v27  ;;  %v7278_v30 = vunpack.i.l.bf16 %v10485_v27 }
 0x1fa   : > { %v7347_v13 = vpop.permute.xlu1 %7346  ;;  %v7362_v38 = vpop.permute.xlu0 %7361  ;;  %v1995_v63 = vpack.c.bf16 %v1964_v59, %v1963_v42  ;;  %v7214_v39 = vunpack.i.h.bf16 %v14166_v15  ;;  %v1900_v50 = vsel %vm1896_vm11, %v1867_v53, %v7199_v61  ;;  %v1934_v27 = vsel %vm1929_vm12, %v1901_v2, %v7283_v33 }
 0x1fb   : > { %v7349_v36 = vunpack.i.h.bf16 %v7347_v13  ;;  %v7348_v29 = vunpack.i.l.bf16 %v7347_v13  ;;  %v7364_v21 = vunpack.i.h.bf16 %v7362_v38  ;;  %v7363_v37 = vunpack.i.l.bf16 %v7362_v38 }
 0x1fc   : > { %6688 = vmatprep.mubr.msk.bf16.mxu0 %vm2063_vm14, %v1995_v63  ;;  %v14167_v63 = vld [vmem:[#allocation24_spill] sm:$0xff]  ;;  %v1933_v54 = vsel %vm1929_vm12, %v1900_v50, %v7279_v8  ;;  %v7294_v61 = vunpack.i.h.bf16 %v10487_v9  ;;  %v7288_v33 = vunpack.i.l.bf16 %v10529_v25  ;;  %v14168_v50 = vunpack.i.h.bf16 %v14161_v4 }
 0x1fd   : > { %v10764_v47 = vsel %vm1929_vm12, %v10472_v26, %v7348_v29  ;;  %v10768_v42 = vsel %vm1929_vm12, %v10476_v52, %v7349_v36  ;;  %v1967_v59 = vsel %vm1962_vm13, %v1934_v27, %v7363_v37  ;;  %v1968_v13 = vsel %vm1962_vm13, %v1935_v10, %v7364_v21 }
 0x1fe   : > { %v7357_v28 = vpop.permute.xlu1 %7356  ;;  %v7209_v29 = vunpack.i.h.bf16 %v14167_v63  ;;  %v7208_v52 = vunpack.i.l.bf16 %v14167_v63  ;;  %v1932_v36 = vsel %vm1929_vm12, %v1899_v43, %v7278_v30  ;;  %v7372_v53 = vpop.permute.xlu0 %7371  ;;  %v7289_v21 = vunpack.i.h.bf16 %v10529_v25 }
 0x1ff   : > { %v7359_v38 = vunpack.i.h.bf16 %v7357_v28  ;;  %v7358_v26 = vunpack.i.l.bf16 %v7357_v28  ;;  %v1997_v15 = vpack.c.bf16 %v1968_v13, %v1967_v59  ;;  %v7374_v27 = vunpack.i.h.bf16 %v7372_v53  ;;  %v14171_v13 = vld [vmem:[#allocation76_spill] sm:$0xff] }
 0x200   : > { %v7373_v30 = vunpack.i.l.bf16 %v7372_v53  ;;  %v1875_v9 = vsel %vm1863_vm10, %v10593_v58, %v14168_v50  ;;  %v14169_v10 = vunpack.i.l.bf16 %v14162_v45  ;;  %v14170_v25 = vunpack.i.h.bf16 %v14162_v45 }
 0x201   : > { %v1965_v17 = vsel %vm1962_vm13, %v1932_v36, %v7358_v26  ;;  %v1966_v12 = vsel %vm1962_vm13, %v1933_v54, %v7359_v38  ;;  %v7149_v38 = vunpack.i.h.bf16 %v14171_v13  ;;  %v1905_v4 = vsel %vm1896_vm11, %v10709_v24, %v7213_v18  ;;  %v14173_v54 = vld [vmem:[#allocation23_spill] sm:$0xff] }
 0x202   : > { %v7367_v37 = vpop.permute.xlu1 %7366  ;;  %v1996_v2 = vpack.c.bf16 %v1966_v12, %v1965_v17  ;;  %v10794_v28 = vsel %vm1863_vm10, %v10599_v7, %v14169_v10  ;;  %v10800_v59 = vsel %vm1863_vm10, %v10606_v14, %v14170_v25  ;;  %v1906_v58 = vsel %vm1896_vm11, %v10713_v46, %v7214_v39 }
 0x203   : > { %v7369_v43 = vunpack.i.h.bf16 %v7367_v37  ;;  %v7368_v8 = vunpack.i.l.bf16 %v7367_v37  ;;  %v1903_v7 = vsel %vm1896_vm11, %v10719_v34, %v7208_v52  ;;  %v1904_v45 = vsel %vm1896_vm11, %v10723_v56, %v7209_v29  ;;  %v14172_v29 = vld [vmem:[#allocation77_spill] sm:$0xff] }
 0x204   : > { %6689 = vmatmul.mubr.msk.bf16.vlgmr.msra.gmra.mrb[0].mxu0 %vm2063_vm14, %v1996_v2  ;;  %v1938_v14 = vsel %vm1929_vm12, %v1905_v4, %v7293_v20  ;;  %v1939_v26 = vsel %vm1929_vm12, %v1906_v58, %v7294_v61  ;;  %v1936_v63 = vsel %vm1929_vm12, %v1903_v7, %v7288_v33  ;;  %v1937_v36 = vsel %vm1929_vm12, %v1904_v45, %v7289_v21  ;;  %v7382_v20 = vpop.permute.xlu0 %7381 }
 0x205   : > { %6692 = vmatprep.mubr.msk.bf16.mxu0 %vm2063_vm14, %v1997_v15  ;;  %v1971_v18 = vsel %vm1962_vm13, %v1938_v14, %v7373_v30  ;;  %v1972_v46 = vsel %vm1962_vm13, %v1939_v26, %v7374_v27  ;;  %v1969_v34 = vsel %vm1962_vm13, %v1936_v63, %v7368_v8  ;;  %v1970_v39 = vsel %vm1962_vm13, %v1937_v36, %v7369_v43  ;;  %v14174_v26 = vld [vmem:[#allocation3_spill] sm:$0xff]  ;;  %v14175_v36 = vld [vmem:[#allocation6_spill] sm:$0xff] }
 0x206   : > { %v7377_v24 = vpop.permute.xlu1 %7376  ;;  %v7148_v56 = vunpack.i.l.bf16 %v14171_v13  ;;  %v7163_v52 = vunpack.i.l.bf16 %v14172_v29  ;;  %v7224_v53 = vunpack.i.h.bf16 %v14173_v54  ;;  %v7223_v61 = vunpack.i.l.bf16 %v14173_v54 }
 0x207   : > { %v7219_v17 = vunpack.i.h.bf16 %v10242_v44  ;;  %v7218_v12 = vunpack.i.l.bf16 %v10242_v44  ;;  %v7304_v21 = vunpack.i.h.bf16 %v10531_v41  ;;  %v7303_v33 = vunpack.i.l.bf16 %v10531_v41 }
 0x208   : > { %v7299_v37 = vunpack.i.h.bf16 %v10573_v23  ;;  %v7298_v2 = vunpack.i.l.bf16 %v10573_v23  ;;  %v1998_v27 = vpack.c.bf16 %v1970_v39, %v1969_v34  ;;  %v1999_v30 = vpack.c.bf16 %v1972_v46, %v1971_v18  ;;  %v7392_v46 = vpop.permute.xlu0 %7391  ;;  %v14176_v34 = vld [vmem:[#allocation30_spill] sm:$0xff] }
 0x209   : > { %v7384_v43 = vunpack.i.h.bf16 %v7382_v20  ;;  %v7383_v8 = vunpack.i.l.bf16 %v7382_v20  ;;  %v7379_v50 = vunpack.i.h.bf16 %v7377_v24  ;;  %v7378_v10 = vunpack.i.l.bf16 %v7377_v24 }
 0x20a   : > { %v10831_v15 = vpop.permute.xlu1 %7386  ;;  %v1878_v25 = vsel %vm1863_vm10, %v10610_v55, %v7148_v56  ;;  %v1879_v44 = vsel %vm1863_vm10, %v10614_v5, %v7149_v38  ;;  %v7164_v41 = vunpack.i.h.bf16 %v14172_v29  ;;  %v10840_v13 = vsel %vm1863_vm10, %v10623_v22, %v7163_v52 }
 0x20b   : > { %v1909_v23 = vsel %vm1896_vm11, %v10727_v40, %v7223_v61  ;;  %v1910_v4 = vsel %vm1896_vm11, %v10732_v51, %v7224_v53  ;;  %v1907_v55 = vsel %vm1896_vm11, %v10747_v62, %v7218_v12  ;;  %v1908_v58 = vsel %vm1896_vm11, %v1875_v9, %v7219_v17 }
 0x20c   : > { %6693 = vmatmul.mubr.msk.bf16.gmra.mrb[4].mxu0 %vm2063_vm14, %v1998_v27  ;;  %v1942_v5 = vsel %vm1929_vm12, %v1909_v23, %v7303_v33  ;;  %v1943_v22 = vsel %vm1929_vm12, %v1910_v4, %v7304_v21  ;;  %v1940_v38 = vsel %vm1929_vm12, %v1907_v55, %v7298_v2  ;;  %v1941_v7 = vsel %vm1929_vm12, %v1908_v58, %v7299_v37  ;;  %v14178_v58 = vld [vmem:[#allocation29_spill] sm:$0xff] }
 0x20d   : > { %6696 = vmatprep.mubr.msk.bf16.mxu0 %vm2063_vm14, %v1999_v30  ;;  %v1975_v40 = vsel %vm1962_vm13, %v1942_v5, %v7383_v8  ;;  %v1976_v51 = vsel %vm1962_vm13, %v1943_v22, %v7384_v43  ;;  %v1973_v62 = vsel %vm1962_vm13, %v1940_v38, %v7378_v10  ;;  %v1974_v9 = vsel %vm1962_vm13, %v1941_v7, %v7379_v50 }
 0x20e   : > { %v10855_v45 = vpop.permute.xlu1 %7396  ;;  %v10863_v14 = vsel %vm1863_vm10, %v10627_v32, %v7164_v41  ;;  %v7158_v63 = vunpack.i.l.bf16 %v14174_v26  ;;  %v7234_v24 = vunpack.i.h.bf16 %v14175_v36  ;;  %v7233_v18 = vunpack.i.l.bf16 %v14175_v36 }
 0x20f   : > { %v7229_v39 = vunpack.i.h.bf16 %v14176_v34  ;;  %v7228_v56 = vunpack.i.l.bf16 %v14176_v34  ;;  %v7314_v29 = vunpack.i.h.bf16 %v10575_v11  ;;  %v7313_v52 = vunpack.i.l.bf16 %v10575_v11  ;;  %v14177_v11 = vld [vmem:[#allocation78_spill] sm:$0xff] }
 0x210   : > { %v7309_v54 = vunpack.i.h.bf16 %v10617_v1  ;;  %v7308_v32 = vunpack.i.l.bf16 %v10617_v1  ;;  %v2000_v61 = vpack.c.bf16 %v1974_v9, %v1973_v62  ;;  %v2001_v20 = vpack.c.bf16 %v1976_v51, %v1975_v40  ;;  %v7402_v62 = vpop.permute.xlu0 %7401 }
 0x211   : > { %v7394_v17 = vunpack.i.h.bf16 %v7392_v46  ;;  %v7393_v12 = vunpack.i.l.bf16 %v7392_v46  ;;  %v7389_v21 = vunpack.i.h.bf16 %v10831_v15  ;;  %v7388_v33 = vunpack.i.l.bf16 %v10831_v15 }
 0x212   : > { %v10874_v53 = vpop.permute.xlu1 %7406  ;;  %v7159_v37 = vunpack.i.h.bf16 %v14174_v26  ;;  %v1882_v2 = vsel %vm1863_vm10, %v10633_v31, %v7158_v63  ;;  %v7174_v27 = vunpack.i.h.bf16 %v14177_v11  ;;  %v7173_v30 = vunpack.i.l.bf16 %v14177_v11 }
 0x213   : > { %v1913_v1 = vsel %vm1896_vm11, %v10794_v28, %v7233_v18  ;;  %v1914_v43 = vsel %vm1896_vm11, %v10800_v59, %v7234_v24  ;;  %v1911_v8 = vsel %vm1896_vm11, %v1878_v25, %v7228_v56  ;;  %v1912_v15 = vsel %vm1896_vm11, %v1879_v44, %v7229_v39 }
 0x214   : > { %6697 = vmatmul.mubr.msk.bf16.gmra.mrb[8].mxu0 %vm2063_vm14, %v2000_v61  ;;  %v1946_v31 = vsel %vm1929_vm12, %v1913_v1, %v7313_v52  ;;  %v1947_v50 = vsel %vm1929_vm12, %v1914_v43, %v7314_v29  ;;  %v1944_v10 = vsel %vm1929_vm12, %v1911_v8, %v7308_v32  ;;  %v1945_v41 = vsel %vm1929_vm12, %v1912_v15, %v7309_v54 }
 0x215   : > { %6700 = vmatprep.mubr.msk.bf16.mxu0 %vm2063_vm14, %v2001_v20  ;;  %v1979_v28 = vsel %vm1962_vm13, %v1946_v31, %v7393_v12  ;;  %v1980_v59 = vsel %vm1962_vm13, %v1947_v50, %v7394_v17  ;;  %v1977_v25 = vsel %vm1962_vm13, %v1944_v10, %v7388_v33  ;;  %v1978_v44 = vsel %vm1962_vm13, %v1945_v41, %v7389_v21  ;;  %v14179_v20 = vld [vmem:[#allocation4_spill] sm:$0xff] }
 0x216   : > { %v10895_v23 = vpop.permute.xlu1 %7416  ;;  %v1883_v4 = vsel %vm1863_vm10, %v10637_v48, %v7159_v37  ;;  %v10905_v55 = vsel %vm1863_vm10, %v10643_v35, %v7173_v30  ;;  %v7244_v5 = vunpack.i.h.bf16 %v14178_v58  ;;  %v7243_v22 = vunpack.i.l.bf16 %v14178_v58 }
 0x217   : > { %v7239_v38 = vunpack.i.h.bf16 %v10318_v19  ;;  %v7238_v7 = vunpack.i.l.bf16 %v10318_v19  ;;  %v7324_v40 = vunpack.i.h.bf16 %v10619_v49  ;;  %v7323_v51 = vunpack.i.l.bf16 %v10619_v49 }
 0x218   : > { %v7319_v9 = vunpack.i.h.bf16 %v10661_v6  ;;  %v7318_v48 = vunpack.i.l.bf16 %v10661_v6  ;;  %v2002_v35 = vpack.c.bf16 %v1978_v44, %v1977_v25  ;;  %v2003_v63 = vpack.c.bf16 %v1980_v59, %v1979_v28  ;;  %v14181_v28 = vld [vmem:[#allocation7_spill] sm:$0xff] }
 0x219   : > { %v7399_v36 = vunpack.i.h.bf16 %v10855_v45  ;;  %v7398_v24 = vunpack.i.l.bf16 %v10855_v45  ;;  %v1889_v19 = vsel %vm1863_vm10, %v10647_v60, %v7174_v27  ;;  %v1917_v49 = vsel %vm1896_vm11, %v10840_v13, %v7243_v22  ;;  %v7412_v27 = vpop.permute.xlu0 %7411  ;;  %v14182_v44 = vld [vmem:[#allocation79_spill] sm:$0xff] }
 0x21a   : > { %v7427_v26 = vpop.permute.xlu1 %7426  ;;  %v7404_v34 = vunpack.i.h.bf16 %v7402_v62  ;;  %v7403_v39 = vunpack.i.l.bf16 %v7402_v62  ;;  %v1915_v6 = vsel %vm1896_vm11, %v1882_v2, %v7238_v7  ;;  %v1916_v56 = vsel %vm1896_vm11, %v1883_v4, %v7239_v38 }
 0x21b   : > { %v7429_v18 = vunpack.i.h.bf16 %v7427_v26  ;;  %v7428_v46 = vunpack.i.l.bf16 %v7427_v26  ;;  %v1918_v60 = vsel %vm1896_vm11, %v10863_v14, %v7244_v5  ;;  %v1948_v13 = vsel %vm1929_vm12, %v1915_v6, %v7318_v48  ;;  %v14187_v6 = vld [vmem:[#allocation11_spill] sm:$0xff] }
 0x21c   : > { %6701 = vmatmul.mubr.msk.bf16.gmra.mrb[12].mxu0 %vm2063_vm14, %v2002_v35  ;;  %v1949_v52 = vsel %vm1929_vm12, %v1916_v56, %v7319_v9  ;;  %v1950_v32 = vsel %vm1929_vm12, %v1917_v49, %v7323_v51  ;;  %v1981_v61 = vsel %vm1962_vm13, %v1948_v13, %v7398_v24  ;;  %v7169_v17 = vunpack.i.h.bf16 %v14179_v20  ;;  %v14183_v9 = vld [vmem:[#allocation22_spill] sm:$0xff] }
 0x21d   : > { %v10926_v29 = vsel %vm1962_vm13, %v10764_v47, %v7428_v46  ;;  %v10930_v45 = vsel %vm1962_vm13, %v10768_v42, %v7429_v18  ;;  %6704 = vmatprep.mubr.msk.bf16.mxu0 %vm2063_vm14, %v2003_v63  ;;  %v1951_v47 = vsel %vm1929_vm12, %v1918_v60, %v7324_v40  ;;  %v1982_v42 = vsel %vm1962_vm13, %v1949_v52, %v7399_v36  ;;  %v14184_v63 = vld [vmem:[#allocation28_spill] sm:$0xff]  ;;  %v14185_v18 = vld [vmem:[#allocation27_spill] sm:$0xff]  ;;  %v7422_v49 = vpop.permute.xlu0 %7421 }
 0x21e   : > { %v2010_v54 = vpack.c.bf16 %v10930_v45, %v10926_v29  ;;  %v7168_v12 = vunpack.i.l.bf16 %v14179_v20  ;;  %v1983_v14 = vsel %vm1962_vm13, %v1950_v32, %v7403_v39  ;;  %v1984_v21 = vsel %vm1962_vm13, %v1951_v47, %v7404_v34  ;;  %v14186_v34 = vld [vmem:[#allocation33_spill] sm:$0xff]  ;;  %v2344_v29 = vld [vmem:[#allocation2 + $0x18] sm:$0xff] }
 0x21f   : > { %v7254_v33 = vunpack.i.h.bf16 %v10320_v57  ;;  %v7253_v37 = vunpack.i.l.bf16 %v10320_v57  ;;  %v7249_v2 = vunpack.i.h.bf16 %v10368_v0  ;;  %v7248_v11 = vunpack.i.l.bf16 %v10368_v0  ;;  %v14180_v57 = vld [vmem:[#allocation8_spill] sm:$0xff] }
 0x220   : > { %v7334_v30 = vunpack.i.h.bf16 %v10663_v16  ;;  %v7329_v1 = vunpack.i.h.bf16 %v10697_v3  ;;  %v7328_v43 = vunpack.i.l.bf16 %v10697_v3  ;;  %v2004_v8 = vpack.c.bf16 %v1982_v42, %v1981_v61  ;;  %v14188_v42 = vld [vmem:[#allocation9_spill] sm:$0xff] }
 0x221   : > { %v7333_v15 = vunpack.i.l.bf16 %v10663_v16  ;;  %v7409_v31 = vunpack.i.h.bf16 %v10874_v53  ;;  %v7408_v50 = vunpack.i.l.bf16 %v10874_v53  ;;  %v2005_v10 = vpack.c.bf16 %v1984_v21, %v1983_v14 }
 0x222   : > { %v1886_v41 = vsel %vm1863_vm10, %v14180_v57, %v7168_v12  ;;  %v1887_v0 = vsel %vm1863_vm10, %v14181_v28, %v7169_v17  ;;  %v7414_v59 = vunpack.i.h.bf16 %v7412_v27  ;;  %v7413_v25 = vunpack.i.l.bf16 %v7412_v27  ;;  %v14189_v17 = vld [vmem:[#allocation13_spill] sm:$0xff] }
 0x223   : > { %v7184_v3 = vunpack.i.h.bf16 %v14182_v44  ;;  %v7183_v4 = vunpack.i.l.bf16 %v14182_v44  ;;  %v1919_v16 = vsel %vm1896_vm11, %v1886_v41, %v7248_v11  ;;  %v1920_v58 = vsel %vm1896_vm11, %v1887_v0, %v7249_v2  ;;  %v14191_v2 = vld [vmem:[#allocation10_spill] sm:$0xff] }
 0x224   : > { %6705 = vmatmul.mubr.msk.bf16.gmra.mrb[16].mxu0 %vm2063_vm14, %v2004_v8  ;;  %v1921_v53 = vsel %vm1896_vm11, %v10905_v55, %v7253_v37  ;;  %v1922_v5 = vsel %vm1896_vm11, %v1889_v19, %v7254_v33  ;;  %v1952_v22 = vsel %vm1929_vm12, %v1919_v16, %v7328_v43  ;;  %v1953_v38 = vsel %vm1929_vm12, %v1920_v58, %v7329_v1  ;;  %v14190_v33 = vld [vmem:[#allocation34_spill] sm:$0xff]  ;;  %v2409_v16 = vld [vmem:[#allocation2 + $0x220] sm:$0xff]  ;;  %v2410_v58 = vld [vmem:[#allocation2 + $0x228] sm:$0xff] }
 0x225   : > { %6708 = vmatprep.mubr.msk.bf16.mxu0 %vm2063_vm14, %v2005_v10  ;;  %v1954_v7 = vsel %vm1929_vm12, %v1921_v53, %v7333_v15  ;;  %v1955_v40 = vsel %vm1929_vm12, %v1922_v5, %v7334_v30  ;;  %v1985_v51 = vsel %vm1962_vm13, %v1952_v22, %v7408_v50  ;;  %v1986_v62 = vsel %vm1962_vm13, %v1953_v38, %v7409_v31  ;;  %v2411_v53 = vld [vmem:[#allocation2 + $0x230] sm:$0xff] }
 0x226   : > { %v7179_v48 = vunpack.i.h.bf16 %v14183_v9  ;;  %v7178_v26 = vunpack.i.l.bf16 %v14183_v9  ;;  %v1987_v55 = vsel %vm1962_vm13, %v1954_v7, %v7413_v25  ;;  %v1988_v35 = vsel %vm1962_vm13, %v1955_v40, %v7414_v59  ;;  %v11018_v59 = vld [vmem:[#allocation2 + $0x8] sm:$0xff]  ;;  %v2343_v25 = vld [vmem:[#allocation2 + $0x10] sm:$0xff] }
 0x227   : > { %v7264_v36 = vunpack.i.h.bf16 %v14184_v63  ;;  %v7263_v24 = vunpack.i.l.bf16 %v14184_v63  ;;  %v7259_v46 = vunpack.i.h.bf16 %v14185_v18  ;;  %v7258_v19 = vunpack.i.l.bf16 %v14185_v18  ;;  %v11041_v63 = vld [vmem:[%s13744_s5] ss:$0 sm:$0xff] }
 0x228   : > { %v7344_v39 = vunpack.i.h.bf16 %v14186_v34  ;;  %v7339_v56 = vunpack.i.h.bf16 %v14187_v6  ;;  %v7338_v60 = vunpack.i.l.bf16 %v14187_v6  ;;  %v2006_v13 = vpack.c.bf16 %v1986_v62, %v1985_v51 }
 0x229   : > { %v7343_v52 = vunpack.i.l.bf16 %v14186_v34  ;;  %v7419_v32 = vunpack.i.h.bf16 %v10895_v23  ;;  %v7418_v47 = vunpack.i.l.bf16 %v10895_v23  ;;  %v2007_v61 = vpack.c.bf16 %v1988_v35, %v1987_v55  ;;  %v8638_v35 = vld [vmem:[%s13742_s3] sm:$0xff]  }
 0x22a   : > { %v1890_v20 = vsel %vm1863_vm10, %v14188_v42, %v7178_v26  ;;  %v1891_v12 = vsel %vm1863_vm10, %v14189_v17, %v7179_v48  ;;  %v7424_v14 = vunpack.i.h.bf16 %v7422_v49  ;;  %v7423_v21 = vunpack.i.l.bf16 %v7422_v49 }
 0x22b   : > { %v1892_v37 = vsel %vm1863_vm10, %v14190_v33, %v7183_v4  ;;  %v1893_v11 = vsel %vm1863_vm10, %v14191_v2, %v7184_v3  ;;  %v1923_v27 = vsel %vm1896_vm11, %v1890_v20, %v7258_v19  ;;  %v1924_v23 = vsel %vm1896_vm11, %v1891_v12, %v7259_v46  ;;  %v2352_v12 = vld [vmem:[#allocation2 + $0x58] sm:$0xff] }
 0x22c   : > { %6709 = vmatmul.mubr.msk.bf16.gmra.mrb[20].mxu0 %vm2063_vm14, %v2006_v13  ;;  %v1925_v30 = vsel %vm1896_vm11, %v1892_v37, %v7263_v24  ;;  %v1926_v1 = vsel %vm1896_vm11, %v1893_v11, %v7264_v36  ;;  %v1956_v43 = vsel %vm1929_vm12, %v1923_v27, %v7338_v60  ;;  %v1957_v8 = vsel %vm1929_vm12, %v1924_v23, %v7339_v56  ;;  %v8641_v23 = vld [vmem:[%s13742_s3 + $0x18] sm:$0xff]  }
 0x22d   : > { %6712 = vmatprep.mubr.msk.bf16.mxu0 %vm2063_vm14, %v2007_v61  ;;  %v1958_v15 = vsel %vm1929_vm12, %v1925_v30, %v7343_v52  ;;  %v1959_v31 = vsel %vm1929_vm12, %v1926_v1, %v7344_v39  ;;  %v1989_v50 = vsel %vm1962_vm13, %v1956_v43, %v7418_v47  ;;  %v1990_v10 = vsel %vm1962_vm13, %v1957_v8, %v7419_v32  ;;  %v8639_v32 = vld [vmem:[%s13742_s3 + $0x8] sm:$0xff]  }
 0x22e   : > { %v1991_v57 = vsel %vm1962_vm13, %v1958_v15, %v7423_v21  ;;  %v1992_v41 = vsel %vm1962_vm13, %v1959_v31, %v7424_v14  ;;  %v2008_v28 = vpack.c.bf16 %v1990_v10, %v1989_v50  ;;  %v2590_v44 = vrot.slane %v2343_v25, 1  ;;  %v8640_v14 = vld [vmem:[%s13742_s3 + $0x10] sm:$0xff]   ;;  %v2349_v10 = vld [vmem:[#allocation2 + $0x40] sm:$0xff] }
 0x22f   : > { %v2009_v0 = vpack.c.bf16 %v1992_v41, %v1991_v57  ;;  %v7430_v3 = vpack.i.bf16 %v2343_v25, %v11018_v59  ;;  %v2589_v4 = vrot.slane %v11018_v59, 1  ;;  %v2686_v5 = vrot.slane %v2409_v16, 7 }
 0x230   : > { %v2687_v22 = vrot.slane %v2410_v58, 7  ;;  %v2689_v38 = vrot.slane %v2411_v53, 7  ;;  %v2464_v48 = vrot.slane %v2343_v25, 7  ;;  %v13864_v26 = vrot.slane %v11018_v59, 7 }
 0x231   : > { %7431 = vrot.lane.b32.xlu0 %v7430_v3, %s8805_s7  ;;  %v2591_v45 = vsel %vm854_vm2, %v2589_v4, %v2590_v44  ;;  %v8808_v36 = vmov 0   ;;  %v2602_v1 = vrot.slane %v2352_v12, 1  ;;  %vm3499_vm5 = vcmask 523264  }
 0x232   : > { %v2688_v7 = vsel %vm725_vm3, %v2686_v5, %v2687_v22  ;;  %v2690_v40 = vsel %vm725_vm3, %v2687_v22, %v2689_v38  ;;  %v11033_v55 = vsel %vm725_vm3, %v13864_v26, %v2464_v48  ;;  %3787 = vmatprep.subr.bf16.mxu1 %v8808_v36  ;;  %8630 = vset.pattern.permute.xlu1 %v8808_v36  ;;  %v2471_v5 = vrot.slane %v2349_v10, 7  ;;  %v8642_v38 = vld [vmem:[%s13742_s3 + $0x20] sm:$0xff]   ;;  %v2348_v48 = vld [vmem:[#allocation2 + $0x38] sm:$0xff] }
 0x233   : > { %v7440_v51 = vpack.i.bf16 %v2690_v40, %v2688_v7  ;;  %3788 = vmatpush1.bf16.msra.mxu1 %v8638_v35  ;;  %8631 = vset.pattern.permute.xlu0 %v8808_v36  ;;  %v8645_v10 = vld [vmem:[%s13742_s3 + $0x38] sm:$0xff]   ;;  %vm3564_vm7 = vcmask 785408   ;;  %vm5486_vm9 = vcmask 1041408   ;;  %vm5168_vm10 = vcmask 64512  }
 0x234   : > { %6713 = vmatmul.mubr.msk.bf16.gmra.mrb[24].mxu0 %vm2063_vm14, %v2008_v28  ;;  %3789 = vmatprep.subr.bf16.mxu1 %v8808_v36  ;;  %v11356_v26 = vld [vmem:[#allocation2 + $0x138] sm:$0xff]  ;;  %vm5201_vm11 = vcmask 97280   ;;  %vm5298_vm12 = vcmask 195584  }
 0x235   : > { %6716 = vmatprep.mubr.msk.bf16.mxu0 %vm2063_vm14, %v2009_v0  ;;  %7441 = vrot.lane.b32.xlu1 %v7440_v51, %s8806_s8 }
 0x237   : > { %3790 = vmatpush1.bf16.msra.mxu1 %v8639_v32 }
 0x238   : > { %3791 = vmatprep.subr.bf16.mxu1 %v8808_v36 }
 0x23b   : > { %3792 = vmatpush1.bf16.msra.mxu1 %v8640_v14 }
 0x23c   : > { %6717 = vmatmul.mubr.msk.bf16.gmra.mrb[28].mxu0 %vm2063_vm14, %v2010_v54  ;;  %v2592_v54 = vrot.slane %v2344_v29, 1  ;;  %3793 = vmatprep.subr.bf16.mxu1 %v8808_v36  ;;  %vm5437_vm14 = vcmask 293888  }
 0x23e   : > { %v2593_v62 = vsel %vm854_vm2, %v2590_v44, %v2592_v54 }
 0x23f   : > { %v7435_v9 = vpack.i.bf16 %v2593_v62, %v2591_v45  ;;  %3794 = vmatpush1.bf16.msra.mxu1 %v8641_v23 }
 0x240   : > { %3795 = vmatprep.subr.bf16.mxu1 %v8808_v36 }
 0x241   : > { %7436 = vrot.lane.b32.xlu0 %v7435_v9, %s8807_s10 }
 0x243   : > { %3796 = vmatpush1.bf16.msra.mxu1 %v8642_v38 }
 0x244   : > { %3797 = vmatprep.subr.bf16.mxu1 %v8808_v36 }
 0x2d7   : > { %v6690_v24 = vpop.f32.mrb[0].mxu0 }
 0x2d8   : > { %v2159_v18 = vadd.f32 %v6690_v24, %v11041_v63  ;;  %v2150_v46 = vpop.f32.mrb[1].mxu0 }
 0x2d9   : > { %v2151_v19 = vadd.f32 %v11041_v63, %v2150_v46  ;;  %v6691_v49 = vpop.f32.mrb[2].mxu0 }
 0x2da   : > { %v11049_v34 = vmax.f32 %v2159_v18, 0.0  ;;  %v2162_v39 = vadd.f32 %v6691_v49, %v11041_v63  ;;  %v2153_v6 = vpop.f32.mrb[3].mxu0 }
 0x2db   : > { %v11052_v56 = vmax.f32 %v2151_v19, 0.0  ;;  %v2154_v60 = vadd.f32 %v11041_v63, %v2153_v6  ;;  %v8643_v19 = vld [vmem:[%s13742_s3 + $0x28] sm:$0xff]  }
 0x2dc   : > { %14192 = vst [vmem:[#allocation32_spill] sm:$0xff] %v11049_v34  ;;  %2311 = vst.msk [vmem:[#allocation2 + $0x48] sm:$0xff] %vm273_vm0, %v11049_v34  ;;  %v11057_v13 = vmax.f32 %v2162_v39, 0.0  ;;  %v2597_v39 = vrot.slane %v2348_v48, 1  ;;  %3798 = vmatpush1.bf16.msra.mxu1 %v8643_v19 }
 0x2dd   : > { %14193 = vst [vmem:[#allocation31_spill] sm:$0xff] %v11052_v56  ;;  %2309 = vst.msk [vmem:[#allocation2 + $0x28] sm:$0xff] %vm273_vm0, %v11052_v56  ;;  %v11061_v52 = vmax.f32 %v2154_v60, 0.0  ;;  %3799 = vmatprep.subr.bf16.mxu1 %v8808_v36 }
 0x2de   : > { %14194 = vst [vmem:[#allocation38_spill] sm:$0xff] %v11057_v13  ;;  %2312 = vst.msk [vmem:[#allocation2 + $0x50] sm:$0xff] %vm273_vm0, %v11057_v13 }
 0x2df   : > { %14195 = vst [vmem:[#allocation37_spill] sm:$0xff] %v11061_v52  ;;  %2310 = vst.msk [vmem:[#allocation2 + $0x30] sm:$0xff] %vm273_vm0, %v11061_v52  ;;  %v6694_v47 = vpop.f32.mrb[4].mxu0 }
 0x2e0   : > { %v2175_v61 = vadd.f32 %v6694_v47, %v11041_v63  ;;  %v2166_v42 = vpop.f32.mrb[5].mxu0 }
 0x2e1   : > { %v2167_v20 = vadd.f32 %v11041_v63, %v2166_v42  ;;  %v6695_v17 = vpop.f32.mrb[6].mxu0 }
 0x2e2   : > { %v11076_v21 = vmax.f32 %v2175_v61, 0.0  ;;  %v2178_v33 = vadd.f32 %v6695_v17, %v11041_v63  ;;  %v2169_v37 = vpop.f32.mrb[7].mxu0 }
 0x2e3   : > { %v11079_v2 = vmax.f32 %v2167_v20, 0.0  ;;  %v2170_v11 = vadd.f32 %v11041_v63, %v2169_v37  ;;  %v2350_v27 = vld [vmem:[#allocation2 + $0x48] sm:$0xff]  ;;  %v8644_v20 = vld [vmem:[%s13742_s3 + $0x30] sm:$0xff]   ;;  %v2345_v37 = vld [vmem:[#allocation2 + $0x20] sm:$0xff] }
 0x2e4   : > { %14196 = vst [vmem:[#allocation36_spill] sm:$0xff] %v11076_v21  ;;  %2315 = vst.msk [vmem:[#allocation2 + $0x88] sm:$0xff] %vm273_vm0, %v11076_v21  ;;  %v11087_v30 = vmax.f32 %v2178_v33, 0.0  ;;  %v2599_v31 = vrot.slane %v2350_v27, 1  ;;  %v11106_v53 = vld [vmem:[#allocation2 + $0x28] sm:$0xff]  ;;  %v2472_v22 = vrot.slane %v2350_v27, 7  ;;  %3800 = vmatpush1.bf16.msra.mxu1 %v8644_v20 }
 0x2e5   : > { %14197 = vst [vmem:[#allocation35_spill] sm:$0xff] %v11079_v2  ;;  %2313 = vst.msk [vmem:[#allocation2 + $0x68] sm:$0xff] %vm273_vm0, %v11079_v2  ;;  %v11092_v43 = vmax.f32 %v2170_v11, 0.0  ;;  %v2351_v8 = vld [vmem:[#allocation2 + $0x50] sm:$0xff]  ;;  %v2594_v32 = vrot.slane %v11106_v53, 1  ;;  %3801 = vmatprep.subr.bf16.mxu1 %v8808_v36 }
 0x2e6   : > { %14198 = vst [vmem:[#allocation16_spill] sm:$0xff] %v11087_v30  ;;  %2316 = vst.msk [vmem:[#allocation2 + $0x90] sm:$0xff] %vm273_vm0, %v11087_v30  ;;  %v7450_v15 = vpack.i.bf16 %v2351_v8, %v2350_v27  ;;  %v2600_v50 = vrot.slane %v2351_v8, 1  ;;  %v11098_v41 = vld [vmem:[#allocation2 + $0x30] sm:$0xff]  ;;  %v2474_v28 = vrot.slane %v2351_v8, 7  ;;  %v11135_v24 = vsel %vm725_vm3, %v2471_v5, %v2472_v22 }
 0x2e7   : > { %14199 = vst [vmem:[#allocation42_spill] sm:$0xff] %v11092_v43  ;;  %2314 = vst.msk [vmem:[#allocation2 + $0x70] sm:$0xff] %vm273_vm0, %v11092_v43  ;;  %v6698_v57 = vpop.f32.mrb[8].mxu0  ;;  %v7460_v7 = vpack.i.bf16 %v11098_v41, %v11106_v53  ;;  %v2595_v46 = vrot.slane %v11098_v41, 1 }
 0x2e8   : > { %v2191_v0 = vadd.f32 %v6698_v57, %v11041_v63  ;;  %7451 = vrot.lane.b32.xlu1 %v7450_v15, %s8809_s22  ;;  %7446 = vrot.lane.b32.xlu0 %v7450_v15, %s8805_s7  ;;  %v2182_v25 = vpop.f32.mrb[9].mxu0  ;;  %v2601_v44 = vsel %vm854_vm2, %v2599_v31, %v2600_v50  ;;  %v2603_v3 = vsel %vm854_vm2, %v2600_v50, %v2602_v1  ;;  %v2469_v1 = vrot.slane %v11098_v41, 7 }
 0x2e9   : > { %v2183_v4 = vadd.f32 %v11041_v63, %v2182_v25  ;;  %v6699_v16 = vpop.f32.mrb[10].mxu0  ;;  %v3631_v58 = vpack.c.bf16 %v2603_v3, %v2601_v44  ;;  %v11122_v62 = vsel %vm725_vm3, %v2472_v22, %v2474_v28  ;;  %v7480_v47 = vpack.i.bf16 %v2603_v3, %v2601_v44  ;;  %3802 = vmatpush1.bf16.msra.mxu1 %v8645_v10 }
 0x2ea   : > { %v11112_v29 = vmax.f32 %v2191_v0, 0.0  ;;  %v2194_v45 = vadd.f32 %v6699_v16, %v11041_v63  ;;  %v2185_v54 = vpop.f32.mrb[11].mxu0  ;;  %v7475_v18 = vpack.i.bf16 %v11122_v62, %v11135_v24  ;;  %v2596_v33 = vsel %vm854_vm2, %v2594_v32, %v2595_v46  ;;  %3803 = vmatprep.subr.bf16.mxu1 %v8808_v36 }
 0x2eb   : > { %v11117_v40 = vmax.f32 %v2183_v4, 0.0  ;;  %v2186_v51 = vadd.f32 %v11041_v63, %v2185_v54  ;;  %6562 = vmatprep.mubr.msk.bf16.mxu1 %vm273_vm0, %v3631_v58  ;;  %v2598_v23 = vsel %vm854_vm2, %v2595_v46, %v2597_v39  ;;  %v2466_v31 = vrot.slane %v2345_v37, 7  ;;  %v2358_v16 = vld [vmem:[#allocation2 + $0x88] sm:$0xff]  ;;  %v2360_v39 = vld [vmem:[#allocation2 + $0x98] sm:$0xff] }
 0x2ec   : > { %14200 = vst [vmem:[#allocation41_spill] sm:$0xff] %v11112_v29  ;;  %2319 = vst.msk [vmem:[#allocation2 + $0xc8] sm:$0xff] %vm273_vm0, %v11112_v29  ;;  %v11126_v9 = vmax.f32 %v2194_v45, 0.0  ;;  %7456 = vrot.lane.b32.xlu0 %v7450_v15, %s8810_s26  ;;  %7461 = vrot.lane.b32.xlu1 %v7460_v7, %s8805_s7  ;;  %v2467_v50 = vrot.slane %v11106_v53, 7  ;;  %v7490_v57 = vpack.i.bf16 %v2598_v23, %v2596_v33  ;;  %v8646_v53 = vld [vmem:[%s13742_s3 + $0x40] sm:$0xff]   ;;  %v11222_v36 = vld [vmem:[#allocation2 + $0x68] sm:$0xff] }
 0x2ed   : > { %14201 = vst [vmem:[#allocation40_spill] sm:$0xff] %v11117_v40  ;;  %2317 = vst.msk [vmem:[#allocation2 + $0xa8] sm:$0xff] %vm273_vm0, %v11117_v40  ;;  %v11132_v35 = vmax.f32 %v2186_v51, 0.0  ;;  %v11185_v28 = vld [vmem:[#allocation2 + $0x90] sm:$0xff]  ;;  %3804 = vmatpush1.bf16.msra.mxu1 %v8646_v53 }
 0x2ee   : > { %14202 = vst [vmem:[#allocation14_spill] sm:$0xff] %v11126_v9  ;;  %2320 = vst.msk [vmem:[#allocation2 + $0xd0] sm:$0xff] %vm273_vm0, %v11126_v9  ;;  %v11188_v0 = vsel %vm725_vm3, %v2467_v50, %v2469_v1  ;;  %v11195_v58 = vsel %vm725_vm3, %v2466_v31, %v2467_v50  ;;  %v7510_v45 = vpack.i.bf16 %v11185_v28, %v2358_v16  ;;  %v11210_v48 = vld [vmem:[#allocation2 + $0x70] sm:$0xff]  ;;  %v2610_v50 = vrot.slane %v11185_v28, 1 }
 0x2ef   : > { %14203 = vst [vmem:[#allocation39_spill] sm:$0xff] %v11132_v35  ;;  %2318 = vst.msk [vmem:[#allocation2 + $0xb0] sm:$0xff] %vm273_vm0, %v11132_v35  ;;  %v6702_v49 = vpop.f32.mrb[12].mxu0  ;;  %v7495_v54 = vpack.i.bf16 %v11188_v0, %v11195_v58  ;;  %v7520_v19 = vpack.i.bf16 %v11210_v48, %v11222_v36 }
 0x2f0   : > { %v2207_v6 = vadd.f32 %v6702_v49, %v11041_v63  ;;  %v2198_v60 = vpop.f32.mrb[13].mxu0  ;;  %7466 = vrot.lane.b32.xlu0 %v7460_v7, %s8809_s22  ;;  %7476 = vrot.lane.b32.xlu1 %v7475_v18, %s8811_s11  ;;  %v2357_v49 = vld [vmem:[#allocation2 + $0x80] sm:$0xff] }
 0x2f1   : > { %v2199_v61 = vadd.f32 %v11041_v63, %v2198_v60  ;;  %v6703_v42 = vpop.f32.mrb[14].mxu0  ;;  %v2484_v60 = vrot.slane %v11185_v28, 7  ;;  %v2481_v20 = vrot.slane %v2357_v49, 7 }
 0x2f2   : > { %v11156_v17 = vmax.f32 %v2207_v6, 0.0  ;;  %v2210_v12 = vadd.f32 %v6703_v42, %v11041_v63  ;;  %v2201_v14 = vpop.f32.mrb[15].mxu0 }
 0x2f3   : > { %v11161_v11 = vmax.f32 %v2199_v61, 0.0  ;;  %v2202_v27 = vadd.f32 %v11041_v63, %v2201_v14  ;;  %v2612_v14 = vrot.slane %v2360_v39, 1 }
 0x2f4   : > { %14204 = vst [vmem:[#allocation44_spill] sm:$0xff] %v11156_v17  ;;  %2323 = vst.msk [vmem:[#allocation2 + $0x108] sm:$0xff] %vm273_vm0, %v11156_v17  ;;  %v11168_v8 = vmax.f32 %v2210_v12, 0.0  ;;  %7471 = vrot.lane.b32.xlu0 %v7480_v47, %s8807_s10  ;;  %7481 = vrot.lane.b32.xlu1 %v7480_v47, %s8804_s30  ;;  %v2482_v12 = vrot.slane %v2358_v16, 7 }
 0x2f5   : > { %14205 = vst [vmem:[#allocation43_spill] sm:$0xff] %v11161_v11  ;;  %2321 = vst.msk [vmem:[#allocation2 + $0xe8] sm:$0xff] %vm273_vm0, %v11161_v11  ;;  %v11174_v15 = vmax.f32 %v2202_v27, 0.0 }
 0x2f6   : > { %14206 = vst [vmem:[#allocation5_spill] sm:$0xff] %v11168_v8  ;;  %2324 = vst.msk [vmem:[#allocation2 + $0x110] sm:$0xff] %vm273_vm0, %v11168_v8  ;;  %v11242_v31 = vsel %vm725_vm3, %v2482_v12, %v2484_v60 }
 0x2f7   : > { %14207 = vst [vmem:[#allocation12_spill] sm:$0xff] %v11174_v15  ;;  %2322 = vst.msk [vmem:[#allocation2 + $0xf0] sm:$0xff] %vm273_vm0, %v11174_v15  ;;  %v6706_v41 = vpop.f32.mrb[16].mxu0 }
 0x2f8   : > { %v2223_v25 = vadd.f32 %v6706_v41, %v11041_v63  ;;  %v2214_v44 = vpop.f32.mrb[17].mxu0  ;;  %7486 = vrot.lane.b32.xlu0 %v7475_v18, %s8806_s8  ;;  %7491 = vrot.lane.b32.xlu1 %v7490_v57, %s8807_s10  ;;  %14214 = vst [vmem:[#allocation49_spill] sm:$0xff] %v11242_v31 }
 0x2f9   : > { %v2215_v3 = vadd.f32 %v11041_v63, %v2214_v44  ;;  %v6707_v4 = vpop.f32.mrb[18].mxu0  ;;  %v2609_v44 = vrot.slane %v2358_v16, 1 }
 0x2fa   : > { %v11200_v5 = vmax.f32 %v2223_v25, 0.0  ;;  %v2226_v22 = vadd.f32 %v6707_v4, %v11041_v63  ;;  %v2217_v38 = vpop.f32.mrb[19].mxu0  ;;  %v11256_v25 = vsel %vm725_vm3, %v2481_v20, %v2482_v12 }
 0x2fb   : > { %v11207_v7 = vmax.f32 %v2215_v3, 0.0  ;;  %v2218_v51 = vadd.f32 %v11041_v63, %v2217_v38  ;;  %14217 = vst [vmem:[#allocation52_spill] sm:$0xff] %v11256_v25  ;;  %v7540_v28 = vpack.i.bf16 %v11242_v31, %v11256_v25  ;;  %v2605_v3 = vrot.slane %v11210_v48, 1 }
 0x2fc   : > { %14208 = vst [vmem:[#allocation45_spill] sm:$0xff] %v11200_v5  ;;  %2327 = vst.msk [vmem:[#allocation2 + $0x148] sm:$0xff] %vm273_vm0, %v11200_v5  ;;  %v11214_v18 = vmax.f32 %v2226_v22, 0.0  ;;  %7511 = vrot.lane.b32.xlu1 %v7510_v45, %s8809_s22  ;;  %7496 = vrot.lane.b32.xlu0 %v7495_v54, %s8811_s11  ;;  %v11266_v53 = vsel %vm854_vm2, %v2609_v44, %v2610_v50  ;;  %v11269_v22 = vsel %vm854_vm2, %v2610_v50, %v2612_v14 }
 0x2fd   : > { %14209 = vst [vmem:[#allocation15_spill] sm:$0xff] %v11207_v7  ;;  %2325 = vst.msk [vmem:[#allocation2 + $0x128] sm:$0xff] %vm273_vm0, %v11207_v7  ;;  %v11220_v46 = vmax.f32 %v2218_v51, 0.0  ;;  %v2604_v51 = vrot.slane %v11222_v36, 1  ;;  %v2479_v14 = vrot.slane %v11210_v48, 7  ;;  %v2477_v50 = vrot.slane %v11222_v36, 7 }
 0x2fe   : > { %14210 = vst [vmem:[#allocation17_spill] sm:$0xff] %v11214_v18  ;;  %2328 = vst.msk [vmem:[#allocation2 + $0x150] sm:$0xff] %vm273_vm0, %v11214_v18  ;;  %v11387_v18 = vld [vmem:[#allocation2 + $0x110] sm:$0xff] }
 0x2ff   : > { %14211 = vst [vmem:[#allocation46_spill] sm:$0xff] %v11220_v46  ;;  %2326 = vst.msk [vmem:[#allocation2 + $0x130] sm:$0xff] %vm273_vm0, %v11220_v46  ;;  %v6710_v6 = vpop.f32.mrb[20].mxu0  ;;  %v11400_v5 = vld [vmem:[#allocation2 + $0xf0] sm:$0xff] }
 0x300   : > { %v2239_v32 = vadd.f32 %v6710_v6, %v11041_v63  ;;  %v2230_v47 = vpop.f32.mrb[21].mxu0  ;;  %7521 = vrot.lane.b32.xlu1 %v7520_v19, %s8805_s7  ;;  %7501 = vrot.lane.b32.xlu0 %v7490_v57, %s8804_s30  ;;  %v2356_v57 = vld [vmem:[#allocation2 + $0x78] sm:$0xff]  ;;  %14218 = vst [vmem:[#allocation21_spill] sm:$0xff] %v11266_v53 }
 0x301   : > { %v2231_v61 = vadd.f32 %v11041_v63, %v2230_v47  ;;  %v6711_v42 = vpop.f32.mrb[22].mxu0  ;;  %v2607_v38 = vrot.slane %v2356_v57, 1  ;;  %v7545_v47 = vpack.i.bf16 %v11269_v22, %v11266_v53 }
 0x302   : > { %v11235_v33 = vmax.f32 %v2239_v32, 0.0  ;;  %v2242_v37 = vadd.f32 %v6711_v42, %v11041_v63  ;;  %v2233_v27 = vpop.f32.mrb[23].mxu0  ;;  %v2353_v42 = vld [vmem:[#allocation2 + $0x60] sm:$0xff] }
 0x303   : > { %v11238_v23 = vmax.f32 %v2231_v61, 0.0  ;;  %v2234_v1 = vadd.f32 %v11041_v63, %v2233_v27  ;;  %v11282_v61 = vsel %vm854_vm2, %v2604_v51, %v2605_v3  ;;  %v11288_v12 = vsel %vm854_vm2, %v2605_v3, %v2607_v38  ;;  %v11432_v15 = vld [vmem:[#allocation2 + $0x148] sm:$0xff] }
 0x304   : > { %14212 = vst [vmem:[#allocation47_spill] sm:$0xff] %v11235_v33  ;;  %2331 = vst.msk [vmem:[#allocation2 + $0x188] sm:$0xff] %vm273_vm0, %v11235_v33  ;;  %v11247_v10 = vmax.f32 %v2242_v37, 0.0  ;;  %7531 = vrot.lane.b32.xlu1 %v7520_v19, %s8810_s26  ;;  %7506 = vrot.lane.b32.xlu0 %v7510_v45, %s8805_s7  ;;  %v7555_v48 = vpack.i.bf16 %v11288_v12, %v11282_v61  ;;  %v2625_v33 = vrot.slane %v11400_v5, 1  ;;  %v2639_v30 = vrot.slane %v11432_v15, 1 }
 0x305   : > { %14213 = vst [vmem:[#allocation48_spill] sm:$0xff] %v11238_v23  ;;  %2329 = vst.msk [vmem:[#allocation2 + $0x168] sm:$0xff] %vm273_vm0, %v11238_v23  ;;  %v11253_v41 = vmax.f32 %v2234_v1, 0.0  ;;  %v2476_v1 = vrot.slane %v2353_v42, 7  ;;  %v2365_v42 = vld [vmem:[#allocation2 + $0xc0] sm:$0xff] }
 0x306   : > { %14215 = vst [vmem:[#allocation50_spill] sm:$0xff] %v11247_v10  ;;  %2332 = vst.msk [vmem:[#allocation2 + $0x190] sm:$0xff] %vm273_vm0, %v11247_v10 }
 0x307   : > { %14216 = vst [vmem:[#allocation51_spill] sm:$0xff] %v11253_v41  ;;  %2330 = vst.msk [vmem:[#allocation2 + $0x170] sm:$0xff] %vm273_vm0, %v11253_v41  ;;  %v6714_v4 = vpop.f32.mrb[24].mxu0  ;;  %v11316_v38 = vsel %vm725_vm3, %v2476_v1, %v2477_v50  ;;  %v2366_v1 = vld [vmem:[#allocation2 + $0xc8] sm:$0xff]  ;;  %v11410_v41 = vld [vmem:[#allocation2 + $0x150] sm:$0xff] }
 0x308   : > { %v2255_v16 = vadd.f32 %v6714_v4, %v11041_v63  ;;  %v2246_v54 = vpop.f32.mrb[25].mxu0  ;;  %7541 = vrot.lane.b32.xlu1 %v7540_v28, %s8811_s11  ;;  %7516 = vrot.lane.b32.xlu0 %v7510_v45, %s8810_s26  ;;  %14224 = vst [vmem:[#allocation57_spill] sm:$0xff] %v11316_v38  ;;  %v2492_v23 = vrot.slane %v2366_v1, 7  ;;  %v2619_v7 = vrot.slane %v2366_v1, 1  ;;  %v2640_v11 = vrot.slane %v11410_v41, 1 }
 0x309   : > { %v2247_v49 = vadd.f32 %v11041_v63, %v2246_v54  ;;  %v6715_v39 = vpop.f32.mrb[26].mxu0 }
 0x30a   : > { %v11276_v6 = vmax.f32 %v2255_v16, 0.0  ;;  %v2258_v60 = vadd.f32 %v6715_v39, %v11041_v63  ;;  %v2249_v32 = vpop.f32.mrb[27].mxu0 }
 0x30b   : > { %v11284_v20 = vmax.f32 %v2247_v49, 0.0  ;;  %v2250_v45 = vadd.f32 %v11041_v63, %v2249_v32  ;;  %v2367_v32 = vld [vmem:[#allocation2 + $0xd0] sm:$0xff]  ;;  %v11468_v21 = vld [vmem:[#allocation2 + $0x188] sm:$0xff] }
 0x30c   : > { %14219 = vst [vmem:[#allocation20_spill] sm:$0xff] %v11276_v6  ;;  %2335 = vst.msk [vmem:[#allocation2 + $0x1c8] sm:$0xff] %vm273_vm0, %v11276_v6  ;;  %v11293_v37 = vmax.f32 %v2258_v60, 0.0  ;;  %7546 = vrot.lane.b32.xlu1 %v7545_v47, %s8804_s30  ;;  %7526 = vrot.lane.b32.xlu0 %v7520_v19, %s8809_s22  ;;  %v11309_v19 = vsel %vm725_vm3, %v2477_v50, %v2479_v14  ;;  %v2364_v50 = vld [vmem:[#allocation2 + $0xb8] sm:$0xff] }
 0x30d   : > { %14220 = vst [vmem:[#allocation53_spill] sm:$0xff] %v11284_v20  ;;  %2333 = vst.msk [vmem:[#allocation2 + $0x1a8] sm:$0xff] %vm273_vm0, %v11284_v20  ;;  %v11299_v27 = vmax.f32 %v2250_v45, 0.0  ;;  %v7570_v49 = vpack.i.bf16 %v11309_v19, %v11316_v38  ;;  %v11332_v45 = vld [vmem:[#allocation2 + $0xa0] sm:$0xff]  ;;  %v2494_v20 = vrot.slane %v2367_v32, 7  ;;  %v11375_v6 = vld [vmem:[#allocation2 + $0x218] sm:$0xff] }
 0x30e   : > { %14221 = vst [vmem:[#allocation54_spill] sm:$0xff] %v11293_v37  ;;  %2336 = vst.msk [vmem:[#allocation2 + $0x1d0] sm:$0xff] %vm273_vm0, %v11293_v37  ;;  %v11442_v8 = vld [vmem:[#allocation2 + $0x190] sm:$0xff]  ;;  %v14235_v9 = vrot.slane %v11332_v45, 7 }
 0x30f   : > { %14222 = vst [vmem:[#allocation55_spill] sm:$0xff] %v11299_v27  ;;  %2334 = vst.msk [vmem:[#allocation2 + $0x1b0] sm:$0xff] %vm273_vm0, %v11299_v27  ;;  %v6718_v57 = vpop.f32.mrb[28].mxu0 }
 0x310   : > { %14223 = vst [vmem:[#allocation56_spill] sm:$0xff] %v11309_v19  ;;  %v2271_v44 = vadd.f32 %v6718_v57, %v11041_v63  ;;  %v2262_v3 = vpop.f32.mrb[29].mxu0  ;;  %7556 = vrot.lane.b32.xlu1 %v7555_v48, %s8807_s10  ;;  %7536 = vrot.lane.b32.xlu0 %v7545_v47, %s8807_s10  ;;  %v11340_v57 = vpack.i.bf16 %v2367_v32, %v2366_v1 }
 0x311   : > { %v2263_v36 = vadd.f32 %v11041_v63, %v2262_v3  ;;  %v6719_v4 = vpop.f32.mrb[30].mxu0  ;;  %v11344_v3 = vld [vmem:[#allocation2 + $0xf8] sm:$0xff] }
 0x312   : > { %v11318_v16 = vmax.f32 %v2271_v44, 0.0  ;;  %v2274_v54 = vadd.f32 %v6719_v4, %v11041_v63  ;;  %v2265_v51 = vpop.f32.mrb[31].mxu0  ;;  %v11342_v44 = vld [vmem:[#allocation2 + $0x118] sm:$0xff]  ;;  %v2491_v4 = vrot.slane %v2365_v42, 7  ;;  %v2620_v42 = vrot.slane %v2367_v32, 1  ;;  %v11408_v32 = vld [vmem:[#allocation2 + $0x108] sm:$0xff] }
 0x313   : > { %v11323_v39 = vmax.f32 %v2263_v36, 0.0  ;;  %v2266_v60 = vadd.f32 %v11041_v63, %v2265_v51  ;;  %v2368_v63 = vld [vmem:[#allocation2 + $0xd8] sm:$0xff]  ;;  %v11350_v36 = vld [vmem:[#allocation2 + $0xb0] sm:$0xff]  ;;  %v2617_v51 = vrot.slane %v2364_v50, 1  ;;  %v14237_v56 = vrot.slane %v11342_v44, 1 }
 0x314   : > { %14225 = vst [vmem:[#allocation58_spill] sm:$0xff] %v11318_v16  ;;  %2339 = vst.msk [vmem:[#allocation2 + $0x208] sm:$0xff] %vm273_vm0, %v11318_v16  ;;  %v11328_v47 = vmax.f32 %v2274_v54, 0.0  ;;  %7571 = vrot.lane.b32.xlu1 %v7570_v49, %s8806_s8  ;;  %7551 = vrot.lane.b32.xlu0 %v7540_v28, %s8806_s8  ;;  %v11346_v28 = vld [vmem:[#allocation2 + $0x158] sm:$0xff]  ;;  %v2622_v54 = vrot.slane %v2368_v63, 1  ;;  %v2615_v37 = vrot.slane %v11350_v36, 1  ;;  %v11403_v46 = vsel %vm854_vm2, %v2619_v7, %v2620_v42 }
 0x315   : > { %14226 = vst [vmem:[#allocation59_spill] sm:$0xff] %v11323_v39  ;;  %2337 = vst.msk [vmem:[#allocation2 + $0x1e8] sm:$0xff] %vm273_vm0, %v11323_v39  ;;  %v11336_v14 = vmax.f32 %v2266_v60, 0.0  ;;  %v11360_v16 = vld [vmem:[#allocation2 + $0x178] sm:$0xff]  ;;  %v2362_v39 = vld [vmem:[#allocation2 + $0xa8] sm:$0xff]  ;;  %v14240_v34 = vrot.slane %v11344_v3, 1 }
 0x316   : > { %14227 = vst [vmem:[#allocation60_spill] sm:$0xff] %v11328_v47  ;;  %2340 = vst.msk [vmem:[#allocation2 + $0x210] sm:$0xff] %vm273_vm0, %v11328_v47  ;;  %v11358_v47 = vld [vmem:[#allocation2 + $0x198] sm:$0xff]  ;;  %v11372_v60 = vpack.i.bf16 %v11350_v36, %v2362_v39  ;;  %v2614_v10 = vrot.slane %v2362_v39, 1  ;;  %v11406_v1 = vsel %vm854_vm2, %v2620_v42, %v2622_v54  ;;  %v2487_v7 = vrot.slane %v2362_v39, 7  ;;  %v11422_v54 = vld [vmem:[#allocation2 + $0xe8] sm:$0xff] }
 0x317   : > { %14228 = vst [vmem:[#allocation61_spill] sm:$0xff] %v11336_v14  ;;  %2338 = vst.msk [vmem:[#allocation2 + $0x1f0] sm:$0xff] %vm273_vm0, %v11336_v14  ;;  %v11367_v63 = vld [vmem:[#allocation2 + $0x1d8] sm:$0xff]  ;;  %v11425_v42 = vld [vmem:[#allocation2 + $0x130] sm:$0xff]  ;;  %v7615_v39 = vpack.i.bf16 %v11406_v1, %v11403_v46  ;;  %v2624_v35 = vrot.slane %v11422_v54, 1  ;;  %v11491_v44 = vsel %vm854_vm2, %v2625_v33, %v14240_v34  ;;  %v2649_v34 = vrot.slane %v11468_v21, 1 }
 0x318   : > { %7581 = vrot.lane.b32.xlu1 %v11340_v57, %s8809_s22  ;;  %7561 = vrot.lane.b32.xlu0 %v7570_v49, %s8811_s11  ;;  %v11369_v50 = vld [vmem:[#allocation2 + $0x1b8] sm:$0xff]  ;;  %v11392_v49 = vsel %vm725_vm3, %v2492_v23, %v2494_v20  ;;  %v11395_v27 = vsel %vm854_vm2, %v2614_v10, %v2615_v37  ;;  %14232 = vst [vmem:[#allocation65_spill] sm:$0xff] %v11403_v46  ;;  %14233 = vst [vmem:[#allocation66_spill] sm:$0xff] %v11406_v1  ;;  %v2635_v40 = vrot.slane %v11425_v42, 1  ;;  %v11470_v52 = vld [vmem:[#allocation2 + $0x1d0] sm:$0xff] }
 0x319   : > { %v11377_v14 = vld [vmem:[#allocation2 + $0x1f8] sm:$0xff]  ;;  %14229 = vst [vmem:[#allocation62_spill] sm:$0xff] %v11392_v49  ;;  %14230 = vst [vmem:[#allocation63_spill] sm:$0xff] %v11395_v27  ;;  %v11419_v10 = vsel %vm725_vm3, %v2491_v4, %v2492_v23  ;;  %v11439_v4 = vld [vmem:[#allocation2 + $0x128] sm:$0xff]  ;;  %v11459_v29 = vsel %vm725_vm3, %v14235_v9, %v2487_v7  ;;  %v11478_v9 = vsel %vm854_vm2, %v2624_v35, %v2625_v33  ;;  %v14242_v35 = vrot.slane %v11346_v28, 1 }
 0x31a   : > { %14234 = vst [vmem:[#allocation67_spill] sm:$0xff] %v11419_v10  ;;  %v11429_v20 = vpack.i.bf16 %v11392_v49, %v11419_v10  ;;  %v11450_v23 = vld [vmem:[#allocation2 + $0x170] sm:$0xff]  ;;  %v2634_v45 = vrot.slane %v11439_v4, 1  ;;  %v11502_v49 = vld [vmem:[#allocation2 + $0x1c8] sm:$0xff]  ;;  %v14245_v28 = vrot.slane %v11356_v26, 1 }
 0x31b   : > { %v2645_v10 = vrot.slane %v11450_v23, 1  ;;  %v11510_v33 = vld [vmem:[#allocation2 + $0x1a8] sm:$0xff]  ;;  %v2659_v46 = vrot.slane %v11502_v49, 1 }
 0x31c   : > { %7591 = vrot.lane.b32.xlu1 %v11372_v60, %s8805_s7  ;;  %7566 = vrot.lane.b32.xlu0 %v7555_v48, %s8804_s30  ;;  %v11398_v48 = vsel %vm854_vm2, %v2615_v37, %v2617_v51  ;;  %v2489_v37 = vrot.slane %v11350_v36, 7  ;;  %v2630_v51 = vrot.slane %v11387_v18, 1  ;;  %v2629_v36 = vrot.slane %v11408_v32, 1  ;;  %v11513_v3 = vld [vmem:[#allocation2 + $0x208] sm:$0xff] }
 0x31d   : > { %14231 = vst [vmem:[#allocation64_spill] sm:$0xff] %v11398_v48  ;;  %v11446_v17 = vpack.i.bf16 %v11398_v48, %v11395_v27  ;;  %v11486_v13 = vld [vmem:[#allocation2 + $0x210] sm:$0xff]  ;;  %v11507_v31 = vsel %vm854_vm2, %v2634_v45, %v2635_v40  ;;  %v11523_v45 = vsel %vm854_vm2, %v2635_v40, %v14245_v28  ;;  %v11527_v19 = vld [vmem:[#allocation2 + $0x1e8] sm:$0xff]  ;;  %v14247_v40 = vrot.slane %v11358_v47, 1 }
 0x31e   : > { %v11462_v43 = vsel %vm725_vm3, %v2487_v7, %v2489_v37  ;;  %v11465_v2 = vsel %vm854_vm2, %v2629_v36, %v2630_v51  ;;  %v11481_v7 = vld [vmem:[#allocation2 + $0x168] sm:$0xff]  ;;  %v2650_v37 = vrot.slane %v11442_v8, 1  ;;  %v11484_v36 = vld [vmem:[#allocation2 + $0x1b0] sm:$0xff]  ;;  %14239 = vst [vmem:[#allocation70_spill] sm:$0xff] %v11486_v13  ;;  %14244 = vst [vmem:[#allocation73_spill] sm:$0xff] %v11507_v31  ;;  %v2679_v27 = vrot.slane %v11486_v13, 1 }
 0x31f   : > { %14236 = vst [vmem:[#allocation68_spill] sm:$0xff] %v11465_v2  ;;  %v11504_v25 = vld [vmem:[#allocation2 + $0x1f0] sm:$0xff]  ;;  %14246 = vst [vmem:[#allocation19_spill] sm:$0xff] %v11523_v45  ;;  %v2655_v38 = vrot.slane %v11484_v36, 1  ;;  %v2654_v13 = vrot.slane %v11510_v33, 1  ;;  %v14248_v48 = vrot.slane %v11360_v16, 1 }
 0x320   : > { %7601 = vrot.lane.b32.xlu1 %v11372_v60, %s8810_s26  ;;  %7576 = vrot.lane.b32.xlu0 %v11340_v57, %s8805_s7  ;;  %v2665_v26 = vrot.slane %v11504_v25, 1  ;;  %v11540_v28 = vsel %vm854_vm2, %v2650_v37, %v14247_v40  ;;  %v14249_v47 = vrot.slane %v11367_v63, 1 }
 0x321   : > { %v11550_v53 = vsel %vm854_vm2, %v2645_v10, %v14248_v48  ;;  %v11565_v16 = vsel %vm854_vm2, %v2654_v13, %v2655_v38  ;;  %v14250_v48 = vrot.slane %v11369_v50, 1  ;;  %v7640_v50 = vpack.i.bf16 %v11462_v43, %v11459_v29 }
 0x324   : > { %7611 = vrot.lane.b32.xlu1 %v11429_v20, %s8811_s11  ;;  %7586 = vrot.lane.b32.xlu0 %v11340_v57, %s8810_s26  ;;  %v11475_v57 = vsel %vm854_vm2, %v2630_v51, %v14237_v56  ;;  %v11494_v56 = vsel %vm854_vm2, %v2639_v30, %v2640_v11  ;;  %v11499_v51 = vsel %vm854_vm2, %v2640_v11, %v14242_v35  ;;  %v2660_v30 = vrot.slane %v11470_v52, 1 }
 0x325   : > { %14238 = vst [vmem:[#allocation69_spill] sm:$0xff] %v11475_v57  ;;  %14241 = vst [vmem:[#allocation71_spill] sm:$0xff] %v11494_v56  ;;  %v2644_v35 = vrot.slane %v11481_v7, 1  ;;  %v11531_v11 = vsel %vm854_vm2, %v2649_v34, %v2650_v37  ;;  %v2678_v34 = vrot.slane %v11513_v3, 1 }
 0x326   : > { %14243 = vst [vmem:[#allocation72_spill] sm:$0xff] %v11499_v51  ;;  %v11558_v37 = vsel %vm854_vm2, %v2660_v30, %v14249_v47 }
 0x327   : > { %v11543_v1 = vsel %vm854_vm2, %v2644_v35, %v2645_v10  ;;  %v2664_v35 = vrot.slane %v11527_v19, 1  ;;  %v11573_v63 = vsel %vm854_vm2, %v2678_v34, %v2679_v27  ;;  %v14251_v10 = vrot.slane %v11375_v6, 1 }
 0x328   : > { %7616 = vrot.lane.b32.xlu1 %v7615_v39, %s8804_s30  ;;  %7596 = vrot.lane.b32.xlu0 %v11372_v60, %s8809_s22  ;;  %v11553_v60 = vsel %vm854_vm2, %v2659_v46, %v2660_v30  ;;  %v11570_v46 = vsel %vm854_vm2, %v2655_v38, %v14250_v48  ;;  %v2502_v48 = vrot.slane %v11408_v32, 7  ;;  %v2512_v34 = vrot.slane %v11432_v15, 7 }
 0x329   : > { %v11578_v30 = vsel %vm854_vm2, %v2679_v27, %v14251_v10  ;;  %v11581_v40 = vsel %vm854_vm2, %v2664_v35, %v2665_v26  ;;  %v7650_v10 = vpack.i.bf16 %v11387_v18, %v11408_v32  ;;  %v2369_v32 = vld [vmem:[#allocation2 + $0xe0] sm:$0xff] }
 0x32c   : > { %7626 = vrot.lane.b32.xlu1 %v11446_v17, %s8807_s10  ;;  %7606 = vrot.lane.b32.xlu0 %v7615_v39, %s8807_s10  ;;  %v14252_v39 = vrot.slane %v11377_v14, 1 }
 0x32e   : > { %v11586_v13 = vsel %vm854_vm2, %v2665_v26, %v14252_v39  ;;  %v7660_v39 = vpack.i.bf16 %v11400_v5, %v11422_v54  ;;  %v2504_v26 = vrot.slane %v11387_v18, 7 }
 0x330   : > { %7641 = vrot.lane.b32.xlu1 %v7640_v50, %s8806_s8  ;;  %7621 = vrot.lane.b32.xlu0 %v11429_v20, %s8806_s8  ;;  %v2373_v20 = vld [vmem:[#allocation2 + $0x100] sm:$0xff]  ;;  %v11623_v47 = vsel %vm725_vm3, %v2502_v48, %v2504_v26  ;;  %v2499_v26 = vrot.slane %v11400_v5, 7 }
 0x331   : > { %v2501_v35 = vrot.slane %v2373_v20, 7  ;;  %14253 = vst [vmem:[#allocation74_spill] sm:$0xff] %v11623_v47  ;;  %v2496_v20 = vrot.slane %v2369_v32, 7  ;;  %v2381_v32 = vld [vmem:[#allocation2 + $0x140] sm:$0xff] }
 0x334   : > { %7651 = vrot.lane.b32.xlu1 %v7650_v10, %s8809_s22  ;;  %7631 = vrot.lane.b32.xlu0 %v7640_v50, %s8811_s11  ;;  %v11628_v50 = vsel %vm725_vm3, %v2501_v35, %v2502_v48  ;;  %v2497_v35 = vrot.slane %v11422_v54, 7  ;;  %v7695_v48 = vpack.i.bf16 %v11491_v44, %v11478_v9  ;;  %v7720_v54 = vpack.i.bf16 %v11410_v41, %v11432_v15 }
 0x335   : > { %14254 = vst [vmem:[#allocation75_spill] sm:$0xff] %v11628_v50  ;;  %v7680_v18 = vpack.i.bf16 %v11623_v47, %v11628_v50  ;;  %v2341_v50 = vld [vmem:[#allocation2] sm:$0xff] }
 0x336   : > { %v11643_v14 = vsel %vm725_vm3, %v2497_v35, %v2499_v26  ;;  %v2514_v26 = vrot.slane %v11410_v41, 7 }
 0x337   : > { %14255 = vst [vmem:[#allocation18_spill] sm:$0xff] %v11643_v14 }
 0x338   : > { %7661 = vrot.lane.b32.xlu1 %v7660_v39, %s8805_s7  ;;  %7636 = vrot.lane.b32.xlu0 %v11446_v17, %s8804_s30  ;;  %v7685_v17 = vpack.i.bf16 %v11475_v57, %v11465_v2  ;;  %v11667_v27 = vsel %vm725_vm3, %v2512_v34, %v2514_v26  ;;  %v7755_v26 = vpack.i.bf16 %v11499_v51, %v11494_v56 }
 0x339   : > { %14258 = vst [vmem:[#allocation24_spill] sm:$0xff] %v11667_v27 }
 0x33c   : > { %7671 = vrot.lane.b32.xlu1 %v7660_v39, %s8810_s26  ;;  %7646 = vrot.lane.b32.xlu0 %v7650_v10, %s8805_s7 }
 0x340   : > { %7681 = vrot.lane.b32.xlu1 %v7680_v18, %s8811_s11  ;;  %7656 = vrot.lane.b32.xlu0 %v7650_v10, %s8810_s26  ;;  %v11648_v10 = vsel %vm725_vm3, %v2496_v20, %v2497_v35  ;;  %v11663_v20 = vpop.permute.xlu1 %7441  ;;  %v2511_v35 = vrot.slane %v2381_v32, 7 }
 0x341   : > { %14256 = vst [vmem:[#allocation26_spill] sm:$0xff] %v11648_v10  ;;  %v7710_v5 = vpack.i.bf16 %v11643_v14, %v11648_v10  ;;  %14257 = vst [vmem:[#allocation25_spill] sm:$0xff] %v11663_v20  ;;  %v2507_v20 = vrot.slane %v11439_v4, 7  ;;  %v14262_v10 = vrot.slane %v11018_v59, 7 }
 0x344   : > { %7686 = vrot.lane.b32.xlu1 %v7685_v17, %s8804_s30  ;;  %7666 = vrot.lane.b32.xlu0 %v7660_v39, %s8809_s22  ;;  %v7432_v39 = vpop.permute.xlu0 %7431 }
 0x345   : > { %v7433_v51 = vunpack.i.l.bf16 %v7432_v39 }
 0x348   : > { %7696 = vrot.lane.b32.xlu1 %v7695_v48, %s8807_s10  ;;  %7676 = vrot.lane.b32.xlu0 %v7685_v17, %s8807_s10  ;;  %v7730_v17 = vpack.i.bf16 %v11425_v42, %v11439_v4 }
 0x34c   : > { %7711 = vrot.lane.b32.xlu1 %v7710_v5, %s8806_s8  ;;  %7691 = vrot.lane.b32.xlu0 %v7680_v18, %s8806_s8  ;;  %v7437_v18 = vpop.permute.xlu0 %7436 }
 0x34d   : > { %v7439_v14 = vunpack.i.h.bf16 %v7437_v18 }
 0x350   : > { %7721 = vrot.lane.b32.xlu1 %v7720_v54, %s8809_s22  ;;  %7701 = vrot.lane.b32.xlu0 %v7710_v5, %s8811_s11  ;;  %v11672_v5 = vsel %vm725_vm3, %v2511_v35, %v2512_v34  ;;  %v2377_v34 = vld [vmem:[#allocation2 + $0x120] sm:$0xff]  ;;  %v2509_v35 = vrot.slane %v11425_v42, 7 }
 0x351   : > { %14259 = vst [vmem:[#allocation76_spill] sm:$0xff] %v11672_v5  ;;  %v2506_v38 = vrot.slane %v2377_v34, 7 }
 0x352   : > { %v11697_v47 = vsel %vm725_vm3, %v2507_v20, %v2509_v35  ;;  %v7434_v35 = vunpack.i.h.bf16 %v7432_v39 }
 0x353   : > { %14260 = vst [vmem:[#allocation77_spill] sm:$0xff] %v11697_v47  ;;  %v11702_v42 = vsel %vm725_vm3, %v2506_v38, %v2507_v20 }
 0x354   : > { %7731 = vrot.lane.b32.xlu1 %v7730_v17, %s8805_s7  ;;  %7706 = vrot.lane.b32.xlu0 %v7695_v48, %s8804_s30  ;;  %v7750_v48 = vpack.i.bf16 %v11667_v27, %v11672_v5  ;;  %14261 = vst [vmem:[#allocation23_spill] sm:$0xff] %v11702_v42  ;;  %v7780_v56 = vpack.i.bf16 %v11697_v47, %v11702_v42  ;;  %v2389_v42 = vld [vmem:[#allocation2 + $0x180] sm:$0xff]  ;;  %v2524_v47 = vrot.slane %v11442_v8, 7 }
 0x355   : > { %v3402_v39 = vsel %vm273_vm0, %v11033_v55, %v7434_v35  ;;  %v2521_v2 = vrot.slane %v2389_v42, 7 }
 0x356   : > { %v3435_v55 = vsel %vm3433_vm15, %v3402_v39, %v7439_v14 }
 0x358   : > { %7741 = vrot.lane.b32.xlu1 %v7730_v17, %s8810_s26  ;;  %7716 = vrot.lane.b32.xlu0 %v7720_v54, %s8805_s7 }
 0x35a   : > { %v11674_v41 = vpop.permute.xlu1 %7451  ;;  %v11676_v6 = vpop.permute.xlu0 %7446 }
 0x35c   : > { %7751 = vrot.lane.b32.xlu1 %v7750_v48, %s8811_s11  ;;  %7726 = vrot.lane.b32.xlu0 %v7720_v54, %s8810_s26  ;;  %v7765_v54 = vpack.i.bf16 %v11523_v45, %v11507_v31  ;;  %v7438_v31 = vunpack.i.l.bf16 %v7437_v18 }
 0x35e   : > { %v11682_v15 = vpop.permute.xlu0 %7456  ;;  %v11684_v32 = vpop.permute.xlu1 %7461 }
 0x360   : > { %7756 = vrot.lane.b32.xlu1 %v7755_v26, %s8804_s30  ;;  %7736 = vrot.lane.b32.xlu0 %v7730_v17, %s8809_s22  ;;  %v2461_v17 = vrot.slane %v2341_v50, 7  ;;  %v7790_v50 = vpack.i.bf16 %v11442_v8, %v11468_v21 }
 0x362   : > { %v7467_v5 = vpop.permute.xlu0 %7466  ;;  %v11692_v27 = vpop.permute.xlu1 %7476 }
 0x363   : > { %v7469_v8 = vunpack.i.h.bf16 %v7467_v5 }
 0x364   : > { %7766 = vrot.lane.b32.xlu1 %v7765_v54, %s8807_s10  ;;  %7746 = vrot.lane.b32.xlu0 %v7755_v26, %s8807_s10  ;;  %v2463_v26 = vsel %vm725_vm3, %v2461_v17, %v14262_v10  ;;  %v7800_v17 = vpack.i.bf16 %v11450_v23, %v11481_v7 }
 0x365   : > { %v3401_v59 = vsel %vm273_vm0, %v2463_v26, %v7433_v51  ;;  %v7468_v26 = vunpack.i.l.bf16 %v7467_v5 }
 0x366   : > { %v11704_v34 = vpop.permute.xlu0 %7471  ;;  %v11706_v4 = vpop.permute.xlu1 %7481  ;;  %v3434_v57 = vsel %vm3433_vm15, %v3401_v59, %v7438_v31 }
 0x368   : > { %7781 = vrot.lane.b32.xlu1 %v7780_v56, %s8806_s8  ;;  %7761 = vrot.lane.b32.xlu0 %v7750_v48, %s8806_s8 }
 0x36a   : > { %v7487_v38 = vpop.permute.xlu0 %7486  ;;  %v11715_v20 = vpop.permute.xlu1 %7491 }
 0x36b   : > { %v7488_v59 = vunpack.i.l.bf16 %v7487_v38 }
 0x36c   : > { %7791 = vrot.lane.b32.xlu1 %v7790_v50, %s8809_s22  ;;  %7771 = vrot.lane.b32.xlu0 %v7780_v56, %s8811_s11  ;;  %v2522_v56 = vrot.slane %v11468_v21, 7 }
 0x36e   : > { %v11724_v10 = vpop.permute.xlu1 %7511  ;;  %v7497_v48 = vpop.permute.xlu0 %7496  ;;  %v11739_v21 = vsel %vm725_vm3, %v2522_v56, %v2524_v47  ;;  %v11742_v39 = vsel %vm725_vm3, %v2521_v2, %v2522_v56  ;;  %v7459_v2 = vunpack.i.h.bf16 %v11682_v15 }
 0x36f   : > { %v7499_v18 = vunpack.i.h.bf16 %v7497_v48  ;;  %v7498_v45 = vunpack.i.l.bf16 %v7497_v48  ;;  %14263 = vst [vmem:[#allocation3_spill] sm:$0xff] %v11742_v39  ;;  %v7820_v5 = vpack.i.bf16 %v11739_v21, %v11742_v39 }
 0x370   : > { %7801 = vrot.lane.b32.xlu1 %v7800_v17, %s8805_s7  ;;  %7776 = vrot.lane.b32.xlu0 %v7765_v54, %s8804_s30  ;;  %v7489_v54 = vunpack.i.h.bf16 %v7487_v38  ;;  %v7458_v38 = vunpack.i.l.bf16 %v11682_v15  ;;  %v7463_v15 = vunpack.i.l.bf16 %v11684_v32 }
 0x371   : > { %v3468_v51 = vsel %vm3466_vm4, %v3435_v55, %v7499_v18  ;;  %v3467_v35 = vsel %vm3466_vm4, %v3434_v57, %v7498_v45 }
 0x372   : > { %v11736_v48 = vpop.permute.xlu1 %7521  ;;  %v7502_v42 = vpop.permute.xlu0 %7501  ;;  %v3500_v18 = vsel %vm3499_vm5, %v3467_v35, %v7468_v26  ;;  %v3501_v57 = vsel %vm3499_vm5, %v3468_v51, %v7469_v8 }
 0x373   : > { %v7504_v31 = vunpack.i.h.bf16 %v7502_v42  ;;  %v7503_v14 = vunpack.i.l.bf16 %v7502_v42 }
 0x374   : > { %7811 = vrot.lane.b32.xlu1 %v7800_v17, %s8810_s26  ;;  %7786 = vrot.lane.b32.xlu0 %v7790_v50, %s8805_s7 }
 0x375   : > { %v3532_v45 = vsel %vm1962_vm13, %v3500_v18, %v7503_v14  ;;  %v3533_v47 = vsel %vm1962_vm13, %v3501_v57, %v7504_v31  ;;  %v7464_v31 = vunpack.i.h.bf16 %v11684_v32  ;;  %v7494_v57 = vunpack.i.h.bf16 %v11715_v20 }
 0x376   : > { %v11754_v56 = vpop.permute.xlu1 %7531  ;;  %v11756_v55 = vpop.permute.xlu0 %7506  ;;  %v3565_v51 = vsel %vm3564_vm7, %v3532_v45, %v7488_v59  ;;  %v3566_v35 = vsel %vm3564_vm7, %v3533_v47, %v7489_v54  ;;  %v7825_v54 = vpack.i.bf16 %v11540_v28, %v11531_v11  ;;  %v2385_v59 = vld [vmem:[#allocation2 + $0x160] sm:$0xff]  ;;  %v2519_v45 = vrot.slane %v11450_v23, 7 }
 0x377   : > { %v3598_v8 = vsel %vm3597_vm8, %v3565_v51, %v7458_v38  ;;  %v3599_v26 = vsel %vm3597_vm8, %v3566_v35, %v7459_v2  ;;  %v14264_v47 = vpack.c.bf16 %v11288_v12, %v11282_v61  ;;  %v2516_v32 = vrot.slane %v2385_v59, 7 }
 0x378   : > { %7821 = vrot.lane.b32.xlu1 %v7820_v5, %s8811_s11  ;;  %7796 = vrot.lane.b32.xlu0 %v7790_v50, %s8810_s26  ;;  %v3630_v42 = vpack.c.bf16 %v3599_v26, %v3598_v8  ;;  %v7493_v50 = vunpack.i.l.bf16 %v11715_v20  ;;  %v2517_v2 = vrot.slane %v11481_v7, 7  ;;  %v3403_v38 = vsel %vm273_vm0, %v11195_v58, %v7463_v15  ;;  %v2397_v8 = vld [vmem:[#allocation2 + $0x1c0] sm:$0xff] }
 0x379   : > { %v3404_v20 = vsel %vm273_vm0, %v11188_v0, %v7464_v31  ;;  %v7835_v61 = vpack.i.bf16 %v11550_v53, %v11543_v1  ;;  %v7479_v7 = vunpack.i.h.bf16 %v11692_v27  ;;  %v7478_v58 = vunpack.i.l.bf16 %v11692_v27 }
 0x37a   : > { %v11766_v14 = vpop.permute.xlu1 %7541  ;;  %v11768_v18 = vpop.permute.xlu0 %7516  ;;  %3820 = vmatmul.mubr.bf16.vlgmr.msra.gmra.mrb[0].mxu1 %v3630_v42  ;;  %v3436_v12 = vsel %vm3433_vm15, %v3403_v38, %v7493_v50  ;;  %v11795_v35 = vsel %vm725_vm3, %v2517_v2, %v2519_v45  ;;  %v11802_v0 = vsel %vm725_vm3, %v2516_v32, %v2517_v2  ;;  %v7454_v27 = vunpack.i.h.bf16 %v11674_v41 }
 0x37b   : > { %6563 = vmatprep.mubr.msk.bf16.mxu1 %vm273_vm0, %v14264_v47  ;;  %v3469_v26 = vsel %vm3466_vm4, %v3436_v12, %v7478_v58  ;;  %v7850_v59 = vpack.i.bf16 %v11795_v35, %v11802_v0  ;;  %v11818_v50 = vpack.i.bf16 %v11470_v52, %v11502_v49  ;;  %v7449_v32 = vunpack.i.h.bf16 %v11676_v6 }
 0x37c   : > { %7826 = vrot.lane.b32.xlu1 %v7825_v54, %s8804_s30  ;;  %7806 = vrot.lane.b32.xlu0 %v7800_v17, %s8809_s22  ;;  %v3437_v17 = vsel %vm3433_vm15, %v3404_v20, %v7494_v57  ;;  %v7453_v57 = vunpack.i.l.bf16 %v11674_v41  ;;  %v7448_v2 = vunpack.i.l.bf16 %v11676_v6  ;;  %v7484_v38 = vunpack.i.h.bf16 %v11706_v4 }
 0x37d   : > { %v3470_v42 = vsel %vm3466_vm4, %v3437_v17, %v7479_v7  ;;  %v7483_v41 = vunpack.i.l.bf16 %v11706_v4  ;;  %v7473_v17 = vunpack.i.l.bf16 %v11704_v34  ;;  %v7870_v4 = vpack.i.bf16 %v11484_v36, %v11510_v33 }
 0x37e   : > { %v11786_v51 = vpop.permute.xlu1 %7546  ;;  %v11788_v23 = vpop.permute.xlu0 %7526  ;;  %v3502_v45 = vsel %vm3499_vm5, %v3469_v26, %v7453_v57  ;;  %v3503_v47 = vsel %vm3499_vm5, %v3470_v42, %v7454_v27  ;;  %v7533_v26 = vunpack.i.l.bf16 %v11754_v56 }
 0x37f   : > { %v3534_v6 = vsel %vm1962_vm13, %v3502_v45, %v7483_v41  ;;  %v3535_v42 = vsel %vm1962_vm13, %v3503_v47, %v7484_v38  ;;  %v2532_v45 = vrot.slane %v11502_v49, 7  ;;  %v2534_v47 = vrot.slane %v11470_v52, 7 }
 0x380   : > { %7836 = vrot.lane.b32.xlu1 %v7835_v61, %s8807_s10  ;;  %7816 = vrot.lane.b32.xlu0 %v7825_v54, %s8807_s10  ;;  %v2531_v54 = vrot.slane %v2397_v8, 7  ;;  %v7534_v8 = vunpack.i.h.bf16 %v11754_v56  ;;  %v3406_v38 = vsel %vm273_vm0, %v11122_v62, %v7449_v32  ;;  %v7529_v52 = vunpack.i.h.bf16 %v11788_v23 }
 0x382   : > { %v11806_v31 = vpop.permute.xlu1 %7556  ;;  %v11808_v15 = vpop.permute.xlu0 %7536 }
 0x384   : > { %7851 = vrot.lane.b32.xlu1 %v7850_v59, %s8806_s8  ;;  %7831 = vrot.lane.b32.xlu0 %v7820_v5, %s8806_s8  ;;  %v7474_v5 = vunpack.i.h.bf16 %v11704_v34 }
 0x386   : > { %v7572_v20 = vpop.permute.xlu1 %7571  ;;  %v7552_v12 = vpop.permute.xlu0 %7551 }
 0x387   : > { %v7574_v7 = vunpack.i.h.bf16 %v7572_v20  ;;  %v7573_v58 = vunpack.i.l.bf16 %v7572_v20 }
 0x388   : > { %7861 = vrot.lane.b32.xlu1 %v11818_v50, %s8809_s22  ;;  %7841 = vrot.lane.b32.xlu0 %v7850_v59, %s8811_s11  ;;  %v3405_v59 = vsel %vm273_vm0, %v11135_v24, %v7448_v2  ;;  %v7528_v24 = vunpack.i.l.bf16 %v11788_v23  ;;  %v11860_v2 = vsel %vm725_vm3, %v2532_v45, %v2534_v47 }
 0x389   : > { %v3567_v34 = vsel %vm3564_vm7, %v3534_v6, %v7573_v58  ;;  %v3568_v27 = vsel %vm3564_vm7, %v3535_v42, %v7574_v7  ;;  %v3439_v7 = vsel %vm3433_vm15, %v3406_v38, %v7474_v5  ;;  %v3438_v6 = vsel %vm3433_vm15, %v3405_v59, %v7473_v17 }
 0x38a   : > { %v11839_v57 = vpop.permute.xlu1 %7581  ;;  %v7562_v20 = vpop.permute.xlu0 %7561  ;;  %v3600_v56 = vsel %vm3597_vm8, %v3567_v34, %v7533_v26  ;;  %v3601_v39 = vsel %vm3597_vm8, %v3568_v27, %v7534_v8  ;;  %v7554_v34 = vunpack.i.h.bf16 %v7552_v12  ;;  %v7553_v27 = vunpack.i.l.bf16 %v7552_v12 }
 0x38b   : > { %v7564_v41 = vunpack.i.h.bf16 %v7562_v20  ;;  %v7563_v58 = vunpack.i.l.bf16 %v7562_v20  ;;  %v3632_v26 = vpack.c.bf16 %v3601_v39, %v3600_v56  ;;  %v14265_v39 = vld [vmem:[#allocation21_spill] sm:$0xff]  ;;  %v7518_v12 = vunpack.i.l.bf16 %v11768_v18 }
 0x38c   : > { %7871 = vrot.lane.b32.xlu1 %v7870_v4, %s8805_s7  ;;  %7846 = vrot.lane.b32.xlu0 %v7835_v61, %s8804_s30  ;;  %v14266_v42 = vpack.c.bf16 %v11269_v22, %v14265_v39  ;;  %v11867_v61 = vsel %vm725_vm3, %v2531_v54, %v2532_v45  ;;  %v7519_v54 = vunpack.i.h.bf16 %v11768_v18  ;;  %v7524_v18 = vunpack.i.h.bf16 %v11736_v48  ;;  %v14268_v39 = vld [vmem:[#allocation63_spill] sm:$0xff] }
 0x38d   : > { %v3472_v8 = vsel %vm3466_vm4, %v3439_v7, %v7564_v41  ;;  %v3471_v49 = vsel %vm3466_vm4, %v3438_v6, %v7563_v58  ;;  %3828 = vmatmul.mubr.bf16.gmra.mrb[4].mxu1 %v3632_v26  ;;  %v7890_v22 = vpack.i.bf16 %v11860_v2, %v11867_v61  ;;  %v7523_v26 = vunpack.i.l.bf16 %v11736_v48 }
 0x38e   : > { %v11857_v62 = vpop.permute.xlu1 %7591  ;;  %v7567_v32 = vpop.permute.xlu0 %7566  ;;  %6564 = vmatprep.mubr.msk.bf16.mxu1 %vm273_vm0, %v14266_v42  ;;  %v3504_v23 = vsel %vm3499_vm5, %v3471_v49, %v7528_v24  ;;  %v3505_v20 = vsel %vm3499_vm5, %v3472_v8, %v7529_v52  ;;  %v7895_v52 = vpack.i.bf16 %v11558_v37, %v11553_v60  ;;  %v2393_v24 = vld [vmem:[#allocation2 + $0x1a0] sm:$0xff] }
 0x38f   : > { %v7569_v5 = vunpack.i.h.bf16 %v7567_v32  ;;  %v7568_v17 = vunpack.i.l.bf16 %v7567_v32  ;;  %v7559_v32 = vunpack.i.h.bf16 %v11806_v31  ;;  %v2526_v48 = vrot.slane %v2393_v24, 7 }
 0x390   : > { %7881 = vrot.lane.b32.xlu1 %v7870_v4, %s8810_s26  ;;  %7856 = vrot.lane.b32.xlu0 %v11818_v50, %s8805_s7  ;;  %v7513_v24 = vunpack.i.l.bf16 %v11724_v10 }
 0x391   : > { %v3536_v56 = vsel %vm1962_vm13, %v3504_v23, %v7568_v17  ;;  %v3537_v47 = vsel %vm1962_vm13, %v3505_v20, %v7569_v5  ;;  %v7558_v5 = vunpack.i.l.bf16 %v11806_v31  ;;  %v14267_v17 = vld [vmem:[#allocation64_spill] sm:$0xff]  ;;  %v14271_v20 = vld [vmem:[#allocation57_spill] sm:$0xff] }
 0x392   : > { %v11880_v45 = vpop.permute.xlu1 %7601  ;;  %v11882_v59 = vpop.permute.xlu0 %7576  ;;  %v3569_v38 = vsel %vm3564_vm7, %v3536_v56, %v7553_v27  ;;  %v3570_v41 = vsel %vm3564_vm7, %v3537_v47, %v7554_v34  ;;  %v14269_v42 = vpack.c.bf16 %v14267_v17, %v14268_v39  ;;  %v2527_v34 = vrot.slane %v11510_v33, 7  ;;  %v14270_v27 = vld [vmem:[#allocation56_spill] sm:$0xff] }
 0x393   : > { %v3602_v58 = vsel %vm3597_vm8, %v3569_v38, %v7518_v12  ;;  %v3603_v7 = vsel %vm3597_vm8, %v3570_v41, %v7519_v54  ;;  %v3408_v23 = vsel %vm273_vm0, %v14270_v27, %v7524_v18  ;;  %v3407_v31 = vsel %vm273_vm0, %v14271_v20, %v7523_v26  ;;  %v2405_v20 = vld [vmem:[#allocation2 + $0x200] sm:$0xff] }
 0x394   : > { %7891 = vrot.lane.b32.xlu1 %v7890_v22, %s8811_s11  ;;  %7866 = vrot.lane.b32.xlu0 %v11818_v50, %s8810_s26  ;;  %v3634_v6 = vpack.c.bf16 %v3603_v7, %v3602_v58  ;;  %v2529_v50 = vrot.slane %v11484_v36, 7  ;;  %v7905_v47 = vpack.i.bf16 %v11570_v46, %v11565_v16  ;;  %v3440_v54 = vsel %vm3433_vm15, %v3407_v31, %v7558_v5 }
 0x395   : > { %v7544_v33 = vunpack.i.h.bf16 %v11766_v14  ;;  %v7543_v38 = vunpack.i.l.bf16 %v11766_v14  ;;  %v11929_v41 = vsel %vm725_vm3, %v2526_v48, %v2527_v34  ;;  %v7514_v14 = vunpack.i.h.bf16 %v11724_v10 }
 0x396   : > { %v11893_v8 = vpop.permute.xlu1 %7611  ;;  %v11895_v49 = vpop.permute.xlu0 %7586  ;;  %3836 = vmatmul.mubr.bf16.gmra.mrb[8].mxu1 %v3634_v6  ;;  %v11922_v12 = vsel %vm725_vm3, %v2527_v34, %v2529_v50  ;;  %v2673_v17 = vrot.slane %v11513_v3, 7  ;;  %v7508_v10 = vunpack.i.l.bf16 %v11756_v55  ;;  %v7549_v48 = vunpack.i.h.bf16 %v11786_v51 }
 0x397   : > { %6565 = vmatprep.mubr.msk.bf16.mxu1 %vm273_vm0, %v14269_v42  ;;  %v3473_v58 = vsel %vm3466_vm4, %v3440_v54, %v7543_v38  ;;  %v7920_v26 = vpack.i.bf16 %v11922_v12, %v11929_v41  ;;  %v7509_v42 = vunpack.i.h.bf16 %v11756_v55  ;;  %v7548_v34 = vunpack.i.l.bf16 %v11786_v51 }
 0x398   : > { %7896 = vrot.lane.b32.xlu1 %v7895_v52, %s8804_s30  ;;  %7876 = vrot.lane.b32.xlu0 %v7870_v4, %s8809_s22  ;;  %v3441_v4 = vsel %vm3433_vm15, %v3408_v23, %v7559_v32  ;;  %v3506_v5 = vsel %vm3499_vm5, %v3473_v58, %v7513_v24  ;;  %v7538_v31 = vunpack.i.l.bf16 %v11808_v15  ;;  %v11966_v38 = vpack.i.bf16 %v11504_v25, %v11527_v19 }
 0x399   : > { %v3474_v7 = vsel %vm3466_vm4, %v3441_v4, %v7544_v33  ;;  %v7603_v33 = vunpack.i.l.bf16 %v11880_v45  ;;  %v3538_v55 = vsel %vm1962_vm13, %v3506_v5, %v7548_v34 }
 0x39a   : > { %v11913_v56 = vpop.permute.xlu1 %7616  ;;  %v11915_v36 = vpop.permute.xlu0 %7596  ;;  %v3507_v50 = vsel %vm3499_vm5, %v3474_v7, %v7514_v14  ;;  %v2672_v7 = vrot.slane %v2405_v20, 7 }
 0x39b   : > { %v3539_v51 = vsel %vm1962_vm13, %v3507_v50, %v7549_v48  ;;  %v14273_v50 = vld [vmem:[#allocation49_spill] sm:$0xff]  ;;  %v14274_v48 = vld [vmem:[#allocation52_spill] sm:$0xff] }
 0x39c   : > { %7906 = vrot.lane.b32.xlu1 %v7905_v47, %s8807_s10  ;;  %7886 = vrot.lane.b32.xlu0 %v7895_v52, %s8807_s10  ;;  %v14272_v52 = vld [vmem:[#allocation70_spill] sm:$0xff]  ;;  %v3409_v34 = vsel %vm273_vm0, %v14274_v48, %v7508_v10  ;;  %v7599_v10 = vunpack.i.h.bf16 %v11915_v36 }
 0x39d   : > { %v11944_v32 = vpack.i.bf16 %v14272_v52, %v11513_v3  ;;  %v2675_v39 = vrot.slane %v14272_v52, 7  ;;  %v7604_v3 = vunpack.i.h.bf16 %v11880_v45  ;;  %v3442_v20 = vsel %vm3433_vm15, %v3409_v34, %v7538_v31 }
 0x39e   : > { %v11933_v6 = vpop.permute.xlu1 %7626  ;;  %v11935_v18 = vpop.permute.xlu0 %7606 }
 0x39f   : > { %v2676_v5 = vsel %vm725_vm3, %v2673_v17, %v2675_v39 }
 0x3a0   : > { %7921 = vrot.lane.b32.xlu1 %v7920_v26, %s8806_s8  ;;  %7901 = vrot.lane.b32.xlu0 %v7890_v22, %s8806_s8  ;;  %v7539_v22 = vunpack.i.h.bf16 %v11808_v15 }
 0x3a2   : > { %v7642_v27 = vpop.permute.xlu1 %7641  ;;  %v7622_v23 = vpop.permute.xlu0 %7621 }
 0x3a3   : > { %v7644_v54 = vunpack.i.h.bf16 %v7642_v27  ;;  %v7643_v4 = vunpack.i.l.bf16 %v7642_v27 }
 0x3a4   : > { %7926 = vrot.lane.b32.xlu1 %v11944_v32, %s8809_s22  ;;  %7911 = vrot.lane.b32.xlu0 %v7920_v26, %s8811_s11  ;;  %v3410_v26 = vsel %vm273_vm0, %v14273_v50, %v7509_v42  ;;  %v2674_v42 = vsel %vm725_vm3, %v2672_v7, %v2673_v17  ;;  %v14276_v50 = vld [vmem:[#allocation65_spill] sm:$0xff]  ;;  %v7624_v17 = vunpack.i.h.bf16 %v7622_v23  ;;  %v7623_v7 = vunpack.i.l.bf16 %v7622_v23 }
 0x3a5   : > { %v3571_v15 = vsel %vm3564_vm7, %v3538_v55, %v7643_v4  ;;  %v3572_v58 = vsel %vm3564_vm7, %v3539_v51, %v7644_v54  ;;  %v2401_v55 = vld [vmem:[#allocation2 + $0x1e0] sm:$0xff]  ;;  %v3443_v54 = vsel %vm3433_vm15, %v3410_v26, %v7539_v22  ;;  %v7598_v51 = vunpack.i.l.bf16 %v11915_v36 }
 0x3a6   : > { %v11970_v14 = vpop.permute.xlu1 %7651  ;;  %v7632_v45 = vpop.permute.xlu0 %7631  ;;  %v3604_v24 = vsel %vm3597_vm8, %v3571_v15, %v7603_v33  ;;  %v3605_v52 = vsel %vm3597_vm8, %v3572_v58, %v7604_v3  ;;  %v7940_v15 = vpack.i.bf16 %v2676_v5, %v2674_v42  ;;  %v2536_v58 = vrot.slane %v2401_v55, 7 }
 0x3a7   : > { %v7634_v27 = vunpack.i.h.bf16 %v7632_v45  ;;  %v7633_v4 = vunpack.i.l.bf16 %v7632_v45  ;;  %v3636_v33 = vpack.c.bf16 %v3605_v52, %v3604_v24  ;;  %v14275_v52 = vld [vmem:[#allocation66_spill] sm:$0xff]  ;;  %v7589_v23 = vunpack.i.h.bf16 %v11895_v49 }
 0x3a8   : > { %7931 = vrot.lane.b32.xlu1 %v11966_v38, %s8805_s7  ;;  %7916 = vrot.lane.b32.xlu0 %v7905_v47, %s8804_s30  ;;  %v14277_v26 = vpack.c.bf16 %v14275_v52, %v14276_v50  ;;  %v2539_v47 = vrot.slane %v11504_v25, 7  ;;  %v2537_v25 = vrot.slane %v11527_v19, 7  ;;  %v7594_v42 = vunpack.i.h.bf16 %v11857_v62 }
 0x3a9   : > { %v3475_v3 = vsel %vm3466_vm4, %v3442_v20, %v7633_v4  ;;  %v3476_v39 = vsel %vm3466_vm4, %v3443_v54, %v7634_v27  ;;  %3844 = vmatmul.mubr.bf16.gmra.mrb[12].mxu1 %v3636_v33  ;;  %v7945_v27 = vpack.i.bf16 %v11578_v30, %v11573_v63  ;;  %v7588_v4 = vunpack.i.l.bf16 %v11895_v49 }
 0x3aa   : > { %v11989_v31 = vpop.permute.xlu1 %7661  ;;  %v7637_v22 = vpop.permute.xlu0 %7636  ;;  %6566 = vmatprep.mubr.msk.bf16.mxu1 %vm273_vm0, %v14277_v26  ;;  %v3508_v48 = vsel %vm3499_vm5, %v3475_v3, %v7598_v51  ;;  %v3509_v36 = vsel %vm3499_vm5, %v3476_v39, %v7599_v10  ;;  %v12018_v19 = vsel %vm725_vm3, %v2537_v25, %v2539_v47  ;;  %v7593_v10 = vunpack.i.l.bf16 %v11857_v62 }
 0x3ab   : > { %v7639_v45 = vunpack.i.h.bf16 %v7637_v22  ;;  %v7638_v24 = vunpack.i.l.bf16 %v7637_v22  ;;  %v7629_v52 = vunpack.i.h.bf16 %v11933_v6  ;;  %v7628_v50 = vunpack.i.l.bf16 %v11933_v6 }
 0x3ac   : > { %7941 = vrot.lane.b32.xlu1 %v7940_v15, %s8811_s11  ;;  %7936 = vrot.lane.b32.xlu0 %v11966_v38, %s8809_s22  ;;  %v14278_v62 = vpack.c.bf16 %v11491_v44, %v11478_v9  ;;  %v3411_v26 = vsel %vm273_vm0, %v11459_v29, %v7593_v10  ;;  %v7614_v44 = vunpack.i.h.bf16 %v11893_v8  ;;  %s8815_s22 = smov 12  }
 0x3ad   : > { %v3540_v5 = vsel %vm1962_vm13, %v3508_v48, %v7638_v24  ;;  %v3541_v34 = vsel %vm1962_vm13, %v3509_v36, %v7639_v45  ;;  %v7955_v45 = vpack.i.bf16 %v11586_v13, %v11581_v40  ;;  %v12030_v24 = vsel %vm725_vm3, %v2536_v58, %v2537_v25 }
 0x3ae   : > { %v12008_v55 = vpop.permute.xlu1 %7671  ;;  %v12010_v20 = vpop.permute.xlu0 %7646  ;;  %v3573_v54 = vsel %vm3564_vm7, %v3540_v5, %v7623_v7  ;;  %v3574_v33 = vsel %vm3564_vm7, %v3541_v34, %v7624_v17  ;;  %v3412_v58 = vsel %vm273_vm0, %v11462_v43, %v7594_v42  ;;  %v3444_v17 = vsel %vm3433_vm15, %v3411_v26, %v7628_v50 }
 0x3af   : > { %v3606_v3 = vsel %vm3597_vm8, %v3573_v54, %v7588_v4  ;;  %v3607_v39 = vsel %vm3597_vm8, %v3574_v33, %v7589_v23  ;;  %v3445_v9 = vsel %vm3433_vm15, %v3412_v58, %v7629_v52  ;;  %v7613_v7 = vunpack.i.l.bf16 %v11893_v8  ;;  %v12066_v8 = vld [vmem:[#allocation2 + $0x228] sm:$0xff] }
 0x3b0   : > { %7946 = vrot.lane.b32.xlu1 %v7945_v27, %s8804_s30  ;;  %7951 = vrot.lane.b32.xlu0 %v7940_v15, %s8806_s8  ;;  %v3638_v49 = vpack.c.bf16 %v3607_v39, %v3606_v3  ;;  %v7960_v15 = vpack.i.bf16 %v12018_v19, %v12030_v24  ;;  %v3478_v29 = vsel %vm3466_vm4, %v3445_v9, %v7614_v44  ;;  %v7584_v5 = vunpack.i.h.bf16 %v11839_v57  ;;  %v12068_v27 = vld [vmem:[#allocation2 + $0x230] sm:$0xff]  ;;  %v14280_v9 = vld [vmem:[#allocation67_spill] sm:$0xff] }
 0x3b1   : > { %v3477_v43 = vsel %vm3466_vm4, %v3444_v17, %v7613_v7  ;;  %v7583_v34 = vunpack.i.l.bf16 %v11839_v57  ;;  %v7985_v25 = vpack.i.bf16 %v12068_v27, %v12066_v8  ;;  %v7579_v54 = vunpack.i.h.bf16 %v11882_v59  ;;  %v14279_v17 = vld [vmem:[#allocation62_spill] sm:$0xff] }
 0x3b2   : > { %v12023_v51 = vpop.permute.xlu1 %7681  ;;  %v12025_v22 = vpop.permute.xlu0 %7656  ;;  %3852 = vmatmul.mubr.bf16.gmra.mrb[16].mxu1 %v3638_v49  ;;  %v3511_v4 = vsel %vm3499_vm5, %v3478_v29, %v7584_v5  ;;  %v7578_v57 = vunpack.i.l.bf16 %v11882_v59  ;;  %v7618_v33 = vunpack.i.l.bf16 %v11913_v56  ;;  %v7609_v49 = vunpack.i.h.bf16 %v11935_v18 }
 0x3b3   : > { %6567 = vmatprep.mubr.msk.bf16.mxu1 %vm273_vm0, %v14278_v62  ;;  %v3510_v23 = vsel %vm3499_vm5, %v3477_v43, %v7583_v34  ;;  %v7608_v42 = vunpack.i.l.bf16 %v11935_v18  ;;  %v7673_v52 = vunpack.i.l.bf16 %v12008_v55 }
 0x3b4   : > { %7956 = vrot.lane.b32.xlu1 %v7955_v45, %s8807_s10  ;;  %7961 = vrot.lane.b32.xlu0 %v7960_v15, %s8811_s11  ;;  %v3542_v59 = vsel %vm1962_vm13, %v3510_v23, %v7618_v33  ;;  %v3413_v44 = vsel %vm273_vm0, %v14280_v9, %v7578_v57  ;;  %v7664_v9 = vunpack.i.h.bf16 %v11989_v31 }
 0x3b5   : > { %v3446_v29 = vsel %vm3433_vm15, %v3413_v44, %v7608_v42  ;;  %v7663_v44 = vunpack.i.l.bf16 %v11989_v31 }
 0x3b6   : > { %v12046_v6 = vpop.permute.xlu1 %7686  ;;  %v12048_v47 = vpop.permute.xlu0 %7666 }
 0x3b8   : > { %7971 = vrot.lane.b32.xlu1 %v7960_v15, %s8806_s8  ;;  %7966 = vrot.lane.b32.xlu0 %v7955_v45, %s8804_s30  ;;  %v7674_v45 = vunpack.i.h.bf16 %v12008_v55  ;;  %v3414_v55 = vsel %vm273_vm0, %v14279_v17, %v7579_v54  ;;  %s8812_s30 = smov 24   ;;  %s8813_s8 = smov 28  }
 0x3b9   : > { %v3447_v5 = vsel %vm3433_vm15, %v3414_v55, %v7609_v49 }
 0x3ba   : > { %v12058_v48 = vpop.permute.xlu1 %7696  ;;  %v12060_v36 = vpop.permute.xlu0 %7676 }
 0x3bc   : > { %7976 = vrot.lane.b32.xlu1 %v11966_v38, %s8810_s26  ;;  %7981 = vrot.lane.b32.xlu0 %v11944_v32, %s8810_s26  ;;  %v7619_v38 = vunpack.i.h.bf16 %v11913_v56 }
 0x3be   : > { %v7712_v3 = vpop.permute.xlu1 %7711  ;;  %v7692_v39 = vpop.permute.xlu0 %7691  ;;  %v3543_v50 = vsel %vm1962_vm13, %v3511_v4, %v7619_v38  ;;  %v7669_v4 = vunpack.i.h.bf16 %v12048_v47  ;;  %v7668_v38 = vunpack.i.l.bf16 %v12048_v47 }
 0x3bf   : > { %v7714_v10 = vunpack.i.h.bf16 %v7712_v3  ;;  %v7713_v32 = vunpack.i.l.bf16 %v7712_v3  ;;  %v7694_v49 = vunpack.i.h.bf16 %v7692_v39 }
 0x3c0   : > { %7986 = vrot.lane.b32.xlu1 %v7985_v25, %s8810_s26 }
 0x3c1   : > { %v3575_v56 = vsel %vm3564_vm7, %v3542_v59, %v7713_v32  ;;  %v3576_v15 = vsel %vm3564_vm7, %v3543_v50, %v7714_v10  ;;  %v14281_v10 = vld [vmem:[#allocation69_spill] sm:$0xff]  ;;  %v14282_v32 = vld [vmem:[#allocation68_spill] sm:$0xff] }
 0x3c2   : > { %v12089_v62 = vpop.permute.xlu1 %7721  ;;  %v7702_v58 = vpop.permute.xlu0 %7701  ;;  %v3608_v18 = vsel %vm3597_vm8, %v3575_v56, %v7673_v52  ;;  %v3609_v26 = vsel %vm3597_vm8, %v3576_v15, %v7674_v45  ;;  %v14283_v42 = vpack.c.bf16 %v14281_v10, %v14282_v32  ;;  %v7693_v45 = vunpack.i.l.bf16 %v7692_v39 }
 0x3c3   : > { %v7704_v7 = vunpack.i.h.bf16 %v7702_v58  ;;  %v7703_v43 = vunpack.i.l.bf16 %v7702_v58  ;;  %v3640_v34 = vpack.c.bf16 %v3609_v26, %v3608_v18  ;;  %v7659_v56 = vunpack.i.h.bf16 %v12025_v22 }
 0x3c4   : > { %v7658_v15 = vunpack.i.l.bf16 %v12025_v22  ;;  %v7698_v22 = vunpack.i.l.bf16 %v12058_v48  ;;  %v7684_v32 = vunpack.i.h.bf16 %v12023_v51 }
 0x3c5   : > { %v3479_v25 = vsel %vm3466_vm4, %v3446_v29, %v7703_v43  ;;  %v3480_v23 = vsel %vm3466_vm4, %v3447_v5, %v7704_v7  ;;  %3860 = vmatmul.mubr.bf16.gmra.mrb[20].mxu1 %v3640_v34  ;;  %v7699_v43 = vunpack.i.h.bf16 %v12058_v48  ;;  %v14284_v34 = vld [vmem:[#allocation19_spill] sm:$0xff] }
 0x3c6   : > { %v12103_v54 = vpop.permute.xlu1 %7731  ;;  %v7707_v33 = vpop.permute.xlu0 %7706  ;;  %6568 = vmatprep.mubr.msk.bf16.mxu1 %vm273_vm0, %v14283_v42  ;;  %v3512_v52 = vsel %vm3499_vm5, %v3479_v25, %v7668_v38  ;;  %v3513_v59 = vsel %vm3499_vm5, %v3480_v23, %v7669_v4  ;;  %v14285_v25 = vld [vmem:[#allocation73_spill] sm:$0xff]  ;;  %v14287_v4 = vld [vmem:[#allocation18_spill] sm:$0xff]  ;;  %v7683_v42 = vunpack.i.l.bf16 %v12023_v51  ;;  %v7649_v51 = vunpack.i.h.bf16 %v12010_v20 }
 0x3c7   : > { %v7709_v57 = vunpack.i.h.bf16 %v7707_v33  ;;  %v7708_v3 = vunpack.i.l.bf16 %v7707_v33  ;;  %v14286_v23 = vpack.c.bf16 %v14284_v34, %v14285_v25  ;;  %v3416_v38 = vsel %vm273_vm0, %v14287_v4, %v7664_v9  ;;  %v14288_v33 = vld [vmem:[#allocation26_spill] sm:$0xff]  ;;  %v12156_v9 = vld [vmem:[#allocation2 + $0x8] sm:$0xff] }
 0x3c8   : > { %v3415_v31 = vsel %vm273_vm0, %v14288_v33, %v7663_v44  ;;  %v3449_v48 = vsel %vm3433_vm15, %v3416_v38, %v7699_v43  ;;  %v12158_v44 = vld [vmem:[#allocation2 + $0x10] sm:$0xff]  ;;  %v7648_v34 = vunpack.i.l.bf16 %v12010_v20  ;;  %v7689_v25 = vunpack.i.h.bf16 %v12046_v6 }
 0x3c9   : > { %v3544_v50 = vsel %vm1962_vm13, %v3512_v52, %v7708_v3  ;;  %v3545_v47 = vsel %vm1962_vm13, %v3513_v59, %v7709_v57  ;;  %v3448_v57 = vsel %vm3433_vm15, %v3415_v31, %v7698_v22  ;;  %v3482_v52 = vsel %vm3466_vm4, %v3449_v48, %v7684_v32  ;;  %v4080_v59 = vld [vmem:[#allocation2 + $0x220] sm:$0xff] }
 0x3ca   : > { %v12115_v58 = vpop.permute.xlu1 %7741  ;;  %v12117_v18 = vpop.permute.xlu0 %7716  ;;  %v3577_v26 = vsel %vm3564_vm7, %v3544_v50, %v7693_v45  ;;  %v3578_v39 = vsel %vm3564_vm7, %v3545_v47, %v7694_v49  ;;  %v7654_v49 = vunpack.i.h.bf16 %v11970_v14  ;;  %v3481_v45 = vsel %vm3466_vm4, %v3448_v57, %v7683_v42  ;;  %v4081_v50 = vld [vmem:[#allocation2 + $0x228] sm:$0xff]  ;;  %v4082_v47 = vld [vmem:[#allocation2 + $0x230] sm:$0xff] }
 0x3cb   : > { %v3610_v17 = vsel %vm3597_vm8, %v3577_v26, %v7658_v15  ;;  %v3611_v55 = vsel %vm3597_vm8, %v3578_v39, %v7659_v56  ;;  %v7653_v56 = vunpack.i.l.bf16 %v11970_v14  ;;  %v4357_v39 = vrot.slane %v4080_v59, 7 }
 0x3cc   : > { %v3642_v7 = vpack.c.bf16 %v3611_v55, %v3610_v17  ;;  %v4358_v17 = vrot.slane %v4081_v50, 7  ;;  %v4360_v55 = vrot.slane %v4082_v47, 7  ;;  %v3515_v43 = vsel %vm3499_vm5, %v3482_v52, %v7654_v49  ;;  %v4015_v52 = vld [vmem:[#allocation2 + $0x18] sm:$0xff] }
 0x3cd   : > { %v7679_v4 = vunpack.i.h.bf16 %v12060_v36  ;;  %v7678_v38 = vunpack.i.l.bf16 %v12060_v36  ;;  %v4261_v48 = vrot.slane %v12158_v44, 1  ;;  %v7990_v32 = vpack.i.bf16 %v12158_v44, %v12156_v9 }
 0x3ce   : > { %v12127_v29 = vpop.permute.xlu1 %7751  ;;  %v12129_v5 = vpop.permute.xlu0 %7726  ;;  %3868 = vmatmul.mubr.bf16.gmra.mrb[24].mxu1 %v3642_v7  ;;  %v3514_v7 = vsel %vm3499_vm5, %v3481_v45, %v7653_v56  ;;  %v4359_v22 = vsel %vm725_vm3, %v4357_v39, %v4358_v17  ;;  %v4361_v14 = vsel %vm725_vm3, %v4358_v17, %v4360_v55  ;;  %v3547_v45 = vsel %vm1962_vm13, %v3515_v43, %v7689_v25  ;;  %v14289_v25 = vld [vmem:[#allocation74_spill] sm:$0xff] }
 0x3cf   : > { %6569 = vmatprep.mubr.msk.bf16.mxu1 %vm273_vm0, %v14286_v23  ;;  %v7688_v23 = vunpack.i.l.bf16 %v12046_v6  ;;  %v8000_v57 = vpack.i.bf16 %v4361_v14, %v4359_v22  ;;  %v7744_v6 = vunpack.i.h.bf16 %v12115_v58  ;;  %v7743_v59 = vunpack.i.l.bf16 %v12115_v58  ;;  %7991 = vrot.lane.b32.xlu0 %v7990_v32, %s8796_s28 }
 0x3d0   : > { %v4260_v36 = vrot.slane %v12156_v9, 1  ;;  %v8005_v56 = vpack.i.bf16 %v4082_v47, %v4081_v50  ;;  %v4263_v14 = vrot.slane %v4015_v52, 1 }
 0x3d1   : > { %v3546_v20 = vsel %vm1962_vm13, %v3514_v7, %v7688_v23  ;;  %8001 = vrot.lane.b32.xlu1 %v8000_v57, %s8812_s30  ;;  %v3418_v23 = vsel %vm273_vm0, %v14289_v25, %v7649_v51  ;;  %v7728_v25 = vunpack.i.l.bf16 %v12129_v5 }
 0x3d2   : > { %v12141_v3 = vpop.permute.xlu1 %7756  ;;  %v12143_v10 = vpop.permute.xlu0 %7736  ;;  %v4262_v58 = vsel %vm854_vm2, %v4260_v36, %v4261_v48 }
 0x3d5   : > { %8006 = vrot.lane.b32.xlu1 %v8005_v56, %s8813_s8 }
 0x3d6   : > { %v12151_v15 = vpop.permute.xlu1 %7766  ;;  %v12153_v26 = vpop.permute.xlu0 %7746 }
 0x3da   : > { %v7782_v33 = vpop.permute.xlu1 %7781  ;;  %v7762_v31 = vpop.permute.xlu0 %7761 }
 0x3db   : > { %v7784_v42 = vunpack.i.h.bf16 %v7782_v33  ;;  %v7783_v49 = vunpack.i.l.bf16 %v7782_v33  ;;  %v14290_v33 = vld [vmem:[#allocation75_spill] sm:$0xff] }
 0x3dc   : > { %v3417_v50 = vsel %vm273_vm0, %v14290_v33, %v7648_v34  ;;  %v7738_v34 = vunpack.i.l.bf16 %v12143_v10 }
 0x3dd   : > { %v3579_v39 = vsel %vm3564_vm7, %v3546_v20, %v7783_v49  ;;  %v3580_v17 = vsel %vm3564_vm7, %v3547_v45, %v7784_v42  ;;  %v3450_v32 = vsel %vm3433_vm15, %v3417_v50, %v7678_v38  ;;  %v3451_v42 = vsel %vm3433_vm15, %v3418_v23, %v7679_v4 }
 0x3de   : > { %v12181_v55 = vpop.permute.xlu1 %7791  ;;  %v7772_v7 = vpop.permute.xlu0 %7771  ;;  %v3612_v43 = vsel %vm3597_vm8, %v3579_v39, %v7743_v59  ;;  %v3613_v22 = vsel %vm3597_vm8, %v3580_v17, %v7744_v6  ;;  %v4264_v20 = vsel %vm854_vm2, %v4261_v48, %v4263_v14  ;;  %v7739_v6 = vunpack.i.h.bf16 %v12143_v10  ;;  %v14291_v39 = vld [vmem:[#allocation72_spill] sm:$0xff]  ;;  %v14292_v17 = vld [vmem:[#allocation71_spill] sm:$0xff] }
 0x3df   : > { %v7774_v47 = vunpack.i.h.bf16 %v7772_v7  ;;  %v7773_v57 = vunpack.i.l.bf16 %v7772_v7  ;;  %v3644_v49 = vpack.c.bf16 %v3613_v22, %v3612_v43  ;;  %v7995_v51 = vpack.i.bf16 %v4264_v20, %v4262_v58 }
 0x3e0   : > { %v14293_v56 = vpack.c.bf16 %v14291_v39, %v14292_v17  ;;  %v7764_v48 = vunpack.i.h.bf16 %v7762_v31  ;;  %v7763_v7 = vunpack.i.l.bf16 %v7762_v31  ;;  %v7729_v14 = vunpack.i.h.bf16 %v12129_v5 }
 0x3e1   : > { %v3483_v45 = vsel %vm3466_vm4, %v3450_v32, %v7773_v57  ;;  %v3484_v52 = vsel %vm3466_vm4, %v3451_v42, %v7774_v47  ;;  %3876 = vmatmul.mubr.bf16.gmra.mrb[28].mxu1 %v3644_v49  ;;  %7996 = vrot.lane.b32.xlu0 %v7995_v51, %s8814_s18  ;;  %v7734_v42 = vunpack.i.h.bf16 %v12103_v54  ;;  %v7733_v49 = vunpack.i.l.bf16 %v12103_v54 }
 0x3e2   : > { %v12198_v59 = vpop.permute.xlu1 %7801  ;;  %v7777_v38 = vpop.permute.xlu0 %7776  ;;  %6570 = vmatprep.mubr.msk.bf16.mxu1 %vm273_vm0, %v14293_v56  ;;  %v3516_v43 = vsel %vm3499_vm5, %v3483_v45, %v7738_v34  ;;  %v3517_v10 = vsel %vm3499_vm5, %v3484_v52, %v7739_v6  ;;  %v7769_v5 = vunpack.i.h.bf16 %v12151_v15  ;;  %v7768_v52 = vunpack.i.l.bf16 %v12151_v15  ;;  %v14295_v6 = vld [vmem:[#allocation77_spill] sm:$0xff] }
 0x3e3   : > { %v7779_v4 = vunpack.i.h.bf16 %v7777_v38  ;;  %v7778_v36 = vunpack.i.l.bf16 %v7777_v38  ;;  %v14294_v51 = vpack.c.bf16 %v11550_v53, %v11543_v1  ;;  %v3420_v34 = vsel %vm273_vm0, %v14295_v6, %v7734_v42  ;;  %v14296_v38 = vld [vmem:[#allocation23_spill] sm:$0xff] }
 0x3e4   : > { %v3419_v54 = vsel %vm273_vm0, %v14296_v38, %v7733_v49  ;;  %v3453_v39 = vsel %vm3433_vm15, %v3420_v34, %v7769_v5  ;;  %v7754_v15 = vunpack.i.h.bf16 %v12127_v29  ;;  %v7753_v56 = vunpack.i.l.bf16 %v12127_v29 }
 0x3e5   : > { %v3548_v22 = vsel %vm1962_vm13, %v3516_v43, %v7778_v36  ;;  %v3549_v58 = vsel %vm1962_vm13, %v3517_v10, %v7779_v4  ;;  %v3452_v36 = vsel %vm3433_vm15, %v3419_v54, %v7768_v52  ;;  %v7723_v43 = vunpack.i.l.bf16 %v12089_v62 }
 0x3e6   : > { %v7812_v23 = vpop.permute.xlu1 %7811  ;;  %v12211_v33 = vpop.permute.xlu0 %7786  ;;  %v3581_v50 = vsel %vm3564_vm7, %v3548_v22, %v7763_v7  ;;  %v3582_v47 = vsel %vm3564_vm7, %v3549_v58, %v7764_v48  ;;  %v3485_v53 = vsel %vm3466_vm4, %v3452_v36, %v7753_v56  ;;  %v3486_v1 = vsel %vm3466_vm4, %v3453_v39, %v7754_v15  ;;  %v14297_v36 = vld [vmem:[#allocation24_spill] sm:$0xff] }
 0x3e7   : > { %v3614_v31 = vsel %vm3597_vm8, %v3581_v50, %v7728_v25  ;;  %v3615_v57 = vsel %vm3597_vm8, %v3582_v47, %v7729_v14  ;;  %v7724_v7 = vunpack.i.h.bf16 %v12089_v62  ;;  %v3518_v22 = vsel %vm3499_vm5, %v3485_v53, %v7723_v43  ;;  %v14298_v15 = vld [vmem:[#allocation76_spill] sm:$0xff] }
 0x3e8   : > { %v3646_v32 = vpack.c.bf16 %v3615_v57, %v3614_v31  ;;  %v7759_v14 = vunpack.i.h.bf16 %v12141_v3  ;;  %v7758_v29 = vunpack.i.l.bf16 %v12141_v3  ;;  %v7719_v50 = vunpack.i.h.bf16 %v12117_v18 }
 0x3e9   : > { %v3519_v58 = vsel %vm3499_vm5, %v3486_v1, %v7724_v7  ;;  %v7718_v47 = vunpack.i.l.bf16 %v12117_v18  ;;  %v7814_v42 = vunpack.i.h.bf16 %v7812_v23  ;;  %v7813_v62 = vunpack.i.l.bf16 %v7812_v23 }
 0x3ea   : > { %v12219_v20 = vpop.permute.xlu1 %7821  ;;  %v12221_v45 = vpop.permute.xlu0 %7796  ;;  %3884 = vmatmul.mubr.bf16.gmra.mrb[32].mxu1 %v3646_v32  ;;  %v3550_v49 = vsel %vm1962_vm13, %v3518_v22, %v7758_v29  ;;  %v3551_v5 = vsel %vm1962_vm13, %v3519_v58, %v7759_v14  ;;  %v7749_v52 = vunpack.i.h.bf16 %v12153_v26  ;;  %v3422_v39 = vsel %vm273_vm0, %v14297_v36, %v7719_v50 }
 0x3eb   : > { %6571 = vmatprep.mubr.msk.bf16.mxu1 %vm273_vm0, %v14294_v51  ;;  %v7748_v51 = vunpack.i.l.bf16 %v12153_v26  ;;  %v3421_v56 = vsel %vm273_vm0, %v14298_v15, %v7718_v47  ;;  %v14299_v14 = vpack.c.bf16 %v11540_v28, %v11531_v11 }
 0x3ec   : > { %v3455_v7 = vsel %vm3433_vm15, %v3422_v39, %v7749_v52  ;;  %v7798_v52 = vunpack.i.l.bf16 %v12221_v45 }
 0x3ed   : > { %v3454_v1 = vsel %vm3433_vm15, %v3421_v56, %v7748_v51  ;;  %v14300_v56 = vpack.c.bf16 %v11570_v46, %v11565_v16 }
 0x3ee   : > { %v12233_v4 = vpop.permute.xlu1 %7826  ;;  %v7807_v17 = vpop.permute.xlu0 %7806 }
 0x3ef   : > { %v7809_v29 = vunpack.i.h.bf16 %v7807_v17 }
 0x3f2   : > { %v12241_v48 = vpop.permute.xlu1 %7836  ;;  %v12245_v10 = vpop.permute.xlu0 %7816 }
 0x3f3   : > { %v7839_v36 = vunpack.i.h.bf16 %v12241_v48  ;;  %v7838_v39 = vunpack.i.l.bf16 %v12241_v48 }
 0x3f6   : > { %v7852_v25 = vpop.permute.xlu1 %7851  ;;  %v7832_v32 = vpop.permute.xlu0 %7831 }
 0x3f7   : > { %v7854_v31 = vunpack.i.h.bf16 %v7852_v25  ;;  %v7853_v57 = vunpack.i.l.bf16 %v7852_v25  ;;  %v7808_v25 = vunpack.i.l.bf16 %v7807_v17 }
 0x3f9   : > { %v3583_v3 = vsel %vm3564_vm7, %v3550_v49, %v7853_v57  ;;  %v3584_v6 = vsel %vm3564_vm7, %v3551_v5, %v7854_v31  ;;  %v7834_v57 = vunpack.i.h.bf16 %v7832_v32  ;;  %v7799_v5 = vunpack.i.h.bf16 %v12221_v45 }
 0x3fa   : > { %v12259_v34 = vpop.permute.xlu1 %7861  ;;  %v3616_v18 = vsel %vm3597_vm8, %v3583_v3, %v7813_v62  ;;  %v3617_v38 = vsel %vm3597_vm8, %v3584_v6, %v7814_v42  ;;  %v7842_v54 = vpop.permute.xlu0 %7841  ;;  %v7833_v42 = vunpack.i.l.bf16 %v7832_v32  ;;  %v7803_v45 = vunpack.i.l.bf16 %v12198_v59 }
 0x3fb   : > { %v3648_v23 = vpack.c.bf16 %v3617_v38, %v3616_v18  ;;  %v7844_v53 = vunpack.i.h.bf16 %v7842_v54  ;;  %v7843_v26 = vunpack.i.l.bf16 %v7842_v54  ;;  %v7804_v54 = vunpack.i.h.bf16 %v12198_v59 }
 0x3fc   : > { %v3423_v59 = vsel %vm273_vm0, %v11802_v0, %v7803_v45  ;;  %v7793_v0 = vunpack.i.l.bf16 %v12181_v55 }
 0x3fd   : > { %3892 = vmatmul.mubr.bf16.gmra.mrb[36].mxu1 %v3648_v23  ;;  %v3487_v43 = vsel %vm3466_vm4, %v3454_v1, %v7843_v26  ;;  %v3488_v22 = vsel %vm3466_vm4, %v3455_v7, %v7844_v53  ;;  %v3424_v53 = vsel %vm273_vm0, %v11795_v35, %v7804_v54  ;;  %v3456_v1 = vsel %vm3433_vm15, %v3423_v59, %v7838_v39 }
 0x3fe   : > { %v12271_v58 = vpop.permute.xlu1 %7871  ;;  %6572 = vmatprep.mubr.msk.bf16.mxu1 %vm273_vm0, %v14299_v14  ;;  %v7847_v50 = vpop.permute.xlu0 %7846  ;;  %v3520_v62 = vsel %vm3499_vm5, %v3487_v43, %v7808_v25  ;;  %v3521_v49 = vsel %vm3499_vm5, %v3488_v22, %v7809_v29  ;;  %v3457_v48 = vsel %vm3433_vm15, %v3424_v53, %v7839_v36  ;;  %v7824_v43 = vunpack.i.h.bf16 %v12219_v20  ;;  %v14301_v36 = vld [vmem:[#allocation3_spill] sm:$0xff] }
 0x3ff   : > { %v7849_v47 = vunpack.i.h.bf16 %v7847_v50  ;;  %v7848_v31 = vunpack.i.l.bf16 %v7847_v50  ;;  %v7823_v22 = vunpack.i.l.bf16 %v12219_v20  ;;  %v7794_v35 = vunpack.i.h.bf16 %v12181_v55 }
 0x400   : > { %v3490_v46 = vsel %vm3466_vm4, %v3457_v48, %v7824_v43  ;;  %v7828_v20 = vunpack.i.l.bf16 %v12233_v4 }
 0x401   : > { %v3552_v51 = vsel %vm1962_vm13, %v3520_v62, %v7848_v31  ;;  %v3553_v11 = vsel %vm1962_vm13, %v3521_v49, %v7849_v47  ;;  %v3489_v16 = vsel %vm3466_vm4, %v3456_v1, %v7823_v22  ;;  %v3523_v50 = vsel %vm3499_vm5, %v3490_v46, %v7794_v35 }
 0x402   : > { %v7882_v28 = vpop.permute.xlu1 %7881  ;;  %v12283_v3 = vpop.permute.xlu0 %7856  ;;  %v3585_v17 = vsel %vm3564_vm7, %v3552_v51, %v7833_v42  ;;  %v3586_v6 = vsel %vm3564_vm7, %v3553_v11, %v7834_v57  ;;  %v3522_v25 = vsel %vm3499_vm5, %v3489_v16, %v7793_v0  ;;  %v7829_v47 = vunpack.i.h.bf16 %v12233_v4 }
 0x403   : > { %v3618_v32 = vsel %vm3597_vm8, %v3585_v17, %v7798_v52  ;;  %v3619_v18 = vsel %vm3597_vm8, %v3586_v6, %v7799_v5  ;;  %v7789_v57 = vunpack.i.h.bf16 %v12211_v33  ;;  %v7788_v42 = vunpack.i.l.bf16 %v12211_v33 }
 0x404   : > { %v3650_v38 = vpack.c.bf16 %v3619_v18, %v3618_v32  ;;  %v7884_v52 = vunpack.i.h.bf16 %v7882_v28  ;;  %v7883_v55 = vunpack.i.l.bf16 %v7882_v28  ;;  %v3554_v51 = vsel %vm1962_vm13, %v3522_v25, %v7828_v20 }
 0x405   : > { %v3555_v11 = vsel %vm1962_vm13, %v3523_v50, %v7829_v47  ;;  %v7819_v17 = vunpack.i.h.bf16 %v12245_v10  ;;  %v7818_v6 = vunpack.i.l.bf16 %v12245_v10  ;;  %v3426_v45 = vsel %vm273_vm0, %v11739_v21, %v7789_v57 }
 0x406   : > { %v12291_v23 = vpop.permute.xlu1 %7891  ;;  %v12295_v15 = vpop.permute.xlu0 %7866  ;;  %3900 = vmatmul.mubr.bf16.gmra.mrb[40].mxu1 %v3650_v38  ;;  %v3425_v39 = vsel %vm273_vm0, %v14301_v36, %v7788_v42  ;;  %v14302_v22 = vpack.c.bf16 %v11558_v37, %v11553_v60  ;;  %v7873_v35 = vunpack.i.l.bf16 %v12271_v58  ;;  %v7863_v36 = vunpack.i.l.bf16 %v12259_v34 }
 0x407   : > { %6573 = vmatprep.mubr.msk.bf16.mxu1 %vm273_vm0, %v14300_v56  ;;  %v3458_v53 = vsel %vm3433_vm15, %v3425_v39, %v7818_v6  ;;  %v3459_v59 = vsel %vm3433_vm15, %v3426_v45, %v7819_v17  ;;  %v7869_v57 = vunpack.i.h.bf16 %v12295_v15  ;;  %v7868_v42 = vunpack.i.l.bf16 %v12295_v15 }
 0x408   : > { %v3427_v6 = vsel %vm273_vm0, %v11929_v41, %v7873_v35  ;;  %v7858_v41 = vunpack.i.l.bf16 %v12283_v3  ;;  %v7859_v39 = vunpack.i.h.bf16 %v12283_v3 }
 0x40a   : > { %v12305_v26 = vpop.permute.xlu1 %7896  ;;  %v7877_v7 = vpop.permute.xlu0 %7876 }
 0x40b   : > { %v7879_v21 = vunpack.i.h.bf16 %v7877_v7  ;;  %v7878_v16 = vunpack.i.l.bf16 %v7877_v7 }
 0x40e   : > { %v12313_v14 = vpop.permute.xlu1 %7906  ;;  %v12317_v29 = vpop.permute.xlu0 %7886 }
 0x412   : > { %v7922_v31 = vpop.permute.xlu1 %7921  ;;  %v7902_v5 = vpop.permute.xlu0 %7901 }
 0x413   : > { %v7924_v62 = vunpack.i.h.bf16 %v7922_v31  ;;  %v7923_v49 = vunpack.i.l.bf16 %v7922_v31  ;;  %v7904_v50 = vunpack.i.h.bf16 %v7902_v5  ;;  %v7903_v47 = vunpack.i.l.bf16 %v7902_v5 }
 0x415   : > { %v3587_v4 = vsel %vm3564_vm7, %v3554_v51, %v7923_v49  ;;  %v3588_v32 = vsel %vm3564_vm7, %v3555_v11, %v7924_v62  ;;  %v7874_v62 = vunpack.i.h.bf16 %v12271_v58  ;;  %v7908_v49 = vunpack.i.l.bf16 %v12313_v14 }
 0x416   : > { %v12331_v18 = vpop.permute.xlu1 %7926  ;;  %v3620_v33 = vsel %vm3597_vm8, %v3587_v4, %v7883_v55  ;;  %v3621_v38 = vsel %vm3597_vm8, %v3588_v32, %v7884_v52  ;;  %v7912_v54 = vpop.permute.xlu0 %7911  ;;  %v7909_v51 = vunpack.i.h.bf16 %v12313_v14  ;;  %v7893_v14 = vunpack.i.l.bf16 %v12291_v23 }
 0x417   : > { %v3652_v28 = vpack.c.bf16 %v3621_v38, %v3620_v33  ;;  %v7914_v56 = vunpack.i.h.bf16 %v7912_v54  ;;  %v7913_v10 = vunpack.i.l.bf16 %v7912_v54  ;;  %v3428_v58 = vsel %vm273_vm0, %v11922_v12, %v7874_v62 }
 0x418   : > { %v3460_v32 = vsel %vm3433_vm15, %v3427_v6, %v7908_v49  ;;  %v3461_v38 = vsel %vm3433_vm15, %v3428_v58, %v7909_v51  ;;  %v14303_v54 = vpack.c.bf16 %v11586_v13, %v11581_v40  ;;  %v7864_v40 = vunpack.i.h.bf16 %v12259_v34 }
 0x419   : > { %3908 = vmatmul.mubr.bf16.gmra.mrb[44].mxu1 %v3652_v28  ;;  %v3491_v1 = vsel %vm3466_vm4, %v3458_v53, %v7913_v10  ;;  %v3492_v48 = vsel %vm3466_vm4, %v3459_v59, %v7914_v56  ;;  %v7894_v28 = vunpack.i.h.bf16 %v12291_v23  ;;  %v3493_v12 = vsel %vm3466_vm4, %v3460_v32, %v7893_v14  ;;  %v2412_v59 = vld [vmem:[#allocation2 + $0x238] sm:$0xff] }
 0x41a   : > { %v12343_v43 = vpop.permute.xlu1 %7931  ;;  %6574 = vmatprep.mubr.msk.bf16.mxu1 %vm273_vm0, %v14302_v22  ;;  %v7917_v46 = vpop.permute.xlu0 %7916  ;;  %v3524_v20 = vsel %vm3499_vm5, %v3491_v1, %v7878_v16  ;;  %v3525_v31 = vsel %vm3499_vm5, %v3492_v48, %v7879_v21  ;;  %v7888_v10 = vunpack.i.l.bf16 %v12317_v29  ;;  %v7889_v13 = vunpack.i.h.bf16 %v12317_v29 }
 0x41b   : > { %v7919_v0 = vunpack.i.h.bf16 %v7917_v46  ;;  %v7918_v25 = vunpack.i.l.bf16 %v7917_v46  ;;  %v3494_v56 = vsel %vm3466_vm4, %v3461_v38, %v7894_v28  ;;  %v2692_v1 = vrot.slane %v12066_v8, 1 }
 0x41c   : > { %v2693_v23 = vrot.slane %v12068_v27, 1  ;;  %v3429_v48 = vsel %vm273_vm0, %v11867_v61, %v7858_v41  ;;  %v7934_v22 = vunpack.i.h.bf16 %v12343_v43  ;;  %v7933_v3 = vunpack.i.l.bf16 %v12343_v43 }
 0x41d   : > { %v3556_v60 = vsel %vm1962_vm13, %v3524_v20, %v7918_v25  ;;  %v3557_v37 = vsel %vm1962_vm13, %v3525_v31, %v7919_v0  ;;  %v3526_v21 = vsel %vm3499_vm5, %v3493_v12, %v7863_v36  ;;  %v7898_v16 = vunpack.i.l.bf16 %v12305_v26 }
 0x41e   : > { %v12356_v7 = vpop.permute.xlu1 %7941  ;;  %v12360_v52 = vpop.permute.xlu0 %7936  ;;  %v3589_v5 = vsel %vm3564_vm7, %v3556_v60, %v7903_v47  ;;  %v3590_v55 = vsel %vm3564_vm7, %v3557_v37, %v7904_v50  ;;  %v3527_v29 = vsel %vm3499_vm5, %v3494_v56, %v7864_v40  ;;  %v3430_v8 = vsel %vm273_vm0, %v11860_v2, %v7859_v39 }
 0x41f   : > { %v3622_v15 = vsel %vm3597_vm8, %v3589_v5, %v7868_v42  ;;  %v3623_v11 = vsel %vm3597_vm8, %v3590_v55, %v7869_v57  ;;  %v7899_v27 = vunpack.i.h.bf16 %v12305_v26  ;;  %v3462_v61 = vsel %vm3433_vm15, %v3429_v48, %v7888_v10 }
 0x420   : > { %v3654_v17 = vpack.c.bf16 %v3623_v11, %v3622_v15  ;;  %v2695_v25 = vrot.slane %v2412_v59, 1  ;;  %v3463_v43 = vsel %vm3433_vm15, %v3430_v8, %v7889_v13  ;;  %v3558_v20 = vsel %vm1962_vm13, %v3526_v21, %v7898_v16 }
 0x421   : > { %v3432_v31 = vsel %vm273_vm0, %v12018_v19, %v7934_v22  ;;  %v3431_v57 = vsel %vm273_vm0, %v12030_v24, %v7933_v3  ;;  %v3559_v2 = vsel %vm1962_vm13, %v3527_v29, %v7899_v27  ;;  %v7944_v26 = vunpack.i.h.bf16 %v12356_v7 }
 0x422   : > { %v12369_v4 = vpop.permute.xlu1 %7946  ;;  %v12374_v33 = vpop.permute.xlu0 %7951  ;;  %3916 = vmatmul.mubr.bf16.gmra.mrb[48].mxu1 %v3654_v17  ;;  %v7939_v19 = vunpack.i.h.bf16 %v12360_v52  ;;  %v7938_v11 = vunpack.i.l.bf16 %v12360_v52  ;;  %v7943_v58 = vunpack.i.l.bf16 %v12356_v7  ;;  %v14304_v40 = vpack.c.bf16 %v11578_v30, %v11573_v63 }
 0x423   : > { %6575 = vmatprep.mubr.msk.bf16.mxu1 %vm273_vm0, %v14303_v54  ;;  %v7954_v7 = vunpack.i.h.bf16 %v12374_v33  ;;  %v7953_v56 = vunpack.i.l.bf16 %v12374_v33  ;;  %v2694_v13 = vsel %vm854_vm2, %v2692_v1, %v2693_v23  ;;  %v2696_v59 = vsel %vm854_vm2, %v2693_v23, %v2695_v25 }
 0x424   : > { %v7929_v48 = vunpack.i.h.bf16 %v12331_v18  ;;  %v7928_v22 = vunpack.i.l.bf16 %v12331_v18  ;;  %v7949_v1 = vunpack.i.h.bf16 %v12369_v4  ;;  %v7948_v23 = vunpack.i.l.bf16 %v12369_v4 }
 0x426   : > { %v7957_v45 = vpop.permute.xlu1 %7956  ;;  %v7962_v53 = vpop.permute.xlu0 %7961 }
 0x427   : > { %v7964_v46 = vunpack.i.h.bf16 %v7962_v53  ;;  %v7963_v34 = vunpack.i.l.bf16 %v7962_v53  ;;  %v7958_v42 = vunpack.i.l.bf16 %v7957_v45  ;;  %v7959_v60 = vunpack.i.h.bf16 %v7957_v45 }
 0x429   : > { %v3495_v37 = vsel %vm3466_vm4, %v3462_v61, %v7963_v34  ;;  %v3496_v62 = vsel %vm3466_vm4, %v3463_v43, %v7964_v46  ;;  %v3464_v32 = vsel %vm3433_vm15, %v3431_v57, %v7958_v42  ;;  %v3465_v54 = vsel %vm3433_vm15, %v3432_v31, %v7959_v60  ;;  %v14305_v61 = vld [vmem:[#allocation25_spill] sm:$0xff] }
 0x42a   : > { %v7972_v35 = vpop.permute.xlu1 %7971  ;;  %v7967_v0 = vpop.permute.xlu0 %7966  ;;  %v3528_v41 = vsel %vm3499_vm5, %v3495_v37, %v7938_v11  ;;  %v3529_v28 = vsel %vm3499_vm5, %v3496_v62, %v7939_v19  ;;  %v3497_v10 = vsel %vm3466_vm4, %v3464_v32, %v7943_v58  ;;  %v3498_v53 = vsel %vm3466_vm4, %v3465_v54, %v7944_v26 }
 0x42b   : > { %v7974_v50 = vunpack.i.h.bf16 %v7972_v35  ;;  %v7973_v47 = vunpack.i.l.bf16 %v7972_v35  ;;  %v7969_v5 = vunpack.i.h.bf16 %v7967_v0  ;;  %v7968_v55 = vunpack.i.l.bf16 %v7967_v0 }
 0x42c   : > { %v3530_v63 = vsel %vm3499_vm5, %v3497_v10, %v7928_v22  ;;  %v3531_v30 = vsel %vm3499_vm5, %v3498_v53, %v7929_v48  ;;  %v3661_v34 = vpack.c.bf16 %v2696_v59, %v2694_v13  ;;  %v7444_v0 = vunpack.i.h.bf16 %v14305_v61 }
 0x42d   : > { %v3591_v17 = vsel %vm3564_vm7, %v3558_v20, %v7973_v47  ;;  %v3592_v6 = vsel %vm3564_vm7, %v3559_v2, %v7974_v50  ;;  %v3560_v12 = vsel %vm1962_vm13, %v3528_v41, %v7968_v55  ;;  %v3561_v45 = vsel %vm1962_vm13, %v3529_v28, %v7969_v5  ;;  %v12466_v2 = vld [vmem:[%s13744_s5 + $0x1] ss:$0 sm:$0xff] }
 0x42e   : > { %v7977_v49 = vpop.permute.xlu1 %7976  ;;  %v7982_v24 = vpop.permute.xlu0 %7981  ;;  %v3593_v33 = vsel %vm3564_vm7, %v3560_v12, %v7953_v56  ;;  %v3594_v3 = vsel %vm3564_vm7, %v3561_v45, %v7954_v7  ;;  %v3562_v8 = vsel %vm1962_vm13, %v3530_v63, %v7948_v23  ;;  %v3563_v27 = vsel %vm1962_vm13, %v3531_v30, %v7949_v1  ;;  %v4023_v30 = vld [vmem:[#allocation2 + $0x58] sm:$0xff] }
 0x42f   : > { %v7979_v51 = vunpack.i.h.bf16 %v7977_v49  ;;  %v7978_v15 = vunpack.i.l.bf16 %v7977_v49  ;;  %v7984_v36 = vunpack.i.h.bf16 %v7982_v24  ;;  %v7983_v39 = vunpack.i.l.bf16 %v7982_v24 }
 0x430   : > { %v7443_v25 = vunpack.i.l.bf16 %v14305_v61  ;;  %v3596_v50 = vsel %vm3564_vm7, %v3563_v27, %v7444_v0  ;;  %v4135_v31 = vrot.slane %v12158_v44, 7  ;;  %v4133_v57 = vrot.slane %v12156_v9, 7 }
 0x431   : > { %v3624_v14 = vsel %vm3597_vm8, %v3591_v17, %v7978_v15  ;;  %v3625_v38 = vsel %vm3597_vm8, %v3592_v6, %v7979_v51  ;;  %v3626_v21 = vsel %vm3597_vm8, %v3593_v33, %v7983_v39  ;;  %v3627_v16 = vsel %vm3597_vm8, %v3594_v3, %v7984_v36  ;;  %v4019_v51 = vld [vmem:[#allocation2 + $0x38] sm:$0xff]  ;;  %v4016_v15 = vld [vmem:[#allocation2 + $0x20] sm:$0xff] }
 0x432   : > { %v3656_v52 = vpack.c.bf16 %v3625_v38, %v3624_v14  ;;  %v7987_v46 = vpop.permute.xlu1 %7986  ;;  %v3658_v35 = vpack.c.bf16 %v3627_v16, %v3626_v21  ;;  %v3595_v43 = vsel %vm3564_vm7, %v3562_v8, %v7443_v25  ;;  %v12461_v42 = vsel %vm725_vm3, %v4133_v57, %v4135_v31  ;;  %v4020_v3 = vld [vmem:[#allocation2 + $0x40] sm:$0xff]  ;;  %v4027_v31 = vld [vmem:[#allocation2 + $0x78] sm:$0xff] }
 0x433   : > { %v7989_v18 = vunpack.i.h.bf16 %v7987_v46  ;;  %v7988_v29 = vunpack.i.l.bf16 %v7987_v46  ;;  %v4268_v11 = vrot.slane %v4019_v51, 1  ;;  %v4137_v17 = vrot.slane %v4016_v15, 7 }
 0x434   : > { %3924 = vmatmul.mubr.bf16.gmra.mrb[52].mxu1 %v3656_v52  ;;  %v4273_v27 = vrot.slane %v4023_v30, 1  ;;  %vm5331_vm13 = vcmask 228352  }
 0x435   : > { %6576 = vmatprep.mubr.msk.bf16.mxu1 %vm273_vm0, %v14304_v40  ;;  %v3628_v4 = vsel %vm3597_vm8, %v3595_v43, %v7988_v29  ;;  %v3629_v47 = vsel %vm3597_vm8, %v3596_v50, %v7989_v18 }
 0x436   : > { %v3660_v20 = vpack.c.bf16 %v3629_v47, %v3628_v4 }
 0x43c   : > { %3932 = vmatmul.mubr.bf16.gmra.mrb[56].mxu1 %v3658_v35 }
 0x43d   : > { %6577 = vmatprep.mubr.msk.bf16.mxu1 %vm273_vm0, %v3661_v34  ;;  %v4142_v34 = vrot.slane %v4020_v3, 7 }
 0x444   : > { %3940 = vmatmul.mubr.bf16.gmra.mrb[60].mxu1 %v3660_v20 }
 0x44d   : > { %v3821_v26 = vpop.f32.mrb[0].mxu1 }
 0x44e   : > { %v3822_v60 = vadd.f32 %v12466_v2, %v3821_v26  ;;  %v3823_v37 = vpop.f32.mrb[1].mxu1 }
 0x44f   : > { %v3824_v62 = vpop.f32.mrb[2].mxu1 }
 0x450   : > { %v3948_v49 = vmax.f32 %v3822_v60, 0.0  ;;  %v3825_v44 = vadd.f32 %v12466_v2, %v3824_v62  ;;  %v3826_v5 = vpop.f32.mrb[3].mxu1 }
 0x452   : > { %3980 = vst.msk [vmem:[#allocation2 + $0x28] sm:$0xff] %vm379_vm1, %v3948_v49  ;;  %v3949_v55 = vmax.f32 %v3825_v44, 0.0  ;;  %v4278_v49 = vrot.slane %v4027_v31, 1  ;;  %v8647_v44 = vld [vmem:[%s13743_s4] sm:$0xff]  }
 0x453   : > { %6720 = vmatprep.subr.bf16.mxu0 %v8647_v44 }
 0x454   : > { %3981 = vst.msk [vmem:[#allocation2 + $0x30] sm:$0xff] %vm379_vm1, %v3949_v55  ;;  %6721 = vmatpush3.bf16.msra.mxu0 %v8647_v44 }
 0x459   : > { %v4017_v19 = vld [vmem:[#allocation2 + $0x28] sm:$0xff] }
 0x45a   : > { %v4138_v6 = vrot.slane %v4017_v19, 7  ;;  %v4265_v32 = vrot.slane %v4017_v19, 1 }
 0x45b   : > { %v4018_v24 = vld [vmem:[#allocation2 + $0x30] sm:$0xff] }
 0x45c   : > { %v8015_v58 = vpack.i.bf16 %v4018_v24, %v4017_v19  ;;  %v4266_v14 = vrot.slane %v4018_v24, 1  ;;  %v4140_v38 = vrot.slane %v4018_v24, 7  ;;  %v12477_v52 = vsel %vm725_vm3, %v4137_v17, %v4138_v6  ;;  %v4024_v17 = vld [vmem:[#allocation2 + $0x60] sm:$0xff] }
 0x45e   : > { %8016 = vrot.lane.b32.xlu0 %v8015_v58, %s8805_s7  ;;  %8011 = vrot.lane.b32.xlu1 %v8015_v58, %s8796_s28  ;;  %v4267_v54 = vsel %vm854_vm2, %v4265_v32, %v4266_v14  ;;  %v4269_v41 = vsel %vm854_vm2, %v4266_v14, %v4268_v11  ;;  %v12480_v12 = vsel %vm725_vm3, %v4138_v6, %v4140_v38  ;;  %v8648_v6 = vld [vmem:[%s13743_s4 + $0x8] sm:$0xff]  }
 0x45f   : > { %v8020_v28 = vpack.i.bf16 %v4269_v41, %v4267_v54  ;;  %v8025_v36 = vpack.i.bf16 %v12480_v12, %v12477_v52  ;;  %v4147_v54 = vrot.slane %v4024_v17, 7  ;;  %6722 = vmatprep.subr.bf16.mxu0 %v8648_v6 }
 0x460   : > { %v3829_v45 = vpop.f32.mrb[4].mxu1  ;;  %6723 = vmatpush3.bf16.msra.mxu0 %v8648_v6 }
 0x461   : > { %v3830_v39 = vadd.f32 %v12466_v2, %v3829_v45  ;;  %v3831_v7 = vpop.f32.mrb[5].mxu1 }
 0x462   : > { %8021 = vrot.lane.b32.xlu1 %v8020_v28, %s8814_s18  ;;  %8026 = vrot.lane.b32.xlu0 %v8025_v36, %s8815_s22  ;;  %v3832_v56 = vpop.f32.mrb[6].mxu1  ;;  %v8649_v36 = vld [vmem:[%s13743_s4 + $0x10] ss:$0 sps:$4 sm:$0x33]  }
 0x463   : > { %v3950_v10 = vmax.f32 %v3830_v39, 0.0  ;;  %v3833_v53 = vadd.f32 %v12466_v2, %v3832_v56  ;;  %v3834_v40 = vpop.f32.mrb[7].mxu1  ;;  %6759 = vmatprep.subr.msk.bf16.mxu0 %vm5486_vm9, %v8649_v36 }
 0x465   : > { %3982 = vst.msk [vmem:[#allocation2 + $0x48] sm:$0xff] %vm379_vm1, %v3950_v10  ;;  %v3951_v13 = vmax.f32 %v3833_v53, 0.0  ;;  %v5488_v53 = vsel %vm5486_vm9, %v8649_v36, 0 }
 0x466   : > { %8031 = vrot.lane.b32.xlu0 %v8020_v28, %s8798_s9  ;;  %6725 = vmatpush3.bf16.msra.mxu0 %v5488_v53 }
 0x467   : > { %3983 = vst.msk [vmem:[#allocation2 + $0x50] sm:$0xff] %vm379_vm1, %v3951_v13 }
 0x469   : > { %v3837_v59 = vpop.f32.mrb[8].mxu1 }
 0x46a   : > { %v3838_v48 = vadd.f32 %v12466_v2, %v3837_v59  ;;  %v3839_v22 = vpop.f32.mrb[9].mxu1 }
 0x46b   : > { %v3840_v33 = vpop.f32.mrb[10].mxu1 }
 0x46c   : > { %v3952_v21 = vmax.f32 %v3838_v48, 0.0  ;;  %v3841_v16 = vadd.f32 %v12466_v2, %v3840_v33  ;;  %v3842_v46 = vpop.f32.mrb[11].mxu1  ;;  %v4021_v63 = vld [vmem:[#allocation2 + $0x48] sm:$0xff] }
 0x46d   : > { %v4143_v35 = vrot.slane %v4021_v63, 7  ;;  %v4270_v25 = vrot.slane %v4021_v63, 1 }
 0x46e   : > { %3984 = vst.msk [vmem:[#allocation2 + $0x68] sm:$0xff] %vm379_vm1, %v3952_v21  ;;  %v3953_v1 = vmax.f32 %v3841_v16, 0.0  ;;  %v4022_v23 = vld [vmem:[#allocation2 + $0x50] sm:$0xff]  ;;  %v4028_v16 = vld [vmem:[#allocation2 + $0x80] sm:$0xff] }
 0x46f   : > { %v8040_v18 = vpack.i.bf16 %v4022_v23, %v4021_v63  ;;  %v4145_v29 = vrot.slane %v4022_v23, 7  ;;  %v4271_v8 = vrot.slane %v4022_v23, 1  ;;  %v12498_v61 = vsel %vm725_vm3, %v4142_v34, %v4143_v35  ;;  %v4031_v63 = vld [vmem:[#allocation2 + $0x98] sm:$0xff] }
 0x470   : > { %3985 = vst.msk [vmem:[#allocation2 + $0x70] sm:$0xff] %vm379_vm1, %v3953_v1  ;;  %v4152_v30 = vrot.slane %v4028_v16, 7 }
 0x471   : > { %8041 = vrot.lane.b32.xlu1 %v8040_v18, %s8805_s7  ;;  %8036 = vrot.lane.b32.xlu0 %v8040_v18, %s8796_s28  ;;  %v12501_v0 = vsel %vm725_vm3, %v4143_v35, %v4145_v29  ;;  %v4272_v50 = vsel %vm854_vm2, %v4270_v25, %v4271_v8  ;;  %v4274_v4 = vsel %vm854_vm2, %v4271_v8, %v4273_v27 }
 0x472   : > { %v8055_v43 = vpack.i.bf16 %v12501_v0, %v12498_v61  ;;  %v8050_v47 = vpack.i.bf16 %v4274_v4, %v4272_v50 }
 0x475   : > { %8046 = vrot.lane.b32.xlu0 %v8040_v18, %s8813_s8  ;;  %8056 = vrot.lane.b32.xlu1 %v8055_v43, %s8815_s22  ;;  %v4025_v26 = vld [vmem:[#allocation2 + $0x68] sm:$0xff]  ;;  %v4283_v18 = vrot.slane %v4031_v63, 1 }
 0x476   : > { %v4275_v15 = vrot.slane %v4025_v26, 1  ;;  %v4148_v41 = vrot.slane %v4025_v26, 7 }
 0x477   : > { %v4026_v20 = vld [vmem:[#allocation2 + $0x70] sm:$0xff] }
 0x478   : > { %v8075_v60 = vpack.i.bf16 %v4026_v20, %v4025_v26  ;;  %v4276_v62 = vrot.slane %v4026_v20, 1  ;;  %v4150_v14 = vrot.slane %v4026_v20, 7  ;;  %v12537_v10 = vsel %vm725_vm3, %v4147_v54, %v4148_v41  ;;  %v4035_v26 = vld [vmem:[#allocation2 + $0xb8] sm:$0xff] }
 0x479   : > { %8051 = vrot.lane.b32.xlu0 %v8050_v47, %s8814_s18  ;;  %8061 = vrot.lane.b32.xlu1 %v8050_v47, %s8798_s9 }
 0x47a   : > { %v4277_v58 = vsel %vm854_vm2, %v4275_v15, %v4276_v62  ;;  %v4279_v32 = vsel %vm854_vm2, %v4276_v62, %v4278_v49  ;;  %v12528_v45 = vsel %vm725_vm3, %v4148_v41, %v4150_v14 }
 0x47b   : > { %v8090_v28 = vpack.i.bf16 %v4279_v32, %v4277_v58  ;;  %v8095_v13 = vpack.i.bf16 %v12528_v45, %v12537_v10 }
 0x47c   : > { %v3845_v37 = vpop.f32.mrb[12].mxu1 }
 0x47d   : > { %v3846_v5 = vadd.f32 %v12466_v2, %v3845_v37  ;;  %v3847_v55 = vpop.f32.mrb[13].mxu1  ;;  %8066 = vrot.lane.b32.xlu0 %v8055_v43, %s8812_s30  ;;  %8076 = vrot.lane.b32.xlu1 %v8075_v60, %s8796_s28 }
 0x47e   : > { %v3848_v51 = vpop.f32.mrb[14].mxu1 }
 0x47f   : > { %v3954_v19 = vmax.f32 %v3846_v5, 0.0  ;;  %v3849_v11 = vadd.f32 %v12466_v2, %v3848_v51  ;;  %v3850_v24 = vpop.f32.mrb[15].mxu1  ;;  %v4288_v51 = vrot.slane %v4035_v26, 1 }
 0x481   : > { %3986 = vst.msk [vmem:[#allocation2 + $0x88] sm:$0xff] %vm379_vm1, %v3954_v19  ;;  %v3955_v38 = vmax.f32 %v3849_v11, 0.0  ;;  %8071 = vrot.lane.b32.xlu0 %v8050_v47, %s8807_s10  ;;  %8086 = vrot.lane.b32.xlu1 %v8075_v60, %s8813_s8  ;;  %v4032_v11 = vld [vmem:[#allocation2 + $0xa0] sm:$0xff] }
 0x483   : > { %3987 = vst.msk [vmem:[#allocation2 + $0x90] sm:$0xff] %vm379_vm1, %v3955_v38  ;;  %v4157_v38 = vrot.slane %v4032_v11, 7 }
 0x485   : > { %v3853_v39 = vpop.f32.mrb[16].mxu1  ;;  %8081 = vrot.lane.b32.xlu0 %v8075_v60, %s8805_s7  ;;  %8091 = vrot.lane.b32.xlu1 %v8090_v28, %s8814_s18 }
 0x486   : > { %v3854_v7 = vadd.f32 %v12466_v2, %v3853_v39  ;;  %v3855_v56 = vpop.f32.mrb[17].mxu1 }
 0x487   : > { %v3856_v40 = vpop.f32.mrb[18].mxu1 }
 0x488   : > { %v3956_v59 = vmax.f32 %v3854_v7, 0.0  ;;  %v3857_v48 = vadd.f32 %v12466_v2, %v3856_v40  ;;  %v3858_v22 = vpop.f32.mrb[19].mxu1  ;;  %v4029_v21 = vld [vmem:[#allocation2 + $0x88] sm:$0xff] }
 0x489   : > { %8096 = vrot.lane.b32.xlu0 %v8095_v13, %s8815_s22  ;;  %8106 = vrot.lane.b32.xlu1 %v8095_v13, %s8812_s30  ;;  %v4153_v1 = vrot.slane %v4029_v21, 7  ;;  %v4280_v8 = vrot.slane %v4029_v21, 1  ;;  %v4036_v22 = vld [vmem:[#allocation2 + $0xc0] sm:$0xff] }
 0x48a   : > { %3988 = vst.msk [vmem:[#allocation2 + $0xa8] sm:$0xff] %vm379_vm1, %v3956_v59  ;;  %v3957_v33 = vmax.f32 %v3857_v48, 0.0  ;;  %v4030_v3 = vld [vmem:[#allocation2 + $0x90] sm:$0xff] }
 0x48b   : > { %v4155_v46 = vrot.slane %v4030_v3, 7  ;;  %v8115_v23 = vpack.i.bf16 %v4030_v3, %v4029_v21  ;;  %v4281_v35 = vrot.slane %v4030_v3, 1  ;;  %v12554_v29 = vsel %vm725_vm3, %v4152_v30, %v4153_v1  ;;  %v4039_v3 = vld [vmem:[#allocation2 + $0xd8] sm:$0xff] }
 0x48c   : > { %3989 = vst.msk [vmem:[#allocation2 + $0xb0] sm:$0xff] %vm379_vm1, %v3957_v33  ;;  %v4162_v21 = vrot.slane %v4036_v22, 7 }
 0x48d   : > { %8101 = vrot.lane.b32.xlu0 %v8090_v28, %s8798_s9  ;;  %8111 = vrot.lane.b32.xlu1 %v8090_v28, %s8807_s10  ;;  %v12549_v34 = vsel %vm725_vm3, %v4153_v1, %v4155_v46  ;;  %v4282_v25 = vsel %vm854_vm2, %v4280_v8, %v4281_v35  ;;  %v4284_v43 = vsel %vm854_vm2, %v4281_v35, %v4283_v18  ;;  %v4293_v1 = vrot.slane %v4039_v3, 1  ;;  %v12636_v3 = vpop.permute.xlu1 %8001 }
 0x48e   : > { %v8135_v27 = vpack.i.bf16 %v12549_v34, %v12554_v29  ;;  %v8130_v50 = vpack.i.bf16 %v4284_v43, %v4282_v25 }
 0x491   : > { %8116 = vrot.lane.b32.xlu0 %v8115_v23, %s8796_s28  ;;  %8121 = vrot.lane.b32.xlu1 %v8115_v23, %s8805_s7  ;;  %v4033_v37 = vld [vmem:[#allocation2 + $0xa8] sm:$0xff] }
 0x492   : > { %v4285_v19 = vrot.slane %v4033_v37, 1  ;;  %v4158_v54 = vrot.slane %v4033_v37, 7 }
 0x493   : > { %v4034_v47 = vld [vmem:[#allocation2 + $0xb0] sm:$0xff] }
 0x494   : > { %v8155_v5 = vpack.i.bf16 %v4034_v47, %v4033_v37  ;;  %v4286_v55 = vrot.slane %v4034_v47, 1  ;;  %v4160_v6 = vrot.slane %v4034_v47, 7  ;;  %v12583_v40 = vsel %vm725_vm3, %v4157_v38, %v4158_v54 }
 0x495   : > { %8126 = vrot.lane.b32.xlu0 %v8115_v23, %s8813_s8  ;;  %8136 = vrot.lane.b32.xlu1 %v8135_v27, %s8815_s22 }
 0x496   : > { %v4287_v24 = vsel %vm854_vm2, %v4285_v19, %v4286_v55  ;;  %v4289_v17 = vsel %vm854_vm2, %v4286_v55, %v4288_v51  ;;  %v12577_v56 = vsel %vm725_vm3, %v4158_v54, %v4160_v6 }
 0x497   : > { %v8170_v28 = vpack.i.bf16 %v4289_v17, %v4287_v24  ;;  %v8175_v13 = vpack.i.bf16 %v12577_v56, %v12583_v40  ;;  %v4040_v17 = vld [vmem:[#allocation2 + $0xe0] sm:$0xff] }
 0x498   : > { %v3861_v4 = vpop.f32.mrb[20].mxu1 }
 0x499   : > { %v3862_v20 = vadd.f32 %v12466_v2, %v3861_v4  ;;  %v3863_v31 = vpop.f32.mrb[21].mxu1  ;;  %8131 = vrot.lane.b32.xlu0 %v8130_v50, %s8814_s18  ;;  %8141 = vrot.lane.b32.xlu1 %v8130_v50, %s8798_s9 }
 0x49a   : > { %v3864_v60 = vpop.f32.mrb[22].mxu1 }
 0x49b   : > { %v3958_v62 = vmax.f32 %v3862_v20, 0.0  ;;  %v3865_v49 = vadd.f32 %v12466_v2, %v3864_v60  ;;  %v3866_v44 = vpop.f32.mrb[23].mxu1 }
 0x49d   : > { %3990 = vst.msk [vmem:[#allocation2 + $0xc8] sm:$0xff] %vm379_vm1, %v3958_v62  ;;  %v3959_v15 = vmax.f32 %v3865_v49, 0.0  ;;  %8146 = vrot.lane.b32.xlu0 %v8135_v27, %s8812_s30  ;;  %8156 = vrot.lane.b32.xlu1 %v8155_v5, %s8796_s28  ;;  %v4043_v62 = vld [vmem:[#allocation2 + $0xf8] sm:$0xff] }
 0x49e   : > { %v4298_v55 = vrot.slane %v4043_v62, 1 }
 0x49f   : > { %3991 = vst.msk [vmem:[#allocation2 + $0xd0] sm:$0xff] %vm379_vm1, %v3959_v15 }
 0x4a1   : > { %v3869_v58 = vpop.f32.mrb[24].mxu1  ;;  %8151 = vrot.lane.b32.xlu0 %v8130_v50, %s8807_s10  ;;  %8166 = vrot.lane.b32.xlu1 %v8155_v5, %s8813_s8 }
 0x4a2   : > { %v3870_v32 = vadd.f32 %v12466_v2, %v3869_v58  ;;  %v3871_v14 = vpop.f32.mrb[25].mxu1 }
 0x4a3   : > { %v3872_v41 = vpop.f32.mrb[26].mxu1 }
 0x4a4   : > { %v3960_v36 = vmax.f32 %v3870_v32, 0.0  ;;  %v3873_v39 = vadd.f32 %v12466_v2, %v3872_v41  ;;  %v3874_v7 = vpop.f32.mrb[27].mxu1  ;;  %v4037_v48 = vld [vmem:[#allocation2 + $0xc8] sm:$0xff] }
 0x4a5   : > { %8161 = vrot.lane.b32.xlu0 %v8155_v5, %s8805_s7  ;;  %8171 = vrot.lane.b32.xlu1 %v8170_v28, %s8814_s18  ;;  %v4163_v16 = vrot.slane %v4037_v48, 7  ;;  %v4290_v35 = vrot.slane %v4037_v48, 1 }
 0x4a6   : > { %3992 = vst.msk [vmem:[#allocation2 + $0xe8] sm:$0xff] %vm379_vm1, %v3960_v36  ;;  %v3961_v53 = vmax.f32 %v3873_v39, 0.0  ;;  %v4038_v59 = vld [vmem:[#allocation2 + $0xd0] sm:$0xff] }
 0x4a7   : > { %v4165_v33 = vrot.slane %v4038_v59, 7  ;;  %v8195_v46 = vpack.i.bf16 %v4038_v59, %v4037_v48  ;;  %v4291_v30 = vrot.slane %v4038_v59, 1  ;;  %v12598_v23 = vsel %vm725_vm3, %v4162_v21, %v4163_v16 }
 0x4a8   : > { %3993 = vst.msk [vmem:[#allocation2 + $0xf0] sm:$0xff] %vm379_vm1, %v3961_v53 }
 0x4a9   : > { %8176 = vrot.lane.b32.xlu0 %v8175_v13, %s8815_s22  ;;  %8186 = vrot.lane.b32.xlu1 %v8175_v13, %s8812_s30  ;;  %v12593_v63 = vsel %vm725_vm3, %v4163_v16, %v4165_v33  ;;  %v4292_v27 = vsel %vm854_vm2, %v4290_v35, %v4291_v30  ;;  %v4294_v25 = vsel %vm854_vm2, %v4291_v30, %v4293_v1  ;;  %v12630_v13 = vpop.permute.xlu0 %7991  ;;  %v4044_v33 = vld [vmem:[#allocation2 + $0x100] sm:$0xff] }
 0x4aa   : > { %v8215_v18 = vpack.i.bf16 %v12593_v63, %v12598_v23  ;;  %v8210_v26 = vpack.i.bf16 %v4294_v25, %v4292_v27  ;;  %v4172_v30 = vrot.slane %v4044_v33, 7 }
 0x4ad   : > { %8181 = vrot.lane.b32.xlu0 %v8170_v28, %s8798_s9  ;;  %8191 = vrot.lane.b32.xlu1 %v8170_v28, %s8807_s10  ;;  %v4041_v49 = vld [vmem:[#allocation2 + $0xe8] sm:$0xff]  ;;  %v4167_v28 = vrot.slane %v4040_v17, 7  ;;  %v12638_v16 = vpop.permute.xlu0 %7996  ;;  %v4051_v17 = vld [vmem:[#allocation2 + $0x138] sm:$0xff] }
 0x4ae   : > { %v4295_v11 = vrot.slane %v4041_v49, 1  ;;  %v4168_v36 = vrot.slane %v4041_v49, 7 }
 0x4af   : > { %v4042_v60 = vld [vmem:[#allocation2 + $0xf0] sm:$0xff] }
 0x4b0   : > { %v8235_v44 = vpack.i.bf16 %v4042_v60, %v4041_v49  ;;  %v4296_v5 = vrot.slane %v4042_v60, 1  ;;  %v4170_v6 = vrot.slane %v4042_v60, 7  ;;  %v12628_v53 = vsel %vm725_vm3, %v4167_v28, %v4168_v36 }
 0x4b1   : > { %8196 = vrot.lane.b32.xlu0 %v8195_v46, %s8796_s28  ;;  %8201 = vrot.lane.b32.xlu1 %v8195_v46, %s8805_s7 }
 0x4b2   : > { %v4297_v38 = vsel %vm854_vm2, %v4295_v11, %v4296_v5  ;;  %v4299_v54 = vsel %vm854_vm2, %v4296_v5, %v4298_v55  ;;  %v12623_v7 = vsel %vm725_vm3, %v4168_v36, %v4170_v6 }
 0x4b3   : > { %v8250_v39 = vpack.i.bf16 %v4299_v54, %v4297_v38  ;;  %v8255_v59 = vpack.i.bf16 %v12623_v7, %v12628_v53 }
 0x4b4   : > { %v3877_v8 = vpop.f32.mrb[28].mxu1 }
 0x4b5   : > { %v3878_v43 = vadd.f32 %v12466_v2, %v3877_v8  ;;  %v3879_v50 = vpop.f32.mrb[29].mxu1  ;;  %8206 = vrot.lane.b32.xlu0 %v8195_v46, %s8813_s8  ;;  %8216 = vrot.lane.b32.xlu1 %v8215_v18, %s8815_s22  ;;  %v4047_v46 = vld [vmem:[#allocation2 + $0x118] sm:$0xff] }
 0x4b6   : > { %v3880_v4 = vpop.f32.mrb[30].mxu1 }
 0x4b7   : > { %v3962_v47 = vmax.f32 %v3878_v43, 0.0  ;;  %v3881_v20 = vadd.f32 %v12466_v2, %v3880_v4  ;;  %v3882_v31 = vpop.f32.mrb[31].mxu1  ;;  %v4303_v43 = vrot.slane %v4047_v46, 1  ;;  %v12648_v4 = vpop.permute.xlu1 %8006 }
 0x4b9   : > { %3994 = vst.msk [vmem:[#allocation2 + $0x108] sm:$0xff] %vm379_vm1, %v3962_v47  ;;  %v3963_v37 = vmax.f32 %v3881_v20, 0.0  ;;  %8211 = vrot.lane.b32.xlu0 %v8210_v26, %s8814_s18  ;;  %8221 = vrot.lane.b32.xlu1 %v8210_v26, %s8798_s9 }
 0x4bb   : > { %3995 = vst.msk [vmem:[#allocation2 + $0x110] sm:$0xff] %vm379_vm1, %v3963_v37 }
 0x4bd   : > { %v3885_v51 = vpop.f32.mrb[32].mxu1  ;;  %8226 = vrot.lane.b32.xlu0 %v8215_v18, %s8812_s30  ;;  %8236 = vrot.lane.b32.xlu1 %v8235_v44, %s8796_s28 }
 0x4be   : > { %v3886_v15 = vadd.f32 %v12466_v2, %v3885_v51  ;;  %v3887_v19 = vpop.f32.mrb[33].mxu1 }
 0x4bf   : > { %v3888_v24 = vpop.f32.mrb[34].mxu1 }
 0x4c0   : > { %v3964_v58 = vmax.f32 %v3886_v15, 0.0  ;;  %v3889_v32 = vadd.f32 %v12466_v2, %v3888_v24  ;;  %v3890_v14 = vpop.f32.mrb[35].mxu1  ;;  %v4045_v22 = vld [vmem:[#allocation2 + $0x108] sm:$0xff] }
 0x4c1   : > { %8231 = vrot.lane.b32.xlu0 %v8210_v26, %s8807_s10  ;;  %8246 = vrot.lane.b32.xlu1 %v8235_v44, %s8813_s8  ;;  %v4173_v1 = vrot.slane %v4045_v22, 7  ;;  %v4300_v26 = vrot.slane %v4045_v22, 1  ;;  %v4012_v14 = vld [vmem:[#allocation2] sm:$0xff] }
 0x4c2   : > { %3996 = vst.msk [vmem:[#allocation2 + $0x128] sm:$0xff] %vm379_vm1, %v3964_v58  ;;  %v3965_v41 = vmax.f32 %v3889_v32, 0.0  ;;  %v4046_v48 = vld [vmem:[#allocation2 + $0x110] sm:$0xff] }
 0x4c3   : > { %v4175_v21 = vrot.slane %v4046_v48, 7  ;;  %v8275_v18 = vpack.i.bf16 %v4046_v48, %v4045_v22  ;;  %v4301_v25 = vrot.slane %v4046_v48, 1  ;;  %v12651_v31 = vsel %vm725_vm3, %v4172_v30, %v4173_v1  ;;  %v4048_v30 = vld [vmem:[#allocation2 + $0x120] sm:$0xff] }
 0x4c4   : > { %3997 = vst.msk [vmem:[#allocation2 + $0x130] sm:$0xff] %vm379_vm1, %v3965_v41  ;;  %v4132_v48 = vrot.slane %v4012_v14, 7 }
 0x4c5   : > { %8241 = vrot.lane.b32.xlu0 %v8235_v44, %s8805_s7  ;;  %8251 = vrot.lane.b32.xlu1 %v8250_v39, %s8814_s18  ;;  %v12644_v27 = vsel %vm725_vm3, %v4173_v1, %v4175_v21  ;;  %v4302_v44 = vsel %vm854_vm2, %v4300_v26, %v4301_v25  ;;  %v4304_v5 = vsel %vm854_vm2, %v4301_v25, %v4303_v43  ;;  %v7993_v25 = vunpack.i.l.bf16 %v12630_v13 }
 0x4c6   : > { %v8295_v49 = vpack.i.bf16 %v12644_v27, %v12651_v31  ;;  %v8290_v51 = vpack.i.bf16 %v4304_v5, %v4302_v44  ;;  %v4134_v43 = vsel %vm725_vm3, %v4132_v48, %v4133_v57 }
 0x4c7   : > { %v5136_v9 = vsel %vm379_vm1, %v4134_v43, %v7993_v25 }
 0x4c9   : > { %8256 = vrot.lane.b32.xlu0 %v8255_v59, %s8815_s22  ;;  %8266 = vrot.lane.b32.xlu1 %v8255_v59, %s8812_s30  ;;  %v4049_v32 = vld [vmem:[#allocation2 + $0x128] sm:$0xff]  ;;  %v4308_v59 = vrot.slane %v4051_v17, 1 }
 0x4ca   : > { %v4305_v33 = vrot.slane %v4049_v32, 1 }
 0x4cb   : > { %v4050_v19 = vld [vmem:[#allocation2 + $0x130] sm:$0xff] }
 0x4cc   : > { %v8315_v54 = vpack.i.bf16 %v4050_v19, %v4049_v32 }
 0x4cd   : > { %8261 = vrot.lane.b32.xlu0 %v8250_v39, %s8798_s9  ;;  %8271 = vrot.lane.b32.xlu1 %v8250_v39, %s8807_s10  ;;  %v4306_v39 = vrot.slane %v4050_v19, 1 }
 0x4cf   : > { %v4307_v1 = vsel %vm854_vm2, %v4305_v33, %v4306_v39 }
 0x4d0   : > { %v3893_v35 = vpop.f32.mrb[36].mxu1  ;;  %v12653_v60 = vpop.permute.xlu0 %8016 }
 0x4d1   : > { %v3894_v8 = vadd.f32 %v12466_v2, %v3893_v35  ;;  %v3895_v50 = vpop.f32.mrb[37].mxu1  ;;  %8276 = vrot.lane.b32.xlu0 %v8275_v18, %s8796_s28  ;;  %8281 = vrot.lane.b32.xlu1 %v8275_v18, %s8805_s7  ;;  %v12664_v15 = vpop.permute.xlu1 %8011  ;;  %v4309_v35 = vsel %vm854_vm2, %v4306_v39, %v4308_v59 }
 0x4d2   : > { %v3896_v20 = vpop.f32.mrb[38].mxu1  ;;  %v4177_v50 = vrot.slane %v4048_v30, 7 }
 0x4d3   : > { %v3966_v47 = vmax.f32 %v3894_v8, 0.0  ;;  %v3897_v37 = vadd.f32 %v12466_v2, %v3896_v20  ;;  %v3898_v62 = vpop.f32.mrb[39].mxu1  ;;  %v7994_v8 = vunpack.i.h.bf16 %v12630_v13 }
 0x4d4   : > { %v12666_v11 = vpop.permute.xlu0 %8026  ;;  %v7999_v62 = vunpack.i.h.bf16 %v12638_v16 }
 0x4d5   : > { %3998 = vst.msk [vmem:[#allocation2 + $0x148] sm:$0xff] %vm379_vm1, %v3966_v47  ;;  %v3967_v55 = vmax.f32 %v3897_v37, 0.0  ;;  %8286 = vrot.lane.b32.xlu0 %v8275_v18, %s8813_s8  ;;  %8296 = vrot.lane.b32.xlu1 %v8295_v49, %s8815_s22  ;;  %v12675_v21 = vpop.permute.xlu1 %8021  ;;  %v4180_v18 = vrot.slane %v4050_v19, 7  ;;  %v4178_v47 = vrot.slane %v4049_v32, 7  ;;  %v8330_v37 = vpack.i.bf16 %v4309_v35, %v4307_v1  ;;  %v4052_v19 = vld [vmem:[#allocation2 + $0x140] sm:$0xff] }
 0x4d6   : > { %v5137_v44 = vsel %vm379_vm1, %v12461_v42, %v7994_v8  ;;  %v8029_v5 = vunpack.i.h.bf16 %v12666_v11 }
 0x4d7   : > { %3999 = vst.msk [vmem:[#allocation2 + $0x150] sm:$0xff] %vm379_vm1, %v3967_v55  ;;  %v12696_v13 = vsel %vm725_vm3, %v4178_v47, %v4180_v18  ;;  %v12704_v57 = vsel %vm725_vm3, %v4177_v50, %v4178_v47  ;;  %v5170_v17 = vsel %vm5168_vm10, %v5137_v44, %v7999_v62  ;;  %v8013_v18 = vunpack.i.l.bf16 %v12664_v15 }
 0x4d8   : > { %v12677_v46 = vpop.permute.xlu0 %8031  ;;  %v8335_v42 = vpack.i.bf16 %v12696_v13, %v12704_v57  ;;  %v5203_v32 = vsel %vm5201_vm11, %v5170_v17, %v8029_v5 }
 0x4d9   : > { %v3901_v24 = vpop.f32.mrb[40].mxu1  ;;  %8291 = vrot.lane.b32.xlu0 %v8290_v51, %s8814_s18  ;;  %8301 = vrot.lane.b32.xlu1 %v8290_v51, %s8798_s9  ;;  %v8034_v33 = vunpack.i.h.bf16 %v12677_v46  ;;  %v8033_v30 = vunpack.i.l.bf16 %v12677_v46 }
 0x4da   : > { %v3902_v6 = vadd.f32 %v12466_v2, %v3901_v24  ;;  %v3903_v58 = vpop.f32.mrb[41].mxu1 }
 0x4db   : > { %v3904_v38 = vpop.f32.mrb[42].mxu1  ;;  %v4055_v58 = vld [vmem:[#allocation2 + $0x158] sm:$0xff] }
 0x4dc   : > { %v3968_v41 = vmax.f32 %v3902_v6, 0.0  ;;  %v3905_v28 = vadd.f32 %v12466_v2, %v3904_v38  ;;  %v3906_v36 = vpop.f32.mrb[43].mxu1  ;;  %v4313_v48 = vrot.slane %v4055_v58, 1 }
 0x4dd   : > { %8306 = vrot.lane.b32.xlu0 %v8295_v49, %s8812_s30  ;;  %8316 = vrot.lane.b32.xlu1 %v8315_v54, %s8796_s28  ;;  %v7998_v49 = vunpack.i.l.bf16 %v12638_v16  ;;  %v8028_v16 = vunpack.i.l.bf16 %v12666_v11  ;;  %v4182_v11 = vrot.slane %v4052_v19, 7  ;;  %v8018_v36 = vunpack.i.l.bf16 %v12653_v60 }
 0x4de   : > { %4000 = vst.msk [vmem:[#allocation2 + $0x168] sm:$0xff] %vm379_vm1, %v3968_v41  ;;  %v3969_v22 = vmax.f32 %v3905_v28, 0.0  ;;  %v4054_v6 = vld [vmem:[#allocation2 + $0x150] sm:$0xff]  ;;  %v4053_v41 = vld [vmem:[#allocation2 + $0x148] sm:$0xff]  ;;  %v8019_v28 = vunpack.i.h.bf16 %v12653_v60 }
 0x4df   : > { %v5169_v24 = vsel %vm5168_vm10, %v5136_v9, %v7998_v49  ;;  %v4185_v59 = vrot.slane %v4054_v6, 7  ;;  %v4183_v43 = vrot.slane %v4053_v41, 7  ;;  %v8355_v49 = vpack.i.bf16 %v4054_v6, %v4053_v41 }
 0x4e0   : > { %4001 = vst.msk [vmem:[#allocation2 + $0x170] sm:$0xff] %vm379_vm1, %v3969_v22  ;;  %v5202_v14 = vsel %vm5201_vm11, %v5169_v24, %v8028_v16  ;;  %v8014_v22 = vunpack.i.h.bf16 %v12664_v15  ;;  %v5235_v8 = vsel %vm273_vm0, %v5203_v32, %v8019_v28  ;;  %v4311_v15 = vrot.slane %v4054_v6, 1 }
 0x4e1   : > { %8311 = vrot.lane.b32.xlu0 %v8290_v51, %s8807_s10  ;;  %8326 = vrot.lane.b32.xlu1 %v8315_v54, %s8813_s8  ;;  %v5234_v60 = vsel %vm273_vm0, %v5202_v14, %v8018_v36  ;;  %v8024_v16 = vunpack.i.h.bf16 %v12675_v21  ;;  %v5267_v19 = vsel %vm1764_vm6, %v5235_v8, %v8034_v33  ;;  %v12750_v32 = vsel %vm725_vm3, %v4182_v11, %v4183_v43 }
 0x4e2   : > { %v4310_v6 = vrot.slane %v4053_v41, 1  ;;  %v4314_v11 = vsel %vm854_vm2, %v4311_v15, %v4313_v48  ;;  %v8023_v41 = vunpack.i.l.bf16 %v12675_v21 }
 0x4e3   : > { %v12689_v20 = vpop.permute.xlu1 %8041  ;;  %v12691_v26 = vpop.permute.xlu0 %8036 }
 0x4e5   : > { %8321 = vrot.lane.b32.xlu0 %v8315_v54, %s8805_s7  ;;  %8331 = vrot.lane.b32.xlu1 %v8330_v37, %s8814_s18 }
 0x4e7   : > { %v12708_v55 = vpop.permute.xlu0 %8046  ;;  %v12710_v51 = vpop.permute.xlu1 %8056 }
 0x4e8   : > { %v8049_v14 = vunpack.i.h.bf16 %v12708_v55  ;;  %v8048_v28 = vunpack.i.l.bf16 %v12708_v55 }
 0x4e9   : > { %8336 = vrot.lane.b32.xlu0 %v8335_v42, %s8815_s22  ;;  %8346 = vrot.lane.b32.xlu1 %v8335_v42, %s8812_s30  ;;  %v5266_v42 = vsel %vm1764_vm6, %v5234_v60, %v8033_v30 }
 0x4eb   : > { %v12720_v38 = vpop.permute.xlu0 %8051  ;;  %v12722_v54 = vpop.permute.xlu1 %8061 }
 0x4ec   : > { %v3909_v39 = vpop.f32.mrb[44].mxu1 }
 0x4ed   : > { %v3910_v1 = vadd.f32 %v12466_v2, %v3909_v39  ;;  %v3911_v35 = vpop.f32.mrb[45].mxu1  ;;  %8341 = vrot.lane.b32.xlu0 %v8330_v37, %s8798_s9  ;;  %8351 = vrot.lane.b32.xlu1 %v8330_v37, %s8807_s10  ;;  %v12739_v37 = vsel %vm725_vm3, %v4183_v43, %v4185_v59 }
 0x4ee   : > { %v3912_v25 = vpop.f32.mrb[46].mxu1  ;;  %v8375_v39 = vpack.i.bf16 %v12739_v37, %v12750_v32  ;;  %v8059_v35 = vunpack.i.h.bf16 %v12710_v51 }
 0x4ef   : > { %v3970_v50 = vmax.f32 %v3910_v1, 0.0  ;;  %v3913_v47 = vadd.f32 %v12466_v2, %v3912_v25  ;;  %v3914_v46 = vpop.f32.mrb[47].mxu1  ;;  %v8067_v62 = vpop.permute.xlu0 %8066  ;;  %v4312_v1 = vsel %vm854_vm2, %v4310_v6, %v4311_v15  ;;  %v8058_v25 = vunpack.i.l.bf16 %v12710_v51 }
 0x4f0   : > { %v8069_v44 = vunpack.i.h.bf16 %v8067_v62  ;;  %v8068_v9 = vunpack.i.l.bf16 %v8067_v62  ;;  %v12736_v5 = vpop.permute.xlu1 %8076  ;;  %v5139_v46 = vsel %vm379_vm1, %v12480_v12, %v8014_v22  ;;  %v4058_v12 = vld [vmem:[#allocation2 + $0x170] sm:$0xff]  ;;  %v4059_v22 = vld [vmem:[#allocation2 + $0x178] sm:$0xff]  ;;  %v8044_v6 = vunpack.i.h.bf16 %v12689_v20 }
 0x4f1   : > { %4002 = vst.msk [vmem:[#allocation2 + $0x188] sm:$0xff] %vm379_vm1, %v3970_v50  ;;  %v3971_v24 = vmax.f32 %v3913_v47, 0.0  ;;  %8356 = vrot.lane.b32.xlu0 %v8355_v49, %s8796_s28  ;;  %8361 = vrot.lane.b32.xlu1 %v8355_v49, %s8805_s7  ;;  %v5138_v47 = vsel %vm379_vm1, %v12477_v52, %v8013_v18  ;;  %v5172_v51 = vsel %vm5168_vm10, %v5139_v46, %v8024_v16  ;;  %v8064_v16 = vunpack.i.h.bf16 %v12722_v54 }
 0x4f2   : > { %v5300_v17 = vsel %vm5298_vm12, %v5267_v19, %v8069_v44  ;;  %v5299_v58 = vsel %vm5298_vm12, %v5266_v42, %v8068_v9  ;;  %v5205_v52 = vsel %vm5201_vm11, %v5172_v51, %v8059_v35 }
 0x4f3   : > { %4003 = vst.msk [vmem:[#allocation2 + $0x190] sm:$0xff] %vm379_vm1, %v3971_v24  ;;  %v8072_v36 = vpop.permute.xlu0 %8071  ;;  %v5332_v55 = vsel %vm5331_vm13, %v5299_v58, %v8048_v28  ;;  %v5333_v60 = vsel %vm5331_vm13, %v5300_v17, %v8049_v14  ;;  %v5171_v17 = vsel %vm5168_vm10, %v5138_v47, %v8023_v41  ;;  %v8063_v58 = vunpack.i.l.bf16 %v12722_v54 }
 0x4f4   : > { %v8074_v59 = vunpack.i.h.bf16 %v8072_v36  ;;  %v8073_v33 = vunpack.i.l.bf16 %v8072_v36  ;;  %v12757_v30 = vpop.permute.xlu1 %8086  ;;  %v5204_v18 = vsel %vm5201_vm11, %v5171_v17, %v8058_v25  ;;  %v8043_v14 = vunpack.i.l.bf16 %v12689_v20  ;;  %v4057_v36 = vld [vmem:[#allocation2 + $0x168] sm:$0xff] }
 0x4f5   : > { %v3917_v8 = vpop.f32.mrb[48].mxu1  ;;  %8366 = vrot.lane.b32.xlu0 %v8355_v49, %s8813_s8  ;;  %8376 = vrot.lane.b32.xlu1 %v8375_v39, %s8815_s22  ;;  %v8370_v49 = vpack.i.bf16 %v4314_v11, %v4312_v1  ;;  %v4316_v1 = vrot.slane %v4058_v12, 1  ;;  %v4318_v11 = vrot.slane %v4059_v22, 1  ;;  %v5237_v41 = vsel %vm273_vm0, %v5205_v52, %v8044_v6 }
 0x4f6   : > { %v5364_v43 = vsel %vm3433_vm15, %v5332_v55, %v8073_v33  ;;  %v5365_v50 = vsel %vm3433_vm15, %v5333_v60, %v8074_v59  ;;  %v3918_v48 = vadd.f32 %v12466_v2, %v3917_v8  ;;  %v3919_v21 = vpop.f32.mrb[49].mxu1  ;;  %v8395_v33 = vpack.i.bf16 %v4058_v12, %v4057_v36 }
 0x4f7   : > { %v3920_v62 = vpop.f32.mrb[50].mxu1  ;;  %v12775_v44 = vpop.permute.xlu0 %8081  ;;  %v5396_v9 = vpack.c.bf16 %v5365_v50, %v5364_v43  ;;  %v5236_v54 = vsel %vm273_vm0, %v5204_v18, %v8043_v14  ;;  %v5269_v20 = vsel %vm1764_vm6, %v5237_v41, %v8064_v16  ;;  %v4315_v50 = vrot.slane %v4057_v36, 1 }
 0x4f8   : > { %v3972_v15 = vmax.f32 %v3918_v48, 0.0  ;;  %v3921_v42 = vadd.f32 %v12466_v2, %v3920_v62  ;;  %v12779_v19 = vpop.permute.xlu1 %8091  ;;  %v3922_v24 = vpop.f32.mrb[51].mxu1  ;;  %v5268_v60 = vsel %vm1764_vm6, %v5236_v54, %v8063_v58  ;;  %v4056_v48 = vld [vmem:[#allocation2 + $0x160] sm:$0xff]  ;;  %v8089_v21 = vunpack.i.h.bf16 %v12757_v30 }
 0x4f9   : > { %8371 = vrot.lane.b32.xlu0 %v8370_v49, %s8814_s18  ;;  %6726 = vmatprep.mubr.msk.bf16.mxu0 %vm5437_vm14, %v5396_v9  ;;  %v8088_v47 = vunpack.i.l.bf16 %v12757_v30  ;;  %v4317_v51 = vsel %vm854_vm2, %v4315_v50, %v4316_v1  ;;  %v4187_v17 = vrot.slane %v4056_v48, 7  ;;  %v4188_v52 = vrot.slane %v4057_v36, 7 }
 0x4fa   : > { %4004 = vst.msk [vmem:[#allocation2 + $0x1a8] sm:$0xff] %vm379_vm1, %v3972_v15  ;;  %v3973_v2 = vmax.f32 %v3921_v42, 0.0  ;;  %8381 = vrot.lane.b32.xlu1 %v8370_v49, %s8798_s9  ;;  %v4319_v15 = vsel %vm854_vm2, %v4316_v1, %v4318_v11  ;;  %v8039_v6 = vunpack.i.h.bf16 %v12691_v26  ;;  %v8053_v14 = vunpack.i.l.bf16 %v12720_v38  ;;  %v12835_v11 = vld [vmem:[%s13744_s5 + $0x1] ss:$0 sm:$0xff] }
 0x4fb   : > { %v12792_v28 = vpop.permute.xlu0 %8096  ;;  %v8410_v16 = vpack.i.bf16 %v4319_v15, %v4317_v51  ;;  %v8054_v1 = vunpack.i.h.bf16 %v12720_v38  ;;  %v4061_v15 = vld [vmem:[#allocation2 + $0x188] sm:$0xff] }
 0x4fc   : > { %4005 = vst.msk [vmem:[#allocation2 + $0x1b0] sm:$0xff] %vm379_vm1, %v3973_v2  ;;  %v8107_v59 = vpop.permute.xlu1 %8106  ;;  %v8038_v2 = vunpack.i.l.bf16 %v12691_v26 }
 0x4fd   : > { %v8109_v35 = vunpack.i.h.bf16 %v8107_v59  ;;  %v8108_v55 = vunpack.i.l.bf16 %v8107_v59  ;;  %8386 = vrot.lane.b32.xlu0 %v8375_v39, %s8812_s30  ;;  %v4190_v39 = vrot.slane %v4058_v12, 7  ;;  %v12829_v59 = vsel %vm725_vm3, %v4187_v17, %v4188_v52 }
 0x4fe   : > { %8396 = vrot.lane.b32.xlu1 %v8395_v33, %s8796_s28 }
 0x4ff   : > { %v5301_v8 = vsel %vm5298_vm12, %v5268_v60, %v8108_v55  ;;  %v5302_v25 = vsel %vm5298_vm12, %v5269_v20, %v8109_v35  ;;  %v12803_v43 = vpop.permute.xlu0 %8101  ;;  %v12820_v58 = vsel %vm725_vm3, %v4188_v52, %v4190_v39  ;;  %v4060_v35 = vld [vmem:[#allocation2 + $0x180] sm:$0xff]  ;;  %v12842_v55 = vld [vmem:[#allocation2 + $0x198] sm:$0xff]  ;;  %v8098_v60 = vunpack.i.l.bf16 %v12792_v28 }
 0x500   : > { %v8112_v46 = vpop.permute.xlu1 %8111  ;;  %v5334_v42 = vsel %vm5331_vm13, %v5301_v8, %v8088_v47  ;;  %v5335_v24 = vsel %vm5331_vm13, %v5302_v25, %v8089_v21  ;;  %v8415_v41 = vpack.i.bf16 %v12820_v58, %v12829_v59  ;;  %v5140_v8 = vsel %vm379_vm1, %v12498_v61, %v8038_v2  ;;  %v4062_v47 = vld [vmem:[#allocation2 + $0x190] sm:$0xff] }
 0x501   : > { %v8114_v62 = vunpack.i.h.bf16 %v8112_v46  ;;  %v8113_v9 = vunpack.i.l.bf16 %v8112_v46  ;;  %8391 = vrot.lane.b32.xlu0 %v8370_v49, %s8807_s10  ;;  %v8099_v25 = vunpack.i.h.bf16 %v12792_v28  ;;  %v5141_v46 = vsel %vm379_vm1, %v12501_v0, %v8039_v6 }
 0x502   : > { %8406 = vrot.lane.b32.xlu1 %v8395_v33, %s8813_s8  ;;  %v5173_v39 = vsel %vm5168_vm10, %v5140_v8, %v8053_v14  ;;  %v5174_v61 = vsel %vm5168_vm10, %v5141_v46, %v8054_v1  ;;  %v4195_v52 = vrot.slane %v4062_v47, 7  ;;  %v8103_v2 = vunpack.i.l.bf16 %v12803_v43 }
 0x503   : > { %v5366_v30 = vsel %vm3433_vm15, %v5334_v42, %v8113_v9  ;;  %v5367_v12 = vsel %vm3433_vm15, %v5335_v24, %v8114_v62  ;;  %v12815_v22 = vpop.permute.xlu0 %8116  ;;  %v4192_v62 = vrot.slane %v4060_v35, 7  ;;  %v4323_v9 = vrot.slane %v12842_v55, 1 }
 0x504   : > { %v5397_v18 = vpack.c.bf16 %v5367_v12, %v5366_v30  ;;  %v12817_v49 = vpop.permute.xlu1 %8121  ;;  %v8079_v42 = vunpack.i.h.bf16 %v12736_v5  ;;  %v8078_v24 = vunpack.i.l.bf16 %v12736_v5  ;;  %v5206_v0 = vsel %vm5201_vm11, %v5173_v39, %v8098_v60  ;;  %v4067_v5 = vld [vmem:[#allocation2 + $0x1b8] sm:$0xff] }
 0x505   : > { %8401 = vrot.lane.b32.xlu0 %v8395_v33, %s8805_s7  ;;  %v8083_v30 = vunpack.i.l.bf16 %v12775_v44  ;;  %v5207_v12 = vsel %vm5201_vm11, %v5174_v61, %v8099_v25  ;;  %v8084_v6 = vunpack.i.h.bf16 %v12775_v44  ;;  %v4193_v1 = vrot.slane %v4061_v15, 7 }
 0x506   : > { %8411 = vrot.lane.b32.xlu1 %v8410_v16, %s8814_s18  ;;  %6727 = vmatmul.mubr.msk.bf16.vlgmr.msra.gmra.mrb[32].mxu0 %vm5437_vm14, %v5397_v18  ;;  %v8104_v18 = vunpack.i.h.bf16 %v12803_v43  ;;  %v4321_v60 = vrot.slane %v4062_v47, 1 }
 0x507   : > { %v3925_v36 = vpop.f32.mrb[52].mxu1  ;;  %v12838_v26 = vpop.permute.xlu0 %8126  ;;  %v5239_v43 = vsel %vm273_vm0, %v5207_v12, %v8084_v6 }
 0x508   : > { %v3926_v33 = vadd.f32 %v12835_v11, %v3925_v36  ;;  %v3927_v54 = vpop.f32.mrb[53].mxu1  ;;  %v12845_v20 = vpop.permute.xlu1 %8136  ;;  %v8435_v36 = vpack.i.bf16 %v4062_v47, %v4061_v15 }
 0x509   : > { %v3928_v38 = vpop.f32.mrb[54].mxu1  ;;  %8416 = vrot.lane.b32.xlu0 %v8415_v41, %s8815_s22  ;;  %v5238_v54 = vsel %vm273_vm0, %v5206_v0, %v8083_v30  ;;  %v8128_v0 = vunpack.i.l.bf16 %v12838_v26 }
 0x50a   : > { %v3974_v50 = vmax.f32 %v3926_v33, 0.0  ;;  %v3929_v48 = vadd.f32 %v12835_v11, %v3928_v38  ;;  %v3930_v21 = vpop.f32.mrb[55].mxu1  ;;  %8426 = vrot.lane.b32.xlu1 %v8415_v41, %s8812_s30  ;;  %v4320_v33 = vrot.slane %v4061_v15, 1  ;;  %v8129_v15 = vunpack.i.h.bf16 %v12838_v26 }
 0x50b   : > { %v12859_v51 = vpop.permute.xlu0 %8131 }
 0x50c   : > { %4006 = vst.msk [vmem:[#allocation2 + $0x1c8] sm:$0xff] %vm379_vm1, %v3974_v50  ;;  %v3975_v28 = vmax.f32 %v3929_v48, 0.0  ;;  %v12864_v17 = vpop.permute.xlu1 %8141  ;;  %v5270_v50 = vsel %vm1764_vm6, %v5238_v54, %v8103_v2  ;;  %v5271_v48 = vsel %vm1764_vm6, %v5239_v43, %v8104_v18  ;;  %v4322_v12 = vsel %vm854_vm2, %v4320_v33, %v4321_v60 }
 0x50d   : > { %8421 = vrot.lane.b32.xlu0 %v8410_v16, %s8798_s9  ;;  %v8093_v54 = vunpack.i.l.bf16 %v12779_v19  ;;  %v8139_v33 = vunpack.i.h.bf16 %v12845_v20 }
 0x50e   : > { %4007 = vst.msk [vmem:[#allocation2 + $0x1d0] sm:$0xff] %vm379_vm1, %v3975_v28  ;;  %8431 = vrot.lane.b32.xlu1 %v8410_v16, %s8807_s10  ;;  %v12880_v16 = vsel %vm725_vm3, %v4193_v1, %v4195_v52  ;;  %v12890_v28 = vsel %vm725_vm3, %v4192_v62, %v4193_v1  ;;  %v4324_v62 = vsel %vm854_vm2, %v4321_v60, %v4323_v9  ;;  %v8094_v1 = vunpack.i.h.bf16 %v12779_v19 }
 0x50f   : > { %v3933_v14 = vpop.f32.mrb[56].mxu1  ;;  %v8147_v35 = vpop.permute.xlu0 %8146 }
 0x510   : > { %v3934_v41 = vadd.f32 %v12835_v11, %v3933_v14  ;;  %v3935_v55 = vpop.f32.mrb[57].mxu1  ;;  %v8149_v38 = vunpack.i.h.bf16 %v8147_v35  ;;  %v8148_v8 = vunpack.i.l.bf16 %v8147_v35  ;;  %v12877_v25 = vpop.permute.xlu1 %8156  ;;  %v8455_v14 = vpack.i.bf16 %v12880_v16, %v12890_v28 }
 0x511   : > { %v3936_v44 = vpop.f32.mrb[58].mxu1  ;;  %8436 = vrot.lane.b32.xlu0 %v8435_v36, %s8796_s28  ;;  %v8138_v35 = vunpack.i.l.bf16 %v12845_v20  ;;  %v5142_v20 = vsel %vm379_vm1, %v12537_v10, %v8078_v24  ;;  %v8144_v24 = vunpack.i.h.bf16 %v12864_v17 }
 0x512   : > { %v3976_v21 = vmax.f32 %v3934_v41, 0.0  ;;  %v3937_v46 = vadd.f32 %v12835_v11, %v3936_v44  ;;  %v3938_v47 = vpop.f32.mrb[59].mxu1  ;;  %v5303_v39 = vsel %vm5298_vm12, %v5270_v50, %v8148_v8  ;;  %v5304_v61 = vsel %vm5298_vm12, %v5271_v48, %v8149_v38  ;;  %8441 = vrot.lane.b32.xlu1 %v8435_v36, %s8805_s7 }
 0x513   : > { %v8152_v30 = vpop.permute.xlu0 %8151  ;;  %v5336_v26 = vsel %vm5331_vm13, %v5303_v39, %v8128_v0  ;;  %v5337_v41 = vsel %vm5331_vm13, %v5304_v61, %v8129_v15  ;;  %v8450_v8 = vpack.i.bf16 %v4324_v62, %v4322_v12  ;;  %v8143_v15 = vunpack.i.l.bf16 %v12864_v17  ;;  %v4065_v12 = vld [vmem:[#allocation2 + $0x1a8] sm:$0xff] }
 0x514   : > { %4008 = vst.msk [vmem:[#allocation2 + $0x1e8] sm:$0xff] %vm379_vm1, %v3976_v21  ;;  %v3977_v52 = vmax.f32 %v3937_v46, 0.0  ;;  %v8154_v18 = vunpack.i.h.bf16 %v8152_v30  ;;  %v8153_v2 = vunpack.i.l.bf16 %v8152_v30  ;;  %v12896_v6 = vpop.permute.xlu1 %8166  ;;  %v5175_v21 = vsel %vm5168_vm10, %v5142_v20, %v8093_v54 }
 0x515   : > { %8446 = vrot.lane.b32.xlu0 %v8435_v36, %s8813_s8  ;;  %v5143_v36 = vsel %vm379_vm1, %v12528_v45, %v8079_v42  ;;  %v4066_v42 = vld [vmem:[#allocation2 + $0x1b0] sm:$0xff]  ;;  %v5208_v61 = vsel %vm5201_vm11, %v5175_v21, %v8138_v35  ;;  %v8124_v0 = vunpack.i.h.bf16 %v12817_v49 }
 0x516   : > { %4009 = vst.msk [vmem:[#allocation2 + $0x1f0] sm:$0xff] %vm379_vm1, %v3977_v52  ;;  %v5368_v55 = vsel %vm3433_vm15, %v5336_v26, %v8153_v2  ;;  %v5369_v9 = vsel %vm3433_vm15, %v5337_v41, %v8154_v18  ;;  %8456 = vrot.lane.b32.xlu1 %v8455_v14, %s8815_s22  ;;  %v5176_v46 = vsel %vm5168_vm10, %v5143_v36, %v8094_v1  ;;  %v4326_v62 = vrot.slane %v4066_v42, 1 }
 0x517   : > { %v3941_v60 = vpop.f32.mrb[60].mxu1  ;;  %v12913_v43 = vpop.permute.xlu0 %8161  ;;  %v5398_v44 = vpack.c.bf16 %v5369_v9, %v5368_v55  ;;  %v5209_v10 = vsel %vm5201_vm11, %v5176_v46, %v8139_v33  ;;  %v8475_v2 = vpack.i.bf16 %v4066_v42, %v4065_v12  ;;  %v4328_v1 = vrot.slane %v4067_v5, 1 }
 0x518   : > { %v3942_v19 = vadd.f32 %v12835_v11, %v3941_v60  ;;  %v3943_v38 = vpop.f32.mrb[61].mxu1  ;;  %v12923_v50 = vpop.permute.xlu1 %8171  ;;  %v5241_v17 = vsel %vm273_vm0, %v5209_v10, %v8124_v0  ;;  %v4325_v60 = vrot.slane %v4065_v12, 1  ;;  %v4198_v5 = vrot.slane %v4065_v12, 7 }
 0x519   : > { %v3944_v48 = vpop.f32.mrb[62].mxu1  ;;  %8451 = vrot.lane.b32.xlu0 %v8450_v8, %s8814_s18  ;;  %6730 = vmatprep.mubr.msk.bf16.mxu0 %vm5437_vm14, %v5398_v44  ;;  %v5273_v33 = vsel %vm1764_vm6, %v5241_v17, %v8144_v24  ;;  %v8169_v38 = vunpack.i.h.bf16 %v12896_v6  ;;  %v8168_v44 = vunpack.i.l.bf16 %v12896_v6  ;;  %v4329_v46 = vsel %vm854_vm2, %v4326_v62, %v4328_v1 }
 0x51a   : > { %v3978_v47 = vmax.f32 %v3942_v19, 0.0  ;;  %v3945_v39 = vadd.f32 %v12835_v11, %v3944_v48  ;;  %v3946_v45 = vpop.f32.mrb[63].mxu1  ;;  %8461 = vrot.lane.b32.xlu1 %v8450_v8, %s8798_s9  ;;  %v8123_v11 = vunpack.i.l.bf16 %v12817_v49  ;;  %v4064_v19 = vld [vmem:[#allocation2 + $0x1a0] sm:$0xff]  ;;  %v4327_v21 = vsel %vm854_vm2, %v4325_v60, %v4326_v62 }
 0x51b   : > { %v12938_v30 = vpop.permute.xlu0 %8176  ;;  %v4197_v45 = vrot.slane %v4064_v19, 7  ;;  %v8134_v62 = vunpack.i.h.bf16 %v12859_v51  ;;  %v4069_v19 = vld [vmem:[#allocation2 + $0x1c8] sm:$0xff] }
 0x51c   : > { %4010 = vst.msk [vmem:[#allocation2 + $0x208] sm:$0xff] %vm379_vm1, %v3978_v47  ;;  %v3979_v52 = vmax.f32 %v3945_v39, 0.0  ;;  %v8187_v18 = vpop.permute.xlu1 %8186  ;;  %v5240_v54 = vsel %vm273_vm0, %v5208_v61, %v8123_v11  ;;  %v8119_v11 = vunpack.i.h.bf16 %v12815_v22  ;;  %v8179_v17 = vunpack.i.h.bf16 %v12938_v30 }
 0x51d   : > { %v8189_v26 = vunpack.i.h.bf16 %v8187_v18  ;;  %v8188_v41 = vunpack.i.l.bf16 %v8187_v18  ;;  %8466 = vrot.lane.b32.xlu0 %v8455_v14, %s8812_s30  ;;  %v5272_v49 = vsel %vm1764_vm6, %v5240_v54, %v8143_v15  ;;  %v4200_v14 = vrot.slane %v4066_v42, 7  ;;  %v4068_v54 = vld [vmem:[#allocation2 + $0x1c0] sm:$0xff] }
 0x51e   : > { %4011 = vst.msk [vmem:[#allocation2 + $0x210] sm:$0xff] %vm379_vm1, %v3979_v52  ;;  %8476 = vrot.lane.b32.xlu1 %v8475_v2, %s8796_s28  ;;  %v12972_v0 = vsel %vm725_vm3, %v4197_v45, %v4198_v5  ;;  %v8118_v52 = vunpack.i.l.bf16 %v12815_v22  ;;  %v5145_v22 = vsel %vm379_vm1, %v12549_v34, %v8119_v11 }
 0x51f   : > { %v5305_v35 = vsel %vm5298_vm12, %v5272_v49, %v8188_v41  ;;  %v5306_v55 = vsel %vm5298_vm12, %v5273_v33, %v8189_v26  ;;  %v12949_v9 = vpop.permute.xlu0 %8181  ;;  %v12966_v15 = vsel %vm725_vm3, %v4198_v5, %v4200_v14  ;;  %v8178_v26 = vunpack.i.l.bf16 %v12938_v30  ;;  %v4070_v41 = vld [vmem:[#allocation2 + $0x1d0] sm:$0xff] }
 0x520   : > { %v8192_v36 = vpop.permute.xlu1 %8191  ;;  %v5338_v47 = vsel %vm5331_vm13, %v5305_v35, %v8168_v44  ;;  %v5339_v39 = vsel %vm5331_vm13, %v5306_v55, %v8169_v38  ;;  %v8495_v18 = vpack.i.bf16 %v12966_v15, %v12972_v0  ;;  %v5144_v49 = vsel %vm379_vm1, %v12554_v29, %v8118_v52  ;;  %v4071_v35 = vld [vmem:[#allocation2 + $0x1d8] sm:$0xff] }
 0x521   : > { %v8194_v20 = vunpack.i.h.bf16 %v8192_v36  ;;  %v8193_v48 = vunpack.i.l.bf16 %v8192_v36  ;;  %8471 = vrot.lane.b32.xlu0 %v8450_v8, %s8807_s10  ;;  %v8490_v8 = vpack.i.bf16 %v4329_v46, %v4327_v21  ;;  %v5178_v60 = vsel %vm5168_vm10, %v5145_v22, %v8134_v62 }
 0x522   : > { %8486 = vrot.lane.b32.xlu1 %v8475_v2, %s8813_s8  ;;  %v4205_v38 = vrot.slane %v4070_v41, 7  ;;  %v5211_v36 = vsel %vm5201_vm11, %v5178_v60, %v8179_v17  ;;  %v8184_v34 = vunpack.i.h.bf16 %v12949_v9  ;;  %v8183_v29 = vunpack.i.l.bf16 %v12949_v9 }
 0x523   : > { %v5370_v6 = vsel %vm3433_vm15, %v5338_v47, %v8193_v48  ;;  %v5371_v42 = vsel %vm3433_vm15, %v5339_v39, %v8194_v20  ;;  %v12961_v61 = vpop.permute.xlu0 %8196  ;;  %v8159_v14 = vunpack.i.h.bf16 %v12877_v25  ;;  %v8164_v20 = vunpack.i.h.bf16 %v12913_v43 }
 0x524   : > { %v12963_v10 = vpop.permute.xlu1 %8201  ;;  %v5399_v24 = vpack.c.bf16 %v5371_v42, %v5370_v6  ;;  %v8163_v48 = vunpack.i.l.bf16 %v12913_v43  ;;  %v4333_v21 = vrot.slane %v4071_v35, 1  ;;  %v8515_v47 = vpack.i.bf16 %v4070_v41, %v4069_v19 }
 0x525   : > { %8481 = vrot.lane.b32.xlu0 %v8475_v2, %s8805_s7  ;;  %v8133_v2 = vunpack.i.l.bf16 %v12859_v51  ;;  %v4202_v51 = vrot.slane %v4068_v54, 7  ;;  %v4203_v39 = vrot.slane %v4069_v19, 7  ;;  %v4331_v45 = vrot.slane %v4070_v41, 1 }
 0x526   : > { %8491 = vrot.lane.b32.xlu1 %v8490_v8, %s8814_s18  ;;  %6731 = vmatmul.mubr.msk.bf16.gmra.mrb[36].mxu0 %vm5437_vm14, %v5399_v24  ;;  %v5243_v6 = vsel %vm273_vm0, %v5211_v36, %v8164_v20 }
 0x527   : > { %v12976_v12 = vpop.permute.xlu0 %8206  ;;  %v5177_v55 = vsel %vm5168_vm10, %v5144_v49, %v8133_v2  ;;  %v5275_v52 = vsel %vm1764_vm6, %v5243_v6, %v8184_v34  ;;  %v13015_v43 = vsel %vm725_vm3, %v4203_v39, %v4205_v38  ;;  %v13024_v41 = vsel %vm725_vm3, %v4202_v51, %v4203_v39 }
 0x528   : > { %v12982_v1 = vpop.permute.xlu1 %8216  ;;  %v5210_v44 = vsel %vm5201_vm11, %v5177_v55, %v8178_v26  ;;  %v8209_v54 = vunpack.i.h.bf16 %v12976_v12  ;;  %v8208_v17 = vunpack.i.l.bf16 %v12976_v12  ;;  %v4334_v60 = vsel %vm854_vm2, %v4331_v45, %v4333_v21 }
 0x529   : > { %8496 = vrot.lane.b32.xlu0 %v8495_v18, %s8815_s22  ;;  %v5242_v5 = vsel %vm273_vm0, %v5210_v44, %v8163_v48  ;;  %v8173_v38 = vunpack.i.l.bf16 %v12923_v50  ;;  %v8219_v44 = vunpack.i.h.bf16 %v12982_v1  ;;  %v8218_v36 = vunpack.i.l.bf16 %v12982_v1 }
 0x52a   : > { %8506 = vrot.lane.b32.xlu1 %v8495_v18, %s8812_s30  ;;  %v5274_v11 = vsel %vm1764_vm6, %v5242_v5, %v8183_v29  ;;  %v8158_v18 = vunpack.i.l.bf16 %v12877_v25  ;;  %v8535_v25 = vpack.i.bf16 %v13015_v43, %v13024_v41  ;;  %v5147_v21 = vsel %vm379_vm1, %v12577_v56, %v8159_v14  ;;  %v4075_v5 = vld [vmem:[#allocation2 + $0x1f8] sm:$0xff] }
 0x52b   : > { %v12992_v33 = vpop.permute.xlu0 %8211  ;;  %v8204_v14 = vunpack.i.h.bf16 %v12963_v10 }
 0x52c   : > { %v12996_v30 = vpop.permute.xlu1 %8221 }
 0x52d   : > { %8501 = vrot.lane.b32.xlu0 %v8490_v8, %s8798_s9  ;;  %v8224_v56 = vunpack.i.h.bf16 %v12996_v30 }
 0x52e   : > { %8511 = vrot.lane.b32.xlu1 %v8490_v8, %s8807_s10  ;;  %v4330_v8 = vrot.slane %v4069_v19, 1  ;;  %v8174_v19 = vunpack.i.h.bf16 %v12923_v50 }
 0x52f   : > { %v8227_v46 = vpop.permute.xlu0 %8226 }
 0x530   : > { %v8229_v9 = vunpack.i.h.bf16 %v8227_v46  ;;  %v8228_v42 = vunpack.i.l.bf16 %v8227_v46  ;;  %v13009_v24 = vpop.permute.xlu1 %8236  ;;  %v4332_v22 = vsel %vm854_vm2, %v4330_v8, %v4331_v45  ;;  %v5146_v46 = vsel %vm379_vm1, %v12583_v40, %v8158_v18  ;;  %v4074_v45 = vld [vmem:[#allocation2 + $0x1f0] sm:$0xff] }
 0x531   : > { %8516 = vrot.lane.b32.xlu0 %v8515_v47, %s8796_s28  ;;  %v8530_v48 = vpack.i.bf16 %v4334_v60, %v4332_v22  ;;  %v5179_v1 = vsel %vm5168_vm10, %v5146_v46, %v8173_v38  ;;  %v5180_v39 = vsel %vm5168_vm10, %v5147_v21, %v8174_v19  ;;  %v8223_v40 = vunpack.i.l.bf16 %v12996_v30  ;;  %v4072_v38 = vld [vmem:[#allocation2 + $0x1e0] sm:$0xff] }
 0x532   : > { %v5307_v62 = vsel %vm5298_vm12, %v5274_v11, %v8228_v42  ;;  %v5308_v2 = vsel %vm5298_vm12, %v5275_v52, %v8229_v9  ;;  %8521 = vrot.lane.b32.xlu1 %v8515_v47, %s8805_s7  ;;  %v5212_v6 = vsel %vm5201_vm11, %v5179_v1, %v8218_v36  ;;  %v5213_v9 = vsel %vm5201_vm11, %v5180_v39, %v8219_v44  ;;  %v4073_v52 = vld [vmem:[#allocation2 + $0x1e8] sm:$0xff] }
 0x533   : > { %v8232_v26 = vpop.permute.xlu0 %8231  ;;  %v5340_v12 = vsel %vm5331_vm13, %v5307_v62, %v8208_v17  ;;  %v5341_v51 = vsel %vm5331_vm13, %v5308_v2, %v8209_v54  ;;  %v8203_v42 = vunpack.i.l.bf16 %v12963_v10  ;;  %v8555_v18 = vpack.i.bf16 %v4074_v45, %v4073_v52 }
 0x534   : > { %v8234_v49 = vunpack.i.h.bf16 %v8232_v26  ;;  %v8233_v35 = vunpack.i.l.bf16 %v8232_v26  ;;  %v13027_v55 = vpop.permute.xlu1 %8246  ;;  %v4336_v62 = vrot.slane %v4074_v45, 1  ;;  %v4338_v2 = vrot.slane %v4075_v5, 1 }
 0x535   : > { %8526 = vrot.lane.b32.xlu0 %v8515_v47, %s8813_s8  ;;  %v5244_v54 = vsel %vm273_vm0, %v5212_v6, %v8203_v42  ;;  %v5245_v17 = vsel %vm273_vm0, %v5213_v9, %v8204_v14  ;;  %v4335_v19 = vrot.slane %v4073_v52, 1  ;;  %v4207_v1 = vrot.slane %v4072_v38, 7  ;;  %v4076_v14 = vld [vmem:[#allocation2 + $0x200] sm:$0xff] }
 0x536   : > { %v5372_v34 = vsel %vm3433_vm15, %v5340_v12, %v8233_v35  ;;  %v5373_v29 = vsel %vm3433_vm15, %v5341_v51, %v8234_v49  ;;  %8536 = vrot.lane.b32.xlu1 %v8535_v25, %s8815_s22  ;;  %v5276_v30 = vsel %vm1764_vm6, %v5244_v54, %v8223_v40  ;;  %v5277_v49 = vsel %vm1764_vm6, %v5245_v17, %v8224_v56  ;;  %v4083_v54 = vld [vmem:[#allocation2 + $0x238] sm:$0xff] }
 0x537   : > { %v13042_v20 = vpop.permute.xlu0 %8241  ;;  %v5400_v50 = vpack.c.bf16 %v5373_v29, %v5372_v34  ;;  %v8249_v12 = vunpack.i.h.bf16 %v13027_v55  ;;  %v8248_v51 = vunpack.i.l.bf16 %v13027_v55  ;;  %v4337_v29 = vsel %vm854_vm2, %v4335_v19, %v4336_v62  ;;  %v8785_v19 = vld [vmem:[#allocation2 + $0x228] sm:$0xff] }
 0x538   : > { %v13048_v47 = vpop.permute.xlu1 %8251  ;;  %v4208_v39 = vrot.slane %v4073_v52, 7  ;;  %v8199_v42 = vunpack.i.h.bf16 %v12961_v61  ;;  %v8198_v52 = vunpack.i.l.bf16 %v12961_v61  ;;  %v8213_v17 = vunpack.i.l.bf16 %v12992_v33  ;;  %v4077_v61 = vld [vmem:[#allocation2 + $0x208] sm:$0xff] }
 0x539   : > { %8531 = vrot.lane.b32.xlu0 %v8530_v48, %s8814_s18  ;;  %6734 = vmatprep.mubr.msk.bf16.mxu0 %vm5437_vm14, %v5400_v50  ;;  %v4339_v50 = vsel %vm854_vm2, %v4336_v62, %v4338_v2  ;;  %v4079_v2 = vld [vmem:[#allocation2 + $0x218] sm:$0xff]  ;;  %v4363_v38 = vrot.slane %v8785_v19, 1 }
 0x53a   : > { %8541 = vrot.lane.b32.xlu1 %v8530_v48, %s8798_s9  ;;  %v13094_v40 = vsel %vm725_vm3, %v4207_v1, %v4208_v39 }
 0x53b   : > { %v13061_v11 = vpop.permute.xlu0 %8256 }
 0x53c   : > { %v8267_v8 = vpop.permute.xlu1 %8266 }
 0x53d   : > { %v8269_v26 = vunpack.i.h.bf16 %v8267_v8  ;;  %v8268_v22 = vunpack.i.l.bf16 %v8267_v8  ;;  %8546 = vrot.lane.b32.xlu0 %v8535_v25, %s8812_s30  ;;  %v4210_v25 = vrot.slane %v4074_v45, 7 }
 0x53e   : > { %8556 = vrot.lane.b32.xlu1 %v8555_v18, %s8796_s28 }
 0x53f   : > { %v5309_v10 = vsel %vm5298_vm12, %v5276_v30, %v8268_v22  ;;  %v5310_v35 = vsel %vm5298_vm12, %v5277_v49, %v8269_v26  ;;  %v13071_v60 = vpop.permute.xlu0 %8261  ;;  %v13088_v56 = vsel %vm725_vm3, %v4208_v39, %v4210_v25  ;;  %v4078_v22 = vld [vmem:[#allocation2 + $0x210] sm:$0xff]  ;;  %v8259_v30 = vunpack.i.h.bf16 %v13061_v11 }
 0x540   : > { %v8272_v44 = vpop.permute.xlu1 %8271  ;;  %v5342_v21 = vsel %vm5331_vm13, %v5309_v10, %v8248_v51  ;;  %v5343_v46 = vsel %vm5331_vm13, %v5310_v35, %v8249_v12  ;;  %v8575_v62 = vpack.i.bf16 %v13088_v56, %v13094_v40  ;;  %v8258_v49 = vunpack.i.l.bf16 %v13061_v11  ;;  %v8786_v12 = vld [vmem:[#allocation2 + $0x230] sm:$0xff] }
 0x541   : > { %v8274_v36 = vunpack.i.h.bf16 %v8272_v44  ;;  %v8273_v34 = vunpack.i.l.bf16 %v8272_v44  ;;  %8551 = vrot.lane.b32.xlu0 %v8530_v48, %s8807_s10  ;;  %v8570_v48 = vpack.i.bf16 %v4339_v50, %v4337_v29  ;;  %v4343_v10 = vrot.slane %v4076_v14, 7 }
 0x542   : > { %8566 = vrot.lane.b32.xlu1 %v8555_v18, %s8813_s8  ;;  %v4352_v35 = vrot.slane %v4079_v2, 1  ;;  %v4364_v51 = vrot.slane %v8786_v12, 1  ;;  %v4366_v44 = vrot.slane %v4083_v54, 1  ;;  %v5148_v25 = vsel %vm379_vm1, %v12598_v23, %v8198_v52 }
 0x543   : > { %v5374_v55 = vsel %vm3433_vm15, %v5342_v21, %v8273_v34  ;;  %v5375_v45 = vsel %vm3433_vm15, %v5343_v46, %v8274_v36  ;;  %v13083_v5 = vpop.permute.xlu0 %8276  ;;  %v4346_v11 = vrot.slane %v4078_v22, 7  ;;  %v5181_v34 = vsel %vm5168_vm10, %v5148_v25, %v8213_v17 }
 0x544   : > { %v13085_v6 = vpop.permute.xlu1 %8281  ;;  %v5401_v9 = vpack.c.bf16 %v5375_v45, %v5374_v55  ;;  %v4344_v21 = vrot.slane %v4077_v61, 7  ;;  %v5214_v46 = vsel %vm5201_vm11, %v5181_v34, %v8258_v49  ;;  %v8264_v39 = vunpack.i.h.bf16 %v13071_v60 }
 0x545   : > { %8561 = vrot.lane.b32.xlu0 %v8555_v18, %s8805_s7  ;;  %v8214_v18 = vunpack.i.h.bf16 %v12992_v33  ;;  %v5149_v33 = vsel %vm379_vm1, %v12593_v63, %v8199_v42  ;;  %v8263_v63 = vunpack.i.l.bf16 %v13071_v60  ;;  %v8244_v23 = vunpack.i.h.bf16 %v13042_v20 }
 0x546   : > { %8571 = vrot.lane.b32.xlu1 %v8570_v48, %s8814_s18  ;;  %6735 = vmatmul.mubr.msk.bf16.gmra.mrb[40].mxu0 %vm5437_vm14, %v5401_v9  ;;  %v8243_v55 = vunpack.i.l.bf16 %v13042_v20  ;;  %v13129_v45 = vsel %vm854_vm2, %v4363_v38, %v4364_v51  ;;  %v13132_v9 = vsel %vm854_vm2, %v4364_v51, %v4366_v44  ;;  %v8600_v42 = vpack.i.bf16 %v4078_v22, %v4077_v61 }
 0x547   : > { %v13098_v8 = vpop.permute.xlu0 %8286  ;;  %v5182_v29 = vsel %vm5168_vm10, %v5149_v33, %v8214_v18  ;;  %v4347_v52 = vsel %vm725_vm3, %v4344_v21, %v4346_v11  ;;  %v4349_v49 = vrot.slane %v4077_v61, 1  ;;  %v8239_v11 = vunpack.i.h.bf16 %v13009_v24 }
 0x548   : > { %v13104_v26 = vpop.permute.xlu1 %8296  ;;  %v5215_v1 = vsel %vm5201_vm11, %v5182_v29, %v8259_v30  ;;  %v5246_v60 = vsel %vm273_vm0, %v5214_v46, %v8243_v55  ;;  %v4345_v30 = vsel %vm725_vm3, %v4343_v10, %v4344_v21  ;;  %v8289_v12 = vunpack.i.h.bf16 %v13098_v8 }
 0x549   : > { %8576 = vrot.lane.b32.xlu0 %v8575_v62, %s8815_s22  ;;  %v5247_v2 = vsel %vm273_vm0, %v5215_v1, %v8244_v23  ;;  %v8615_v38 = vpack.i.bf16 %v4347_v52, %v4345_v30  ;;  %v8288_v51 = vunpack.i.l.bf16 %v13098_v8  ;;  %v8238_v61 = vunpack.i.l.bf16 %v13009_v24 }
 0x54a   : > { %8586 = vrot.lane.b32.xlu1 %v8575_v62, %s8812_s30  ;;  %v4350_v62 = vrot.slane %v4078_v22, 1  ;;  %v5279_v17 = vsel %vm1764_vm6, %v5247_v2, %v8264_v39  ;;  %v8254_v21 = vunpack.i.h.bf16 %v13048_v47  ;;  %v8253_v46 = vunpack.i.l.bf16 %v13048_v47 }
 0x54b   : > { %v13114_v36 = vpop.permute.xlu0 %8291  ;;  %v8299_v39 = vunpack.i.h.bf16 %v13104_v26 }
 0x54c   : > { %v13118_v50 = vpop.permute.xlu1 %8301  ;;  %v4351_v33 = vsel %vm854_vm2, %v4349_v49, %v4350_v62  ;;  %v4353_v25 = vsel %vm854_vm2, %v4350_v62, %v4352_v35  ;;  %v8298_v35 = vunpack.i.l.bf16 %v13104_v26 }
 0x54d   : > { %8581 = vrot.lane.b32.xlu0 %v8570_v48, %s8798_s9  ;;  %v8620_v55 = vpack.i.bf16 %v4353_v25, %v4351_v33 }
 0x54e   : > { %8591 = vrot.lane.b32.xlu1 %v8570_v48, %s8807_s10  ;;  %v5278_v48 = vsel %vm1764_vm6, %v5246_v60, %v8263_v63  ;;  %v8625_v60 = vpack.i.bf16 %v13132_v9, %v13129_v45 }
 0x54f   : > { %v8307_v14 = vpop.permute.xlu0 %8306 }
 0x550   : > { %v8309_v54 = vunpack.i.h.bf16 %v8307_v14  ;;  %v8308_v18 = vunpack.i.l.bf16 %v8307_v14  ;;  %v13137_v20 = vpop.permute.xlu1 %8316  ;;  %v5151_v14 = vsel %vm379_vm1, %v12623_v7, %v8239_v11 }
 0x551   : > { %8601 = vrot.lane.b32.xlu0 %v8600_v42, %s8813_s8  ;;  %v5184_v62 = vsel %vm5168_vm10, %v5151_v14, %v8254_v21 }
 0x552   : > { %v5311_v19 = vsel %vm5298_vm12, %v5278_v48, %v8308_v18  ;;  %v5312_v22 = vsel %vm5298_vm12, %v5279_v17, %v8309_v54  ;;  %8596 = vrot.lane.b32.xlu1 %v8600_v42, %s8805_s7  ;;  %v5150_v42 = vsel %vm379_vm1, %v12628_v53, %v8238_v61  ;;  %v5217_v7 = vsel %vm5201_vm11, %v5184_v62, %v8299_v39  ;;  %s8816_s7 = smov 120  }
 0x553   : > { %v8312_v44 = vpop.permute.xlu0 %8311  ;;  %v5344_v1 = vsel %vm5331_vm13, %v5311_v19, %v8288_v51  ;;  %v5345_v8 = vsel %vm5331_vm13, %v5312_v22, %v8289_v12  ;;  %v5183_v26 = vsel %vm5168_vm10, %v5150_v42, %v8253_v46  ;;  %v8304_v54 = vunpack.i.h.bf16 %v13118_v50 }
 0x554   : > { %v8314_v10 = vunpack.i.h.bf16 %v8312_v44  ;;  %v8313_v34 = vunpack.i.l.bf16 %v8312_v44  ;;  %v8327_v29 = vpop.permute.xlu1 %8326  ;;  %v5216_v2 = vsel %vm5201_vm11, %v5183_v26, %v8298_v35  ;;  %v8303_v53 = vunpack.i.l.bf16 %v13118_v50 }
 0x555   : > { %8616 = vrot.lane.b32.xlu0 %v8615_v38, %s8812_s30  ;;  %v8284_v18 = vunpack.i.h.bf16 %v13085_v6  ;;  %v8283_v48 = vunpack.i.l.bf16 %v13085_v6  ;;  %v8329_v6 = vunpack.i.h.bf16 %v8327_v29  ;;  %v8328_v44 = vunpack.i.l.bf16 %v8327_v29 }
 0x556   : > { %v5376_v63 = vsel %vm3433_vm15, %v5344_v1, %v8313_v34  ;;  %v5377_v24 = vsel %vm3433_vm15, %v5345_v8, %v8314_v10  ;;  %8606 = vrot.lane.b32.xlu1 %v8615_v38, %s8815_s22  ;;  %v8279_v29 = vunpack.i.h.bf16 %v13083_v5  ;;  %v8278_v39 = vunpack.i.l.bf16 %v13083_v5 }
 0x557   : > { %v13162_v23 = vpop.permute.xlu0 %8321  ;;  %v5402_v47 = vpack.c.bf16 %v5377_v24, %v5376_v63  ;;  %v5248_v49 = vsel %vm273_vm0, %v5216_v2, %v8283_v48  ;;  %v5249_v45 = vsel %vm273_vm0, %v5217_v7, %v8284_v18  ;;  %v8294_v63 = vunpack.i.h.bf16 %v13114_v36 }
 0x558   : > { %v13168_v52 = vpop.permute.xlu1 %8331  ;;  %v5280_v22 = vsel %vm1764_vm6, %v5248_v49, %v8303_v53  ;;  %v5281_v38 = vsel %vm1764_vm6, %v5249_v45, %v8304_v54  ;;  %v8293_v24 = vunpack.i.l.bf16 %v13114_v36  ;;  %v5153_v42 = vsel %vm379_vm1, %v12644_v27, %v8279_v29 }
 0x559   : > { %8621 = vrot.lane.b32.xlu0 %v8620_v55, %s8807_s10  ;;  %6738 = vmatprep.mubr.msk.bf16.mxu0 %vm5437_vm14, %v5402_v47  ;;  %v5152_v26 = vsel %vm379_vm1, %v12651_v31, %v8278_v39  ;;  %v5186_v5 = vsel %vm5168_vm10, %v5153_v42, %v8294_v63  ;;  %v8324_v18 = vunpack.i.h.bf16 %v13162_v23  ;;  %v8323_v27 = vunpack.i.l.bf16 %v13162_v23 }
 0x55a   : > { %8611 = vrot.lane.b32.xlu1 %v8620_v55, %s8798_s9 }
 0x55b   : > { %v8337_v17 = vpop.permute.xlu0 %8336 }
 0x55c   : > { %v8347_v30 = vpop.permute.xlu1 %8346  ;;  %v8339_v47 = vunpack.i.h.bf16 %v8337_v17  ;;  %v8338_v14 = vunpack.i.l.bf16 %v8337_v17 }
 0x55d   : > { %v8349_v9 = vunpack.i.h.bf16 %v8347_v30  ;;  %v8348_v19 = vunpack.i.l.bf16 %v8347_v30 }
 0x55e   : > { %8626 = vrot.lane.b32.xlu1 %v8625_v60, %s8807_s10  ;;  %v5185_v60 = vsel %vm5168_vm10, %v5152_v26, %v8293_v24  ;;  %v5219_v36 = vsel %vm5201_vm11, %v5186_v5, %v8339_v47 }
 0x55f   : > { %v5313_v50 = vsel %vm5298_vm12, %v5280_v22, %v8348_v19  ;;  %v5314_v12 = vsel %vm5298_vm12, %v5281_v38, %v8349_v9  ;;  %v8342_v51 = vpop.permute.xlu0 %8341  ;;  %v5218_v7 = vsel %vm5201_vm11, %v5185_v60, %v8338_v14  ;;  %v5251_v17 = vsel %vm273_vm0, %v5219_v36, %v8324_v18 }
 0x560   : > { %v8352_v33 = vpop.permute.xlu1 %8351  ;;  %v5346_v61 = vsel %vm5331_vm13, %v5313_v50, %v8328_v44  ;;  %v5347_v10 = vsel %vm5331_vm13, %v5314_v12, %v8329_v6  ;;  %v8344_v54 = vunpack.i.h.bf16 %v8342_v51  ;;  %v8343_v53 = vunpack.i.l.bf16 %v8342_v51 }
 0x561   : > { %v8354_v25 = vunpack.i.h.bf16 %v8352_v33  ;;  %v8353_v11 = vunpack.i.l.bf16 %v8352_v33  ;;  %v5250_v31 = vsel %vm273_vm0, %v5218_v7, %v8323_v27  ;;  %v8319_v51 = vunpack.i.h.bf16 %v13137_v20 }
 0x562   : > { %v5282_v9 = vsel %vm1764_vm6, %v5250_v31, %v8343_v53  ;;  %v5283_v19 = vsel %vm1764_vm6, %v5251_v17, %v8344_v54  ;;  %v8318_v6 = vunpack.i.l.bf16 %v13137_v20 }
 0x563   : > { %v5378_v34 = vsel %vm3433_vm15, %v5346_v61, %v8353_v11  ;;  %v5379_v21 = vsel %vm3433_vm15, %v5347_v10, %v8354_v25  ;;  %v13194_v46 = vpop.permute.xlu0 %8356  ;;  %v8334_v11 = vunpack.i.h.bf16 %v13168_v52  ;;  %v8333_v61 = vunpack.i.l.bf16 %v13168_v52 }
 0x564   : > { %v13196_v1 = vpop.permute.xlu1 %8361  ;;  %v5403_v8 = vpack.c.bf16 %v5379_v21, %v5378_v34  ;;  %v5155_v20 = vsel %vm379_vm1, %v12696_v13, %v8319_v51  ;;  %v5154_v24 = vsel %vm379_vm1, %v12704_v57, %v8318_v6 }
 0x565   : > { %v5187_v52 = vsel %vm5168_vm10, %v5154_v24, %v8333_v61  ;;  %v5188_v14 = vsel %vm5168_vm10, %v5155_v20, %v8334_v11  ;;  %v8364_v5 = vunpack.i.h.bf16 %v13196_v1  ;;  %v8363_v13 = vunpack.i.l.bf16 %v13196_v1 }
 0x566   : > { %6739 = vmatmul.mubr.msk.bf16.gmra.mrb[44].mxu0 %vm5437_vm14, %v5403_v8 }
 0x567   : > { %v8367_v35 = vpop.permute.xlu0 %8366 }
 0x568   : > { %v8377_v55 = vpop.permute.xlu1 %8376  ;;  %v8369_v50 = vunpack.i.h.bf16 %v8367_v35  ;;  %v8368_v12 = vunpack.i.l.bf16 %v8367_v35 }
 0x569   : > { %v8379_v21 = vunpack.i.h.bf16 %v8377_v55  ;;  %v8378_v8 = vunpack.i.l.bf16 %v8377_v55 }
 0x56b   : > { %v13207_v62 = vpop.permute.xlu0 %8371  ;;  %v5220_v55 = vsel %vm5201_vm11, %v5187_v52, %v8378_v8  ;;  %v5221_v42 = vsel %vm5201_vm11, %v5188_v14, %v8379_v21 }
 0x56c   : > { %v8382_v2 = vpop.permute.xlu1 %8381  ;;  %v5252_v36 = vsel %vm273_vm0, %v5220_v55, %v8363_v13  ;;  %v5253_v54 = vsel %vm273_vm0, %v5221_v42, %v8364_v5  ;;  %v8374_v11 = vunpack.i.h.bf16 %v13207_v62  ;;  %v8373_v61 = vunpack.i.l.bf16 %v13207_v62 }
 0x56d   : > { %v8384_v26 = vunpack.i.h.bf16 %v8382_v2  ;;  %v8383_v60 = vunpack.i.l.bf16 %v8382_v2 }
 0x56f   : > { %v8387_v48 = vpop.permute.xlu0 %8386  ;;  %v5284_v27 = vsel %vm1764_vm6, %v5252_v36, %v8383_v60 }
 0x570   : > { %v8389_v30 = vunpack.i.h.bf16 %v8387_v48  ;;  %v8388_v49 = vunpack.i.l.bf16 %v8387_v48  ;;  %v13217_v45 = vpop.permute.xlu1 %8396  ;;  %v5285_v48 = vsel %vm1764_vm6, %v5253_v54, %v8384_v26 }
 0x572   : > { %v5315_v22 = vsel %vm5298_vm12, %v5282_v9, %v8388_v49  ;;  %v5316_v38 = vsel %vm5298_vm12, %v5283_v19, %v8389_v30 }
 0x573   : > { %v8392_v23 = vpop.permute.xlu0 %8391  ;;  %v5348_v10 = vsel %vm5331_vm13, %v5315_v22, %v8368_v12  ;;  %v5349_v34 = vsel %vm5331_vm13, %v5316_v38, %v8369_v50 }
 0x574   : > { %v8394_v44 = vunpack.i.h.bf16 %v8392_v23  ;;  %v8393_v33 = vunpack.i.l.bf16 %v8392_v23  ;;  %v8407_v25 = vpop.permute.xlu1 %8406 }
 0x575   : > { %v8409_v30 = vunpack.i.h.bf16 %v8407_v25  ;;  %v8408_v49 = vunpack.i.l.bf16 %v8407_v25 }
 0x576   : > { %v5380_v29 = vsel %vm3433_vm15, %v5348_v10, %v8393_v33  ;;  %v5381_v39 = vsel %vm3433_vm15, %v5349_v34, %v8394_v44  ;;  %v8359_v44 = vunpack.i.h.bf16 %v13194_v46  ;;  %v8358_v33 = vunpack.i.l.bf16 %v13194_v46 }
 0x577   : > { %v8402_v35 = vpop.permute.xlu0 %8401  ;;  %v5404_v63 = vpack.c.bf16 %v5381_v39, %v5380_v29 }
 0x578   : > { %v13235_v47 = vpop.permute.xlu1 %8411  ;;  %v5157_v8 = vsel %vm379_vm1, %v12739_v37, %v8359_v44  ;;  %v5156_v29 = vsel %vm379_vm1, %v12750_v32, %v8358_v33  ;;  %v8404_v55 = vunpack.i.h.bf16 %v8402_v35  ;;  %v8403_v42 = vunpack.i.l.bf16 %v8402_v35 }
 0x579   : > { %6742 = vmatprep.mubr.msk.bf16.mxu0 %vm5437_vm14, %v5404_v63  ;;  %v5189_v63 = vsel %vm5168_vm10, %v5156_v29, %v8373_v61  ;;  %v5190_v46 = vsel %vm5168_vm10, %v5157_v8, %v8374_v11 }
 0x57b   : > { %v8417_v7 = vpop.permute.xlu0 %8416 }
 0x57c   : > { %v8427_v57 = vpop.permute.xlu1 %8426  ;;  %v8419_v34 = vunpack.i.h.bf16 %v8417_v7  ;;  %v8418_v21 = vunpack.i.l.bf16 %v8417_v7 }
 0x57d   : > { %v8429_v53 = vunpack.i.h.bf16 %v8427_v57  ;;  %v8428_v18 = vunpack.i.l.bf16 %v8427_v57 }
 0x57e   : > { %v5222_v24 = vsel %vm5201_vm11, %v5189_v63, %v8418_v21  ;;  %v5223_v62 = vsel %vm5201_vm11, %v5190_v46, %v8419_v34 }
 0x57f   : > { %v5317_v31 = vsel %vm5298_vm12, %v5284_v27, %v8428_v18  ;;  %v5318_v2 = vsel %vm5298_vm12, %v5285_v48, %v8429_v53  ;;  %v8422_v17 = vpop.permute.xlu0 %8421  ;;  %v5254_v37 = vsel %vm273_vm0, %v5222_v24, %v8403_v42  ;;  %v5255_v32 = vsel %vm273_vm0, %v5223_v62, %v8404_v55 }
 0x580   : > { %v8432_v1 = vpop.permute.xlu1 %8431  ;;  %v5350_v22 = vsel %vm5331_vm13, %v5317_v31, %v8408_v49  ;;  %v5351_v38 = vsel %vm5331_vm13, %v5318_v2, %v8409_v30  ;;  %v8424_v52 = vunpack.i.h.bf16 %v8422_v17  ;;  %v8423_v14 = vunpack.i.l.bf16 %v8422_v17 }
 0x581   : > { %v8434_v9 = vunpack.i.h.bf16 %v8432_v1  ;;  %v8433_v19 = vunpack.i.l.bf16 %v8432_v1  ;;  %v8399_v27 = vunpack.i.h.bf16 %v13217_v45  ;;  %v8398_v48 = vunpack.i.l.bf16 %v13217_v45 }
 0x582   : > { %v5286_v7 = vsel %vm1764_vm6, %v5254_v37, %v8423_v14  ;;  %v5287_v57 = vsel %vm1764_vm6, %v5255_v32, %v8424_v52  ;;  %v8414_v30 = vunpack.i.h.bf16 %v13235_v47  ;;  %v8413_v49 = vunpack.i.l.bf16 %v13235_v47 }
 0x583   : > { %v5382_v50 = vsel %vm3433_vm15, %v5350_v22, %v8433_v19  ;;  %v5383_v12 = vsel %vm3433_vm15, %v5351_v38, %v8434_v9  ;;  %v13254_v23 = vpop.permute.xlu0 %8436  ;;  %v5159_v45 = vsel %vm379_vm1, %v12820_v58, %v8399_v27  ;;  %v5158_v44 = vsel %vm379_vm1, %v12829_v59, %v8398_v48 }
 0x584   : > { %v13256_v51 = vpop.permute.xlu1 %8441  ;;  %v5405_v6 = vpack.c.bf16 %v5383_v12, %v5382_v50  ;;  %v5191_v47 = vsel %vm5168_vm10, %v5158_v44, %v8413_v49 }
 0x585   : > { %v8444_v21 = vunpack.i.h.bf16 %v13256_v51  ;;  %v8443_v58 = vunpack.i.l.bf16 %v13256_v51 }
 0x586   : > { %6743 = vmatmul.mubr.msk.bf16.gmra.mrb[48].mxu0 %vm5437_vm14, %v5405_v6 }
 0x587   : > { %v8447_v25 = vpop.permute.xlu0 %8446 }
 0x588   : > { %v8457_v10 = vpop.permute.xlu1 %8456  ;;  %v8449_v53 = vunpack.i.h.bf16 %v8447_v25  ;;  %v8448_v18 = vunpack.i.l.bf16 %v8447_v25  ;;  %v5192_v25 = vsel %vm5168_vm10, %v5159_v45, %v8414_v30 }
 0x589   : > { %v8459_v19 = vunpack.i.h.bf16 %v8457_v10  ;;  %v8458_v22 = vunpack.i.l.bf16 %v8457_v10 }
 0x58b   : > { %v13267_v39 = vpop.permute.xlu0 %8451  ;;  %v5224_v11 = vsel %vm5201_vm11, %v5191_v47, %v8458_v22  ;;  %v5225_v61 = vsel %vm5201_vm11, %v5192_v25, %v8459_v19 }
 0x58c   : > { %v8462_v20 = vpop.permute.xlu1 %8461  ;;  %v5256_v29 = vsel %vm273_vm0, %v5224_v11, %v8443_v58  ;;  %v5257_v63 = vsel %vm273_vm0, %v5225_v61, %v8444_v21  ;;  %v8454_v48 = vunpack.i.h.bf16 %v13267_v39 }
 0x58d   : > { %v8464_v10 = vunpack.i.h.bf16 %v8462_v20  ;;  %v8463_v34 = vunpack.i.l.bf16 %v8462_v20 }
 0x58f   : > { %v8467_v26 = vpop.permute.xlu0 %8466  ;;  %v5288_v62 = vsel %vm1764_vm6, %v5256_v29, %v8463_v34  ;;  %v5289_v52 = vsel %vm1764_vm6, %v5257_v63, %v8464_v10 }
 0x590   : > { %v8469_v60 = vunpack.i.h.bf16 %v8467_v26  ;;  %v8468_v5 = vunpack.i.l.bf16 %v8467_v26  ;;  %v13275_v13 = vpop.permute.xlu1 %8476 }
 0x591   : > { %v8479_v29 = vunpack.i.h.bf16 %v13275_v13  ;;  %v8478_v63 = vunpack.i.l.bf16 %v13275_v13 }
 0x592   : > { %v5319_v36 = vsel %vm5298_vm12, %v5286_v7, %v8468_v5  ;;  %v5320_v54 = vsel %vm5298_vm12, %v5287_v57, %v8469_v60 }
 0x593   : > { %v8472_v35 = vpop.permute.xlu0 %8471  ;;  %v5352_v1 = vsel %vm5331_vm13, %v5319_v36, %v8448_v18  ;;  %v5353_v9 = vsel %vm5331_vm13, %v5320_v54, %v8449_v53  ;;  %v8439_v18 = vunpack.i.h.bf16 %v13254_v23 }
 0x594   : > { %v8474_v31 = vunpack.i.h.bf16 %v8472_v35  ;;  %v8473_v2 = vunpack.i.l.bf16 %v8472_v35  ;;  %v8487_v17 = vpop.permute.xlu1 %8486  ;;  %v8438_v35 = vunpack.i.l.bf16 %v13254_v23 }
 0x595   : > { %v8489_v42 = vunpack.i.h.bf16 %v8487_v17  ;;  %v8488_v26 = vunpack.i.l.bf16 %v8487_v17  ;;  %v5161_v49 = vsel %vm379_vm1, %v12880_v16, %v8439_v18 }
 0x596   : > { %v5384_v38 = vsel %vm3433_vm15, %v5352_v1, %v8473_v2  ;;  %v5385_v50 = vsel %vm3433_vm15, %v5353_v9, %v8474_v31  ;;  %v8453_v31 = vunpack.i.l.bf16 %v13267_v39  ;;  %v5160_v1 = vsel %vm379_vm1, %v12890_v28, %v8438_v35 }
 0x597   : > { %v8482_v12 = vpop.permute.xlu0 %8481  ;;  %v5406_v6 = vpack.c.bf16 %v5385_v50, %v5384_v38  ;;  %v5194_v23 = vsel %vm5168_vm10, %v5161_v49, %v8454_v48 }
 0x598   : > { %v13293_v33 = vpop.permute.xlu1 %8491  ;;  %v5193_v19 = vsel %vm5168_vm10, %v5160_v1, %v8453_v31  ;;  %v8484_v45 = vunpack.i.h.bf16 %v8482_v12  ;;  %v8483_v44 = vunpack.i.l.bf16 %v8482_v12 }
 0x599   : > { %6746 = vmatprep.mubr.msk.bf16.mxu0 %vm5437_vm14, %v5406_v6 }
 0x59b   : > { %v8497_v8 = vpop.permute.xlu0 %8496 }
 0x59c   : > { %v8507_v59 = vpop.permute.xlu1 %8506  ;;  %v8499_v17 = vunpack.i.h.bf16 %v8497_v8  ;;  %v8498_v30 = vunpack.i.l.bf16 %v8497_v8 }
 0x59d   : > { %v8509_v46 = vunpack.i.h.bf16 %v8507_v59  ;;  %v8508_v24 = vunpack.i.l.bf16 %v8507_v59 }
 0x59e   : > { %v5226_v38 = vsel %vm5201_vm11, %v5193_v19, %v8498_v30  ;;  %v5227_v39 = vsel %vm5201_vm11, %v5194_v23, %v8499_v17 }
 0x59f   : > { %v5321_v14 = vsel %vm5298_vm12, %v5288_v62, %v8508_v24  ;;  %v5322_v20 = vsel %vm5298_vm12, %v5289_v52, %v8509_v46  ;;  %v8502_v55 = vpop.permute.xlu0 %8501  ;;  %v5258_v16 = vsel %vm273_vm0, %v5226_v38, %v8483_v44  ;;  %v5259_v28 = vsel %vm273_vm0, %v5227_v39, %v8484_v45 }
 0x5a0   : > { %v8512_v51 = vpop.permute.xlu1 %8511  ;;  %v5354_v60 = vsel %vm5331_vm13, %v5321_v14, %v8488_v26  ;;  %v5355_v5 = vsel %vm5331_vm13, %v5322_v20, %v8489_v42  ;;  %v8504_v50 = vunpack.i.h.bf16 %v8502_v55  ;;  %v8503_v6 = vunpack.i.l.bf16 %v8502_v55 }
 0x5a1   : > { %v8514_v37 = vunpack.i.h.bf16 %v8512_v51  ;;  %v8513_v32 = vunpack.i.l.bf16 %v8512_v51  ;;  %v8494_v52 = vunpack.i.h.bf16 %v13293_v33  ;;  %v8493_v14 = vunpack.i.l.bf16 %v13293_v33 }
 0x5a2   : > { %v5290_v10 = vsel %vm1764_vm6, %v5258_v16, %v8503_v6  ;;  %v5291_v34 = vsel %vm1764_vm6, %v5259_v28, %v8504_v50 }
 0x5a3   : > { %v5386_v7 = vsel %vm3433_vm15, %v5354_v60, %v8513_v32  ;;  %v5387_v57 = vsel %vm3433_vm15, %v5355_v5, %v8514_v37  ;;  %v13312_v36 = vpop.permute.xlu0 %8516  ;;  %v5163_v60 = vsel %vm379_vm1, %v12966_v15, %v8479_v29  ;;  %v5162_v5 = vsel %vm379_vm1, %v12972_v0, %v8478_v63 }
 0x5a4   : > { %v13314_v54 = vpop.permute.xlu1 %8521  ;;  %v5407_v53 = vpack.c.bf16 %v5387_v57, %v5386_v7  ;;  %v5195_v7 = vsel %vm5168_vm10, %v5162_v5, %v8493_v14  ;;  %v5196_v57 = vsel %vm5168_vm10, %v5163_v60, %v8494_v52  ;;  %v8519_v1 = vunpack.i.h.bf16 %v13312_v36 }
 0x5a5   : > { %v8524_v48 = vunpack.i.h.bf16 %v13314_v54  ;;  %v8523_v15 = vunpack.i.l.bf16 %v13314_v54  ;;  %v8518_v19 = vunpack.i.l.bf16 %v13312_v36  ;;  %v8004_v29 = vunpack.i.h.bf16 %v12636_v3 }
 0x5a6   : > { %6747 = vmatmul.mubr.msk.bf16.gmra.mrb[52].mxu0 %vm5437_vm14, %v5407_v53 }
 0x5a7   : > { %v8527_v27 = vpop.permute.xlu0 %8526 }
 0x5a8   : > { %v8537_v2 = vpop.permute.xlu1 %8536  ;;  %v8529_v8 = vunpack.i.h.bf16 %v8527_v27  ;;  %v8528_v59 = vunpack.i.l.bf16 %v8527_v27 }
 0x5a9   : > { %v8539_v42 = vunpack.i.h.bf16 %v8537_v2  ;;  %v8538_v26 = vunpack.i.l.bf16 %v8537_v2 }
 0x5ab   : > { %v13325_v9 = vpop.permute.xlu0 %8531  ;;  %v5228_v53 = vsel %vm5201_vm11, %v5195_v7, %v8538_v26  ;;  %v5229_v18 = vsel %vm5201_vm11, %v5196_v57, %v8539_v42  ;;  %v8003_v26 = vunpack.i.l.bf16 %v12636_v3 }
 0x5ac   : > { %v8542_v22 = vpop.permute.xlu1 %8541  ;;  %v5260_v2 = vsel %vm273_vm0, %v5228_v53, %v8523_v15  ;;  %v5261_v17 = vsel %vm273_vm0, %v5229_v18, %v8524_v48  ;;  %v8534_v50 = vunpack.i.h.bf16 %v13325_v9  ;;  %v8533_v6 = vunpack.i.l.bf16 %v13325_v9 }
 0x5ad   : > { %v8544_v35 = vunpack.i.h.bf16 %v8542_v22  ;;  %v8543_v27 = vunpack.i.l.bf16 %v8542_v22 }
 0x5af   : > { %v8547_v47 = vpop.permute.xlu0 %8546  ;;  %v5292_v23 = vsel %vm1764_vm6, %v5260_v2, %v8543_v27  ;;  %v5293_v22 = vsel %vm1764_vm6, %v5261_v17, %v8544_v35 }
 0x5b0   : > { %v8549_v25 = vunpack.i.h.bf16 %v8547_v47  ;;  %v8548_v11 = vunpack.i.l.bf16 %v8547_v47  ;;  %v13333_v61 = vpop.permute.xlu1 %8556 }
 0x5b1   : > { %v8558_v9 = vunpack.i.l.bf16 %v13333_v61 }
 0x5b2   : > { %v5323_v21 = vsel %vm5298_vm12, %v5290_v10, %v8548_v11  ;;  %v5324_v58 = vsel %vm5298_vm12, %v5291_v34, %v8549_v25  ;;  %v5165_v11 = vsel %vm379_vm1, %v13015_v43, %v8519_v1  ;;  %v5164_v10 = vsel %vm379_vm1, %v13024_v41, %v8518_v19 }
 0x5b3   : > { %v8552_v12 = vpop.permute.xlu0 %8551  ;;  %v5356_v20 = vsel %vm5331_vm13, %v5323_v21, %v8528_v59  ;;  %v5357_v55 = vsel %vm5331_vm13, %v5324_v58, %v8529_v8  ;;  %v8559_v58 = vunpack.i.h.bf16 %v13333_v61  ;;  %v5197_v43 = vsel %vm5168_vm10, %v5164_v10, %v8533_v6 }
 0x5b4   : > { %v8554_v46 = vunpack.i.h.bf16 %v8552_v12  ;;  %v8553_v24 = vunpack.i.l.bf16 %v8552_v12  ;;  %v8567_v62 = vpop.permute.xlu1 %8566  ;;  %v5198_v63 = vsel %vm5168_vm10, %v5165_v11, %v8534_v50 }
 0x5b5   : > { %v8569_v45 = vunpack.i.h.bf16 %v8567_v62  ;;  %v8568_v44 = vunpack.i.l.bf16 %v8567_v62 }
 0x5b6   : > { %v5388_v51 = vsel %vm3433_vm15, %v5356_v20, %v8553_v24  ;;  %v5389_v37 = vsel %vm3433_vm15, %v5357_v55, %v8554_v46 }
 0x5b7   : > { %v13347_v32 = vpop.permute.xlu0 %8561  ;;  %v5408_v13 = vpack.c.bf16 %v5389_v37, %v5388_v51  ;;  %v8009_v51 = vunpack.i.h.bf16 %v12648_v4  ;;  %v5167_v37 = vsel %vm379_vm1, %v13088_v56, %v8559_v58 }
 0x5b8   : > { %v13353_v33 = vpop.permute.xlu1 %8571  ;;  %v8564_v61 = vunpack.i.h.bf16 %v13347_v32  ;;  %v8563_v20 = vunpack.i.l.bf16 %v13347_v32 }
 0x5b9   : > { %6750 = vmatprep.mubr.msk.bf16.mxu0 %vm5437_vm14, %v5408_v13  ;;  %v8574_v55 = vunpack.i.h.bf16 %v13353_v33  ;;  %v8573_v42 = vunpack.i.l.bf16 %v13353_v33  ;;  %v5166_v13 = vsel %vm379_vm1, %v13094_v40, %v8558_v9 }
 0x5bb   : > { %v8577_v31 = vpop.permute.xlu0 %8576  ;;  %v5199_v27 = vsel %vm5168_vm10, %v5166_v13, %v8573_v42  ;;  %v5200_v56 = vsel %vm5168_vm10, %v5167_v37, %v8574_v55 }
 0x5bc   : > { %v8587_v0 = vpop.permute.xlu1 %8586  ;;  %v8579_v16 = vunpack.i.h.bf16 %v8577_v31  ;;  %v8578_v28 = vunpack.i.l.bf16 %v8577_v31 }
 0x5bd   : > { %v8589_v30 = vunpack.i.h.bf16 %v8587_v0  ;;  %v8588_v49 = vunpack.i.l.bf16 %v8587_v0 }
 0x5be   : > { %v5230_v24 = vsel %vm5201_vm11, %v5197_v43, %v8578_v28  ;;  %v5231_v62 = vsel %vm5201_vm11, %v5198_v63, %v8579_v16 }
 0x5bf   : > { %v5325_v38 = vsel %vm5298_vm12, %v5292_v23, %v8588_v49  ;;  %v5326_v54 = vsel %vm5298_vm12, %v5293_v22, %v8589_v30  ;;  %v8582_v39 = vpop.permute.xlu0 %8581  ;;  %v5262_v5 = vsel %vm273_vm0, %v5230_v24, %v8563_v20  ;;  %v5263_v32 = vsel %vm273_vm0, %v5231_v62, %v8564_v61 }
 0x5c0   : > { %v8592_v47 = vpop.permute.xlu1 %8591  ;;  %v5358_v34 = vsel %vm5331_vm13, %v5325_v38, %v8568_v44  ;;  %v5359_v21 = vsel %vm5331_vm13, %v5326_v54, %v8569_v45  ;;  %v8584_v52 = vunpack.i.h.bf16 %v8582_v39  ;;  %v8583_v14 = vunpack.i.l.bf16 %v8582_v39 }
 0x5c1   : > { %v8594_v25 = vunpack.i.h.bf16 %v8592_v47  ;;  %v8593_v36 = vunpack.i.l.bf16 %v8592_v47  ;;  %v8008_v47 = vunpack.i.l.bf16 %v12648_v4 }
 0x5c2   : > { %v5294_v53 = vsel %vm1764_vm6, %v5262_v5, %v8583_v14  ;;  %v5295_v3 = vsel %vm1764_vm6, %v5263_v32, %v8584_v52 }
 0x5c3   : > { %v5390_v8 = vsel %vm3433_vm15, %v5358_v34, %v8593_v36  ;;  %v5391_v59 = vsel %vm3433_vm15, %v5359_v21, %v8594_v25  ;;  %v8602_v12 = vpop.permute.xlu0 %8601 }
 0x5c4   : > { %v8597_v41 = vpop.permute.xlu1 %8596  ;;  %v5409_v46 = vpack.c.bf16 %v5391_v59, %v5390_v8  ;;  %v8604_v15 = vunpack.i.h.bf16 %v8602_v12  ;;  %v8603_v31 = vunpack.i.l.bf16 %v8602_v12  ;;  %v13428_v12 = vld [vmem:[%s13744_s5 + $0x2] ss:$0 sm:$0xff] }
 0x5c5   : > { %v8599_v30 = vunpack.i.h.bf16 %v8597_v41  ;;  %v8598_v49 = vunpack.i.l.bf16 %v8597_v41 }
 0x5c6   : > { %6751 = vmatmul.mubr.msk.bf16.gmra.mrb[56].mxu0 %vm5437_vm14, %v5409_v46 }
 0x5c7   : > { %v8617_v60 = vpop.permute.xlu0 %8616 }
 0x5c8   : > { %v8619_v7 = vunpack.i.h.bf16 %v8617_v60  ;;  %v8618_v57 = vunpack.i.l.bf16 %v8617_v60  ;;  %v8607_v33 = vpop.permute.xlu1 %8606 }
 0x5c9   : > { %v8609_v18 = vunpack.i.h.bf16 %v8607_v33  ;;  %v8608_v35 = vunpack.i.l.bf16 %v8607_v33 }
 0x5ca   : > { %v5327_v40 = vsel %vm5298_vm12, %v5294_v53, %v8618_v57  ;;  %v5328_v48 = vsel %vm5298_vm12, %v5295_v3, %v8619_v7 }
 0x5cb   : > { %v5232_v0 = vsel %vm5201_vm11, %v5199_v27, %v8608_v35  ;;  %v5233_v2 = vsel %vm5201_vm11, %v5200_v56, %v8609_v18  ;;  %v8622_v17 = vpop.permute.xlu0 %8621  ;;  %v5360_v22 = vsel %vm5331_vm13, %v5327_v40, %v8603_v31  ;;  %v5361_v38 = vsel %vm5331_vm13, %v5328_v48, %v8604_v15 }
 0x5cc   : > { %v8624_v1 = vunpack.i.h.bf16 %v8622_v17  ;;  %v8623_v19 = vunpack.i.l.bf16 %v8622_v17  ;;  %v8612_v23 = vpop.permute.xlu1 %8611  ;;  %v5264_v45 = vsel %vm273_vm0, %v5232_v0, %v8598_v49  ;;  %v5265_v44 = vsel %vm273_vm0, %v5233_v2, %v8599_v30 }
 0x5cd   : > { %v8614_v54 = vunpack.i.h.bf16 %v8612_v23  ;;  %v8613_v39 = vunpack.i.l.bf16 %v8612_v23 }
 0x5ce   : > { %v5392_v50 = vsel %vm3433_vm15, %v5360_v22, %v8623_v19  ;;  %v5393_v6 = vsel %vm3433_vm15, %v5361_v38, %v8624_v1 }
 0x5cf   : > { %v5410_v16 = vpack.c.bf16 %v5393_v6, %v5392_v50  ;;  %v5296_v28 = vsel %vm1764_vm6, %v5264_v45, %v8613_v39  ;;  %v5297_v25 = vsel %vm1764_vm6, %v5265_v44, %v8614_v54 }
 0x5d0   : > { %v5329_v36 = vsel %vm5298_vm12, %v5296_v28, %v8003_v26  ;;  %v5330_v11 = vsel %vm5298_vm12, %v5297_v25, %v8004_v29  ;;  %v8627_v10 = vpop.permute.xlu1 %8626 }
 0x5d1   : > { %v8629_v34 = vunpack.i.h.bf16 %v8627_v10  ;;  %v8628_v21 = vunpack.i.l.bf16 %v8627_v10  ;;  %v5362_v58 = vsel %vm5331_vm13, %v5329_v36, %v8008_v47  ;;  %v5363_v9 = vsel %vm5331_vm13, %v5330_v11, %v8009_v51  ;;  %6754 = vmatprep.mubr.msk.bf16.mxu0 %vm5437_vm14, %v5410_v16 }
 0x5d3   : > { %v5394_v4 = vsel %vm3433_vm15, %v5362_v58, %v8628_v21  ;;  %v5395_v8 = vsel %vm3433_vm15, %v5363_v9, %v8629_v34 }
 0x5d4   : > { %v5411_v59 = vpack.c.bf16 %v5395_v8, %v5394_v4 }
 0x5d6   : > { %6755 = vmatmul.mubr.msk.bf16.gmra.mrb[60].mxu0 %vm5437_vm14, %v5411_v59 }
 0x5d9   : > { %v6728_v29 = vpop.f32.mrb[32].mxu0 }
 0x5da   : > { %v5533_v43 = vadd.f32 %v6728_v29, %v13428_v12  ;;  %v5524_v63 = vpop.f32.mrb[33].mxu0 }
 0x5db   : > { %v5525_v41 = vadd.f32 %v13428_v12, %v5524_v63  ;;  %v6729_v46 = vpop.f32.mrb[34].mxu0 }
 0x5dc   : > { %v6600_v24 = vmul.f32 -1.442695, %v5533_v43  ;;  %v5536_v62 = vadd.f32 %v6729_v46, %v13428_v12  ;;  %v5527_v52 = vpop.f32.mrb[35].mxu0 }
 0x5dd   : > { %v6598_v14 = vmul.f32 -1.442695, %v5525_v41  ;;  %v5528_v61 = vadd.f32 %v13428_v12, %v5527_v52 }
 0x5de   : > { %8650 = vpow2.f32 %v6600_v24  ;;  %v6601_v20 = vmul.f32 -1.442695, %v5536_v62 }
 0x5df   : > { %8652 = vpow2.f32 %v6598_v14  ;;  %v6599_v55 = vmul.f32 -1.442695, %v5528_v61 }
 0x5e0   : > { %8654 = vpow2.f32 %v6601_v20 }
 0x5e1   : > { %8656 = vpow2.f32 %v6599_v55 }
 0x5e8   : > { %v8651_v42 = vpop.eup %8650 }
 0x5e9   : > { %v8653_v26 = vpop.eup %8652  ;;  %v5749_v51 = vadd.f32 1.0, %v8651_v42 }
 0x5ea   : > { %v8655_v37 = vpop.eup %8654  ;;  %v5747_v13 = vadd.f32 1.0, %v8653_v26 }
 0x5eb   : > { %8658 = vrcp.f32 %v5749_v51  ;;  %v8657_v60 = vpop.eup %8656  ;;  %v5750_v5 = vadd.f32 1.0, %v8655_v37 }
 0x5ec   : > { %8660 = vrcp.f32 %v5747_v13  ;;  %v5748_v32 = vadd.f32 1.0, %v8657_v60 }
 0x5ed   : > { %8662 = vrcp.f32 %v5750_v5 }
 0x5ee   : > { %8664 = vrcp.f32 %v5748_v32 }
 0x5f5   : > { %v8659_v7 = vpop.eup %8658 }
 0x5f6   : > { %v8661_v57 = vpop.eup %8660  ;;  %5855 = vperm.xlu1 %8630, %v8659_v7   ;;  %v6037_v33 = vsub.f32 1.0, %v8659_v7 }
 0x5f7   : > { %5845 = vperm.xlu0 %8631, %v8661_v57   ;;  %v8663_v3 = vpop.eup %8662  ;;  %v6035_v1 = vsub.f32 1.0, %v8661_v57 }
 0x5f8   : > { %v8665_v31 = vpop.eup %8664  ;;  %v6038_v17 = vsub.f32 1.0, %v8663_v3 }
 0x5f9   : > { %v6732_v53 = vpop.f32.mrb[36].mxu0  ;;  %v6036_v19 = vsub.f32 1.0, %v8665_v31 }
 0x5fa   : > { %v5549_v18 = vadd.f32 %v6732_v53, %v13428_v12  ;;  %6079 = vperm.xlu1 %8630, %v6037_v33   ;;  %v5540_v35 = vpop.f32.mrb[37].mxu0 }
 0x5fb   : > { %v5541_v27 = vadd.f32 %v13428_v12, %v5540_v35  ;;  %5860 = vperm.xlu0 %8631, %v8663_v3   ;;  %v6733_v56 = vpop.f32.mrb[38].mxu0 }
 0x5fc   : > { %v6604_v40 = vmul.f32 -1.442695, %v5549_v18  ;;  %v5552_v48 = vadd.f32 %v6733_v56, %v13428_v12  ;;  %v5543_v15 = vpop.f32.mrb[39].mxu0 }
 0x5fd   : > { %v6602_v0 = vmul.f32 -1.442695, %v5541_v27  ;;  %v5544_v2 = vadd.f32 %v13428_v12, %v5543_v15 }
 0x5fe   : > { %8666 = vpow2.f32 %v6604_v40  ;;  %v6605_v30 = vmul.f32 -1.442695, %v5552_v48  ;;  %5850 = vperm.xlu1 %8630, %v8665_v31  }
 0x5ff   : > { %8668 = vpow2.f32 %v6602_v0  ;;  %v6603_v49 = vmul.f32 -1.442695, %v5544_v2  ;;  %6084 = vperm.xlu0 %8631, %v6038_v17  }
 0x600   : > { %8670 = vpow2.f32 %v6605_v30 }
 0x601   : > { %8672 = vpow2.f32 %v6603_v49 }
 0x602   : > { %6069 = vperm.xlu1 %8630, %v6035_v1  }
 0x603   : > { %6074 = vperm.xlu0 %8631, %v6036_v19  }
 0x608   : > { %v8667_v23 = vpop.eup %8666 }
 0x609   : > { %v8669_v22 = vpop.eup %8668  ;;  %v5753_v38 = vadd.f32 1.0, %v8667_v23 }
 0x60a   : > { %v8671_v54 = vpop.eup %8670  ;;  %v5751_v50 = vadd.f32 1.0, %v8669_v22 }
 0x60b   : > { %v8673_v39 = vpop.eup %8672  ;;  %8674 = vrcp.f32 %v5753_v38  ;;  %v5754_v6 = vadd.f32 1.0, %v8671_v54 }
 0x60c   : > { %v5752_v45 = vadd.f32 1.0, %v8673_v39 }
 0x60d   : > { %8676 = vrcp.f32 %v5754_v6 }
 0x60e   : > { %8678 = vrcp.f32 %v5751_v50 }
 0x60f   : > { %8680 = vrcp.f32 %v5752_v45 }
 0x615   : > { %v8675_v44 = vpop.eup %8674 }
 0x616   : > { %5875 = vperm.xlu1 %8630, %v8675_v44   ;;  %v6041_v4 = vsub.f32 1.0, %v8675_v44 }
 0x617   : > { %v8677_v47 = vpop.eup %8676 }
 0x618   : > { %5880 = vperm.xlu0 %8631, %v8677_v47   ;;  %v8679_v16 = vpop.eup %8678  ;;  %v6042_v43 = vsub.f32 1.0, %v8677_v47 }
 0x619   : > { %v6736_v28 = vpop.f32.mrb[40].mxu0  ;;  %v8681_v11 = vpop.eup %8680  ;;  %v6039_v41 = vsub.f32 1.0, %v8679_v16 }
 0x61a   : > { %v5565_v25 = vadd.f32 %v6736_v28, %v13428_v12  ;;  %v5556_v36 = vpop.f32.mrb[41].mxu0  ;;  %5865 = vperm.xlu1 %8630, %v8679_v16   ;;  %v6040_v46 = vsub.f32 1.0, %v8681_v11 }
 0x61b   : > { %v5557_v10 = vadd.f32 %v13428_v12, %v5556_v36  ;;  %v6737_v34 = vpop.f32.mrb[42].mxu0 }
 0x61c   : > { %v6608_v21 = vmul.f32 -1.442695, %v5565_v25  ;;  %v5568_v58 = vadd.f32 %v6737_v34, %v13428_v12  ;;  %v5559_v9 = vpop.f32.mrb[43].mxu0  ;;  %5870 = vperm.xlu0 %8631, %v8681_v11  }
 0x61d   : > { %v6606_v8 = vmul.f32 -1.442695, %v5557_v10  ;;  %v5560_v59 = vadd.f32 %v13428_v12, %v5559_v9 }
 0x61e   : > { %8682 = vpow2.f32 %v6608_v21  ;;  %v6609_v29 = vmul.f32 -1.442695, %v5568_v58  ;;  %6099 = vperm.xlu1 %8630, %v6041_v4  }
 0x61f   : > { %8684 = vpow2.f32 %v6606_v8  ;;  %v6607_v63 = vmul.f32 -1.442695, %v5560_v59 }
 0x620   : > { %8686 = vpow2.f32 %v6609_v29  ;;  %6104 = vperm.xlu0 %8631, %v6042_v43  }
 0x621   : > { %8688 = vpow2.f32 %v6607_v63 }
 0x622   : > { %6089 = vperm.xlu1 %8630, %v6039_v41  }
 0x624   : > { %6094 = vperm.xlu0 %8631, %v6040_v46  }
 0x628   : > { %v8683_v24 = vpop.eup %8682 }
 0x629   : > { %v8685_v62 = vpop.eup %8684  ;;  %v5757_v52 = vadd.f32 1.0, %v8683_v24 }
 0x62a   : > { %v8687_v14 = vpop.eup %8686  ;;  %v5755_v20 = vadd.f32 1.0, %v8685_v62 }
 0x62b   : > { %v8689_v61 = vpop.eup %8688  ;;  %8690 = vrcp.f32 %v5757_v52  ;;  %v5758_v55 = vadd.f32 1.0, %v8687_v14 }
 0x62c   : > { %v5756_v42 = vadd.f32 1.0, %v8689_v61 }
 0x62d   : > { %8692 = vrcp.f32 %v5758_v55 }
 0x62e   : > { %8694 = vrcp.f32 %v5755_v20 }
 0x62f   : > { %8696 = vrcp.f32 %v5756_v42 }
 0x635   : > { %v8691_v26 = vpop.eup %8690 }
 0x636   : > { %5895 = vperm.xlu1 %8630, %v8691_v26   ;;  %v6045_v18 = vsub.f32 1.0, %v8691_v26 }
 0x637   : > { %v8693_v51 = vpop.eup %8692 }
 0x638   : > { %5900 = vperm.xlu0 %8631, %v8693_v51   ;;  %v8695_v37 = vpop.eup %8694  ;;  %v6046_v40 = vsub.f32 1.0, %v8693_v51 }
 0x639   : > { %v6740_v13 = vpop.f32.mrb[44].mxu0  ;;  %v8697_v32 = vpop.eup %8696  ;;  %v6043_v15 = vsub.f32 1.0, %v8695_v37 }
 0x63a   : > { %v5581_v60 = vadd.f32 %v6740_v13, %v13428_v12  ;;  %v5572_v5 = vpop.f32.mrb[45].mxu0  ;;  %5885 = vperm.xlu1 %8630, %v8695_v37   ;;  %v6044_v31 = vsub.f32 1.0, %v8697_v32 }
 0x63b   : > { %v5573_v7 = vadd.f32 %v13428_v12, %v5572_v5  ;;  %v6741_v57 = vpop.f32.mrb[46].mxu0 }
 0x63c   : > { %v6612_v33 = vmul.f32 -1.442695, %v5581_v60  ;;  %v5584_v53 = vadd.f32 %v6741_v57, %v13428_v12  ;;  %v5575_v3 = vpop.f32.mrb[47].mxu0  ;;  %5890 = vperm.xlu0 %8631, %v8697_v32  }
 0x63d   : > { %v6610_v35 = vmul.f32 -1.442695, %v5573_v7  ;;  %v5576_v27 = vadd.f32 %v13428_v12, %v5575_v3 }
 0x63e   : > { %8698 = vpow2.f32 %v6612_v33  ;;  %v6613_v56 = vmul.f32 -1.442695, %v5584_v53  ;;  %6119 = vperm.xlu1 %8630, %v6045_v18  }
 0x63f   : > { %8700 = vpow2.f32 %v6610_v35  ;;  %v6611_v48 = vmul.f32 -1.442695, %v5576_v27 }
 0x640   : > { %8702 = vpow2.f32 %v6613_v56  ;;  %6124 = vperm.xlu0 %8631, %v6046_v40  }
 0x641   : > { %8704 = vpow2.f32 %v6611_v48 }
 0x642   : > { %6109 = vperm.xlu1 %8630, %v6043_v15  }
 0x644   : > { %6114 = vperm.xlu0 %8631, %v6044_v31  }
 0x648   : > { %v8699_v0 = vpop.eup %8698 }
 0x649   : > { %v8701_v2 = vpop.eup %8700  ;;  %v5761_v17 = vadd.f32 1.0, %v8699_v0 }
 0x64a   : > { %v8703_v30 = vpop.eup %8702  ;;  %v5759_v1 = vadd.f32 1.0, %v8701_v2 }
 0x64b   : > { %v8705_v49 = vpop.eup %8704  ;;  %8706 = vrcp.f32 %v5761_v17  ;;  %v5762_v19 = vadd.f32 1.0, %v8703_v30 }
 0x64c   : > { %v5760_v23 = vadd.f32 1.0, %v8705_v49 }
 0x64d   : > { %8708 = vrcp.f32 %v5762_v19 }
 0x64e   : > { %8710 = vrcp.f32 %v5759_v1 }
 0x64f   : > { %8712 = vrcp.f32 %v5760_v23 }
 0x655   : > { %v8707_v22 = vpop.eup %8706 }
 0x656   : > { %5915 = vperm.xlu1 %8630, %v8707_v22   ;;  %v6049_v36 = vsub.f32 1.0, %v8707_v22 }
 0x657   : > { %v8709_v38 = vpop.eup %8708 }
 0x658   : > { %5920 = vperm.xlu0 %8631, %v8709_v38   ;;  %v8711_v54 = vpop.eup %8710  ;;  %v6050_v21 = vsub.f32 1.0, %v8709_v38 }
 0x659   : > { %v6744_v39 = vpop.f32.mrb[48].mxu0  ;;  %v8713_v45 = vpop.eup %8712  ;;  %v6047_v9 = vsub.f32 1.0, %v8711_v54 }
 0x65a   : > { %v5597_v50 = vadd.f32 %v6744_v39, %v13428_v12  ;;  %v5588_v6 = vpop.f32.mrb[49].mxu0  ;;  %5905 = vperm.xlu1 %8630, %v8711_v54   ;;  %v6048_v4 = vsub.f32 1.0, %v8713_v45 }
 0x65b   : > { %v5589_v44 = vadd.f32 %v13428_v12, %v5588_v6  ;;  %v6745_v47 = vpop.f32.mrb[50].mxu0 }
 0x65c   : > { %v6616_v16 = vmul.f32 -1.442695, %v5597_v50  ;;  %v5600_v28 = vadd.f32 %v6745_v47, %v13428_v12  ;;  %v5591_v25 = vpop.f32.mrb[51].mxu0  ;;  %5910 = vperm.xlu0 %8631, %v8713_v45  }
 0x65d   : > { %v6614_v11 = vmul.f32 -1.442695, %v5589_v44  ;;  %v5592_v10 = vadd.f32 %v13428_v12, %v5591_v25 }
 0x65e   : > { %8714 = vpow2.f32 %v6616_v16  ;;  %v6617_v34 = vmul.f32 -1.442695, %v5600_v28  ;;  %6139 = vperm.xlu1 %8630, %v6049_v36  }
 0x65f   : > { %8716 = vpow2.f32 %v6614_v11  ;;  %v6615_v58 = vmul.f32 -1.442695, %v5592_v10 }
 0x660   : > { %8718 = vpow2.f32 %v6617_v34  ;;  %6144 = vperm.xlu0 %8631, %v6050_v21  }
 0x661   : > { %8720 = vpow2.f32 %v6615_v58 }
 0x662   : > { %6129 = vperm.xlu1 %8630, %v6047_v9  }
 0x664   : > { %6134 = vperm.xlu0 %8631, %v6048_v4  }
 0x668   : > { %v8715_v8 = vpop.eup %8714 }
 0x669   : > { %v8717_v59 = vpop.eup %8716  ;;  %v5765_v29 = vadd.f32 1.0, %v8715_v8 }
 0x66a   : > { %v8719_v43 = vpop.eup %8718  ;;  %v5763_v41 = vadd.f32 1.0, %v8717_v59 }
 0x66b   : > { %v8721_v63 = vpop.eup %8720  ;;  %8722 = vrcp.f32 %v5765_v29  ;;  %v5766_v46 = vadd.f32 1.0, %v8719_v43 }
 0x66c   : > { %v5764_v24 = vadd.f32 1.0, %v8721_v63 }
 0x66d   : > { %8724 = vrcp.f32 %v5766_v46 }
 0x66e   : > { %8726 = vrcp.f32 %v5763_v41 }
 0x66f   : > { %8728 = vrcp.f32 %v5764_v24 }
 0x675   : > { %v8723_v62 = vpop.eup %8722  ;;  %v13454_v1 = vpop.permute.xlu1 %5855 }
 0x676   : > { %5935 = vperm.xlu1 %8630, %v8723_v62   ;;  %v6053_v5 = vsub.f32 1.0, %v8723_v62  ;;  %v13458_v39 = vpop.permute.xlu0 %5845 }
 0x677   : > { %v8725_v52 = vpop.eup %8724 }
 0x678   : > { %5940 = vperm.xlu0 %8631, %v8725_v52   ;;  %v8727_v14 = vpop.eup %8726  ;;  %v6054_v33 = vsub.f32 1.0, %v8725_v52 }
 0x679   : > { %v6748_v61 = vpop.f32.mrb[52].mxu0  ;;  %v8729_v42 = vpop.eup %8728  ;;  %v6051_v3 = vsub.f32 1.0, %v8727_v14 }
 0x67a   : > { %v5613_v20 = vadd.f32 %v6748_v61, %v13428_v12  ;;  %v5604_v55 = vpop.f32.mrb[53].mxu0  ;;  %5925 = vperm.xlu1 %8630, %v8727_v14   ;;  %v6052_v18 = vsub.f32 1.0, %v8729_v42  ;;  %v13462_v11 = vpop.permute.xlu1 %6079 }
 0x67b   : > { %v5605_v26 = vadd.f32 %v13428_v12, %v5604_v55  ;;  %v6749_v51 = vpop.f32.mrb[54].mxu0  ;;  %v13464_v34 = vpop.permute.xlu0 %5860 }
 0x67c   : > { %v6620_v37 = vmul.f32 -1.442695, %v5613_v20  ;;  %v5616_v13 = vadd.f32 %v6749_v51, %v13428_v12  ;;  %v5607_v60 = vpop.f32.mrb[55].mxu0  ;;  %5930 = vperm.xlu0 %8631, %v8729_v42  }
 0x67d   : > { %v6618_v32 = vmul.f32 -1.442695, %v5605_v26  ;;  %v5608_v7 = vadd.f32 %v13428_v12, %v5607_v60 }
 0x67e   : > { %8730 = vpow2.f32 %v6620_v37  ;;  %v6621_v57 = vmul.f32 -1.442695, %v5616_v13  ;;  %6159 = vperm.xlu1 %8630, %v6053_v5   ;;  %v13466_v58 = vpop.permute.xlu1 %5850 }
 0x67f   : > { %8732 = vpow2.f32 %v6618_v32  ;;  %v6619_v53 = vmul.f32 -1.442695, %v5608_v7  ;;  %v13468_v4 = vpop.permute.xlu0 %6084 }
 0x680   : > { %8734 = vpow2.f32 %v6621_v57  ;;  %6164 = vperm.xlu0 %8631, %v6054_v33  }
 0x681   : > { %8736 = vpow2.f32 %v6619_v53 }
 0x682   : > { %6149 = vperm.xlu1 %8630, %v6051_v3   ;;  %v13472_v61 = vpop.permute.xlu1 %6069 }
 0x683   : > { %v13476_v13 = vpop.permute.xlu0 %6074 }
 0x684   : > { %6154 = vperm.xlu0 %8631, %v6052_v18  }
 0x688   : > { %v8731_v35 = vpop.eup %8730 }
 0x689   : > { %v8733_v27 = vpop.eup %8732  ;;  %v5769_v56 = vadd.f32 1.0, %v8731_v35 }
 0x68a   : > { %v8735_v40 = vpop.eup %8734  ;;  %v5767_v15 = vadd.f32 1.0, %v8733_v27 }
 0x68b   : > { %v8737_v48 = vpop.eup %8736  ;;  %8738 = vrcp.f32 %v5769_v56  ;;  %v5770_v31 = vadd.f32 1.0, %v8735_v40 }
 0x68c   : > { %v5768_v0 = vadd.f32 1.0, %v8737_v48 }
 0x68d   : > { %8740 = vrcp.f32 %v5770_v31 }
 0x68e   : > { %8742 = vrcp.f32 %v5767_v15 }
 0x68f   : > { %8744 = vrcp.f32 %v5768_v0 }
 0x695   : > { %v8739_v2 = vpop.eup %8738  ;;  %v13478_v32 = vpop.permute.xlu1 %5875 }
 0x696   : > { %5955 = vperm.xlu1 %8630, %v8739_v2   ;;  %v6057_v44 = vsub.f32 1.0, %v8739_v2 }
 0x697   : > { %v8741_v17 = vpop.eup %8740  ;;  %v13480_v7 = vpop.permute.xlu0 %5880 }
 0x698   : > { %5960 = vperm.xlu0 %8631, %v8741_v17   ;;  %v8743_v30 = vpop.eup %8742  ;;  %v6058_v25 = vsub.f32 1.0, %v8741_v17 }
 0x699   : > { %v6752_v49 = vpop.f32.mrb[56].mxu0  ;;  %v8745_v22 = vpop.eup %8744  ;;  %v6055_v10 = vsub.f32 1.0, %v8743_v30 }
 0x69a   : > { %v5629_v19 = vadd.f32 %v6752_v49, %v13428_v12  ;;  %v5620_v23 = vpop.f32.mrb[57].mxu0  ;;  %5945 = vperm.xlu1 %8630, %v8743_v30   ;;  %v6056_v21 = vsub.f32 1.0, %v8745_v22  ;;  %v13482_v53 = vpop.permute.xlu1 %5865 }
 0x69b   : > { %v5621_v38 = vadd.f32 %v13428_v12, %v5620_v23  ;;  %v6753_v54 = vpop.f32.mrb[58].mxu0  ;;  %v13484_v18 = vpop.permute.xlu0 %5870 }
 0x69c   : > { %v6624_v50 = vmul.f32 -1.442695, %v5629_v19  ;;  %v5632_v6 = vadd.f32 %v6753_v54, %v13428_v12  ;;  %v5623_v45 = vpop.f32.mrb[59].mxu0  ;;  %5950 = vperm.xlu0 %8631, %v8745_v22  }
 0x69d   : > { %v6622_v47 = vmul.f32 -1.442695, %v5621_v38  ;;  %v5624_v16 = vadd.f32 %v13428_v12, %v5623_v45 }
 0x69e   : > { %8746 = vpow2.f32 %v6624_v50  ;;  %v6625_v28 = vmul.f32 -1.442695, %v5632_v6  ;;  %6179 = vperm.xlu1 %8630, %v6057_v44   ;;  %v6100_v15 = vpop.permute.xlu1 %6099 }
 0x69f   : > { %8748 = vpow2.f32 %v6622_v47  ;;  %v6623_v36 = vmul.f32 -1.442695, %v5624_v16  ;;  %v6105_v17 = vpop.permute.xlu0 %6104 }
 0x6a0   : > { %8750 = vpow2.f32 %v6625_v28  ;;  %6184 = vperm.xlu0 %8631, %v6058_v25  }
 0x6a1   : > { %8752 = vpow2.f32 %v6623_v36 }
 0x6a2   : > { %6169 = vperm.xlu1 %8630, %v6055_v10   ;;  %v6090_v23 = vpop.permute.xlu1 %6089 }
 0x6a3   : > { %v6095_v38 = vpop.permute.xlu0 %6094 }
 0x6a4   : > { %6174 = vperm.xlu0 %8631, %v6056_v21  }
 0x6a8   : > { %v8747_v9 = vpop.eup %8746 }
 0x6a9   : > { %v8749_v8 = vpop.eup %8748  ;;  %v5773_v59 = vadd.f32 1.0, %v8747_v9  ;;  %v6756_v29 = vpop.f32.mrb[60].mxu0 }
 0x6aa   : > { %v8751_v43 = vpop.eup %8750  ;;  %v5771_v63 = vadd.f32 1.0, %v8749_v8  ;;  %v5645_v41 = vadd.f32 %v6756_v29, %v13428_v12  ;;  %v5636_v46 = vpop.f32.mrb[61].mxu0 }
 0x6ab   : > { %v8753_v24 = vpop.eup %8752  ;;  %8754 = vrcp.f32 %v5773_v59  ;;  %v5774_v62 = vadd.f32 1.0, %v8751_v43  ;;  %v5637_v52 = vadd.f32 %v13428_v12, %v5636_v46  ;;  %v6757_v14 = vpop.f32.mrb[62].mxu0  ;;  %v14306_v59 = vld [vmem:[#allocation32_spill] sm:$0xff]  ;;  %v14307_v43 = vld [vmem:[#allocation38_spill] sm:$0xff]  ;;  %v14308_v46 = vld [vmem:[#allocation31_spill] sm:$0xff] }
 0x6ac   : > { %8756 = vrcp.f32 %v5771_v63  ;;  %v5772_v20 = vadd.f32 1.0, %v8753_v24  ;;  %v6628_v55 = vmul.f32 -1.442695, %v5645_v41  ;;  %v5648_v42 = vadd.f32 %v6757_v14, %v13428_v12  ;;  %v5639_v26 = vpop.f32.mrb[63].mxu0 }
 0x6ad   : > { %8758 = vrcp.f32 %v5774_v62  ;;  %v6626_v51 = vmul.f32 -1.442695, %v5637_v52  ;;  %v5640_v37 = vadd.f32 %v13428_v12, %v5639_v26  ;;  %v6229_v29 = vmul.f32 %v13462_v11, %v14306_v59  ;;  %v14309_v52 = vld [vmem:[#allocation37_spill] sm:$0xff] }
 0x6ae   : > { %8760 = vrcp.f32 %v5772_v20  ;;  %v6629_v60 = vmul.f32 -1.442695, %v5648_v42  ;;  %v6230_v63 = vmul.f32 %v13468_v4, %v14307_v43  ;;  %v6227_v24 = vmul.f32 %v13472_v61, %v14308_v46  ;;  %v14310_v20 = vld [vmem:[#allocation36_spill] sm:$0xff]  ;;  %v14312_v61 = vld [vmem:[#allocation35_spill] sm:$0xff] }
 0x6af   : > { %8762 = vpow2.f32 %v6628_v55  ;;  %v6627_v5 = vmul.f32 -1.442695, %v5640_v37  ;;  %v6228_v14 = vmul.f32 %v13476_v13, %v14309_v52  ;;  %v6233_v55 = vmul.f32 %v6100_v15, %v14310_v20  ;;  %v14311_v42 = vld [vmem:[#allocation16_spill] sm:$0xff]  ;;  %v14313_v13 = vld [vmem:[#allocation42_spill] sm:$0xff] }
 0x6b0   : > { %8764 = vpow2.f32 %v6626_v51  ;;  %v6234_v26 = vmul.f32 %v6105_v17, %v14311_v42  ;;  %v6231_v51 = vmul.f32 %v6090_v23, %v14312_v61  ;;  %v14319_v17 = vld [vmem:[#allocation5_spill] sm:$0xff] }
 0x6b1   : > { %8766 = vpow2.f32 %v6629_v60  ;;  %v6232_v60 = vmul.f32 %v6095_v38, %v14313_v13 }
 0x6b2   : > { %8768 = vpow2.f32 %v6627_v5 }
 0x6b5   : > { %v8755_v57 = vpop.eup %8754  ;;  %v13486_v50 = vpop.permute.xlu1 %5895 }
 0x6b6   : > { %v8757_v33 = vpop.eup %8756  ;;  %5975 = vperm.xlu1 %8630, %v8755_v57   ;;  %v6061_v2 = vsub.f32 1.0, %v8755_v57  ;;  %v14314_v57 = vld [vmem:[#allocation41_spill] sm:$0xff] }
 0x6b7   : > { %v8759_v3 = vpop.eup %8758  ;;  %v6059_v19 = vsub.f32 1.0, %v8757_v33  ;;  %v13488_v45 = vpop.permute.xlu0 %5900 }
 0x6b8   : > { %v8761_v12 = vpop.eup %8760  ;;  %5980 = vperm.xlu0 %8631, %v8759_v3   ;;  %v6062_v49 = vsub.f32 1.0, %v8759_v3  ;;  %v14315_v3 = vld [vmem:[#allocation14_spill] sm:$0xff] }
 0x6b9   : > { %v8763_v35 = vpop.eup %8762  ;;  %v6060_v22 = vsub.f32 1.0, %v8761_v12  ;;  %v13490_v16 = vpop.permute.xlu1 %5885 }
 0x6ba   : > { %v8765_v27 = vpop.eup %8764  ;;  %v5777_v56 = vadd.f32 1.0, %v8763_v35  ;;  %5965 = vperm.xlu1 %8630, %v8757_v33  }
 0x6bb   : > { %v8767_v40 = vpop.eup %8766  ;;  %v5775_v31 = vadd.f32 1.0, %v8765_v27  ;;  %v13492_v25 = vpop.permute.xlu0 %5890  ;;  %v14316_v27 = vld [vmem:[#allocation40_spill] sm:$0xff] }
 0x6bc   : > { %v8769_v48 = vpop.eup %8768  ;;  %8770 = vrcp.f32 %v5777_v56  ;;  %v5778_v0 = vadd.f32 1.0, %v8767_v40  ;;  %5970 = vperm.xlu0 %8631, %v8761_v12  }
 0x6bd   : > { %v5776_v30 = vadd.f32 1.0, %v8769_v48  ;;  %v6120_v21 = vpop.permute.xlu1 %6119  ;;  %v14317_v48 = vld [vmem:[#allocation39_spill] sm:$0xff] }
 0x6be   : > { %8772 = vrcp.f32 %v5778_v0  ;;  %6199 = vperm.xlu1 %8630, %v6061_v2   ;;  %v6237_v33 = vmul.f32 %v6120_v21, %v14314_v57 }
 0x6bf   : > { %8774 = vrcp.f32 %v5775_v31  ;;  %v6125_v8 = vpop.permute.xlu0 %6124  ;;  %v14318_v31 = vld [vmem:[#allocation44_spill] sm:$0xff] }
 0x6c0   : > { %6204 = vperm.xlu0 %8631, %v6062_v49   ;;  %8776 = vrcp.f32 %v5776_v30  ;;  %v6238_v12 = vmul.f32 %v6125_v8, %v14315_v3 }
 0x6c1   : > { %v6110_v41 = vpop.permute.xlu1 %6109 }
 0x6c2   : > { %6189 = vperm.xlu1 %8630, %v6059_v19   ;;  %v6235_v56 = vmul.f32 %v6110_v41, %v14316_v27  ;;  %v14320_v19 = vld [vmem:[#allocation43_spill] sm:$0xff] }
 0x6c3   : > { %v6115_v62 = vpop.permute.xlu0 %6114 }
 0x6c4   : > { %6194 = vperm.xlu0 %8631, %v6060_v22   ;;  %v6236_v15 = vmul.f32 %v6115_v62, %v14317_v48  ;;  %v14321_v22 = vld [vmem:[#allocation12_spill] sm:$0xff]  ;;  %v14325_v62 = vld [vmem:[#allocation46_spill] sm:$0xff] }
 0x6c6   : > { %v8771_v54 = vpop.eup %8770 }
 0x6c7   : > { %5995 = vperm.xlu1 %8630, %v8771_v54   ;;  %v6065_v10 = vsub.f32 1.0, %v8771_v54 }
 0x6c8   : > { %v8773_v6 = vpop.eup %8772 }
 0x6c9   : > { %6000 = vperm.xlu0 %8631, %v8773_v6   ;;  %v8775_v44 = vpop.eup %8774  ;;  %v6066_v36 = vsub.f32 1.0, %v8773_v6 }
 0x6ca   : > { %v8777_v47 = vpop.eup %8776  ;;  %v6063_v28 = vsub.f32 1.0, %v8775_v44 }
 0x6cb   : > { %5985 = vperm.xlu1 %8630, %v8775_v44   ;;  %v6064_v9 = vsub.f32 1.0, %v8777_v47 }
 0x6cd   : > { %5990 = vperm.xlu0 %8631, %v8777_v47  }
 0x6cf   : > { %6209 = vperm.xlu1 %8630, %v6063_v28  }
 0x6d1   : > { %6224 = vperm.xlu0 %8631, %v6066_v36   ;;  %v14322_v36 = vld [vmem:[#allocation45_spill] sm:$0xff] }
 0x6d3   : > { %6219 = vperm.xlu1 %8630, %v6065_v10  }
 0x6d5   : > { %6214 = vperm.xlu0 %8631, %v6064_v9   ;;  %v13505_v11 = vpop.permute.xlu1 %5915  ;;  %v14323_v9 = vld [vmem:[#allocation17_spill] sm:$0xff] }
 0x6d7   : > { %6295 = vrot.lane.b32.xlu1 %v6229_v29, %s8816_s7  ;;  %v13509_v4 = vpop.permute.xlu0 %5920 }
 0x6d9   : > { %6297 = vrot.lane.b32.xlu0 %v6230_v63, %s8816_s7  ;;  %v13515_v37 = vpop.permute.xlu1 %5905  ;;  %v14324_v63 = vld [vmem:[#allocation15_spill] sm:$0xff] }
 0x6db   : > { %6291 = vrot.lane.b32.xlu1 %v6227_v24, %s8816_s7  ;;  %v13519_v5 = vpop.permute.xlu0 %5910 }
 0x6dd   : > { %6293 = vrot.lane.b32.xlu0 %v6228_v14, %s8816_s7  ;;  %v6140_v35 = vpop.permute.xlu1 %6139 }
 0x6de   : > { %v6241_v0 = vmul.f32 %v6140_v35, %v14318_v31 }
 0x6df   : > { %6303 = vrot.lane.b32.xlu1 %v6233_v55, %s8816_s7  ;;  %v6145_v40 = vpop.permute.xlu0 %6144 }
 0x6e0   : > { %v6242_v30 = vmul.f32 %v6145_v40, %v14319_v17  ;;  %v14327_v40 = vld [vmem:[#allocation50_spill] sm:$0xff] }
 0x6e1   : > { %6305 = vrot.lane.b32.xlu0 %v6234_v26, %s8816_s7  ;;  %v6130_v2 = vpop.permute.xlu1 %6129 }
 0x6e2   : > { %v6239_v23 = vmul.f32 %v6130_v2, %v14320_v19  ;;  %v14328_v2 = vld [vmem:[#allocation48_spill] sm:$0xff] }
 0x6e3   : > { %6299 = vrot.lane.b32.xlu1 %v6231_v51, %s8816_s7  ;;  %v6135_v49 = vpop.permute.xlu0 %6134 }
 0x6e4   : > { %v6240_v38 = vmul.f32 %v6135_v49, %v14321_v22 }
 0x6e5   : > { %6301 = vrot.lane.b32.xlu0 %v6232_v60, %s8816_s7 }
 0x6e7   : > { %6311 = vrot.lane.b32.xlu1 %v6237_v33, %s8816_s7 }
 0x6e9   : > { %6313 = vrot.lane.b32.xlu0 %v6238_v12, %s8816_s7  ;;  %v14326_v12 = vld [vmem:[#allocation47_spill] sm:$0xff] }
 0x6eb   : > { %6307 = vrot.lane.b32.xlu1 %v6235_v56, %s8816_s7 }
 0x6ed   : > { %6309 = vrot.lane.b32.xlu0 %v6236_v15, %s8816_s7 }
 0x6ef   : > { %6319 = vrot.lane.b32.xlu1 %v6241_v0, %s8816_s7 }
 0x6f1   : > { %6321 = vrot.lane.b32.xlu0 %v6242_v30, %s8816_s7 }
 0x6f3   : > { %6315 = vrot.lane.b32.xlu1 %v6239_v23, %s8816_s7  ;;  %v14329_v23 = vld [vmem:[#allocation51_spill] sm:$0xff] }
 0x6f5   : > { %6317 = vrot.lane.b32.xlu0 %v6240_v38, %s8816_s7  ;;  %v13538_v54 = vpop.permute.xlu1 %5935 }
 0x6f7   : > { %v13540_v6 = vpop.permute.xlu0 %5940 }
 0x6f9   : > { %v13542_v44 = vpop.permute.xlu1 %5925 }
 0x6fb   : > { %v13544_v47 = vpop.permute.xlu0 %5930 }
 0x6fd   : > { %v6160_v28 = vpop.permute.xlu1 %6159 }
 0x6fe   : > { %v6245_v10 = vmul.f32 %v6160_v28, %v14322_v36 }
 0x6ff   : > { %v6165_v21 = vpop.permute.xlu0 %6164 }
 0x700   : > { %v6246_v8 = vmul.f32 %v6165_v21, %v14323_v9  ;;  %6327 = vrot.lane.b32.xlu1 %v6245_v10, %s8816_s7 }
 0x701   : > { %v6150_v29 = vpop.permute.xlu1 %6149 }
 0x702   : > { %v6243_v41 = vmul.f32 %v6150_v29, %v14324_v63  ;;  %6329 = vrot.lane.b32.xlu0 %v6246_v8, %s8816_s7 }
 0x703   : > { %v6155_v24 = vpop.permute.xlu0 %6154 }
 0x704   : > { %v6244_v14 = vmul.f32 %v6155_v24, %v14325_v62  ;;  %6323 = vrot.lane.b32.xlu1 %v6243_v41, %s8816_s7  ;;  %v14333_v41 = vld [vmem:[#allocation20_spill] sm:$0xff] }
 0x706   : > { %6325 = vrot.lane.b32.xlu0 %v6244_v14, %s8816_s7 }
 0x715   : > { %v13554_v55 = vpop.permute.xlu1 %5955 }
 0x717   : > { %v13556_v26 = vpop.permute.xlu0 %5960 }
 0x719   : > { %v13558_v51 = vpop.permute.xlu1 %5945 }
 0x71b   : > { %v13560_v60 = vpop.permute.xlu0 %5950 }
 0x71d   : > { %v6180_v33 = vpop.permute.xlu1 %6179 }
 0x71e   : > { %v6249_v35 = vmul.f32 %v6180_v33, %v14326_v12  ;;  %v14334_v33 = vld [vmem:[#allocation54_spill] sm:$0xff] }
 0x71f   : > { %v6185_v56 = vpop.permute.xlu0 %6184 }
 0x720   : > { %v6250_v15 = vmul.f32 %v6185_v56, %v14327_v40  ;;  %6335 = vrot.lane.b32.xlu1 %v6249_v35, %s8816_s7 }
 0x721   : > { %v6170_v0 = vpop.permute.xlu1 %6169 }
 0x722   : > { %v6247_v30 = vmul.f32 %v6170_v0, %v14328_v2  ;;  %6337 = vrot.lane.b32.xlu0 %v6250_v15, %s8816_s7  ;;  %v14335_v15 = vld [vmem:[#allocation53_spill] sm:$0xff] }
 0x723   : > { %v6175_v49 = vpop.permute.xlu0 %6174 }
 0x724   : > { %v6248_v38 = vmul.f32 %v6175_v49, %v14329_v23  ;;  %6331 = vrot.lane.b32.xlu1 %v6247_v30, %s8816_s7  ;;  %v14336_v49 = vld [vmem:[#allocation55_spill] sm:$0xff] }
 0x726   : > { %6333 = vrot.lane.b32.xlu0 %v6248_v38, %s8816_s7 }
 0x735   : > { %v13570_v28 = vpop.permute.xlu1 %5975 }
 0x737   : > { %v13572_v10 = vpop.permute.xlu0 %5980 }
 0x738   : > { %14330 = vst [vmem:[#allocation6_spill] sm:$0xff] %v13572_v10 }
 0x739   : > { %v13574_v21 = vpop.permute.xlu1 %5965 }
 0x73a   : > { %14331 = vst [vmem:[#allocation30_spill] sm:$0xff] %v13574_v21 }
 0x73b   : > { %v13576_v8 = vpop.permute.xlu0 %5970 }
 0x73c   : > { %14332 = vst [vmem:[#allocation78_spill] sm:$0xff] %v13576_v8 }
 0x73d   : > { %v6200_v29 = vpop.permute.xlu1 %6199 }
 0x73e   : > { %v6253_v24 = vmul.f32 %v6200_v29, %v14333_v41 }
 0x73f   : > { %v6205_v14 = vpop.permute.xlu0 %6204 }
 0x740   : > { %v6254_v35 = vmul.f32 %v6205_v14, %v14334_v33  ;;  %6343 = vrot.lane.b32.xlu1 %v6253_v24, %s8816_s7 }
 0x741   : > { %v6190_v56 = vpop.permute.xlu1 %6189 }
 0x742   : > { %v6251_v0 = vmul.f32 %v6190_v56, %v14335_v15  ;;  %6345 = vrot.lane.b32.xlu0 %v6254_v35, %s8816_s7  ;;  %v14340_v56 = vld [vmem:[#allocation59_spill] sm:$0xff] }
 0x743   : > { %v6195_v30 = vpop.permute.xlu0 %6194 }
 0x744   : > { %v6252_v38 = vmul.f32 %v6195_v30, %v14336_v49  ;;  %6339 = vrot.lane.b32.xlu1 %v6251_v0, %s8816_s7  ;;  %v14341_v49 = vld [vmem:[#allocation58_spill] sm:$0xff] }
 0x746   : > { %v13585_v8 = vpop.permute.xlu1 %5995  ;;  %6341 = vrot.lane.b32.xlu0 %v6252_v38, %s8816_s7  ;;  %v14342_v38 = vld [vmem:[#allocation61_spill] sm:$0xff] }
 0x747   : > { %14337 = vst [vmem:[#allocation29_spill] sm:$0xff] %v13585_v8  ;;  %v6005_v8 = vmul.f32 %v13454_v1, %v14306_v59  ;;  %v6003_v59 = vmul.f32 %v13458_v39, %v14308_v46  ;;  %v6009_v39 = vmul.f32 %v13478_v32, %v14310_v20 }
 0x748   : > { %v13588_v29 = vpop.permute.xlu0 %6000 }
 0x749   : > { %14338 = vst [vmem:[#allocation4_spill] sm:$0xff] %v13588_v29 }
 0x74a   : > { %v13590_v14 = vpop.permute.xlu1 %5985 }
 0x74c   : > { %v13592_v24 = vpop.permute.xlu0 %5990 }
 0x74d   : > { %14339 = vst [vmem:[#allocation8_spill] sm:$0xff] %v13592_v24 }
 0x74e   : > { %v6210_v21 = vpop.permute.xlu1 %6209 }
 0x74f   : > { %v6255_v15 = vmul.f32 %v6210_v21, %v14340_v56 }
 0x750   : > { %v6225_v35 = vpop.permute.xlu0 %6224 }
 0x751   : > { %6347 = vrot.lane.b32.xlu1 %v6255_v15, %s8816_s7  ;;  %v6006_v15 = vmul.f32 %v13464_v34, %v14307_v43 }
 0x752   : > { %v6220_v30 = vpop.permute.xlu1 %6219 }
 0x753   : > { %v6257_v0 = vmul.f32 %v6220_v30, %v14341_v49 }
 0x754   : > { %v6215_v10 = vpop.permute.xlu0 %6214 }
 0x755   : > { %v6256_v33 = vmul.f32 %v6215_v10, %v14342_v38  ;;  %6351 = vrot.lane.b32.xlu1 %v6257_v0, %s8816_s7  ;;  %v14343_v10 = vld [vmem:[#allocation60_spill] sm:$0xff]  ;;  %v6004_v38 = vmul.f32 %v13466_v58, %v14309_v52 }
 0x756   : > { %v6296_v21 = vpop.permute.xlu1 %6295  ;;  %v6258_v0 = vmul.f32 %v6225_v35, %v14343_v10  ;;  %v6013_v35 = vmul.f32 %v13486_v50, %v14314_v57 }
 0x757   : > { %v6389_v30 = vadd.f32 %v6296_v21, %v6005_v8  ;;  %6349 = vrot.lane.b32.xlu0 %v6256_v33, %s8816_s7  ;;  %v6010_v33 = vmul.f32 %v13480_v7, %v14311_v42  ;;  %v6011_v21 = vmul.f32 %v13490_v16, %v14316_v27 }
 0x758   : > { %v6298_v1 = vpop.permute.xlu0 %6297 }
 0x759   : > { %6421 = vst.msk [vmem:[%s13605_s15 + $0x10] sm:$0xff] %vm5168_vm10, %v6389_v30  ;;  %v6390_v29 = vadd.f32 %v6298_v1, %v6006_v15  ;;  %v6012_v15 = vmul.f32 %v13492_v25, %v14317_v48  ;;  %v6017_v30 = vmul.f32 %v13505_v11, %v14318_v31  ;;  %v6018_v1 = vmul.f32 %v13509_v4, %v14319_v17 }
 0x75a   : > { %v6292_v24 = vpop.permute.xlu1 %6291 }
 0x75b   : > { %6422 = vst.msk [vmem:[%s13605_s15 + $0x18] sm:$0xff] %vm5168_vm10, %v6390_v29  ;;  %v6387_v34 = vadd.f32 %v6292_v24, %v6003_v59  ;;  %6353 = vrot.lane.b32.xlu0 %v6258_v0, %s8816_s7  ;;  %v6007_v29 = vmul.f32 %v13482_v53, %v14312_v61  ;;  %v6008_v24 = vmul.f32 %v13484_v18, %v14313_v13 }
 0x75c   : > { %v6294_v43 = vpop.permute.xlu0 %6293  ;;  %v6015_v59 = vmul.f32 %v13515_v37, %v14320_v19  ;;  %v6016_v0 = vmul.f32 %v13519_v5, %v14321_v22 }
 0x75d   : > { %6419 = vst.msk [vmem:[%s13605_s15] sm:$0xff] %vm5168_vm10, %v6387_v34  ;;  %v6388_v46 = vadd.f32 %v6294_v43, %v6004_v38  ;;  %v6014_v38 = vmul.f32 %v13488_v45, %v14315_v3  ;;  %v6021_v34 = vmul.f32 %v13538_v54, %v14322_v36  ;;  %v6022_v43 = vmul.f32 %v13540_v6, %v14323_v9 }
 0x75e   : > { %v6304_v8 = vpop.permute.xlu1 %6303 }
 0x75f   : > { %6420 = vst.msk [vmem:[%s13605_s15 + $0x8] sm:$0xff] %vm5168_vm10, %v6388_v46  ;;  %v6393_v58 = vadd.f32 %v6304_v8, %v6009_v39  ;;  %v6019_v39 = vmul.f32 %v13542_v44, %v14324_v63  ;;  %v6020_v46 = vmul.f32 %v13544_v47, %v14325_v62  ;;  %v6025_v44 = vmul.f32 %v13554_v55, %v14326_v12 }
 0x760   : > { %v6306_v52 = vpop.permute.xlu0 %6305 }
 0x761   : > { %6425 = vst.msk [vmem:[%s13605_s15 + $0x30] sm:$0xff] %vm5168_vm10, %v6393_v58  ;;  %v6394_v32 = vadd.f32 %v6306_v52, %v6010_v33  ;;  %v6026_v33 = vmul.f32 %v13556_v26, %v14327_v40  ;;  %v6023_v58 = vmul.f32 %v13558_v51, %v14328_v2  ;;  %v6029_v51 = vmul.f32 %v13570_v28, %v14333_v41  ;;  %v14344_v2 = vld [vmem:[#allocation54_spill] sm:$0xff] }
 0x762   : > { %v6300_v20 = vpop.permute.xlu1 %6299 }
 0x763   : > { %6426 = vst.msk [vmem:[%s13605_s15 + $0x38] sm:$0xff] %vm5168_vm10, %v6394_v32  ;;  %v6391_v7 = vadd.f32 %v6300_v20, %v6007_v29  ;;  %v6024_v32 = vmul.f32 %v13560_v60, %v14329_v23  ;;  %v14345_v20 = vld [vmem:[#allocation6_spill] sm:$0xff] }
 0x764   : > { %v6302_v42 = vpop.permute.xlu0 %6301 }
 0x765   : > { %6423 = vst.msk [vmem:[%s13605_s15 + $0x20] sm:$0xff] %vm5168_vm10, %v6391_v7  ;;  %v6392_v53 = vadd.f32 %v6302_v42, %v6008_v24  ;;  %v6030_v24 = vmul.f32 %v14345_v20, %v14344_v2  ;;  %v14346_v7 = vld [vmem:[#allocation53_spill] sm:$0xff]  ;;  %v14347_v42 = vld [vmem:[#allocation30_spill] sm:$0xff] }
 0x766   : > { %v6312_v61 = vpop.permute.xlu1 %6311 }
 0x767   : > { %6424 = vst.msk [vmem:[%s13605_s15 + $0x28] sm:$0xff] %vm5168_vm10, %v6392_v53  ;;  %v6397_v18 = vadd.f32 %v6312_v61, %v6013_v35  ;;  %v6027_v35 = vmul.f32 %v14347_v42, %v14346_v7 }
 0x768   : > { %v6314_v13 = vpop.permute.xlu0 %6313 }
 0x769   : > { %6429 = vst.msk [vmem:[%s13605_s15 + $0x50] sm:$0xff] %vm5168_vm10, %v6397_v18  ;;  %v6398_v50 = vadd.f32 %v6314_v13, %v6014_v38  ;;  %v14348_v38 = vld [vmem:[#allocation55_spill] sm:$0xff]  ;;  %v14349_v18 = vld [vmem:[#allocation78_spill] sm:$0xff] }
 0x76a   : > { %v6308_v57 = vpop.permute.xlu1 %6307  ;;  %v6028_v13 = vmul.f32 %v14349_v18, %v14348_v38 }
 0x76b   : > { %6430 = vst.msk [vmem:[%s13605_s15 + $0x58] sm:$0xff] %vm5168_vm10, %v6398_v50  ;;  %v6395_v45 = vadd.f32 %v6308_v57, %v6011_v21  ;;  %v6031_v50 = vmul.f32 %v13590_v14, %v14340_v56 }
 0x76c   : > { %v6310_v3 = vpop.permute.xlu0 %6309 }
 0x76d   : > { %6427 = vst.msk [vmem:[%s13605_s15 + $0x40] sm:$0xff] %vm5168_vm10, %v6395_v45  ;;  %v6396_v16 = vadd.f32 %v6310_v3, %v6012_v15  ;;  %v14350_v45 = vld [vmem:[#allocation29_spill] sm:$0xff] }
 0x76e   : > { %v6320_v27 = vpop.permute.xlu1 %6319  ;;  %v6033_v3 = vmul.f32 %v14350_v45, %v14341_v49 }
 0x76f   : > { %6428 = vst.msk [vmem:[%s13605_s15 + $0x48] sm:$0xff] %vm5168_vm10, %v6396_v16  ;;  %v6401_v25 = vadd.f32 %v6320_v27, %v6017_v30  ;;  %v14351_v16 = vld [vmem:[#allocation61_spill] sm:$0xff]  ;;  %v14352_v27 = vld [vmem:[#allocation8_spill] sm:$0xff] }
 0x770   : > { %v6322_v48 = vpop.permute.xlu0 %6321 }
 0x771   : > { %6433 = vst.msk [vmem:[%s13605_s15 + $0x70] sm:$0xff] %vm5168_vm10, %v6401_v25  ;;  %v6402_v11 = vadd.f32 %v6322_v48, %v6018_v1  ;;  %v6032_v1 = vmul.f32 %v14352_v27, %v14351_v16 }
 0x772   : > { %v6316_v31 = vpop.permute.xlu1 %6315 }
 0x773   : > { %6434 = vst.msk [vmem:[%s13605_s15 + $0x78] sm:$0xff] %vm5168_vm10, %v6402_v11  ;;  %v6399_v4 = vadd.f32 %v6316_v31, %v6015_v59  ;;  %v14353_v11 = vld [vmem:[#allocation4_spill] sm:$0xff] }
 0x774   : > { %v6318_v17 = vpop.permute.xlu0 %6317  ;;  %v6034_v31 = vmul.f32 %v14353_v11, %v14343_v10 }
 0x775   : > { %6431 = vst.msk [vmem:[%s13605_s15 + $0x60] sm:$0xff] %vm5168_vm10, %v6399_v4  ;;  %v6400_v37 = vadd.f32 %v6318_v17, %v6016_v0 }
 0x776   : > { %v6328_v19 = vpop.permute.xlu1 %6327 }
 0x777   : > { %6432 = vst.msk [vmem:[%s13605_s15 + $0x68] sm:$0xff] %vm5168_vm10, %v6400_v37  ;;  %v6405_v5 = vadd.f32 %v6328_v19, %v6021_v34 }
 0x778   : > { %v6330_v22 = vpop.permute.xlu0 %6329 }
 0x779   : > { %6437 = vst.msk [vmem:[%s13605_s15 + $0x90] sm:$0xff] %vm5168_vm10, %v6405_v5  ;;  %v6406_v54 = vadd.f32 %v6330_v22, %v6022_v43 }
 0x77a   : > { %v6324_v36 = vpop.permute.xlu1 %6323 }
 0x77b   : > { %6438 = vst.msk [vmem:[%s13605_s15 + $0x98] sm:$0xff] %vm5168_vm10, %v6406_v54  ;;  %v6403_v8 = vadd.f32 %v6324_v36, %v6019_v39 }
 0x77c   : > { %v6326_v6 = vpop.permute.xlu0 %6325 }
 0x77d   : > { %6435 = vst.msk [vmem:[%s13605_s15 + $0x80] sm:$0xff] %vm5168_vm10, %v6403_v8  ;;  %v6404_v9 = vadd.f32 %v6326_v6, %v6020_v46 }
 0x77f   : > { %6436 = vst.msk [vmem:[%s13605_s15 + $0x88] sm:$0xff] %vm5168_vm10, %v6404_v9 }
 0x792   : > { %v6336_v63 = vpop.permute.xlu1 %6335 }
 0x793   : > { %v6409_v47 = vadd.f32 %v6336_v63, %v6025_v44 }
 0x794   : > { %v6338_v62 = vpop.permute.xlu0 %6337 }
 0x795   : > { %6441 = vst.msk [vmem:[%s13605_s15 + $0xb0] sm:$0xff] %vm5168_vm10, %v6409_v47  ;;  %v6410_v52 = vadd.f32 %v6338_v62, %v6026_v33 }
 0x796   : > { %v6332_v29 = vpop.permute.xlu1 %6331 }
 0x797   : > { %6442 = vst.msk [vmem:[%s13605_s15 + $0xb8] sm:$0xff] %vm5168_vm10, %v6410_v52  ;;  %v6407_v55 = vadd.f32 %v6332_v29, %v6023_v58 }
 0x798   : > { %v6334_v12 = vpop.permute.xlu0 %6333 }
 0x799   : > { %6439 = vst.msk [vmem:[%s13605_s15 + $0xa0] sm:$0xff] %vm5168_vm10, %v6407_v55  ;;  %v6408_v26 = vadd.f32 %v6334_v12, %v6024_v32 }
 0x79b   : > { %6440 = vst.msk [vmem:[%s13605_s15 + $0xa8] sm:$0xff] %vm5168_vm10, %v6408_v26 }
 0x7b2   : > { %v6344_v40 = vpop.permute.xlu1 %6343 }
 0x7b3   : > { %v6413_v60 = vadd.f32 %v6344_v40, %v6029_v51 }
 0x7b4   : > { %v6346_v23 = vpop.permute.xlu0 %6345 }
 0x7b5   : > { %6445 = vst.msk [vmem:[%s13605_s15 + $0xd0] sm:$0xff] %vm5168_vm10, %v6413_v60  ;;  %v6414_v53 = vadd.f32 %v6346_v23, %v6030_v24 }
 0x7b6   : > { %v6340_v61 = vpop.permute.xlu1 %6339 }
 0x7b7   : > { %6446 = vst.msk [vmem:[%s13605_s15 + $0xd8] sm:$0xff] %vm5168_vm10, %v6414_v53  ;;  %v6411_v28 = vadd.f32 %v6340_v61, %v6027_v35 }
 0x7b8   : > { %v6342_v41 = vpop.permute.xlu0 %6341 }
 0x7b9   : > { %6443 = vst.msk [vmem:[%s13605_s15 + $0xc0] sm:$0xff] %vm5168_vm10, %v6411_v28  ;;  %v6412_v21 = vadd.f32 %v6342_v41, %v6028_v13 }
 0x7bb   : > { %6444 = vst.msk [vmem:[%s13605_s15 + $0xc8] sm:$0xff] %vm5168_vm10, %v6412_v21 }
 0x7c3   : > { %v6348_v57 = vpop.permute.xlu1 %6347 }
 0x7c4   : > { %v6415_v15 = vadd.f32 %v6348_v57, %v6031_v50 }
 0x7c6   : > { %6447 = vst.msk [vmem:[%s13605_s15 + $0xe0] sm:$0xff] %vm5168_vm10, %v6415_v15 }
 0x7c7   : > { %v6352_v30 = vpop.permute.xlu1 %6351 }
 0x7c8   : > { %v6417_v25 = vadd.f32 %v6352_v30, %v6033_v3 }
 0x7c9   : > { %v6350_v48 = vpop.permute.xlu0 %6349 }
 0x7ca   : > { %6449 = vst.msk [vmem:[%s13605_s15 + $0xf0] sm:$0xff] %vm5168_vm10, %v6417_v25  ;;  %v6416_v59 = vadd.f32 %v6350_v48, %v6032_v1 }
 0x7cc   : > { %6448 = vst.msk [vmem:[%s13605_s15 + $0xe8] sm:$0xff] %vm5168_vm10, %v6416_v59 }
 0x7cd   : > { %v6354_v14 = vpop.permute.xlu0 %6353 }
 0x7ce   : > { %v6418_v56 = vadd.f32 %v6354_v14, %v6034_v31 }
 0x7d0   : > { %6450 = vst.msk [vmem:[%s13605_s15 + $0xf8] sm:$0xff] %vm5168_vm10, %v6418_v56 }
 0x7d1 PF: > { %s16_s21 = sadd.s32 1, %s8793_s21  }
 0x7d2   : > { %p13_p4 = scmp.ge.s32.totalorder %s16_s21, 4  }
 0x7d4   :  { %15 = sbr.rel (!%p13_p4) target bundleno = 1 (0x1), region = 78 }

</bundles_post_ra>
